<compile_context>
chip_gen: v7x
topology: tpu7x:2x2x1
jax: 0.10.0
libtpu: 0.0.40
codegen_flags: <defaults>
</compile_context>

<pallas_src>
import jax
import jax.numpy as jnp
from jax.experimental import pallas as pl
from jax.experimental.pallas import tpu as pltpu

LATENT_DIM = 2
IN_DIM = 64 * 64     # 4096
HID_DIM = 400        # logical hidden width (matches PyTorch)
HID_PAD = 512        # zero-padded to a multiple of 128 lanes
TN = 2048            # decoder output-column tile -> grid of 4096 / 2048 = 2


def _vae_fused_kernel(x_ref, w1_ref, b1_ref, w2_ref, b2_ref, w3_ref, b3_ref, eps_ref,
                      w4_ref, b4_ref,
                      recon_ref, mu_ref, logvar_ref,
                      h3_ref):
    j = pl.program_id(0)

    # ---- encoder + reparameterize + fc3 prologue: runs once, h3 kept in VMEM scratch ----
    @pl.when(j == 0)
    def _():
        # fc1: h1 = relu(x @ W1 + b1)   -- bf16 operands, f32 accumulation
        x = x_ref[...].astype(jnp.bfloat16)                                    # (B, 4096)
        h1 = jnp.dot(x, w1_ref[...], preferred_element_type=jnp.float32) + b1_ref[...]
        h1 = jnp.maximum(h1, 0.0)                                              # (B, 512)

        # fused fc21 / fc22: one (512, 4) matmul, then slice mu / logvar
        ml = jnp.dot(h1, w2_ref[...], preferred_element_type=jnp.float32) + b2_ref[...]
        mu = ml[:, :LATENT_DIM]                                                # (B, 2)
        logvar = ml[:, LATENT_DIM:]                                            # (B, 2)

        # reparameterize: z = mu + eps * exp(0.5 * logvar)
        z = mu + eps_ref[...] * jnp.exp(0.5 * logvar)                          # (B, 2)

        # fc3: h3 = relu(z @ W3 + b3), stored as bf16 (decoder consumes it as bf16 anyway)
        h3 = jnp.dot(z, w3_ref[...], preferred_element_type=jnp.float32) + b3_ref[...]
        h3_ref[...] = jnp.maximum(h3, 0.0).astype(jnp.bfloat16)                # (B, 512)

        mu_ref[...] = mu
        logvar_ref[...] = logvar

    # ---- decoder column tile: recon[:, j*TN:(j+1)*TN] = sigmoid(h3 @ W4[:, tile] + b4[tile]) ----
    logits = jnp.dot(h3_ref[...], w4_ref[...],
                     preferred_element_type=jnp.float32) + b4_ref[...]
    recon_ref[...] = jax.nn.sigmoid(logits)                                    # (B, TN)


@jax.jit
def vae_forward(x, params, eps):
    """x: (B, 1, 64, 64) float32.  Returns (recon (B, 4096), mu (B, 2), logvar (B, 2))."""
    B = x.shape[0]
    x2d = x.reshape(B, IN_DIM).astype(jnp.float32)

    recon, mu, logvar = pl.pallas_call(
        _vae_fused_kernel,
        out_shape=(
            jax.ShapeDtypeStruct((B, IN_DIM), jnp.float32),
            jax.ShapeDtypeStruct((B, LATENT_DIM), jnp.float32),
            jax.ShapeDtypeStruct((B, LATENT_DIM), jnp.float32),
        ),
        grid_spec=pltpu.PrefetchScalarGridSpec(
            num_scalar_prefetch=0,
            grid=(IN_DIM // TN,),
            in_specs=[
                pl.BlockSpec((B, IN_DIM), lambda j: (0, 0)),          # x       (resident)
                pl.BlockSpec((IN_DIM, HID_PAD), lambda j: (0, 0)),    # W1 bf16 (resident)
                pl.BlockSpec((1, HID_PAD), lambda j: (0, 0)),         # b1
                pl.BlockSpec((HID_PAD, 2 * LATENT_DIM), lambda j: (0, 0)),  # W2 fused
                pl.BlockSpec((1, 2 * LATENT_DIM), lambda j: (0, 0)),  # b2
                pl.BlockSpec((LATENT_DIM, HID_PAD), lambda j: (0, 0)),  # W3
                pl.BlockSpec((1, HID_PAD), lambda j: (0, 0)),         # b3
                pl.BlockSpec((B, LATENT_DIM), lambda j: (0, 0)),      # eps
                pl.BlockSpec((HID_PAD, TN), lambda j: (0, j)),        # W4 column tile (bf16)
                pl.BlockSpec((1, TN), lambda j: (0, j)),              # b4 tile
            ],
            out_specs=(
                pl.BlockSpec((B, TN), lambda j: (0, j)),              # recon tile
                pl.BlockSpec((B, LATENT_DIM), lambda j: (0, 0)),      # mu      (written @ j==0)
                pl.BlockSpec((B, LATENT_DIM), lambda j: (0, 0)),      # logvar  (written @ j==0)
            ),
            scratch_shapes=[pltpu.VMEM((B, HID_PAD), jnp.bfloat16)],  # h3, persists across steps
        ),
        compiler_params=pltpu.CompilerParams(
            dimension_semantics=("arbitrary",),   # step 1 consumes scratch written at step 0
            vmem_limit_bytes=32 << 20,
        ),
    )(x2d, params["w1"], params["b1"], params["w2"], params["b2"],
      params["w3"], params["b3"], eps, params["w4"], params["b4"])

    return recon, mu, logvar


def init_params(key):
    """Deterministic init mimicking nn.Linear's U(-1/sqrt(fan_in), 1/sqrt(fan_in)),
    then zero-pad hidden 400 -> 512, fuse fc21/fc22, and compress big weights to bf16."""
    def linear(k, fan_in, fan_out):
        kw, kb = jax.random.split(k)
        bound = 1.0 / jnp.sqrt(float(fan_in))
        w = jax.random.uniform(kw, (fan_in, fan_out), jnp.float32, -bound, bound)
        b = jax.random.uniform(kb, (1, fan_out), jnp.float32, -bound, bound)
        return w, b

    k1, k21, k22, k3, k4 = jax.random.split(key, 5)
    w1, b1 = linear(k1, IN_DIM, HID_DIM)            # (4096, 400), (1, 400)
    w21, b21 = linear(k21, HID_DIM, LATENT_DIM)     # (400, 2)
    w22, b22 = linear(k22, HID_DIM, LATENT_DIM)     # (400, 2)
    w3, b3 = linear(k3, LATENT_DIM, HID_DIM)        # (2, 400)
    w4, b4 = linear(k4, HID_DIM, IN_DIM)            # (400, 4096)

    pad = HID_PAD - HID_DIM
    # Zero-padding keeps the math identical: padded hidden units are relu(0 + 0) = 0 and
    # their corresponding rows in the downstream weights are zero.
    w1p = jnp.pad(w1, ((0, 0), (0, pad)))
    b1p = jnp.pad(b1, ((0, 0), (0, pad)))
    w2 = jnp.pad(jnp.concatenate([w21, w22], axis=1), ((0, pad), (0, 0)))   # (512, 4)
    b2 = jnp.concatenate([b21, b22], axis=1)                                # (1, 4)
    w3p = jnp.pad(w3, ((0, 0), (0, pad)))
    b3p = jnp.pad(b3, ((0, 0), (0, pad)))
    w4p = jnp.pad(w4, ((0, pad), (0, 0)))

    return dict(
        w1=w1p.astype(jnp.bfloat16), b1=b1p,        # large weights shipped as bf16
        w2=w2, b2=b2,
        w3=w3p, b3=b3p,
        w4=w4p.astype(jnp.bfloat16), b4=b4,
    )


def vae_reference(x, params, eps):
    """Pure-JAX f32 reference using the same (padded / fused) parameters."""
    x2d = x.reshape(x.shape[0], IN_DIM).astype(jnp.float32)
    w1 = params["w1"].astype(jnp.float32)
    w4 = params["w4"].astype(jnp.float32)
    h1 = jnp.maximum(x2d @ w1 + params["b1"], 0.0)
    ml = h1 @ params["w2"] + params["b2"]
    mu, logvar = ml[:, :LATENT_DIM], ml[:, LATENT_DIM:]
    z = mu + eps * jnp.exp(0.5 * logvar)
    h3 = jnp.maximum(z @ params["w3"] + params["b3"], 0.0)
    recon = jax.nn.sigmoid(h3 @ w4 + params["b4"])
    return recon, mu, logvar


if __name__ == "__main__":
    key = jax.random.PRNGKey(0)
    k_params, k_x, k_eps = jax.random.split(key, 3)

    B = 2
    params = init_params(k_params)
    x = jax.random.uniform(k_x, (B, 1, 64, 64), jnp.float32)          # NCHW input
    # eps for reparameterize (torch.randn_like) drawn deterministically in JAX and passed in.
    eps = jax.random.normal(k_eps, (B, LATENT_DIM), jnp.float32)

    recon, mu, logvar = vae_forward(x, params, eps)
    jax.block_until_ready((recon, mu, logvar))

    assert recon.shape == (B, IN_DIM)
    assert mu.shape == (B, LATENT_DIM)
    assert logvar.shape == (B, LATENT_DIM)
    assert bool(jnp.all(jnp.isfinite(recon)))
    assert bool(jnp.all((recon >= 0.0) & (recon <= 1.0)))

    # Numerical check vs. f32 reference (generous tolerance: bf16 weight/activation compression).
    recon_ref, mu_ref, logvar_ref = vae_reference(x, params, eps)
    assert bool(jnp.max(jnp.abs(recon - recon_ref)) < 2e-2)
    assert bool(jnp.max(jnp.abs(mu - mu_ref)) < 2e-2)
    assert bool(jnp.max(jnp.abs(logvar - logvar_ref)) < 2e-2)

    print("KERNEL_OK")
</pallas_src>

<mosaic_0001>
module attributes {stable_mosaic.version = 11 : i64} {
  func.func @_vae_fused_kernel(%arg0: i32, %arg1: memref<2x4096xf32, #tpu.memory_space<vmem>>, %arg2: memref<4096x512xbf16, #tpu.memory_space<vmem>>, %arg3: memref<1x512xf32, #tpu.memory_space<vmem>>, %arg4: memref<512x4xf32, #tpu.memory_space<vmem>>, %arg5: memref<1x4xf32, #tpu.memory_space<vmem>>, %arg6: memref<2x512xf32, #tpu.memory_space<vmem>>, %arg7: memref<1x512xf32, #tpu.memory_space<vmem>>, %arg8: memref<2x2xf32, #tpu.memory_space<vmem>>, %arg9: memref<512x2048xbf16, #tpu.memory_space<vmem>>, %arg10: memref<1x2048xf32, #tpu.memory_space<vmem>>, %arg11: memref<2x2048xf32, #tpu.memory_space<vmem>>, %arg12: memref<2x2xf32, #tpu.memory_space<vmem>>, %arg13: memref<2x2xf32, #tpu.memory_space<vmem>>, %arg14: memref<2x512xbf16, #tpu.memory_space<vmem>>) attributes {dimension_semantics = [#tpu.dimension_semantics<arbitrary>], iteration_bounds = array<i64: 2>, scalar_prefetch = 0 : i64, scratch_operands = 1 : i64, tpu.core_type = #tpu.core_type<tc>, window_params = [{pipeline_mode = #tpu.pipeline_mode<synchronous>, transform_indices = @transform_0, window_bounds = array<i64: 2, 4096>}, {pipeline_mode = #tpu.pipeline_mode<synchronous>, transform_indices = @transform_1, window_bounds = array<i64: 4096, 512>}, {pipeline_mode = #tpu.pipeline_mode<synchronous>, transform_indices = @transform_2, window_bounds = array<i64: 1, 512>}, {pipeline_mode = #tpu.pipeline_mode<synchronous>, transform_indices = @transform_3, window_bounds = array<i64: 512, 4>}, {pipeline_mode = #tpu.pipeline_mode<synchronous>, transform_indices = @transform_4, window_bounds = array<i64: 1, 4>}, {pipeline_mode = #tpu.pipeline_mode<synchronous>, transform_indices = @transform_5, window_bounds = array<i64: 2, 512>}, {pipeline_mode = #tpu.pipeline_mode<synchronous>, transform_indices = @transform_6, window_bounds = array<i64: 1, 512>}, {pipeline_mode = #tpu.pipeline_mode<synchronous>, transform_indices = @transform_7, window_bounds = array<i64: 2, 2>}, {transform_indices = @transform_8, window_bounds = array<i64: 512, 2048>}, {transform_indices = @transform_9, window_bounds = array<i64: 1, 2048>}, {transform_indices = @transform_10, window_bounds = array<i64: 2, 2048>}, {pipeline_mode = #tpu.pipeline_mode<synchronous>, transform_indices = @transform_11, window_bounds = array<i64: 2, 2>}, {pipeline_mode = #tpu.pipeline_mode<synchronous>, transform_indices = @transform_12, window_bounds = array<i64: 2, 2>}]} {
    %c0_i32 = arith.constant 0 : i32
    %0 = arith.cmpi eq, %arg0, %c0_i32 : i32
    %1 = arith.extui %0 : i1 to i32
    %c0_i32_0 = arith.constant 0 : i32
    %2 = arith.cmpi ne, %1, %c0_i32_0 : i32
    scf.if %2 {
      %c0_9 = arith.constant 0 : index
      %c0_10 = arith.constant 0 : index
      %15 = vector.load %arg1[%c0_9, %c0_10] : memref<2x4096xf32, #tpu.memory_space<vmem>>, vector<2x4096xf32>
      %16 = arith.truncf %15 : vector<2x4096xf32> to vector<2x4096xbf16>
      %c0_11 = arith.constant 0 : index
      %c0_12 = arith.constant 0 : index
      %17 = vector.load %arg2[%c0_11, %c0_12] : memref<4096x512xbf16, #tpu.memory_space<vmem>>, vector<4096x512xbf16>
      %cst_13 = arith.constant dense<0.000000e+00> : vector<2x512xf32>
      %18 = tpu.matmul %16, %17, %cst_13 {dimension_numbers = #tpu.dot_dimension_numbers<[1], [0], [0], [1], [0, 0, 1, 1], [], []>} : vector<2x4096xbf16>, vector<4096x512xbf16>, vector<2x512xf32> -> vector<2x512xf32>
      %c0_14 = arith.constant 0 : index
      %c0_15 = arith.constant 0 : index
      %19 = vector.load %arg3[%c0_14, %c0_15] : memref<1x512xf32, #tpu.memory_space<vmem>>, vector<1x512xf32>
      %20 = vector.broadcast %19 : vector<1x512xf32> to vector<2x512xf32>
      %21 = arith.addf %18, %20 : vector<2x512xf32>
      %cst_16 = arith.constant 0.000000e+00 : f32
      %22 = vector.broadcast %cst_16 : f32 to vector<2x512xf32>
      %23 = arith.maximumf %21, %22 : vector<2x512xf32>
      %c0_17 = arith.constant 0 : index
      %c0_18 = arith.constant 0 : index
      %24 = vector.load %arg4[%c0_17, %c0_18] : memref<512x4xf32, #tpu.memory_space<vmem>>, vector<512x4xf32>
      %cst_19 = arith.constant dense<0.000000e+00> : vector<2x4xf32>
      %25 = tpu.matmul %23, %24, %cst_19 {dimension_numbers = #tpu.dot_dimension_numbers<[1], [0], [0], [1], [0, 0, 1, 1], [], []>} : vector<2x512xf32>, vector<512x4xf32>, vector<2x4xf32> -> vector<2x4xf32>
      %c0_20 = arith.constant 0 : index
      %c0_21 = arith.constant 0 : index
      %26 = vector.load %arg5[%c0_20, %c0_21] : memref<1x4xf32, #tpu.memory_space<vmem>>, vector<1x4xf32>
      %27 = vector.broadcast %26 : vector<1x4xf32> to vector<2x4xf32>
      %28 = arith.addf %25, %27 : vector<2x4xf32>
      %29 = vector.extract_strided_slice %28 {offsets = [0, 0], sizes = [2, 2], strides = [1, 1]} : vector<2x4xf32> to vector<2x2xf32>
      %30 = vector.extract_strided_slice %28 {offsets = [0, 2], sizes = [2, 2], strides = [1, 1]} : vector<2x4xf32> to vector<2x2xf32>
      %c0_22 = arith.constant 0 : index
      %c0_23 = arith.constant 0 : index
      %31 = vector.load %arg8[%c0_22, %c0_23] : memref<2x2xf32, #tpu.memory_space<vmem>>, vector<2x2xf32>
      %cst_24 = arith.constant 5.000000e-01 : f32
      %32 = vector.broadcast %cst_24 : f32 to vector<2x2xf32>
      %33 = arith.mulf %32, %30 : vector<2x2xf32>
      %34 = math.exp %33 : vector<2x2xf32>
      %35 = arith.mulf %31, %34 : vector<2x2xf32>
      %36 = arith.addf %29, %35 : vector<2x2xf32>
      %c0_25 = arith.constant 0 : index
      %c0_26 = arith.constant 0 : index
      %37 = vector.load %arg6[%c0_25, %c0_26] : memref<2x512xf32, #tpu.memory_space<vmem>>, vector<2x512xf32>
      %cst_27 = arith.constant dense<0.000000e+00> : vector<2x512xf32>
      %38 = tpu.matmul %36, %37, %cst_27 {dimension_numbers = #tpu.dot_dimension_numbers<[1], [0], [0], [1], [0, 0, 1, 1], [], []>} : vector<2x2xf32>, vector<2x512xf32>, vector<2x512xf32> -> vector<2x512xf32>
      %c0_28 = arith.constant 0 : index
      %c0_29 = arith.constant 0 : index
      %39 = vector.load %arg7[%c0_28, %c0_29] : memref<1x512xf32, #tpu.memory_space<vmem>>, vector<1x512xf32>
      %40 = vector.broadcast %39 : vector<1x512xf32> to vector<2x512xf32>
      %41 = arith.addf %38, %40 : vector<2x512xf32>
      %cst_30 = arith.constant 0.000000e+00 : f32
      %42 = vector.broadcast %cst_30 : f32 to vector<2x512xf32>
      %43 = arith.maximumf %41, %42 : vector<2x512xf32>
      %44 = arith.truncf %43 : vector<2x512xf32> to vector<2x512xbf16>
      %c0_31 = arith.constant 0 : index
      %c0_32 = arith.constant 0 : index
      %45 = vector.load %arg14[%c0_31, %c0_32] : memref<2x512xbf16, #tpu.memory_space<vmem>>, vector<2x512xbf16>
      tpu.vector_store %arg14[%c0_31, %c0_32], %44 {strides = array<i32>} : memref<2x512xbf16, #tpu.memory_space<vmem>>, vector<2x512xbf16>,
      %c0_33 = arith.constant 0 : index
      %c0_34 = arith.constant 0 : index
      %46 = vector.load %arg12[%c0_33, %c0_34] : memref<2x2xf32, #tpu.memory_space<vmem>>, vector<2x2xf32>
      tpu.vector_store %arg12[%c0_33, %c0_34], %29 {strides = array<i32>} : memref<2x2xf32, #tpu.memory_space<vmem>>, vector<2x2xf32>,
      %c0_35 = arith.constant 0 : index
      %c0_36 = arith.constant 0 : index
      %47 = vector.load %arg13[%c0_35, %c0_36] : memref<2x2xf32, #tpu.memory_space<vmem>>, vector<2x2xf32>
      tpu.vector_store %arg13[%c0_35, %c0_36], %30 {strides = array<i32>} : memref<2x2xf32, #tpu.memory_space<vmem>>, vector<2x2xf32>,
    } else {
    }
    %c0 = arith.constant 0 : index
    %c0_1 = arith.constant 0 : index
    %3 = vector.load %arg14[%c0, %c0_1] : memref<2x512xbf16, #tpu.memory_space<vmem>>, vector<2x512xbf16>
    %c0_2 = arith.constant 0 : index
    %c0_3 = arith.constant 0 : index
    %4 = vector.load %arg9[%c0_2, %c0_3] : memref<512x2048xbf16, #tpu.memory_space<vmem>>, vector<512x2048xbf16>
    %cst = arith.constant dense<0.000000e+00> : vector<2x2048xf32>
    %5 = tpu.matmul %3, %4, %cst {dimension_numbers = #tpu.dot_dimension_numbers<[1], [0], [0], [1], [0, 0, 1, 1], [], []>} : vector<2x512xbf16>, vector<512x2048xbf16>, vector<2x2048xf32> -> vector<2x2048xf32>
    %c0_4 = arith.constant 0 : index
    %c0_5 = arith.constant 0 : index
    %6 = vector.load %arg10[%c0_4, %c0_5] : memref<1x2048xf32, #tpu.memory_space<vmem>>, vector<1x2048xf32>
    %7 = vector.broadcast %6 : vector<1x2048xf32> to vector<2x2048xf32>
    %8 = arith.addf %5, %7 : vector<2x2048xf32>
    %9 = arith.negf %8 : vector<2x2048xf32>
    %10 = math.exp %9 : vector<2x2048xf32>
    %cst_6 = arith.constant 1.000000e+00 : f32
    %11 = vector.broadcast %cst_6 : f32 to vector<2x2048xf32>
    %12 = arith.addf %11, %10 : vector<2x2048xf32>
    %13 = arith.divf %11, %12 : vector<2x2048xf32>
    %c0_7 = arith.constant 0 : index
    %c0_8 = arith.constant 0 : index
    %14 = vector.load %arg11[%c0_7, %c0_8] : memref<2x2048xf32, #tpu.memory_space<vmem>>, vector<2x2048xf32>
    tpu.vector_store %arg11[%c0_7, %c0_8], %13 {strides = array<i32>} : memref<2x2048xf32, #tpu.memory_space<vmem>>, vector<2x2048xf32>,
    return
  }
  func.func @transform_0(%arg0: i32) -> (i32, i32) {
    %c0_i32 = arith.constant 0 : i32
    %c0_i32_0 = arith.constant 0 : i32
    %c0_i32_1 = arith.constant 0 : i32
    return %c0_i32, %c0_i32_0 : i32, i32
  }
  func.func @transform_1(%arg0: i32) -> (i32, i32) {
    %c0_i32 = arith.constant 0 : i32
    %c0_i32_0 = arith.constant 0 : i32
    %c0_i32_1 = arith.constant 0 : i32
    return %c0_i32, %c0_i32_0 : i32, i32
  }
  func.func @transform_2(%arg0: i32) -> (i32, i32) {
    %c0_i32 = arith.constant 0 : i32
    %c0_i32_0 = arith.constant 0 : i32
    %c0_i32_1 = arith.constant 0 : i32
    return %c0_i32, %c0_i32_0 : i32, i32
  }
  func.func @transform_3(%arg0: i32) -> (i32, i32) {
    %c0_i32 = arith.constant 0 : i32
    %c0_i32_0 = arith.constant 0 : i32
    %c0_i32_1 = arith.constant 0 : i32
    return %c0_i32, %c0_i32_0 : i32, i32
  }
  func.func @transform_4(%arg0: i32) -> (i32, i32) {
    %c0_i32 = arith.constant 0 : i32
    %c0_i32_0 = arith.constant 0 : i32
    %c0_i32_1 = arith.constant 0 : i32
    return %c0_i32, %c0_i32_0 : i32, i32
  }
  func.func @transform_5(%arg0: i32) -> (i32, i32) {
    %c0_i32 = arith.constant 0 : i32
    %c0_i32_0 = arith.constant 0 : i32
    %c0_i32_1 = arith.constant 0 : i32
    return %c0_i32, %c0_i32_0 : i32, i32
  }
  func.func @transform_6(%arg0: i32) -> (i32, i32) {
    %c0_i32 = arith.constant 0 : i32
    %c0_i32_0 = arith.constant 0 : i32
    %c0_i32_1 = arith.constant 0 : i32
    return %c0_i32, %c0_i32_0 : i32, i32
  }
  func.func @transform_7(%arg0: i32) -> (i32, i32) {
    %c0_i32 = arith.constant 0 : i32
    %c0_i32_0 = arith.constant 0 : i32
    %c0_i32_1 = arith.constant 0 : i32
    return %c0_i32, %c0_i32_0 : i32, i32
  }
  func.func @transform_8(%arg0: i32) -> (i32, i32) {
    %c0_i32 = arith.constant 0 : i32
    %c0_i32_0 = arith.constant 0 : i32
    return %c0_i32, %arg0 : i32, i32
  }
  func.func @transform_9(%arg0: i32) -> (i32, i32) {
    %c0_i32 = arith.constant 0 : i32
    %c0_i32_0 = arith.constant 0 : i32
    return %c0_i32, %arg0 : i32, i32
  }
  func.func @transform_10(%arg0: i32) -> (i32, i32) {
    %c0_i32 = arith.constant 0 : i32
    %c0_i32_0 = arith.constant 0 : i32
    return %c0_i32, %arg0 : i32, i32
  }
  func.func @transform_11(%arg0: i32) -> (i32, i32) {
    %c0_i32 = arith.constant 0 : i32
    %c0_i32_0 = arith.constant 0 : i32
    %c0_i32_1 = arith.constant 0 : i32
    return %c0_i32, %c0_i32_0 : i32, i32
  }
  func.func @transform_12(%arg0: i32) -> (i32, i32) {
    %c0_i32 = arith.constant 0 : i32
    %c0_i32_0 = arith.constant 0 : i32
    %c0_i32_1 = arith.constant 0 : i32
    return %c0_i32, %c0_i32_0 : i32, i32
  }
}

</mosaic_0001>

<bundles_post_ra>
// kernel: vae_forward.1
= control target key start
LH: loop header
LB: loop body
LE: loop exit
PB: predicated region body
PF: predicated region fallthrough
CT: control target
= control target key end

     0   :  { %s18495_s0 = inlined_call_operand.vmem [shape: f32[2,4096], index: 0, kind: input, shape index: {}]   ;;  %s18496_s1 = inlined_call_operand.hbm [shape: bf16[4096,512], index: 1, kind: input, shape index: {}]   ;;  %s18497_s2 = inlined_call_operand.hbm [shape: f32[1,512], index: 2, kind: input, shape index: {}]   ;;  %s18498_s3 = inlined_call_operand.vmem [shape: f32[512,4], index: 3, kind: input, shape index: {}]   ;;  %s18499_s4 = inlined_call_operand.hbm [shape: f32[1,4], index: 4, kind: input, shape index: {}]   ;;  %s18500_s5 = inlined_call_operand.hbm [shape: f32[2,512], index: 5, kind: input, shape index: {}]   ;;  %s18501_s6 = inlined_call_operand.hbm [shape: f32[1,512], index: 6, kind: input, shape index: {}]   ;;  %s18502_s7 = inlined_call_operand.hbm [shape: f32[2,2], index: 7, kind: input, shape index: {}]   ;;  %s18503_s8 = inlined_call_operand.hbm [shape: bf16[512,4096], index: 8, kind: input, shape index: {}]   ;;  %s18504_s9 = inlined_call_operand.hbm [shape: f32[1,4096], index: 9, kind: input, shape index: {}]   ;;  %s18505_s10 = inlined_call_operand.hbm [shape: f32[2,4096], index: 10, kind: output, shape index: {0}]   ;;  %s18506_s11 = inlined_call_operand.hbm [shape: f32[2,2], index: 11, kind: output, shape index: {1}]   ;;  %s18507_s12 = inlined_call_operand.hbm [shape: f32[2,2], index: 12, kind: output, shape index: {2}]  }
   0x1   :  { %18527 = sst [smem:[#allocation31_spill]] %s18496_s1 }
   0x2   :  { %18528 = sst [smem:[#allocation32_spill]] %s18497_s2 }
   0x3   :  { %18529 = sst [smem:[#allocation33_spill]] %s18498_s3 }
   0x4   :  { %18530 = sst [smem:[#allocation34_spill]] %s18500_s5 }
   0x5   :  { %18531 = sst [smem:[#allocation35_spill]] %s18503_s8 }
   0x6   :  { %18532 = sst [smem:[#allocation36_spill]] %s18505_s10 }
   0x7   :  { %18533 = sst [smem:[#allocation37_spill]] %s18506_s11 }
   0x8   :  { %18534 = sst [smem:[#allocation38_spill]] %s18507_s12 }
   0x9   :  { %18 = vsyncpa [#allocation4], 0 }
   0xa   :  { %19 = vsyncpa [#allocation7], 0 }
   0xb   :  { %20 = vsyncpa [#allocation10], 0 }
   0xc   :  { %21 = vsyncpa [#allocation13], 0 }
   0xd   :  { %22 = vsyncpa [#allocation5], 0 }
   0xe   :  { %24 = vsyncpa [#allocation5 + $0x1], 0 }
   0xf   :  { %25 = vsyncpa [#allocation18], 0  ;;  %s17050_s21 = smov 0   ;;  %s17052_s22 = smov 0  }
  0x10   :  { %s17054_s23 = smov 0   ;;  %s17056_s24 = smov 0  }
  0x11 LB: > { %18535 = sst [smem:[#allocation27_spill]] %s16949_s21  ;;  %s16963_s25 = smov [#allocation3]   ;;  %s16961_s24 = sphi %s17056_s24, %s18583_s24   ;;  %s16957_s23 = sphi %s17054_s23, %s18587_s23   ;;  %s16953_s22 = sphi %s17052_s22, %s18586_s22   ;;  %s16949_s21 = sphi %s17050_s21, %s18585_s21  }
  0x12   : > { %s339_s26 = sshll.u32 %s16963_s25, 4  ;;  %s17071_s27 = sadd.s32 4294967295, %s16961_s24   ;;  %s17077_s26 = int_to_ptr.vmem [resolvable:$true] %s339_s26 }
  0x13   : > { %p12941_p0 = scmp.ge.s32.totalorder %s16961_s24, 1  ;;  %p18515_p1 = scmp.eq.s32.totalorder %s17071_s27, 0 }
  0x14   : > { %p324_p2 = scmp.lt.s32.totalorder %s16961_s24, 3  ;;  %s16964_s29 = smov [#allocation6]  }
  0x15   : > { %s353_s30 = sshll.u32 %s16964_s29, 4  ;;  %s16965_s14 = smov [#allocation9]   ;;  %s17092_s30 = int_to_ptr.vmem [resolvable:$true] %s353_s30 }
  0x16   : > { %p17079_p4 = pnand %p12941_p0, %p324_p2  ;;  %s378_s15 = sshll.u32 %s16965_s14, 4  ;;  %s17094_s15 = int_to_ptr.vmem [resolvable:$true] %s378_s15 }
  0x17   : > { %s18538_s1 = sld [smem:[#allocation31_spill]] }
  0x18   : > { %s18536_s28 = scalar_select %p17079_p4, 1, 0 }
  0x19   : > { %p14885_p6 = pneg %p17079_p4 }
  0x1b   : > { %p17088_p7 = pnand %p14885_p6, %p18515_p1 }
  0x1d   : > { %s18537_s13 = scalar_select %p17088_p7, 1, 0 }
  0x1e   : > { %s16595_s18 = scalar_lea.hbm %s18538_s1, 131072  ;;  %p17104_p9 = pneg %p17088_p7 }
  0x1f   : > { %p16596_p8 = scmp.ne.s32.totalorder %s18538_s1, %s16595_s18  ;;  %p16602_p12 = scmp.lt.u32.totalorder %s16595_s18, %s18538_s1 }
  0x21   : > { %p16598_p10 = pnand %p17104_p9, %p16596_p8 }
  0x23   : > { %p16599_p11 = pneg %p16598_p10 }
  0x25   : > { %p16604_p13 = pnand %p16602_p12, %p16599_p11 }
  0x27   : > { %16607 = shalt.err (!%p16604_p13)
}
  0x28   : > { %s16608_s16 = scalar_lea.vmem %s17077_s26, 131072  ;;  %p16616_p5 = scmp.lt.s32.totalorder %s17077_s26, %s17077_s26 }
  0x29   : > { %p16609_p0 = scmp.ne.s32.totalorder %s17077_s26, %s16608_s16  ;;  %p16617_p3 = scmp.lt.s32.totalorder %s16608_s16, %s16608_s16 }
  0x2b   : > { %p16611_p2 = pnand %p16609_p0, %p17104_p9  ;;  %p16618_p8 = por %p16617_p3, %p16616_p5 }
  0x2d   : > { %p16612_p6 = pneg %p16611_p2 }
  0x2f   : > { %p16619_p10 = pnand %p16618_p8, %p16612_p6 }
  0x31   : > { %16622 = shalt.err (!%p16619_p10)
}
  0x32   : > { %s16966_s17 = smov 256   ;;  %s16967_s18 = smov 16  }
  0x33   : > { %14888 = dma.hbm_to_vmem [thread:$0]  (!%p17088_p7), %s18538_s1, 131072, %s17077_s26, [#allocation4], %s16966_s17, %s16966_s17, %s16967_s18  }
  0x34   : > { %s18540_s2 = sld [smem:[#allocation32_spill]] }
  0x3a   : > { %s16623_s10 = scalar_lea.hbm %s18540_s2, 64 }
  0x3b   : > { %p16624_p3 = scmp.ne.s32.totalorder %s18540_s2, %s16623_s10  ;;  %p16630_p12 = scmp.lt.u32.totalorder %s16623_s10, %s18540_s2 }
  0x3d   : > { %p16626_p5 = pnand %p16624_p3, %p17104_p9 }
  0x3f   : > { %p16627_p11 = pneg %p16626_p5 }
  0x41   : > { %p16632_p13 = pnand %p16630_p12, %p16627_p11 }
  0x43   : > { %16635 = shalt.err (!%p16632_p13)
}
  0x44   : > { %s16636_s26 = scalar_lea.vmem %s17092_s30, 64  ;;  %p16644_p8 = scmp.lt.s32.totalorder %s17092_s30, %s17092_s30 }
  0x45   : > { %p16637_p0 = scmp.ne.s32.totalorder %s17092_s30, %s16636_s26  ;;  %p16645_p10 = scmp.lt.s32.totalorder %s16636_s26, %s16636_s26 }
  0x47   : > { %p16639_p2 = pnand %p16637_p0, %p17104_p9  ;;  %p16646_p3 = por %p16645_p10, %p16644_p8 }
  0x49   : > { %p16640_p6 = pneg %p16639_p2 }
  0x4b   : > { %p16647_p5 = pnand %p16646_p3, %p16640_p6 }
  0x4d   : > { %16650 = shalt.err (!%p16647_p5)
}
  0x4e   : > { %14891 = dma.hbm_to_vmem [thread:$0]  (!%p17088_p7), %s18540_s2, 64, %s17092_s30, [#allocation7]  }
  0x4f   : > { %s18541_s5 = sld [smem:[#allocation34_spill]] }
  0x55   : > { %s16651_s17 = scalar_lea.hbm %s18541_s5, 128 }
  0x56   : > { %p16652_p11 = scmp.ne.s32.totalorder %s18541_s5, %s16651_s17  ;;  %p16658_p0 = scmp.lt.u32.totalorder %s16651_s17, %s18541_s5 }
  0x58   : > { %p16654_p12 = pnand %p16652_p11, %p17104_p9 }
  0x5a   : > { %p16655_p13 = pneg %p16654_p12 }
  0x5c   : > { %p16660_p2 = pnand %p16658_p0, %p16655_p13 }
  0x5e   : > { %16663 = shalt.err (!%p16660_p2)
}
  0x5f   : > { %s16664_s30 = scalar_lea.vmem %s17094_s15, 128  ;;  %p16672_p3 = scmp.lt.s32.totalorder %s17094_s15, %s17094_s15 }
  0x60   : > { %p16665_p6 = scmp.ne.s32.totalorder %s17094_s15, %s16664_s30  ;;  %p16673_p5 = scmp.lt.s32.totalorder %s16664_s30, %s16664_s30 }
  0x62   : > { %p16667_p8 = pnand %p16665_p6, %p17104_p9  ;;  %p16674_p11 = por %p16673_p5, %p16672_p3 }
  0x64   : > { %p16668_p10 = pneg %p16667_p8 }
  0x66   : > { %p16675_p12 = pnand %p16674_p11, %p16668_p10 }
  0x68   : > { %16678 = shalt.err (!%p16675_p12)
}
  0x69   : > { %14897 = dma.hbm_to_vmem [thread:$0]  (!%p17088_p7), %s18541_s5, 128, %s17094_s15, [#allocation10]  }
  0x6a   : > { %s12940_s26 = sadd.s32 4294967294, %s16961_s24   ;;  %s17173_s3 = sadd.s32 1, %s16961_s24  }
  0x6b   : > { %18542 = sst [smem:[#allocation28_spill]] %s17173_s3  ;;  %s206_s10 = sadd.s32 1, %s16957_s23 }
  0x6c   : > { %s203_s11 = ssub.s32 %s16961_s24, %s17173_s3  ;;  %p213_p13 = scmp.ne.s32.totalorder %s16957_s23, %s16953_s22 }
  0x6d   : > { %p204_p0 = scmp.eq.s32.totalorder %s203_s11, 0  ;;  %p214_p2 = scmp.eq.s32.totalorder %s16961_s24, 0 }
  0x6e   : > { %p219_p6 = scmp.ne.s32.totalorder %s16953_s22, %s16949_s21  ;;  %p18514_p8 = scmp.eq.s32.totalorder %s17071_s27, 1 }
  0x6f   : > { %s17185_s12 = scalar_select %p204_p0, %s16957_s23, %s206_s10  }
  0x70   : > { %p215_p10 = por %p214_p2, %p213_p13  ;;  %p17189_p3 = por %p18515_p1, %p219_p6 }
  0x71   : > { %18543 = sst [smem:[#allocation29_spill]] %s17185_s12  ;;  %p17195_p5 = por %p18514_p8, %p213_p13 }
  0x72   : > { %s18544_s15 = scalar_select %p17189_p3, 1, 0 }
  0x73   : > { %s18545_s17 = scalar_select %p17195_p5, 1, 0 }
  0x74   : > { %p275_p11 = scmp.eq.s32.totalorder %s12940_s26, 1  ;;  %p14921_p12 = scmp.lt.s32.totalorder %s16961_s24, 2 }
  0x75   : > { %s411_s18 = sand.u32 1, %s16961_s24   ;;  %s18513_s20 = sand.u32 1, %s16957_s23  }
  0x76   : > { %p17201_p4 = por %p275_p11, %p219_p6  ;;  %s14538_s29 = sshll.u32 %s16961_s24, 10 }
  0x77   : > { %s12949_s30 = sshll.u32 %s18513_s20, 12  ;;  %s18548_s8 = sld [smem:[#allocation35_spill]] }
  0x78   : > { %s18546_s19 = scalar_select %p17201_p4, 1, 0 }
  0x79   : > { %p17214_p13 = pnand %p14921_p12, %p215_p10  ;;  %s415_s11 = scalar_lea.vmem [#allocation14], %s12949_s30 }
  0x7a   : > { %18547 = sst [smem:[#allocation30_spill]] %s18546_s19  ;;  %s422_s1 = sshll.u32 %s415_s11, 4  ;;  %s17218_s1 = int_to_ptr.vmem [resolvable:$true] %s422_s1 }
  0x7b   : > { %s18549_s26 = scalar_select %p17214_p13, 1, 0 }
  0x7c   : > { %s17220_s20 = scalar_lea.sflag [#allocation4], %s411_s18  ;;  %p18524_p2 = pneg %p17214_p13 }
  0x7d   : > { %s17212_s10 = scalar_lea.hbm %s18548_s8, %s14538_s29  ;;  %s16684_s16 = scalar_lea.hbm %s18548_s8, 131072 }
  0x7e   : > { %s16679_s2 = scalar_lea.hbm %s17212_s10, 65536  ;;  %p16685_p10 = scmp.lt.u32.totalorder %s17212_s10, %s18548_s8 }
  0x7f   : > { %p16680_p0 = scmp.ne.s32.totalorder %s17212_s10, %s16679_s2  ;;  %p16686_p12 = scmp.lt.u32.totalorder %s16684_s16, %s16679_s2 }
  0x80   : > { %p16688_p1 = scmp.lt.u32.totalorder %s16679_s2, %s17212_s10 }
  0x81   : > { %p16682_p6 = pnand %p18524_p2, %p16680_p0  ;;  %p16687_p8 = por %p16686_p12, %p16685_p10 }
  0x83   : > { %p16683_p11 = pneg %p16682_p6  ;;  %p16689_p4 = por %p16688_p1, %p16687_p8 }
  0x85   : > { %p16690_p5 = pnand %p16689_p4, %p16683_p11 }
  0x87   : > { %16693 = shalt.err (!%p16690_p5)
}
  0x88   : > { %s16694_s18 = scalar_lea.vmem %s17218_s1, 65536  ;;  %s16968_s30 = smov [#allocation14]  }
  0x89   : > { %p16695_p0 = scmp.ne.s32.totalorder %s17218_s1, %s16694_s18  ;;  %s16699_s11 = sshll.u32 %s16968_s30, 4  ;;  %s16700_s11 = int_to_ptr.vmem [resolvable:$false] %s16699_s11 }
  0x8a   : > { %s16701_s5 = scalar_lea.vmem %s16700_s11, 131072  ;;  %p16702_p7 = scmp.lt.s32.totalorder %s17218_s1, %s16700_s11 }
  0x8b   : > { %p16697_p6 = pnand %p16695_p0, %p18524_p2  ;;  %p16703_p10 = scmp.lt.s32.totalorder %s16701_s5, %s16694_s18 }
  0x8d   : > { %p16698_p3 = pneg %p16697_p6  ;;  %p16704_p12 = por %p16703_p10, %p16702_p7 }
  0x8f   : > { %p16705_p1 = pnand %p16704_p12, %p16698_p3 }
  0x91   : > { %16708 = shalt.err (!%p16705_p1)
}
  0x92   : > { %s16969_s2 = smov 2048   ;;  %s16970_s12 = smov 1024  }
  0x93   : > { %s16971_s29 = smov 64   ;;  %s16972_s14 = smov [#allocation8]  }
  0x94   : > { %14907 = dma.hbm_to_vmem [thread:$0]  (!%p17214_p13), %s17212_s10, 65536, %s17218_s1, %s17220_s20, %s16969_s2, %s16970_s12, %s16971_s29  }
  0x95   : > { %s367_s16 = sshll.u32 %s16972_s14, 4  ;;  %s16973_s30 = smov [#allocation11]   ;;  %s368_s16 = int_to_ptr.vmem [resolvable:$true] %s367_s16 }
  0x96   : > { %s389_s8 = sshll.u32 %s16973_s30, 4  ;;  %s16709_s5 = scalar_lea.hbm %s18499_s4, 16  ;;  %s17248_s8 = int_to_ptr.vmem [resolvable:$true] %s389_s8 }
  0x97   : > { %p16710_p4 = scmp.ne.s32.totalorder %s18499_s4, %s16709_s5  ;;  %p16716_p3 = scmp.lt.u32.totalorder %s16709_s5, %s18499_s4 }
  0x99   : > { %p16712_p7 = pnand %p16710_p4, %p17104_p9 }
  0x9b   : > { %p16713_p8 = pneg %p16712_p7 }
  0x9d   : > { %p16718_p5 = pnand %p16716_p3, %p16713_p8 }
  0x9f   : > { %16721 = shalt.err (!%p16718_p5)
}
  0xa0   : > { %s16722_s10 = scalar_lea.vmem %s368_s16, 16  ;;  %s16729_s2 = scalar_lea.vmem %s368_s16, 32 }
  0xa1   : > { %p16723_p11 = scmp.ne.s32.totalorder %s368_s16, %s16722_s10  ;;  %p16730_p10 = scmp.lt.s32.totalorder %s368_s16, %s368_s16 }
  0xa2   : > { %p16731_p12 = scmp.lt.s32.totalorder %s16729_s2, %s16722_s10 }
  0xa3   : > { %p16725_p0 = pnand %p16723_p11, %p17104_p9 }
  0xa4   : > { %p16732_p1 = por %p16731_p12, %p16730_p10 }
  0xa5   : > { %p16726_p6 = pneg %p16725_p0 }
  0xa7   : > { %p16733_p2 = pnand %p16732_p1, %p16726_p6 }
  0xa9   : > { %16736 = shalt.err (!%p16733_p2)
}
  0xaa   : > { %p18550_p4 = scmp.ne.s32.totalorder %s18537_s13, 0  ;;  %s16737_s29 = scalar_lea.hbm %s18501_s6, 64 }
  0xab   : > { %p16738_p7 = scmp.ne.s32.totalorder %s18501_s6, %s16737_s29  ;;  %p16744_p2 = scmp.lt.u32.totalorder %s16737_s29, %s18501_s6 }
  0xac   : > { %14894 = dma.hbm_to_vmem [thread:$0]  (!%p18550_p4), %s18499_s4, 16, %s368_s16, [#allocation7]  }
  0xad   : > { %p16740_p8 = pnand %p16738_p7, %p17104_p9 }
  0xaf   : > { %p16741_p3 = pneg %p16740_p8 }
  0xb1   : > { %p16746_p5 = pnand %p16744_p2, %p16741_p3 }
  0xb3   : > { %16749 = shalt.err (!%p16746_p5)
}
  0xb4   : > { %s16750_s16 = scalar_lea.vmem %s17248_s8, 64  ;;  %p16758_p10 = scmp.lt.s32.totalorder %s17248_s8, %s17248_s8 }
  0xb5   : > { %p16751_p11 = scmp.ne.s32.totalorder %s17248_s8, %s16750_s16  ;;  %p16759_p12 = scmp.lt.s32.totalorder %s16750_s16, %s16750_s16 }
  0xb7   : > { %p16753_p0 = pnand %p16751_p11, %p17104_p9  ;;  %p16760_p1 = por %p16759_p12, %p16758_p10 }
  0xb9   : > { %p16754_p6 = pneg %p16753_p0 }
  0xbb   : > { %p16761_p7 = pnand %p16760_p1, %p16754_p6 }
  0xbd   : > { %16764 = shalt.err (!%p16761_p7)
}
  0xbe   : > { %14900 = dma.hbm_to_vmem [thread:$0]  (!%p18550_p4), %s18501_s6, 64, %s17248_s8, [#allocation10]  }
  0xbf   : > { %s18551_s10 = sand.u32 1, %s16957_s23   ;;  %s16974_s3 = smov [#allocation12]  }
  0xc0   : > { %s12952_s2 = sshll.u32 %s18551_s10, 4  ;;  %s400_s19 = sshll.u32 %s16974_s3, 4  ;;  %s401_s19 = int_to_ptr.vmem [resolvable:$true] %s400_s19 }
  0xc1   : > { %s14539_s21 = sshll.u32 %s16961_s24, 8  ;;  %s16765_s14 = scalar_lea.hbm %s18502_s7, 32 }
  0xc2   : > { %p16766_p8 = scmp.ne.s32.totalorder %s18502_s7, %s16765_s14  ;;  %p16772_p5 = scmp.lt.u32.totalorder %s16765_s14, %s18502_s7 }
  0xc4   : > { %p16768_p3 = pnand %p16766_p8, %p17104_p9 }
  0xc6   : > { %p16769_p2 = pneg %p16768_p3 }
  0xc8   : > { %p16774_p11 = pnand %p16772_p5, %p16769_p2 }
  0xca   : > { %16777 = shalt.err (!%p16774_p11)
}
  0xcb   : > { %s16778_s8 = scalar_lea.vmem %s401_s19, 32  ;;  %p16786_p12 = scmp.lt.s32.totalorder %s401_s19, %s401_s19 }
  0xcc   : > { %p16779_p0 = scmp.ne.s32.totalorder %s401_s19, %s16778_s8  ;;  %p16787_p1 = scmp.lt.s32.totalorder %s16778_s8, %s16778_s8 }
  0xce   : > { %p16781_p6 = pnand %p16779_p0, %p17104_p9  ;;  %p16788_p7 = por %p16787_p1, %p16786_p12 }
  0xd0   : > { %p16782_p10 = pneg %p16781_p6 }
  0xd2   : > { %p16789_p13 = pnand %p16788_p7, %p16782_p10 }
  0xd4   : > { %16792 = shalt.err (!%p16789_p13)
}
  0xd5   : > { %14903 = dma.hbm_to_vmem [thread:$0]  (!%p18550_p4), %s18502_s7, 32, %s401_s19, [#allocation13]  }
  0xd6   : > { %s17315_s12 = scalar_lea.hbm %s18504_s9, %s14539_s21  ;;  %s436_s25 = scalar_lea.vmem [#allocation15], %s12952_s2 }
  0xd7   : > { %s444_s29 = sshll.u32 %s436_s25, 4  ;;  %s16793_s14 = scalar_lea.hbm %s17315_s12, 256  ;;  %s445_s29 = int_to_ptr.vmem [resolvable:$true] %s444_s29 }
  0xd8   : > { %p16794_p9 = scmp.ne.s32.totalorder %s17315_s12, %s16793_s14  ;;  %p18552_p13 = scmp.ne.s32.totalorder %s18549_s26, 0 }
  0xd9   : > { %s16798_s30 = scalar_lea.hbm %s18504_s9, 512  ;;  %p16799_p4 = scmp.lt.u32.totalorder %s17315_s12, %s18504_s9 }
  0xda   : > { %p18553_p8 = pneg %p18552_p13  ;;  %p16800_p5 = scmp.lt.u32.totalorder %s16798_s30, %s16793_s14 }
  0xdb   : > { %p16802_p0 = scmp.lt.u32.totalorder %s16793_s14, %s17315_s12 }
  0xdc   : > { %p16796_p3 = pnand %p16794_p9, %p18553_p8  ;;  %p16801_p11 = por %p16800_p5, %p16799_p4 }
  0xde   : > { %p16797_p2 = pneg %p16796_p3  ;;  %p16803_p6 = por %p16802_p0, %p16801_p11 }
  0xe0   : > { %p16804_p10 = pnand %p16803_p6, %p16797_p2 }
  0xe2   : > { %16807 = shalt.err (!%p16804_p10)
}
  0xe3   : > { %s16808_s2 = scalar_lea.vmem %s445_s29, 256  ;;  %p18554_p1 = pmov %p18553_p8 }
  0xe4   : > { %p16809_p12 = scmp.ne.s32.totalorder %s445_s29, %s16808_s2  ;;  %s16975_s11 = smov [#allocation15]  }
  0xe5   : > { %s16813_s16 = sshll.u32 %s16975_s11, 4  ;;  %s16814_s16 = int_to_ptr.vmem [resolvable:$false] %s16813_s16 }
  0xe6   : > { %p16811_p7 = pnand %p16809_p12, %p18554_p1  ;;  %s16815_s8 = scalar_lea.vmem %s16814_s16, 512 }
  0xe7   : > { %p16816_p8 = scmp.lt.s32.totalorder %s445_s29, %s16814_s16  ;;  %p16817_p3 = scmp.lt.s32.totalorder %s16815_s8, %s16808_s2 }
  0xe8   : > { %p16812_p9 = pneg %p16811_p7 }
  0xe9   : > { %p16818_p4 = por %p16817_p3, %p16816_p8 }
  0xeb   : > { %p16819_p5 = pnand %p16818_p4, %p16812_p9 }
  0xed   : > { %16822 = shalt.err (!%p16819_p5)
}
  0xee   : > { %14910 = dma.hbm_to_vmem [thread:$0]  (!%p18552_p13), %s17315_s12, 256, %s445_s29, %s17220_s20  }
  0xef   : > { %p18555_p2 = scmp.ne.s32.totalorder %s18536_s28, 0 }
  0xf0   : > { %p18556_p11 = scmp.eq.s32.totalorder (!%p18555_p2), %s17071_s27, 0 }
  0xf1   : > { %453 = sbr.rel (%p18555_p2) target bundleno = 2871 (0xb37), region = 60 }
  0xf8   : > { %16920 = dma.done.wait (%p18556_p11), [#allocation4], 131072   ;;  %p18557_p0 = pmov %p18556_p11 }
  0xfa   : > { %16922 = vsyncadd (%p18557_p0), [#allocation4], 4294836224  ;;  %p18558_p6 = pmov %p18557_p0 }
  0xfb   : > { %p18559_p10 = pmov %p18557_p0 }
  0xfc   : > { %16924 = dma.done.wait (%p18558_p6), [#allocation7], 80  }
  0xfd   : > { %16926 = vsyncadd (%p18559_p10), [#allocation7], 4294967216  ;;  %p18560_p12 = pmov %p18557_p0 }
  0xfe   : > { %p18561_p13 = pmov %p18557_p0 }
  0xff   : > { %16928 = dma.done.wait (%p18560_p12), [#allocation10], 192  }
 0x100   : > { %16930 = vsyncadd (%p18561_p13), [#allocation10], 4294967104  ;;  %p18562_p1 = pmov %p18557_p0 }
 0x101   : > { %p18563_p7 = pmov %p18557_p0 }
 0x102   : > { %16932 = dma.done.wait (%p18562_p1), [#allocation13], 32  }
 0x103   : > { %16934 = vsyncadd (%p18563_p7), [#allocation13], 4294967264  ;;  %s479_s28 = sand.u32 1, %s17071_s27   ;;  %s17357_s20 = sand.u32 1, %s16953_s22  }
 0x104   : > { %s12962_s26 = sshll.u32 %s17357_s20, 12  ;;  %s480_s5 = scalar_lea.sflag [#allocation4], %s479_s28 }
 0x105   : > { %s17360_s1 = scalar_lea.vmem [#allocation14], %s12962_s26  ;;  %p18564_p9 = scmp.ne.s32.totalorder %s18544_s15, 0 }
 0x107   : > { %16936 = dma.done.wait (%p18564_p9), %s480_s5, 65792  }
 0x108   : > { %16938 = vsyncadd (%p18564_p9), %s480_s5, 4294901504  ;;  %s12963_s10 = sshll.u32 %s17357_s20, 4  ;;  %s12964_s3 = sshll.u32 %s17357_s20, 5 }
 0x109   : > { %s17368_s12 = scalar_lea.vmem [#allocation15], %s12963_s10  ;;  %s17370_s25 = scalar_lea.vmem [#allocation16], %s12964_s3 }
 0x10a   : > { %p18565_p8 = scmp.ne.s32.totalorder %s17071_s27, 0 }
 0x10b   : > { %v14984_v0 = vld [vmem:[#allocation3 + $0x4] ss:$16 sps:$4 sm:$0xff] (!%p18565_p8)   ;;  %v14986_v1 = vld [vmem:[#allocation3 + $0xc] ss:$16 sps:$4 sm:$0xff] (!%p18565_p8)   ;;  %v14988_v2 = vld [vmem:[#allocation3] ss:$16 sps:$4 sm:$0xff] (!%p18565_p8)   ;;  %v565_v38 = vlaneseq (!%p18565_p8) }
 0x10c   : > { %544 = sbr.rel (%p18565_p8) target bundleno = 2087 (0x827), region = 96  ;;  %6927 = vmatprep.subr.bf16.mxu0 (!%p18565_p8), %v14984_v0  ;;  %v14989_v3 = vld [vmem:[#allocation3 + $0x8] ss:$16 sps:$4 sm:$0xff] (!%p18565_p8)   ;;  %7583 = vmatprep.subr.bf16.mxu1 (!%p18565_p8), %v14986_v1  ;;  %v14990_v4 = vld [vmem:[#allocation3 + $0x24] ss:$16 sps:$4 sm:$0xff] (!%p18565_p8)   ;;  %v545_v52 = vld [vmem:[%s18495_s0] sm:$0xff] (!%p18565_p8) }
 0x10d   : > { %6928 = vmatpush1.bf16.msra.mxu0 (!%p18565_p8), %v14988_v2  ;;  %7584 = vmatpush1.bf16.msra.mxu1 (!%p18565_p8), %v14989_v3  ;;  %v14992_v5 = vld [vmem:[#allocation3 + $0x2c] ss:$16 sps:$4 sm:$0xff] (!%p18565_p8)   ;;  %v14994_v6 = vld [vmem:[#allocation3 + $0x20] ss:$16 sps:$4 sm:$0xff] (!%p18565_p8)   ;;  %v14995_v7 = vld [vmem:[#allocation3 + $0x28] ss:$16 sps:$4 sm:$0xff] (!%p18565_p8)  }
 0x10e   : > { %6929 = vmatprep.subr.bf16.mxu0 (!%p18565_p8), %v14990_v4  ;;  %7585 = vmatprep.subr.bf16.mxu1 (!%p18565_p8), %v14992_v5  ;;  %v14996_v8 = vld [vmem:[#allocation3 + $0x44] ss:$16 sps:$4 sm:$0xff] (!%p18565_p8)   ;;  %v14998_v9 = vld [vmem:[#allocation3 + $0x4c] ss:$16 sps:$4 sm:$0xff] (!%p18565_p8)   ;;  %v15000_v10 = vld [vmem:[#allocation3 + $0x40] ss:$16 sps:$4 sm:$0xff] (!%p18565_p8)   ;;  %v561_v4 = vcombine.high (!%p18565_p8), %v545_v52, %v545_v52 }
 0x10f   : > { %v15001_v11 = vld [vmem:[#allocation3 + $0x48] ss:$16 sps:$4 sm:$0xff] (!%p18565_p8)   ;;  %v15002_v12 = vld [vmem:[#allocation3 + $0x64] ss:$16 sps:$4 sm:$0xff] (!%p18565_p8)   ;;  %v15004_v13 = vld [vmem:[#allocation3 + $0x6c] ss:$16 sps:$4 sm:$0xff] (!%p18565_p8)  }
 0x110   : > { %v15006_v14 = vld [vmem:[#allocation3 + $0x60] ss:$16 sps:$4 sm:$0xff] (!%p18565_p8)   ;;  %v15007_v15 = vld [vmem:[#allocation3 + $0x68] ss:$16 sps:$4 sm:$0xff] (!%p18565_p8)   ;;  %v15008_v16 = vld [vmem:[#allocation3 + $0x84] ss:$16 sps:$4 sm:$0xff] (!%p18565_p8)  }
 0x111   : > { %6930 = vmatpush1.bf16.msra.mxu0 (!%p18565_p8), %v14994_v6  ;;  %7586 = vmatpush1.bf16.msra.mxu1 (!%p18565_p8), %v14995_v7  ;;  %v15010_v17 = vld [vmem:[#allocation3 + $0x8c] ss:$16 sps:$4 sm:$0xff] (!%p18565_p8)   ;;  %v15012_v18 = vld [vmem:[#allocation3 + $0x80] ss:$16 sps:$4 sm:$0xff] (!%p18565_p8)   ;;  %v15013_v19 = vld [vmem:[#allocation3 + $0x88] ss:$16 sps:$4 sm:$0xff] (!%p18565_p8)  }
 0x112   : > { %6931 = vmatprep.subr.bf16.mxu0 (!%p18565_p8), %v14996_v8  ;;  %7587 = vmatprep.subr.bf16.mxu1 (!%p18565_p8), %v14998_v9  ;;  %v15014_v20 = vld [vmem:[#allocation3 + $0xa4] ss:$16 sps:$4 sm:$0xff] (!%p18565_p8)   ;;  %v15016_v21 = vld [vmem:[#allocation3 + $0xac] ss:$16 sps:$4 sm:$0xff] (!%p18565_p8)   ;;  %v15018_v22 = vld [vmem:[#allocation3 + $0xa0] ss:$16 sps:$4 sm:$0xff] (!%p18565_p8)  }
 0x113   : > { %v15019_v23 = vld [vmem:[#allocation3 + $0xa8] ss:$16 sps:$4 sm:$0xff]   ;;  %v15020_v24 = vld [vmem:[#allocation3 + $0xc4] ss:$16 sps:$4 sm:$0xff]   ;;  %v15022_v25 = vld [vmem:[#allocation3 + $0xcc] ss:$16 sps:$4 sm:$0xff]  }
 0x114   : > { %v15024_v26 = vld [vmem:[#allocation3 + $0xc0] ss:$16 sps:$4 sm:$0xff]   ;;  %v15025_v27 = vld [vmem:[#allocation3 + $0xc8] ss:$16 sps:$4 sm:$0xff]   ;;  %v15026_v28 = vld [vmem:[#allocation3 + $0xe4] ss:$16 sps:$4 sm:$0xff]  }
 0x115   : > { %6932 = vmatpush1.bf16.msra.mxu0 %v15000_v10  ;;  %7588 = vmatpush1.bf16.msra.mxu1 %v15001_v11  ;;  %v15028_v29 = vld [vmem:[#allocation3 + $0xec] ss:$16 sps:$4 sm:$0xff]   ;;  %v15030_v30 = vld [vmem:[#allocation3 + $0xe0] ss:$16 sps:$4 sm:$0xff]   ;;  %v15031_v31 = vld [vmem:[#allocation3 + $0xe8] ss:$16 sps:$4 sm:$0xff]  }
 0x116   : > { %6933 = vmatprep.subr.bf16.mxu0 %v15002_v12  ;;  %7589 = vmatprep.subr.bf16.mxu1 %v15004_v13  ;;  %v15032_v32 = vld [vmem:[#allocation3 + $0x104] ss:$16 sps:$4 sm:$0xff]   ;;  %v15034_v33 = vld [vmem:[#allocation3 + $0x10c] ss:$16 sps:$4 sm:$0xff]   ;;  %v15036_v34 = vld [vmem:[#allocation3 + $0x100] ss:$16 sps:$4 sm:$0xff]  }
 0x117   : > { %v15037_v35 = vld [vmem:[#allocation3 + $0x108] ss:$16 sps:$4 sm:$0xff]   ;;  %v16976_v36 = vmov 1983009808   ;;  %v15038_v39 = vld [vmem:[#allocation3 + $0x124] ss:$16 sps:$4 sm:$0xff]  }
 0x118   : > { %v563_v37 = vunpack.c.l.s4 %v16976_v36  ;;  %v15040_v40 = vld [vmem:[#allocation3 + $0x12c] ss:$16 sps:$4 sm:$0xff]   ;;  %v15042_v41 = vld [vmem:[#allocation3 + $0x120] ss:$16 sps:$4 sm:$0xff]   ;;  %v17374_v43 = vshrl.u32 %v565_v38, 7  ;;  %s18566_s29 = sld [smem:[#allocation33_spill]] }
 0x119   : > { %6934 = vmatpush1.bf16.msra.mxu0 %v15006_v14  ;;  %7590 = vmatpush1.bf16.msra.mxu1 %v15007_v15  ;;  %v15043_v44 = vld [vmem:[#allocation3 + $0x128] ss:$16 sps:$4 sm:$0xff]   ;;  %v15044_v45 = vld [vmem:[#allocation3 + $0x144] ss:$16 sps:$4 sm:$0xff]   ;;  %v15046_v46 = vld [vmem:[#allocation3 + $0x14c] ss:$16 sps:$4 sm:$0xff]  }
 0x11a   : > { %6935 = vmatprep.subr.bf16.mxu0 %v15008_v16  ;;  %7591 = vmatprep.subr.bf16.mxu1 %v15010_v17  ;;  %v564_v42 = vunpack.c.0.s8 %v563_v37  ;;  %v15048_v47 = vld [vmem:[#allocation3 + $0x140] ss:$16 sps:$4 sm:$0xff]   ;;  %v15049_v48 = vld [vmem:[#allocation3 + $0x148] ss:$16 sps:$4 sm:$0xff]   ;;  %v15050_v50 = vld [vmem:[#allocation3 + $0x164] ss:$16 sps:$4 sm:$0xff]  }
 0x11b   : > { %v15052_v51 = vld [vmem:[#allocation3 + $0x16c] ss:$16 sps:$4 sm:$0xff]   ;;  %v15054_v53 = vld [vmem:[#allocation3 + $0x160] ss:$16 sps:$4 sm:$0xff]   ;;  %v15055_v55 = vld [vmem:[#allocation3 + $0x168] ss:$16 sps:$4 sm:$0xff]  }
 0x11c   : > { %v17377_v49 = vsub.s32 %v564_v42, %v17374_v43  ;;  %v15056_v56 = vld [vmem:[#allocation3 + $0x184] ss:$16 sps:$4 sm:$0xff]   ;;  %v15058_v57 = vld [vmem:[#allocation3 + $0x18c] ss:$16 sps:$4 sm:$0xff]   ;;  %v15060_v59 = vld [vmem:[#allocation3 + $0x180] ss:$16 sps:$4 sm:$0xff]  }
 0x11d   : > { %6936 = vmatpush1.bf16.msra.mxu0 %v15012_v18  ;;  %7592 = vmatpush1.bf16.msra.mxu1 %v15013_v19  ;;  %v15061_v61 = vld [vmem:[#allocation3 + $0x188] ss:$16 sps:$4 sm:$0xff]   ;;  %v15062_v62 = vld [vmem:[#allocation3 + $0x1a4] ss:$16 sps:$4 sm:$0xff]   ;;  %v15064_v63 = vld [vmem:[#allocation3 + $0x1ac] ss:$16 sps:$4 sm:$0xff]  }
 0x11e   : > { %6937 = vmatprep.subr.bf16.mxu0 %v15014_v20  ;;  %7593 = vmatprep.subr.bf16.mxu1 %v15016_v21  ;;  %v568_v54 = vrot.slane %v545_v52, %v17377_v49  ;;  %v15066_v0 = vld [vmem:[#allocation3 + $0x1a0] ss:$16 sps:$4 sm:$0xff]   ;;  %v15067_v1 = vld [vmem:[#allocation3 + $0x1a8] ss:$16 sps:$4 sm:$0xff]   ;;  %v15068_v2 = vld [vmem:[#allocation3 + $0x1c4] ss:$16 sps:$4 sm:$0xff]   ;;  %v17384_v9 = vrot.slane %v561_v4, %v17377_v49 }
 0x11f   : > { %v15070_v3 = vld [vmem:[#allocation3 + $0x1cc] ss:$16 sps:$4 sm:$0xff]   ;;  %v15072_v5 = vld [vmem:[#allocation3 + $0x1c0] ss:$16 sps:$4 sm:$0xff]   ;;  %v15073_v6 = vld [vmem:[#allocation3 + $0x1c8] ss:$16 sps:$4 sm:$0xff]  }
 0x120   : > { %v576_v58 = vcombine.high %v568_v54, %v568_v54  ;;  %v15074_v7 = vld [vmem:[#allocation3 + $0x1e4] ss:$16 sps:$4 sm:$0xff]   ;;  %v15076_v8 = vld [vmem:[#allocation3 + $0x1ec] ss:$16 sps:$4 sm:$0xff]   ;;  %v15078_v10 = vld [vmem:[#allocation3 + $0x1e0] ss:$16 sps:$4 sm:$0xff]   ;;  %v577_v14 = vcombine.high %v17384_v9, %v17384_v9  ;;  %v729_v16 = vpack.c.bf16 %v568_v54, %v568_v54 }
 0x121   : > { %6938 = vmatpush1.bf16.msra.mxu0 %v15018_v22  ;;  %7594 = vmatpush1.bf16.msra.mxu1 %v15019_v23  ;;  %v15079_v11 = vld [vmem:[#allocation3 + $0x1e8] ss:$16 sps:$4 sm:$0xff]   ;;  %v15083_v12 = vld [vmem:[#allocation3 + $0x204] ss:$16 sps:$4 sm:$0xff]   ;;  %v15086_v13 = vld [vmem:[#allocation3 + $0x20c] ss:$16 sps:$4 sm:$0xff]  }
 0x122   : > { %6939 = vmatprep.subr.bf16.mxu0 %v15020_v24  ;;  %7595 = vmatprep.subr.bf16.mxu1 %v15022_v25  ;;  %v730_v60 = vpack.c.bf16 %v576_v58, %v576_v58  ;;  %v15081_v15 = vld [vmem:[#allocation3 + $0x200] ss:$16 sps:$4 sm:$0xff]   ;;  %v15084_v17 = vld [vmem:[#allocation3 + $0x208] ss:$16 sps:$4 sm:$0xff]   ;;  %v15089_v18 = vld [vmem:[#allocation3 + $0x224] ss:$16 sps:$4 sm:$0xff]   ;;  %v732_v20 = vpack.c.bf16 %v577_v14, %v577_v14 }
 0x123   : > { %v15092_v19 = vld [vmem:[#allocation3 + $0x22c] ss:$16 sps:$4 sm:$0xff]   ;;  %v15087_v21 = vld [vmem:[#allocation3 + $0x220] ss:$16 sps:$4 sm:$0xff]   ;;  %v15090_v22 = vld [vmem:[#allocation3 + $0x228] ss:$16 sps:$4 sm:$0xff]  }
 0x124   : > { %6959 = vmatprep.mubr.bf16.mxu0 %v730_v60  ;;  %7615 = vmatprep.mubr.bf16.mxu1 %v730_v60  ;;  %v15095_v23 = vld [vmem:[#allocation3 + $0x244] ss:$16 sps:$4 sm:$0xff]   ;;  %v15098_v24 = vld [vmem:[#allocation3 + $0x24c] ss:$16 sps:$4 sm:$0xff]   ;;  %v15093_v25 = vld [vmem:[#allocation3 + $0x240] ss:$16 sps:$4 sm:$0xff]  }
 0x125   : > { %6940 = vmatpush1.bf16.msra.mxu0 %v15024_v26  ;;  %7596 = vmatpush1.bf16.msra.mxu1 %v15025_v27  ;;  %v15096_v26 = vld [vmem:[#allocation3 + $0x248] ss:$16 sps:$4 sm:$0xff]   ;;  %v15101_v27 = vld [vmem:[#allocation3 + $0x264] ss:$16 sps:$4 sm:$0xff]   ;;  %v15116_v36 = vld [vmem:[#allocation3 + $0x2ac] ss:$16 sps:$4 sm:$0xff]  }
 0x126   : > { %6941 = vmatprep.subr.bf16.mxu0 %v15026_v28  ;;  %7597 = vmatprep.subr.bf16.mxu1 %v15028_v29  ;;  %v15104_v28 = vld [vmem:[#allocation3 + $0x26c] ss:$16 sps:$4 sm:$0xff]   ;;  %v15099_v29 = vld [vmem:[#allocation3 + $0x260] ss:$16 sps:$4 sm:$0xff]   ;;  %v15114_v38 = vld [vmem:[#allocation3 + $0x2a8] ss:$16 sps:$4 sm:$0xff]  }
 0x127   : > { %v15111_v37 = vld [vmem:[#allocation3 + $0x2a0] ss:$16 sps:$4 sm:$0xff]   ;;  %v15120_v42 = vld [vmem:[#allocation3 + $0x2c8] ss:$16 sps:$4 sm:$0xff]   ;;  %v15140_v54 = vld [vmem:[#allocation3 + $0x32c] ss:$16 sps:$4 sm:$0xff]  }
 0x128   : > { %v15132_v52 = vld [vmem:[#allocation3 + $0x308] ss:$16 sps:$4 sm:$0xff]   ;;  %v15146_v58 = vld [vmem:[#allocation3 + $0x34c] ss:$16 sps:$4 sm:$0xff]   ;;  %v15173_v14 = vld [vmem:[#allocation3 + $0x3e4] ss:$16 sps:$4 sm:$0xff]  }
 0x129   : > { %6942 = vmatpush1.bf16.msra.mxu0 %v15030_v30  ;;  %7598 = vmatpush1.bf16.msra.mxu1 %v15031_v31  ;;  %v15102_v30 = vld [vmem:[#allocation3 + $0x268] ss:$16 sps:$4 sm:$0xff]   ;;  %v15107_v31 = vld [vmem:[#allocation3 + $0x284] ss:$16 sps:$4 sm:$0xff]   ;;  %vm8509_vm0 = vcmask 1041408   ;;  %vm8698_vm1 = vcmask 9216  }
 0x12a   : > { %6943 = vmatprep.subr.bf16.mxu0 %v15032_v32  ;;  %7599 = vmatprep.subr.bf16.mxu1 %v15034_v33  ;;  %v15110_v32 = vld [vmem:[#allocation3 + $0x28c] ss:$16 sps:$4 sm:$0xff]   ;;  %v15105_v33 = vld [vmem:[#allocation3 + $0x280] ss:$16 sps:$4 sm:$0xff]   ;;  %v15144_v60 = vld [vmem:[#allocation3 + $0x348] ss:$16 sps:$4 sm:$0xff]  }
 0x12b   : > { %v15156_v4 = vld [vmem:[#allocation3 + $0x388] ss:$16 sps:$4 sm:$0xff]   ;;  %s16978_s3 = smov 126   ;;  %vm8505_vm2 = vcmask 15360  }
 0x12d   : > { %6944 = vmatpush1.bf16.msra.mxu0 %v15036_v34  ;;  %7600 = vmatpush1.bf16.msra.mxu1 %v15037_v35  ;;  %v15108_v34 = vld [vmem:[#allocation3 + $0x288] ss:$16 sps:$4 sm:$0xff]   ;;  %v15113_v35 = vld [vmem:[#allocation3 + $0x2a4] ss:$16 sps:$4 sm:$0xff]  }
 0x12e   : > { %6945 = vmatprep.subr.bf16.mxu0 %v15038_v39  ;;  %7601 = vmatprep.subr.bf16.mxu1 %v15040_v40  ;;  %v15119_v39 = vld [vmem:[#allocation3 + $0x2c4] ss:$16 sps:$4 sm:$0xff]   ;;  %v15122_v40 = vld [vmem:[#allocation3 + $0x2cc] ss:$16 sps:$4 sm:$0xff]  }
 0x131   : > { %6946 = vmatpush1.bf16.msra.mxu0 %v15042_v41  ;;  %7602 = vmatpush1.bf16.msra.mxu1 %v15043_v44  ;;  %v15117_v41 = vld [vmem:[#allocation3 + $0x2c0] ss:$16 sps:$4 sm:$0xff]   ;;  %v15125_v44 = vld [vmem:[#allocation3 + $0x2e4] ss:$16 sps:$4 sm:$0xff]  }
 0x132   : > { %6947 = vmatprep.subr.bf16.mxu0 %v15044_v45  ;;  %7603 = vmatprep.subr.bf16.mxu1 %v15046_v46  ;;  %v15128_v45 = vld [vmem:[#allocation3 + $0x2ec] ss:$16 sps:$4 sm:$0xff]   ;;  %v15123_v46 = vld [vmem:[#allocation3 + $0x2e0] ss:$16 sps:$4 sm:$0xff]  }
 0x135   : > { %6948 = vmatpush1.bf16.msra.mxu0 %v15048_v47  ;;  %7604 = vmatpush1.bf16.msra.mxu1 %v15049_v48  ;;  %v15126_v47 = vld [vmem:[#allocation3 + $0x2e8] ss:$16 sps:$4 sm:$0xff]   ;;  %v15131_v48 = vld [vmem:[#allocation3 + $0x304] ss:$16 sps:$4 sm:$0xff]  }
 0x136   : > { %6949 = vmatprep.subr.bf16.mxu0 %v15050_v50  ;;  %7605 = vmatprep.subr.bf16.mxu1 %v15052_v51  ;;  %v15134_v50 = vld [vmem:[#allocation3 + $0x30c] ss:$16 sps:$4 sm:$0xff]   ;;  %v15129_v51 = vld [vmem:[#allocation3 + $0x300] ss:$16 sps:$4 sm:$0xff]  }
 0x139   : > { %6950 = vmatpush1.bf16.msra.mxu0 %v15054_v53  ;;  %7606 = vmatpush1.bf16.msra.mxu1 %v15055_v55  ;;  %v15137_v53 = vld [vmem:[#allocation3 + $0x324] ss:$16 sps:$4 sm:$0xff]   ;;  %v15135_v55 = vld [vmem:[#allocation3 + $0x320] ss:$16 sps:$4 sm:$0xff]  }
 0x13a   : > { %6951 = vmatprep.subr.bf16.mxu0 %v15056_v56  ;;  %7607 = vmatprep.subr.bf16.mxu1 %v15058_v57  ;;  %v15138_v56 = vld [vmem:[#allocation3 + $0x328] ss:$16 sps:$4 sm:$0xff]   ;;  %v15143_v57 = vld [vmem:[#allocation3 + $0x344] ss:$16 sps:$4 sm:$0xff]  }
 0x13d   : > { %6952 = vmatpush1.bf16.msra.mxu0 %v15060_v59  ;;  %7608 = vmatpush1.bf16.msra.mxu1 %v15061_v61  ;;  %v15141_v59 = vld [vmem:[#allocation3 + $0x340] ss:$16 sps:$4 sm:$0xff]   ;;  %v15149_v61 = vld [vmem:[#allocation3 + $0x364] ss:$16 sps:$4 sm:$0xff]  }
 0x13e   : > { %6953 = vmatprep.subr.bf16.mxu0 %v15062_v62  ;;  %7609 = vmatprep.subr.bf16.mxu1 %v15064_v63  ;;  %v15152_v62 = vld [vmem:[#allocation3 + $0x36c] ss:$16 sps:$4 sm:$0xff]   ;;  %v15147_v63 = vld [vmem:[#allocation3 + $0x360] ss:$16 sps:$4 sm:$0xff]  }
 0x141   : > { %6954 = vmatpush1.bf16.msra.mxu0 %v15066_v0  ;;  %7610 = vmatpush1.bf16.msra.mxu1 %v15067_v1  ;;  %v15150_v0 = vld [vmem:[#allocation3 + $0x368] ss:$16 sps:$4 sm:$0xff]   ;;  %v15155_v1 = vld [vmem:[#allocation3 + $0x384] ss:$16 sps:$4 sm:$0xff]  }
 0x142   : > { %6955 = vmatprep.subr.bf16.mxu0 %v15068_v2  ;;  %7611 = vmatprep.subr.bf16.mxu1 %v15070_v3  ;;  %v15158_v2 = vld [vmem:[#allocation3 + $0x38c] ss:$16 sps:$4 sm:$0xff]   ;;  %v15153_v3 = vld [vmem:[#allocation3 + $0x380] ss:$16 sps:$4 sm:$0xff]  }
 0x145   : > { %6956 = vmatpush1.bf16.msra.mxu0 %v15072_v5  ;;  %7612 = vmatpush1.bf16.msra.mxu1 %v15073_v6  ;;  %v15161_v5 = vld [vmem:[#allocation3 + $0x3a4] ss:$16 sps:$4 sm:$0xff]   ;;  %v15164_v6 = vld [vmem:[#allocation3 + $0x3ac] ss:$16 sps:$4 sm:$0xff]  }
 0x146   : > { %6957 = vmatprep.subr.bf16.mxu0 %v15074_v7  ;;  %7613 = vmatprep.subr.bf16.mxu1 %v15076_v8  ;;  %v15159_v7 = vld [vmem:[#allocation3 + $0x3a0] ss:$16 sps:$4 sm:$0xff]   ;;  %v15162_v8 = vld [vmem:[#allocation3 + $0x3a8] ss:$16 sps:$4 sm:$0xff]  }
 0x149   : > { %6958 = vmatpush1.bf16.msra.mxu0 %v15078_v10  ;;  %7614 = vmatpush1.bf16.msra.mxu1 %v15079_v11  ;;  %v15167_v10 = vld [vmem:[#allocation3 + $0x3c4] ss:$16 sps:$4 sm:$0xff]   ;;  %v15170_v11 = vld [vmem:[#allocation3 + $0x3cc] ss:$16 sps:$4 sm:$0xff]  }
 0x14a   : > { %6968 = vmatprep.subr.bf16.mxu0 %v15083_v12  ;;  %7624 = vmatprep.subr.bf16.mxu1 %v15086_v13  ;;  %v15165_v12 = vld [vmem:[#allocation3 + $0x3c0] ss:$16 sps:$4 sm:$0xff]   ;;  %v15168_v13 = vld [vmem:[#allocation3 + $0x3c8] ss:$16 sps:$4 sm:$0xff]  }
 0x14c   : > { %6960 = vmatmul.mubr.bf16.vlgmr.msra.gmra.mrb[0].mxu0 %v729_v16  ;;  %7616 = vmatmul.mubr.bf16.vlgmr.msra.gmra.mrb[0].mxu1 %v729_v16  ;;  %v15171_v16 = vld [vmem:[#allocation3 + $0x3e0] ss:$16 sps:$4 sm:$0xff]  }
 0x14d   : > { %6969 = vmatpush1.bf16.msra.mxu0 %v15081_v15  ;;  %7625 = vmatpush1.bf16.msra.mxu1 %v15084_v17  ;;  %v15176_v15 = vld [vmem:[#allocation3 + $0x3ec] ss:$16 sps:$4 sm:$0xff]   ;;  %v15174_v17 = vld [vmem:[#allocation3 + $0x3e8] ss:$16 sps:$4 sm:$0xff]  }
 0x14e   : > { %6970 = vmatprep.subr.bf16.mxu0 %v15089_v18  ;;  %7626 = vmatprep.subr.bf16.mxu1 %v15092_v19  ;;  %v15179_v18 = vld [vmem:[#allocation3 + $0x404] ss:$16 sps:$4 sm:$0xff]   ;;  %v15182_v19 = vld [vmem:[#allocation3 + $0x40c] ss:$16 sps:$4 sm:$0xff]  }
 0x14f   : > { %7000 = vmatprep.mubr.bf16.mxu0 %v732_v20  ;;  %7656 = vmatprep.mubr.bf16.mxu1 %v732_v20  ;;  %v15177_v20 = vld [vmem:[#allocation3 + $0x400] ss:$16 sps:$4 sm:$0xff]  }
 0x151   : > { %6971 = vmatpush1.bf16.msra.mxu0 %v15087_v21  ;;  %7627 = vmatpush1.bf16.msra.mxu1 %v15090_v22  ;;  %v731_v21 = vpack.c.bf16 %v17384_v9, %v17384_v9  ;;  %v15180_v22 = vld [vmem:[#allocation3 + $0x408] ss:$16 sps:$4 sm:$0xff]  }
 0x152   : > { %6972 = vmatprep.subr.bf16.mxu0 %v15095_v23  ;;  %7628 = vmatprep.subr.bf16.mxu1 %v15098_v24  ;;  %v17393_v23 = vld [vmem:[%s18495_s0 + $0x8] sm:$0xff] }
 0x153   : > { %v15185_v24 = vld [vmem:[#allocation3 + $0x424] ss:$16 sps:$4 sm:$0xff]  }
 0x155   : > { %6973 = vmatpush1.bf16.msra.mxu0 %v15093_v25  ;;  %7629 = vmatpush1.bf16.msra.mxu1 %v15096_v26  ;;  %v15188_v25 = vld [vmem:[#allocation3 + $0x42c] ss:$16 sps:$4 sm:$0xff]   ;;  %v17397_v26 = vrot.slane %v17393_v23, %v17377_v49 }
 0x156   : > { %6974 = vmatprep.subr.bf16.mxu0 %v15101_v27  ;;  %7630 = vmatprep.subr.bf16.mxu1 %v15104_v28  ;;  %v15183_v27 = vld [vmem:[#allocation3 + $0x420] ss:$16 sps:$4 sm:$0xff]   ;;  %v15186_v28 = vld [vmem:[#allocation3 + $0x428] ss:$16 sps:$4 sm:$0xff]  }
 0x157   : > { %v593_v9 = vcombine.high %v17397_v26, %v17397_v26 }
 0x159   : > { %6975 = vmatpush1.bf16.msra.mxu0 %v15099_v29  ;;  %7631 = vmatpush1.bf16.msra.mxu1 %v15102_v30  ;;  %v15191_v29 = vld [vmem:[#allocation3 + $0x444] ss:$16 sps:$4 sm:$0xff]   ;;  %v15194_v30 = vld [vmem:[#allocation3 + $0x44c] ss:$16 sps:$4 sm:$0xff]  }
 0x15a   : > { %6976 = vmatprep.subr.bf16.mxu0 %v15107_v31  ;;  %7632 = vmatprep.subr.bf16.mxu1 %v15110_v32  ;;  %v734_v31 = vpack.c.bf16 %v593_v9, %v593_v9  ;;  %v15189_v32 = vld [vmem:[#allocation3 + $0x440] ss:$16 sps:$4 sm:$0xff]  }
 0x15b   : > { %v15267_v9 = vld [vmem:[#allocation3 + $0x5e0] ss:$16 sps:$4 sm:$0xff]  }
 0x15d   : > { %6977 = vmatpush1.bf16.msra.mxu0 %v15105_v33  ;;  %7633 = vmatpush1.bf16.msra.mxu1 %v15108_v34  ;;  %v15192_v33 = vld [vmem:[#allocation3 + $0x448] ss:$16 sps:$4 sm:$0xff]   ;;  %v15197_v34 = vld [vmem:[#allocation3 + $0x464] ss:$16 sps:$4 sm:$0xff]  }
 0x15e   : > { %6978 = vmatprep.subr.bf16.mxu0 %v15113_v35  ;;  %7634 = vmatprep.subr.bf16.mxu1 %v15116_v36  ;;  %v15200_v35 = vld [vmem:[#allocation3 + $0x46c] ss:$16 sps:$4 sm:$0xff]   ;;  %v15195_v36 = vld [vmem:[#allocation3 + $0x460] ss:$16 sps:$4 sm:$0xff]  }
 0x161   : > { %6979 = vmatpush1.bf16.msra.mxu0 %v15111_v37  ;;  %7635 = vmatpush1.bf16.msra.mxu1 %v15114_v38  ;;  %v15198_v37 = vld [vmem:[#allocation3 + $0x468] ss:$16 sps:$4 sm:$0xff]   ;;  %v15203_v38 = vld [vmem:[#allocation3 + $0x484] ss:$16 sps:$4 sm:$0xff]  }
 0x162   : > { %6980 = vmatprep.subr.bf16.mxu0 %v15119_v39  ;;  %7636 = vmatprep.subr.bf16.mxu1 %v15122_v40  ;;  %v15206_v39 = vld [vmem:[#allocation3 + $0x48c] ss:$16 sps:$4 sm:$0xff]   ;;  %v15201_v40 = vld [vmem:[#allocation3 + $0x480] ss:$16 sps:$4 sm:$0xff]  }
 0x165   : > { %6981 = vmatpush1.bf16.msra.mxu0 %v15117_v41  ;;  %7637 = vmatpush1.bf16.msra.mxu1 %v15120_v42  ;;  %v15204_v41 = vld [vmem:[#allocation3 + $0x488] ss:$16 sps:$4 sm:$0xff]   ;;  %v15209_v42 = vld [vmem:[#allocation3 + $0x4a4] ss:$16 sps:$4 sm:$0xff]  }
 0x166   : > { %6982 = vmatprep.subr.bf16.mxu0 %v15125_v44  ;;  %7638 = vmatprep.subr.bf16.mxu1 %v15128_v45  ;;  %v15212_v44 = vld [vmem:[#allocation3 + $0x4ac] ss:$16 sps:$4 sm:$0xff]   ;;  %v15207_v45 = vld [vmem:[#allocation3 + $0x4a0] ss:$16 sps:$4 sm:$0xff]  }
 0x169   : > { %6983 = vmatpush1.bf16.msra.mxu0 %v15123_v46  ;;  %7639 = vmatpush1.bf16.msra.mxu1 %v15126_v47  ;;  %v15210_v46 = vld [vmem:[#allocation3 + $0x4a8] ss:$16 sps:$4 sm:$0xff]   ;;  %v15215_v47 = vld [vmem:[#allocation3 + $0x4c4] ss:$16 sps:$4 sm:$0xff]  }
 0x16a   : > { %6984 = vmatprep.subr.bf16.mxu0 %v15131_v48  ;;  %7640 = vmatprep.subr.bf16.mxu1 %v15134_v50  ;;  %v15218_v48 = vld [vmem:[#allocation3 + $0x4cc] ss:$16 sps:$4 sm:$0xff]   ;;  %v15213_v50 = vld [vmem:[#allocation3 + $0x4c0] ss:$16 sps:$4 sm:$0xff]  }
 0x16d   : > { %6985 = vmatpush1.bf16.msra.mxu0 %v15129_v51  ;;  %7641 = vmatpush1.bf16.msra.mxu1 %v15132_v52  ;;  %v15216_v51 = vld [vmem:[#allocation3 + $0x4c8] ss:$16 sps:$4 sm:$0xff]   ;;  %v15221_v52 = vld [vmem:[#allocation3 + $0x4e4] ss:$16 sps:$4 sm:$0xff]  }
 0x16e   : > { %6986 = vmatprep.subr.bf16.mxu0 %v15137_v53  ;;  %7642 = vmatprep.subr.bf16.mxu1 %v15140_v54  ;;  %v15224_v53 = vld [vmem:[#allocation3 + $0x4ec] ss:$16 sps:$4 sm:$0xff]   ;;  %v15219_v54 = vld [vmem:[#allocation3 + $0x4e0] ss:$16 sps:$4 sm:$0xff]  }
 0x171   : > { %6987 = vmatpush1.bf16.msra.mxu0 %v15135_v55  ;;  %7643 = vmatpush1.bf16.msra.mxu1 %v15138_v56  ;;  %v15222_v55 = vld [vmem:[#allocation3 + $0x4e8] ss:$16 sps:$4 sm:$0xff]   ;;  %v15227_v56 = vld [vmem:[#allocation3 + $0x504] ss:$16 sps:$4 sm:$0xff]  }
 0x172   : > { %6988 = vmatprep.subr.bf16.mxu0 %v15143_v57  ;;  %7644 = vmatprep.subr.bf16.mxu1 %v15146_v58  ;;  %v15230_v57 = vld [vmem:[#allocation3 + $0x50c] ss:$16 sps:$4 sm:$0xff]   ;;  %v15225_v58 = vld [vmem:[#allocation3 + $0x500] ss:$16 sps:$4 sm:$0xff]  }
 0x175   : > { %6989 = vmatpush1.bf16.msra.mxu0 %v15141_v59  ;;  %7645 = vmatpush1.bf16.msra.mxu1 %v15144_v60  ;;  %v15228_v59 = vld [vmem:[#allocation3 + $0x508] ss:$16 sps:$4 sm:$0xff]   ;;  %v15233_v60 = vld [vmem:[#allocation3 + $0x524] ss:$16 sps:$4 sm:$0xff]  }
 0x176   : > { %6990 = vmatprep.subr.bf16.mxu0 %v15149_v61  ;;  %7646 = vmatprep.subr.bf16.mxu1 %v15152_v62  ;;  %v15236_v61 = vld [vmem:[#allocation3 + $0x52c] ss:$16 sps:$4 sm:$0xff]   ;;  %v15231_v62 = vld [vmem:[#allocation3 + $0x520] ss:$16 sps:$4 sm:$0xff]  }
 0x179   : > { %6991 = vmatpush1.bf16.msra.mxu0 %v15147_v63  ;;  %7647 = vmatpush1.bf16.msra.mxu1 %v15150_v0  ;;  %v15234_v63 = vld [vmem:[#allocation3 + $0x528] ss:$16 sps:$4 sm:$0xff]   ;;  %v15239_v0 = vld [vmem:[#allocation3 + $0x544] ss:$16 sps:$4 sm:$0xff]  }
 0x17a   : > { %6992 = vmatprep.subr.bf16.mxu0 %v15155_v1  ;;  %7648 = vmatprep.subr.bf16.mxu1 %v15158_v2  ;;  %v15242_v1 = vld [vmem:[#allocation3 + $0x54c] ss:$16 sps:$4 sm:$0xff]   ;;  %v15237_v2 = vld [vmem:[#allocation3 + $0x540] ss:$16 sps:$4 sm:$0xff]  }
 0x17d   : > { %6993 = vmatpush1.bf16.msra.mxu0 %v15153_v3  ;;  %7649 = vmatpush1.bf16.msra.mxu1 %v15156_v4  ;;  %v15240_v3 = vld [vmem:[#allocation3 + $0x548] ss:$16 sps:$4 sm:$0xff]   ;;  %v15245_v4 = vld [vmem:[#allocation3 + $0x564] ss:$16 sps:$4 sm:$0xff]  }
 0x17e   : > { %6994 = vmatprep.subr.bf16.mxu0 %v15161_v5  ;;  %7650 = vmatprep.subr.bf16.mxu1 %v15164_v6  ;;  %v15248_v5 = vld [vmem:[#allocation3 + $0x56c] ss:$16 sps:$4 sm:$0xff]   ;;  %v15243_v6 = vld [vmem:[#allocation3 + $0x560] ss:$16 sps:$4 sm:$0xff]  }
 0x181   : > { %6995 = vmatpush1.bf16.msra.mxu0 %v15159_v7  ;;  %7651 = vmatpush1.bf16.msra.mxu1 %v15162_v8  ;;  %v15246_v7 = vld [vmem:[#allocation3 + $0x568] ss:$16 sps:$4 sm:$0xff]   ;;  %v15251_v8 = vld [vmem:[#allocation3 + $0x584] ss:$16 sps:$4 sm:$0xff]  }
 0x182   : > { %6996 = vmatprep.subr.bf16.mxu0 %v15167_v10  ;;  %7652 = vmatprep.subr.bf16.mxu1 %v15170_v11  ;;  %v15254_v10 = vld [vmem:[#allocation3 + $0x58c] ss:$16 sps:$4 sm:$0xff]   ;;  %v15249_v11 = vld [vmem:[#allocation3 + $0x580] ss:$16 sps:$4 sm:$0xff]  }
 0x185   : > { %6997 = vmatpush1.bf16.msra.mxu0 %v15165_v12  ;;  %7653 = vmatpush1.bf16.msra.mxu1 %v15168_v13  ;;  %v15252_v12 = vld [vmem:[#allocation3 + $0x588] ss:$16 sps:$4 sm:$0xff]   ;;  %v15257_v13 = vld [vmem:[#allocation3 + $0x5a4] ss:$16 sps:$4 sm:$0xff]  }
 0x186   : > { %6998 = vmatprep.subr.bf16.mxu0 %v15173_v14  ;;  %7654 = vmatprep.subr.bf16.mxu1 %v15176_v15  ;;  %v15260_v14 = vld [vmem:[#allocation3 + $0x5ac] ss:$16 sps:$4 sm:$0xff]   ;;  %v15255_v15 = vld [vmem:[#allocation3 + $0x5a0] ss:$16 sps:$4 sm:$0xff]  }
 0x189   : > { %6999 = vmatpush1.bf16.msra.mxu0 %v15171_v16  ;;  %7655 = vmatpush1.bf16.msra.mxu1 %v15174_v17  ;;  %v15258_v16 = vld [vmem:[#allocation3 + $0x5a8] ss:$16 sps:$4 sm:$0xff]   ;;  %v15263_v17 = vld [vmem:[#allocation3 + $0x5c4] ss:$16 sps:$4 sm:$0xff]  }
 0x18a   : > { %7009 = vmatprep.subr.bf16.mxu0 %v15179_v18  ;;  %7665 = vmatprep.subr.bf16.mxu1 %v15182_v19  ;;  %v15266_v18 = vld [vmem:[#allocation3 + $0x5cc] ss:$16 sps:$4 sm:$0xff]   ;;  %v578_v19 = vcombine.high %v17393_v23, %v17393_v23 }
 0x18c   : > { %7001 = vmatmul.mubr.bf16.vlgmr.msra.gmra.mrb[0].mxu0 %v731_v21  ;;  %7657 = vmatmul.mubr.bf16.vlgmr.msra.gmra.mrb[0].mxu1 %v731_v21  ;;  %v15264_v21 = vld [vmem:[#allocation3 + $0x5c8] ss:$16 sps:$4 sm:$0xff]  }
 0x18d   : > { %7010 = vmatpush1.bf16.msra.mxu0 %v15177_v20  ;;  %7666 = vmatpush1.bf16.msra.mxu1 %v15180_v22  ;;  %v15261_v20 = vld [vmem:[#allocation3 + $0x5c0] ss:$16 sps:$4 sm:$0xff]   ;;  %v15269_v22 = vld [vmem:[#allocation3 + $0x5e4] ss:$16 sps:$4 sm:$0xff]  }
 0x18e   : > { %7011 = vmatprep.subr.bf16.mxu0 %v15185_v24  ;;  %7667 = vmatprep.subr.bf16.mxu1 %v15188_v25  ;;  %v15272_v24 = vld [vmem:[#allocation3 + $0x5ec] ss:$16 sps:$4 sm:$0xff]   ;;  %v17404_v25 = vrot.slane %v578_v19, %v17377_v49  ;;  %v15348_v19 = vld [vmem:[#allocation3 + $0x788] ss:$16 sps:$4 sm:$0xff]  }
 0x18f   : > { %7041 = vmatprep.mubr.bf16.mxu0 %v734_v31  ;;  %7697 = vmatprep.mubr.bf16.mxu1 %v734_v31  ;;  %v15273_v31 = vld [vmem:[#allocation3 + $0x600] ss:$16 sps:$4 sm:$0xff]  }
 0x190   : > { %v594_v23 = vcombine.high %v17404_v25, %v17404_v25 }
 0x191   : > { %7012 = vmatpush1.bf16.msra.mxu0 %v15183_v27  ;;  %7668 = vmatpush1.bf16.msra.mxu1 %v15186_v28  ;;  %v15270_v27 = vld [vmem:[#allocation3 + $0x5e8] ss:$16 sps:$4 sm:$0xff]   ;;  %v15275_v28 = vld [vmem:[#allocation3 + $0x604] ss:$16 sps:$4 sm:$0xff]  }
 0x192   : > { %7013 = vmatprep.subr.bf16.mxu0 %v15191_v29  ;;  %7669 = vmatprep.subr.bf16.mxu1 %v15194_v30  ;;  %v15278_v29 = vld [vmem:[#allocation3 + $0x60c] ss:$16 sps:$4 sm:$0xff]   ;;  %v733_v30 = vpack.c.bf16 %v17397_v26, %v17397_v26  ;;  %v15285_v26 = vld [vmem:[#allocation3 + $0x640] ss:$16 sps:$4 sm:$0xff]  }
 0x195   : > { %7014 = vmatpush1.bf16.msra.mxu0 %v15189_v32  ;;  %7670 = vmatpush1.bf16.msra.mxu1 %v15192_v33  ;;  %v15276_v32 = vld [vmem:[#allocation3 + $0x608] ss:$16 sps:$4 sm:$0xff]   ;;  %v15281_v33 = vld [vmem:[#allocation3 + $0x624] ss:$16 sps:$4 sm:$0xff]  }
 0x196   : > { %7015 = vmatprep.subr.bf16.mxu0 %v15197_v34  ;;  %7671 = vmatprep.subr.bf16.mxu1 %v15200_v35  ;;  %v15284_v34 = vld [vmem:[#allocation3 + $0x62c] ss:$16 sps:$4 sm:$0xff]   ;;  %v736_v35 = vpack.c.bf16 %v594_v23, %v594_v23  ;;  %v15360_v23 = vld [vmem:[#allocation3 + $0x7c8] ss:$16 sps:$4 sm:$0xff]  }
 0x199   : > { %7016 = vmatpush1.bf16.msra.mxu0 %v15195_v36  ;;  %7672 = vmatpush1.bf16.msra.mxu1 %v15198_v37  ;;  %v15279_v36 = vld [vmem:[#allocation3 + $0x620] ss:$16 sps:$4 sm:$0xff]   ;;  %v15282_v37 = vld [vmem:[#allocation3 + $0x628] ss:$16 sps:$4 sm:$0xff]  }
 0x19a   : > { %7017 = vmatprep.subr.bf16.mxu0 %v15203_v38  ;;  %7673 = vmatprep.subr.bf16.mxu1 %v15206_v39  ;;  %v15287_v38 = vld [vmem:[#allocation3 + $0x644] ss:$16 sps:$4 sm:$0xff]   ;;  %v15290_v39 = vld [vmem:[#allocation3 + $0x64c] ss:$16 sps:$4 sm:$0xff]  }
 0x19d   : > { %7018 = vmatpush1.bf16.msra.mxu0 %v15201_v40  ;;  %7674 = vmatpush1.bf16.msra.mxu1 %v15204_v41  ;;  %v15288_v40 = vld [vmem:[#allocation3 + $0x648] ss:$16 sps:$4 sm:$0xff]   ;;  %v15293_v41 = vld [vmem:[#allocation3 + $0x664] ss:$16 sps:$4 sm:$0xff]  }
 0x19e   : > { %7019 = vmatprep.subr.bf16.mxu0 %v15209_v42  ;;  %7675 = vmatprep.subr.bf16.mxu1 %v15212_v44  ;;  %v15296_v42 = vld [vmem:[#allocation3 + $0x66c] ss:$16 sps:$4 sm:$0xff]   ;;  %v15291_v44 = vld [vmem:[#allocation3 + $0x660] ss:$16 sps:$4 sm:$0xff]  }
 0x1a1   : > { %7020 = vmatpush1.bf16.msra.mxu0 %v15207_v45  ;;  %7676 = vmatpush1.bf16.msra.mxu1 %v15210_v46  ;;  %v15294_v45 = vld [vmem:[#allocation3 + $0x668] ss:$16 sps:$4 sm:$0xff]   ;;  %v15299_v46 = vld [vmem:[#allocation3 + $0x684] ss:$16 sps:$4 sm:$0xff]  }
 0x1a2   : > { %7021 = vmatprep.subr.bf16.mxu0 %v15215_v47  ;;  %7677 = vmatprep.subr.bf16.mxu1 %v15218_v48  ;;  %v15302_v47 = vld [vmem:[#allocation3 + $0x68c] ss:$16 sps:$4 sm:$0xff]   ;;  %v15297_v48 = vld [vmem:[#allocation3 + $0x680] ss:$16 sps:$4 sm:$0xff]  }
 0x1a5   : > { %7022 = vmatpush1.bf16.msra.mxu0 %v15213_v50  ;;  %7678 = vmatpush1.bf16.msra.mxu1 %v15216_v51  ;;  %v15300_v50 = vld [vmem:[#allocation3 + $0x688] ss:$16 sps:$4 sm:$0xff]   ;;  %v15305_v51 = vld [vmem:[#allocation3 + $0x6a4] ss:$16 sps:$4 sm:$0xff]  }
 0x1a6   : > { %7023 = vmatprep.subr.bf16.mxu0 %v15221_v52  ;;  %7679 = vmatprep.subr.bf16.mxu1 %v15224_v53  ;;  %v15308_v52 = vld [vmem:[#allocation3 + $0x6ac] ss:$16 sps:$4 sm:$0xff]   ;;  %v15303_v53 = vld [vmem:[#allocation3 + $0x6a0] ss:$16 sps:$4 sm:$0xff]  }
 0x1a9   : > { %7024 = vmatpush1.bf16.msra.mxu0 %v15219_v54  ;;  %7680 = vmatpush1.bf16.msra.mxu1 %v15222_v55  ;;  %v15306_v54 = vld [vmem:[#allocation3 + $0x6a8] ss:$16 sps:$4 sm:$0xff]   ;;  %v15311_v55 = vld [vmem:[#allocation3 + $0x6c4] ss:$16 sps:$4 sm:$0xff]  }
 0x1aa   : > { %7025 = vmatprep.subr.bf16.mxu0 %v15227_v56  ;;  %7681 = vmatprep.subr.bf16.mxu1 %v15230_v57  ;;  %v15314_v56 = vld [vmem:[#allocation3 + $0x6cc] ss:$16 sps:$4 sm:$0xff]   ;;  %v15309_v57 = vld [vmem:[#allocation3 + $0x6c0] ss:$16 sps:$4 sm:$0xff]  }
 0x1ad   : > { %7026 = vmatpush1.bf16.msra.mxu0 %v15225_v58  ;;  %7682 = vmatpush1.bf16.msra.mxu1 %v15228_v59  ;;  %v15312_v58 = vld [vmem:[#allocation3 + $0x6c8] ss:$16 sps:$4 sm:$0xff]   ;;  %v15317_v59 = vld [vmem:[#allocation3 + $0x6e4] ss:$16 sps:$4 sm:$0xff]  }
 0x1ae   : > { %7027 = vmatprep.subr.bf16.mxu0 %v15233_v60  ;;  %7683 = vmatprep.subr.bf16.mxu1 %v15236_v61  ;;  %v15320_v60 = vld [vmem:[#allocation3 + $0x6ec] ss:$16 sps:$4 sm:$0xff]   ;;  %v15315_v61 = vld [vmem:[#allocation3 + $0x6e0] ss:$16 sps:$4 sm:$0xff]  }
 0x1b1   : > { %7028 = vmatpush1.bf16.msra.mxu0 %v15231_v62  ;;  %7684 = vmatpush1.bf16.msra.mxu1 %v15234_v63  ;;  %v15318_v62 = vld [vmem:[#allocation3 + $0x6e8] ss:$16 sps:$4 sm:$0xff]   ;;  %v15323_v63 = vld [vmem:[#allocation3 + $0x704] ss:$16 sps:$4 sm:$0xff]  }
 0x1b2   : > { %7029 = vmatprep.subr.bf16.mxu0 %v15239_v0  ;;  %7685 = vmatprep.subr.bf16.mxu1 %v15242_v1  ;;  %v15326_v0 = vld [vmem:[#allocation3 + $0x70c] ss:$16 sps:$4 sm:$0xff]   ;;  %v15321_v1 = vld [vmem:[#allocation3 + $0x700] ss:$16 sps:$4 sm:$0xff]  }
 0x1b5   : > { %7030 = vmatpush1.bf16.msra.mxu0 %v15237_v2  ;;  %7686 = vmatpush1.bf16.msra.mxu1 %v15240_v3  ;;  %v15324_v2 = vld [vmem:[#allocation3 + $0x708] ss:$16 sps:$4 sm:$0xff]   ;;  %v15329_v3 = vld [vmem:[#allocation3 + $0x724] ss:$16 sps:$4 sm:$0xff]  }
 0x1b6   : > { %7031 = vmatprep.subr.bf16.mxu0 %v15245_v4  ;;  %7687 = vmatprep.subr.bf16.mxu1 %v15248_v5  ;;  %v15332_v4 = vld [vmem:[#allocation3 + $0x72c] ss:$16 sps:$4 sm:$0xff]   ;;  %v15327_v5 = vld [vmem:[#allocation3 + $0x720] ss:$16 sps:$4 sm:$0xff]  }
 0x1b9   : > { %7032 = vmatpush1.bf16.msra.mxu0 %v15243_v6  ;;  %7688 = vmatpush1.bf16.msra.mxu1 %v15246_v7  ;;  %v15330_v6 = vld [vmem:[#allocation3 + $0x728] ss:$16 sps:$4 sm:$0xff]   ;;  %v15335_v7 = vld [vmem:[#allocation3 + $0x744] ss:$16 sps:$4 sm:$0xff]  }
 0x1ba   : > { %7033 = vmatprep.subr.bf16.mxu0 %v15251_v8  ;;  %7689 = vmatprep.subr.bf16.mxu1 %v15254_v10  ;;  %v15338_v8 = vld [vmem:[#allocation3 + $0x74c] ss:$16 sps:$4 sm:$0xff]   ;;  %v15333_v10 = vld [vmem:[#allocation3 + $0x740] ss:$16 sps:$4 sm:$0xff]  }
 0x1bd   : > { %7034 = vmatpush1.bf16.msra.mxu0 %v15249_v11  ;;  %7690 = vmatpush1.bf16.msra.mxu1 %v15252_v12  ;;  %v15336_v11 = vld [vmem:[#allocation3 + $0x748] ss:$16 sps:$4 sm:$0xff]   ;;  %v15341_v12 = vld [vmem:[#allocation3 + $0x764] ss:$16 sps:$4 sm:$0xff]  }
 0x1be   : > { %7035 = vmatprep.subr.bf16.mxu0 %v15257_v13  ;;  %7691 = vmatprep.subr.bf16.mxu1 %v15260_v14  ;;  %v15344_v13 = vld [vmem:[#allocation3 + $0x76c] ss:$16 sps:$4 sm:$0xff]   ;;  %v15339_v14 = vld [vmem:[#allocation3 + $0x760] ss:$16 sps:$4 sm:$0xff]  }
 0x1c1   : > { %7036 = vmatpush1.bf16.msra.mxu0 %v15255_v15  ;;  %7692 = vmatpush1.bf16.msra.mxu1 %v15258_v16  ;;  %v15342_v15 = vld [vmem:[#allocation3 + $0x768] ss:$16 sps:$4 sm:$0xff]   ;;  %v15347_v16 = vld [vmem:[#allocation3 + $0x784] ss:$16 sps:$4 sm:$0xff]  }
 0x1c2   : > { %7037 = vmatprep.subr.bf16.mxu0 %v15263_v17  ;;  %7693 = vmatprep.subr.bf16.mxu1 %v15266_v18  ;;  %v15350_v17 = vld [vmem:[#allocation3 + $0x78c] ss:$16 sps:$4 sm:$0xff]   ;;  %v15345_v18 = vld [vmem:[#allocation3 + $0x780] ss:$16 sps:$4 sm:$0xff]  }
 0x1c5   : > { %7038 = vmatpush1.bf16.msra.mxu0 %v15261_v20  ;;  %7694 = vmatpush1.bf16.msra.mxu1 %v15264_v21  ;;  %v15353_v20 = vld [vmem:[#allocation3 + $0x7a4] ss:$16 sps:$4 sm:$0xff]   ;;  %v15356_v21 = vld [vmem:[#allocation3 + $0x7ac] ss:$16 sps:$4 sm:$0xff]  }
 0x1c6   : > { %7039 = vmatprep.subr.bf16.mxu0 %v15269_v22  ;;  %7695 = vmatprep.subr.bf16.mxu1 %v15272_v24  ;;  %v15351_v22 = vld [vmem:[#allocation3 + $0x7a0] ss:$16 sps:$4 sm:$0xff]   ;;  %v15354_v24 = vld [vmem:[#allocation3 + $0x7a8] ss:$16 sps:$4 sm:$0xff]  }
 0x1c9   : > { %7040 = vmatpush1.bf16.msra.mxu0 %v15267_v9  ;;  %7696 = vmatpush1.bf16.msra.mxu1 %v15270_v27  ;;  %v15359_v9 = vld [vmem:[#allocation3 + $0x7c4] ss:$16 sps:$4 sm:$0xff]   ;;  %v15362_v27 = vld [vmem:[#allocation3 + $0x7cc] ss:$16 sps:$4 sm:$0xff]  }
 0x1ca   : > { %7050 = vmatprep.subr.bf16.mxu0 %v15275_v28  ;;  %7706 = vmatprep.subr.bf16.mxu1 %v15278_v29  ;;  %v15357_v28 = vld [vmem:[#allocation3 + $0x7c0] ss:$16 sps:$4 sm:$0xff]  }
 0x1cb   : > { %v17413_v29 = vld [vmem:[%s18495_s0 + $0x10] sm:$0xff] }
 0x1cc   : > { %7042 = vmatmul.mubr.bf16.vlgmr.msra.gmra.mrb[0].mxu0 %v733_v30  ;;  %7698 = vmatmul.mubr.bf16.vlgmr.msra.gmra.mrb[0].mxu1 %v733_v30  ;;  %v15365_v30 = vld [vmem:[#allocation3 + $0x7e4] ss:$16 sps:$4 sm:$0xff]  }
 0x1cd   : > { %7051 = vmatpush1.bf16.msra.mxu0 %v15273_v31  ;;  %7707 = vmatpush1.bf16.msra.mxu1 %v15276_v32  ;;  %v15368_v31 = vld [vmem:[#allocation3 + $0x7ec] ss:$16 sps:$4 sm:$0xff]   ;;  %v17417_v32 = vrot.slane %v17413_v29, %v17377_v49 }
 0x1ce   : > { %7052 = vmatprep.subr.bf16.mxu0 %v15281_v33  ;;  %7708 = vmatprep.subr.bf16.mxu1 %v15284_v34  ;;  %v15363_v33 = vld [vmem:[#allocation3 + $0x7e0] ss:$16 sps:$4 sm:$0xff]   ;;  %v15366_v34 = vld [vmem:[#allocation3 + $0x7e8] ss:$16 sps:$4 sm:$0xff]  }
 0x1cf   : > { %7082 = vmatprep.mubr.bf16.mxu0 %v736_v35  ;;  %7738 = vmatprep.mubr.bf16.mxu1 %v736_v35  ;;  %v15372_v35 = vld [vmem:[#allocation3 + $0x804] ss:$16 sps:$4 sm:$0xff]  }
 0x1d1   : > { %7053 = vmatpush1.bf16.msra.mxu0 %v15279_v36  ;;  %7709 = vmatpush1.bf16.msra.mxu1 %v15282_v37  ;;  %v15375_v36 = vld [vmem:[#allocation3 + $0x80c] ss:$16 sps:$4 sm:$0xff]   ;;  %v610_v37 = vcombine.high %v17417_v32, %v17417_v32 }
 0x1d2   : > { %7054 = vmatprep.subr.bf16.mxu0 %v15287_v38  ;;  %7710 = vmatprep.subr.bf16.mxu1 %v15290_v39  ;;  %v15370_v38 = vld [vmem:[#allocation3 + $0x800] ss:$16 sps:$4 sm:$0xff]   ;;  %v735_v39 = vpack.c.bf16 %v17404_v25, %v17404_v25 }
 0x1d3   : > { %v15382_v25 = vld [vmem:[#allocation3 + $0x840] ss:$16 sps:$4 sm:$0xff]  }
 0x1d5   : > { %7055 = vmatpush1.bf16.msra.mxu0 %v15285_v26  ;;  %7711 = vmatpush1.bf16.msra.mxu1 %v15288_v40  ;;  %v15373_v26 = vld [vmem:[#allocation3 + $0x808] ss:$16 sps:$4 sm:$0xff]   ;;  %v15378_v40 = vld [vmem:[#allocation3 + $0x824] ss:$16 sps:$4 sm:$0xff]  }
 0x1d6   : > { %7056 = vmatprep.subr.bf16.mxu0 %v15293_v41  ;;  %7712 = vmatprep.subr.bf16.mxu1 %v15296_v42  ;;  %v15381_v41 = vld [vmem:[#allocation3 + $0x82c] ss:$16 sps:$4 sm:$0xff]   ;;  %v738_v42 = vpack.c.bf16 %v610_v37, %v610_v37  ;;  %v15454_v37 = vld [vmem:[#allocation3 + $0x9c0] ss:$16 sps:$4 sm:$0xff]  }
 0x1d9   : > { %7057 = vmatpush1.bf16.msra.mxu0 %v15291_v44  ;;  %7713 = vmatpush1.bf16.msra.mxu1 %v15294_v45  ;;  %v15376_v44 = vld [vmem:[#allocation3 + $0x820] ss:$16 sps:$4 sm:$0xff]   ;;  %v15379_v45 = vld [vmem:[#allocation3 + $0x828] ss:$16 sps:$4 sm:$0xff]  }
 0x1da   : > { %7058 = vmatprep.subr.bf16.mxu0 %v15299_v46  ;;  %7714 = vmatprep.subr.bf16.mxu1 %v15302_v47  ;;  %v15384_v46 = vld [vmem:[#allocation3 + $0x844] ss:$16 sps:$4 sm:$0xff]   ;;  %v15387_v47 = vld [vmem:[#allocation3 + $0x84c] ss:$16 sps:$4 sm:$0xff]  }
 0x1dd   : > { %7059 = vmatpush1.bf16.msra.mxu0 %v15297_v48  ;;  %7715 = vmatpush1.bf16.msra.mxu1 %v15300_v50  ;;  %v15385_v48 = vld [vmem:[#allocation3 + $0x848] ss:$16 sps:$4 sm:$0xff]   ;;  %v15390_v50 = vld [vmem:[#allocation3 + $0x864] ss:$16 sps:$4 sm:$0xff]  }
 0x1de   : > { %7060 = vmatprep.subr.bf16.mxu0 %v15305_v51  ;;  %7716 = vmatprep.subr.bf16.mxu1 %v15308_v52  ;;  %v15393_v51 = vld [vmem:[#allocation3 + $0x86c] ss:$16 sps:$4 sm:$0xff]   ;;  %v15388_v52 = vld [vmem:[#allocation3 + $0x860] ss:$16 sps:$4 sm:$0xff]  }
 0x1e1   : > { %7061 = vmatpush1.bf16.msra.mxu0 %v15303_v53  ;;  %7717 = vmatpush1.bf16.msra.mxu1 %v15306_v54  ;;  %v15391_v53 = vld [vmem:[#allocation3 + $0x868] ss:$16 sps:$4 sm:$0xff]   ;;  %v15396_v54 = vld [vmem:[#allocation3 + $0x884] ss:$16 sps:$4 sm:$0xff]  }
 0x1e2   : > { %7062 = vmatprep.subr.bf16.mxu0 %v15311_v55  ;;  %7718 = vmatprep.subr.bf16.mxu1 %v15314_v56  ;;  %v15399_v55 = vld [vmem:[#allocation3 + $0x88c] ss:$16 sps:$4 sm:$0xff]   ;;  %v15394_v56 = vld [vmem:[#allocation3 + $0x880] ss:$16 sps:$4 sm:$0xff]  }
 0x1e5   : > { %7063 = vmatpush1.bf16.msra.mxu0 %v15309_v57  ;;  %7719 = vmatpush1.bf16.msra.mxu1 %v15312_v58  ;;  %v15397_v57 = vld [vmem:[#allocation3 + $0x888] ss:$16 sps:$4 sm:$0xff]   ;;  %v15402_v58 = vld [vmem:[#allocation3 + $0x8a4] ss:$16 sps:$4 sm:$0xff]  }
 0x1e6   : > { %7064 = vmatprep.subr.bf16.mxu0 %v15317_v59  ;;  %7720 = vmatprep.subr.bf16.mxu1 %v15320_v60  ;;  %v15405_v59 = vld [vmem:[#allocation3 + $0x8ac] ss:$16 sps:$4 sm:$0xff]   ;;  %v15400_v60 = vld [vmem:[#allocation3 + $0x8a0] ss:$16 sps:$4 sm:$0xff]  }
 0x1e9   : > { %7065 = vmatpush1.bf16.msra.mxu0 %v15315_v61  ;;  %7721 = vmatpush1.bf16.msra.mxu1 %v15318_v62  ;;  %v15403_v61 = vld [vmem:[#allocation3 + $0x8a8] ss:$16 sps:$4 sm:$0xff]   ;;  %v15408_v62 = vld [vmem:[#allocation3 + $0x8c4] ss:$16 sps:$4 sm:$0xff]  }
 0x1ea   : > { %7066 = vmatprep.subr.bf16.mxu0 %v15323_v63  ;;  %7722 = vmatprep.subr.bf16.mxu1 %v15326_v0  ;;  %v15411_v63 = vld [vmem:[#allocation3 + $0x8cc] ss:$16 sps:$4 sm:$0xff]   ;;  %v15406_v0 = vld [vmem:[#allocation3 + $0x8c0] ss:$16 sps:$4 sm:$0xff]  }
 0x1ed   : > { %7067 = vmatpush1.bf16.msra.mxu0 %v15321_v1  ;;  %7723 = vmatpush1.bf16.msra.mxu1 %v15324_v2  ;;  %v15409_v1 = vld [vmem:[#allocation3 + $0x8c8] ss:$16 sps:$4 sm:$0xff]   ;;  %v15414_v2 = vld [vmem:[#allocation3 + $0x8e4] ss:$16 sps:$4 sm:$0xff]  }
 0x1ee   : > { %7068 = vmatprep.subr.bf16.mxu0 %v15329_v3  ;;  %7724 = vmatprep.subr.bf16.mxu1 %v15332_v4  ;;  %v15417_v3 = vld [vmem:[#allocation3 + $0x8ec] ss:$16 sps:$4 sm:$0xff]   ;;  %v15412_v4 = vld [vmem:[#allocation3 + $0x8e0] ss:$16 sps:$4 sm:$0xff]  }
 0x1f1   : > { %7069 = vmatpush1.bf16.msra.mxu0 %v15327_v5  ;;  %7725 = vmatpush1.bf16.msra.mxu1 %v15330_v6  ;;  %v15415_v5 = vld [vmem:[#allocation3 + $0x8e8] ss:$16 sps:$4 sm:$0xff]   ;;  %v15420_v6 = vld [vmem:[#allocation3 + $0x904] ss:$16 sps:$4 sm:$0xff]  }
 0x1f2   : > { %7070 = vmatprep.subr.bf16.mxu0 %v15335_v7  ;;  %7726 = vmatprep.subr.bf16.mxu1 %v15338_v8  ;;  %v15423_v7 = vld [vmem:[#allocation3 + $0x90c] ss:$16 sps:$4 sm:$0xff]   ;;  %v15418_v8 = vld [vmem:[#allocation3 + $0x900] ss:$16 sps:$4 sm:$0xff]  }
 0x1f5   : > { %7071 = vmatpush1.bf16.msra.mxu0 %v15333_v10  ;;  %7727 = vmatpush1.bf16.msra.mxu1 %v15336_v11  ;;  %v15421_v10 = vld [vmem:[#allocation3 + $0x908] ss:$16 sps:$4 sm:$0xff]   ;;  %v15426_v11 = vld [vmem:[#allocation3 + $0x924] ss:$16 sps:$4 sm:$0xff]  }
 0x1f6   : > { %7072 = vmatprep.subr.bf16.mxu0 %v15341_v12  ;;  %7728 = vmatprep.subr.bf16.mxu1 %v15344_v13  ;;  %v15429_v12 = vld [vmem:[#allocation3 + $0x92c] ss:$16 sps:$4 sm:$0xff]   ;;  %v15424_v13 = vld [vmem:[#allocation3 + $0x920] ss:$16 sps:$4 sm:$0xff]  }
 0x1f9   : > { %7073 = vmatpush1.bf16.msra.mxu0 %v15339_v14  ;;  %7729 = vmatpush1.bf16.msra.mxu1 %v15342_v15  ;;  %v15427_v14 = vld [vmem:[#allocation3 + $0x928] ss:$16 sps:$4 sm:$0xff]   ;;  %v15432_v15 = vld [vmem:[#allocation3 + $0x944] ss:$16 sps:$4 sm:$0xff]  }
 0x1fa   : > { %7074 = vmatprep.subr.bf16.mxu0 %v15347_v16  ;;  %7730 = vmatprep.subr.bf16.mxu1 %v15350_v17  ;;  %v15435_v16 = vld [vmem:[#allocation3 + $0x94c] ss:$16 sps:$4 sm:$0xff]   ;;  %v15430_v17 = vld [vmem:[#allocation3 + $0x940] ss:$16 sps:$4 sm:$0xff]  }
 0x1fd   : > { %7075 = vmatpush1.bf16.msra.mxu0 %v15345_v18  ;;  %7731 = vmatpush1.bf16.msra.mxu1 %v15348_v19  ;;  %v15433_v18 = vld [vmem:[#allocation3 + $0x948] ss:$16 sps:$4 sm:$0xff]   ;;  %v15438_v19 = vld [vmem:[#allocation3 + $0x964] ss:$16 sps:$4 sm:$0xff]  }
 0x1fe   : > { %7076 = vmatprep.subr.bf16.mxu0 %v15353_v20  ;;  %7732 = vmatprep.subr.bf16.mxu1 %v15356_v21  ;;  %v15441_v20 = vld [vmem:[#allocation3 + $0x96c] ss:$16 sps:$4 sm:$0xff]   ;;  %v15436_v21 = vld [vmem:[#allocation3 + $0x960] ss:$16 sps:$4 sm:$0xff]  }
 0x201   : > { %7077 = vmatpush1.bf16.msra.mxu0 %v15351_v22  ;;  %7733 = vmatpush1.bf16.msra.mxu1 %v15354_v24  ;;  %v15439_v22 = vld [vmem:[#allocation3 + $0x968] ss:$16 sps:$4 sm:$0xff]   ;;  %v15444_v24 = vld [vmem:[#allocation3 + $0x984] ss:$16 sps:$4 sm:$0xff]  }
 0x202   : > { %7078 = vmatprep.subr.bf16.mxu0 %v15359_v9  ;;  %7734 = vmatprep.subr.bf16.mxu1 %v15362_v27  ;;  %v15447_v9 = vld [vmem:[#allocation3 + $0x98c] ss:$16 sps:$4 sm:$0xff]   ;;  %v15442_v27 = vld [vmem:[#allocation3 + $0x980] ss:$16 sps:$4 sm:$0xff]  }
 0x205   : > { %7079 = vmatpush1.bf16.msra.mxu0 %v15357_v28  ;;  %7735 = vmatpush1.bf16.msra.mxu1 %v15360_v23  ;;  %v15445_v28 = vld [vmem:[#allocation3 + $0x988] ss:$16 sps:$4 sm:$0xff]   ;;  %v15450_v23 = vld [vmem:[#allocation3 + $0x9a4] ss:$16 sps:$4 sm:$0xff]  }
 0x206   : > { %7080 = vmatprep.subr.bf16.mxu0 %v15365_v30  ;;  %7736 = vmatprep.subr.bf16.mxu1 %v15368_v31  ;;  %v15453_v30 = vld [vmem:[#allocation3 + $0x9ac] ss:$16 sps:$4 sm:$0xff]   ;;  %v15448_v31 = vld [vmem:[#allocation3 + $0x9a0] ss:$16 sps:$4 sm:$0xff]  }
 0x209   : > { %7081 = vmatpush1.bf16.msra.mxu0 %v15363_v33  ;;  %7737 = vmatpush1.bf16.msra.mxu1 %v15366_v34  ;;  %v15451_v33 = vld [vmem:[#allocation3 + $0x9a8] ss:$16 sps:$4 sm:$0xff]   ;;  %v15456_v34 = vld [vmem:[#allocation3 + $0x9c4] ss:$16 sps:$4 sm:$0xff]  }
 0x20a   : > { %7091 = vmatprep.subr.bf16.mxu0 %v15372_v35  ;;  %7747 = vmatprep.subr.bf16.mxu1 %v15375_v36  ;;  %v15459_v35 = vld [vmem:[#allocation3 + $0x9cc] ss:$16 sps:$4 sm:$0xff]   ;;  %v595_v36 = vcombine.high %v17413_v29, %v17413_v29 }
 0x20c   : > { %7083 = vmatmul.mubr.bf16.vlgmr.msra.gmra.mrb[0].mxu0 %v735_v39  ;;  %7739 = vmatmul.mubr.bf16.vlgmr.msra.gmra.mrb[0].mxu1 %v735_v39  ;;  %v15462_v39 = vld [vmem:[#allocation3 + $0x9e4] ss:$16 sps:$4 sm:$0xff]  }
 0x20d   : > { %7092 = vmatpush1.bf16.msra.mxu0 %v15370_v38  ;;  %7748 = vmatpush1.bf16.msra.mxu1 %v15373_v26  ;;  %v15457_v38 = vld [vmem:[#allocation3 + $0x9c8] ss:$16 sps:$4 sm:$0xff]   ;;  %v15465_v26 = vld [vmem:[#allocation3 + $0x9ec] ss:$16 sps:$4 sm:$0xff]  }
 0x20e   : > { %7093 = vmatprep.subr.bf16.mxu0 %v15378_v40  ;;  %7749 = vmatprep.subr.bf16.mxu1 %v15381_v41  ;;  %v17426_v40 = vrot.slane %v595_v36, %v17377_v49  ;;  %v15460_v41 = vld [vmem:[#allocation3 + $0x9e0] ss:$16 sps:$4 sm:$0xff]   ;;  %v15541_v36 = vld [vmem:[#allocation3 + $0xb88] ss:$16 sps:$4 sm:$0xff]  }
 0x20f   : > { %7123 = vmatprep.mubr.bf16.mxu0 %v738_v42  ;;  %7779 = vmatprep.mubr.bf16.mxu1 %v738_v42  ;;  %v15463_v42 = vld [vmem:[#allocation3 + $0x9e8] ss:$16 sps:$4 sm:$0xff]  }
 0x210   : > { %v611_v29 = vcombine.high %v17426_v40, %v17426_v40 }
 0x211   : > { %7094 = vmatpush1.bf16.msra.mxu0 %v15376_v44  ;;  %7750 = vmatpush1.bf16.msra.mxu1 %v15379_v45  ;;  %v15468_v44 = vld [vmem:[#allocation3 + $0xa04] ss:$16 sps:$4 sm:$0xff]   ;;  %v15471_v45 = vld [vmem:[#allocation3 + $0xa0c] ss:$16 sps:$4 sm:$0xff]  }
 0x212   : > { %7095 = vmatprep.subr.bf16.mxu0 %v15384_v46  ;;  %7751 = vmatprep.subr.bf16.mxu1 %v15387_v47  ;;  %v737_v46 = vpack.c.bf16 %v17417_v32, %v17417_v32  ;;  %v15466_v47 = vld [vmem:[#allocation3 + $0xa00] ss:$16 sps:$4 sm:$0xff]  }
 0x213   : > { %v15478_v32 = vld [vmem:[#allocation3 + $0xa40] ss:$16 sps:$4 sm:$0xff]  }
 0x215   : > { %7096 = vmatpush1.bf16.msra.mxu0 %v15382_v25  ;;  %7752 = vmatpush1.bf16.msra.mxu1 %v15385_v48  ;;  %v15469_v25 = vld [vmem:[#allocation3 + $0xa08] ss:$16 sps:$4 sm:$0xff]   ;;  %v15474_v48 = vld [vmem:[#allocation3 + $0xa24] ss:$16 sps:$4 sm:$0xff]  }
 0x216   : > { %7097 = vmatprep.subr.bf16.mxu0 %v15390_v50  ;;  %7753 = vmatprep.subr.bf16.mxu1 %v15393_v51  ;;  %v15477_v50 = vld [vmem:[#allocation3 + $0xa2c] ss:$16 sps:$4 sm:$0xff]   ;;  %v740_v51 = vpack.c.bf16 %v611_v29, %v611_v29  ;;  %v15553_v29 = vld [vmem:[#allocation3 + $0xbc8] ss:$16 sps:$4 sm:$0xff]  }
 0x219   : > { %7098 = vmatpush1.bf16.msra.mxu0 %v15388_v52  ;;  %7754 = vmatpush1.bf16.msra.mxu1 %v15391_v53  ;;  %v15472_v52 = vld [vmem:[#allocation3 + $0xa20] ss:$16 sps:$4 sm:$0xff]   ;;  %v15475_v53 = vld [vmem:[#allocation3 + $0xa28] ss:$16 sps:$4 sm:$0xff]  }
 0x21a   : > { %7099 = vmatprep.subr.bf16.mxu0 %v15396_v54  ;;  %7755 = vmatprep.subr.bf16.mxu1 %v15399_v55  ;;  %v15480_v54 = vld [vmem:[#allocation3 + $0xa44] ss:$16 sps:$4 sm:$0xff]   ;;  %v15483_v55 = vld [vmem:[#allocation3 + $0xa4c] ss:$16 sps:$4 sm:$0xff]  }
 0x21d   : > { %7100 = vmatpush1.bf16.msra.mxu0 %v15394_v56  ;;  %7756 = vmatpush1.bf16.msra.mxu1 %v15397_v57  ;;  %v15481_v56 = vld [vmem:[#allocation3 + $0xa48] ss:$16 sps:$4 sm:$0xff]   ;;  %v15486_v57 = vld [vmem:[#allocation3 + $0xa64] ss:$16 sps:$4 sm:$0xff]  }
 0x21e   : > { %7101 = vmatprep.subr.bf16.mxu0 %v15402_v58  ;;  %7757 = vmatprep.subr.bf16.mxu1 %v15405_v59  ;;  %v15489_v58 = vld [vmem:[#allocation3 + $0xa6c] ss:$16 sps:$4 sm:$0xff]   ;;  %v15484_v59 = vld [vmem:[#allocation3 + $0xa60] ss:$16 sps:$4 sm:$0xff]  }
 0x221   : > { %7102 = vmatpush1.bf16.msra.mxu0 %v15400_v60  ;;  %7758 = vmatpush1.bf16.msra.mxu1 %v15403_v61  ;;  %v15487_v60 = vld [vmem:[#allocation3 + $0xa68] ss:$16 sps:$4 sm:$0xff]   ;;  %v15492_v61 = vld [vmem:[#allocation3 + $0xa84] ss:$16 sps:$4 sm:$0xff]  }
 0x222   : > { %7103 = vmatprep.subr.bf16.mxu0 %v15408_v62  ;;  %7759 = vmatprep.subr.bf16.mxu1 %v15411_v63  ;;  %v15495_v62 = vld [vmem:[#allocation3 + $0xa8c] ss:$16 sps:$4 sm:$0xff]   ;;  %v15490_v63 = vld [vmem:[#allocation3 + $0xa80] ss:$16 sps:$4 sm:$0xff]  }
 0x225   : > { %7104 = vmatpush1.bf16.msra.mxu0 %v15406_v0  ;;  %7760 = vmatpush1.bf16.msra.mxu1 %v15409_v1  ;;  %v15493_v0 = vld [vmem:[#allocation3 + $0xa88] ss:$16 sps:$4 sm:$0xff]   ;;  %v15498_v1 = vld [vmem:[#allocation3 + $0xaa4] ss:$16 sps:$4 sm:$0xff]  }
 0x226   : > { %7105 = vmatprep.subr.bf16.mxu0 %v15414_v2  ;;  %7761 = vmatprep.subr.bf16.mxu1 %v15417_v3  ;;  %v15501_v2 = vld [vmem:[#allocation3 + $0xaac] ss:$16 sps:$4 sm:$0xff]   ;;  %v15496_v3 = vld [vmem:[#allocation3 + $0xaa0] ss:$16 sps:$4 sm:$0xff]  }
 0x229   : > { %7106 = vmatpush1.bf16.msra.mxu0 %v15412_v4  ;;  %7762 = vmatpush1.bf16.msra.mxu1 %v15415_v5  ;;  %v15499_v4 = vld [vmem:[#allocation3 + $0xaa8] ss:$16 sps:$4 sm:$0xff]   ;;  %v15504_v5 = vld [vmem:[#allocation3 + $0xac4] ss:$16 sps:$4 sm:$0xff]  }
 0x22a   : > { %7107 = vmatprep.subr.bf16.mxu0 %v15420_v6  ;;  %7763 = vmatprep.subr.bf16.mxu1 %v15423_v7  ;;  %v15507_v6 = vld [vmem:[#allocation3 + $0xacc] ss:$16 sps:$4 sm:$0xff]   ;;  %v15502_v7 = vld [vmem:[#allocation3 + $0xac0] ss:$16 sps:$4 sm:$0xff]  }
 0x22d   : > { %7108 = vmatpush1.bf16.msra.mxu0 %v15418_v8  ;;  %7764 = vmatpush1.bf16.msra.mxu1 %v15421_v10  ;;  %v15505_v8 = vld [vmem:[#allocation3 + $0xac8] ss:$16 sps:$4 sm:$0xff]   ;;  %v15510_v10 = vld [vmem:[#allocation3 + $0xae4] ss:$16 sps:$4 sm:$0xff]  }
 0x22e   : > { %7109 = vmatprep.subr.bf16.mxu0 %v15426_v11  ;;  %7765 = vmatprep.subr.bf16.mxu1 %v15429_v12  ;;  %v15513_v11 = vld [vmem:[#allocation3 + $0xaec] ss:$16 sps:$4 sm:$0xff]   ;;  %v15508_v12 = vld [vmem:[#allocation3 + $0xae0] ss:$16 sps:$4 sm:$0xff]  }
 0x231   : > { %7110 = vmatpush1.bf16.msra.mxu0 %v15424_v13  ;;  %7766 = vmatpush1.bf16.msra.mxu1 %v15427_v14  ;;  %v15511_v13 = vld [vmem:[#allocation3 + $0xae8] ss:$16 sps:$4 sm:$0xff]   ;;  %v15516_v14 = vld [vmem:[#allocation3 + $0xb04] ss:$16 sps:$4 sm:$0xff]  }
 0x232   : > { %7111 = vmatprep.subr.bf16.mxu0 %v15432_v15  ;;  %7767 = vmatprep.subr.bf16.mxu1 %v15435_v16  ;;  %v15519_v15 = vld [vmem:[#allocation3 + $0xb0c] ss:$16 sps:$4 sm:$0xff]   ;;  %v15514_v16 = vld [vmem:[#allocation3 + $0xb00] ss:$16 sps:$4 sm:$0xff]  }
 0x235   : > { %7112 = vmatpush1.bf16.msra.mxu0 %v15430_v17  ;;  %7768 = vmatpush1.bf16.msra.mxu1 %v15433_v18  ;;  %v15517_v17 = vld [vmem:[#allocation3 + $0xb08] ss:$16 sps:$4 sm:$0xff]   ;;  %v15522_v18 = vld [vmem:[#allocation3 + $0xb24] ss:$16 sps:$4 sm:$0xff]  }
 0x236   : > { %7113 = vmatprep.subr.bf16.mxu0 %v15438_v19  ;;  %7769 = vmatprep.subr.bf16.mxu1 %v15441_v20  ;;  %v15525_v19 = vld [vmem:[#allocation3 + $0xb2c] ss:$16 sps:$4 sm:$0xff]   ;;  %v15520_v20 = vld [vmem:[#allocation3 + $0xb20] ss:$16 sps:$4 sm:$0xff]  }
 0x239   : > { %7114 = vmatpush1.bf16.msra.mxu0 %v15436_v21  ;;  %7770 = vmatpush1.bf16.msra.mxu1 %v15439_v22  ;;  %v15523_v21 = vld [vmem:[#allocation3 + $0xb28] ss:$16 sps:$4 sm:$0xff]   ;;  %v15528_v22 = vld [vmem:[#allocation3 + $0xb44] ss:$16 sps:$4 sm:$0xff]  }
 0x23a   : > { %7115 = vmatprep.subr.bf16.mxu0 %v15444_v24  ;;  %7771 = vmatprep.subr.bf16.mxu1 %v15447_v9  ;;  %v15531_v24 = vld [vmem:[#allocation3 + $0xb4c] ss:$16 sps:$4 sm:$0xff]   ;;  %v15526_v9 = vld [vmem:[#allocation3 + $0xb40] ss:$16 sps:$4 sm:$0xff]  }
 0x23d   : > { %7116 = vmatpush1.bf16.msra.mxu0 %v15442_v27  ;;  %7772 = vmatpush1.bf16.msra.mxu1 %v15445_v28  ;;  %v15529_v27 = vld [vmem:[#allocation3 + $0xb48] ss:$16 sps:$4 sm:$0xff]   ;;  %v15534_v28 = vld [vmem:[#allocation3 + $0xb64] ss:$16 sps:$4 sm:$0xff]  }
 0x23e   : > { %7117 = vmatprep.subr.bf16.mxu0 %v15450_v23  ;;  %7773 = vmatprep.subr.bf16.mxu1 %v15453_v30  ;;  %v15537_v23 = vld [vmem:[#allocation3 + $0xb6c] ss:$16 sps:$4 sm:$0xff]   ;;  %v15532_v30 = vld [vmem:[#allocation3 + $0xb60] ss:$16 sps:$4 sm:$0xff]  }
 0x241   : > { %7118 = vmatpush1.bf16.msra.mxu0 %v15448_v31  ;;  %7774 = vmatpush1.bf16.msra.mxu1 %v15451_v33  ;;  %v15535_v31 = vld [vmem:[#allocation3 + $0xb68] ss:$16 sps:$4 sm:$0xff]   ;;  %v15540_v33 = vld [vmem:[#allocation3 + $0xb84] ss:$16 sps:$4 sm:$0xff]  }
 0x242   : > { %7119 = vmatprep.subr.bf16.mxu0 %v15456_v34  ;;  %7775 = vmatprep.subr.bf16.mxu1 %v15459_v35  ;;  %v15543_v34 = vld [vmem:[#allocation3 + $0xb8c] ss:$16 sps:$4 sm:$0xff]   ;;  %v15538_v35 = vld [vmem:[#allocation3 + $0xb80] ss:$16 sps:$4 sm:$0xff]  }
 0x245   : > { %7120 = vmatpush1.bf16.msra.mxu0 %v15454_v37  ;;  %7776 = vmatpush1.bf16.msra.mxu1 %v15457_v38  ;;  %v15546_v37 = vld [vmem:[#allocation3 + $0xba4] ss:$16 sps:$4 sm:$0xff]   ;;  %v15549_v38 = vld [vmem:[#allocation3 + $0xbac] ss:$16 sps:$4 sm:$0xff]  }
 0x246   : > { %7121 = vmatprep.subr.bf16.mxu0 %v15462_v39  ;;  %7777 = vmatprep.subr.bf16.mxu1 %v15465_v26  ;;  %v15544_v39 = vld [vmem:[#allocation3 + $0xba0] ss:$16 sps:$4 sm:$0xff]   ;;  %v15547_v26 = vld [vmem:[#allocation3 + $0xba8] ss:$16 sps:$4 sm:$0xff]  }
 0x249   : > { %7122 = vmatpush1.bf16.msra.mxu0 %v15460_v41  ;;  %7778 = vmatpush1.bf16.msra.mxu1 %v15463_v42  ;;  %v15552_v41 = vld [vmem:[#allocation3 + $0xbc4] ss:$16 sps:$4 sm:$0xff]   ;;  %v15555_v42 = vld [vmem:[#allocation3 + $0xbcc] ss:$16 sps:$4 sm:$0xff]  }
 0x24a   : > { %7132 = vmatprep.subr.bf16.mxu0 %v15468_v44  ;;  %7788 = vmatprep.subr.bf16.mxu1 %v15471_v45  ;;  %v17435_v44 = vld [vmem:[%s18495_s0 + $0x18] sm:$0xff]  ;;  %v15550_v45 = vld [vmem:[#allocation3 + $0xbc0] ss:$16 sps:$4 sm:$0xff]  }
 0x24c   : > { %7124 = vmatmul.mubr.bf16.vlgmr.msra.gmra.mrb[0].mxu0 %v737_v46  ;;  %7780 = vmatmul.mubr.bf16.vlgmr.msra.gmra.mrb[0].mxu1 %v737_v46  ;;  %v15558_v46 = vld [vmem:[#allocation3 + $0xbe4] ss:$16 sps:$4 sm:$0xff]  }
 0x24d   : > { %7133 = vmatpush1.bf16.msra.mxu0 %v15466_v47  ;;  %7789 = vmatpush1.bf16.msra.mxu1 %v15469_v25  ;;  %v15561_v47 = vld [vmem:[#allocation3 + $0xbec] ss:$16 sps:$4 sm:$0xff]   ;;  %v17439_v25 = vrot.slane %v17435_v44, %v17377_v49 }
 0x24e   : > { %7134 = vmatprep.subr.bf16.mxu0 %v15474_v48  ;;  %7790 = vmatprep.subr.bf16.mxu1 %v15477_v50  ;;  %v15556_v48 = vld [vmem:[#allocation3 + $0xbe0] ss:$16 sps:$4 sm:$0xff]   ;;  %v15559_v50 = vld [vmem:[#allocation3 + $0xbe8] ss:$16 sps:$4 sm:$0xff]  }
 0x24f   : > { %7164 = vmatprep.mubr.bf16.mxu0 %v740_v51  ;;  %7820 = vmatprep.mubr.bf16.mxu1 %v740_v51  ;;  %v15565_v51 = vld [vmem:[#allocation3 + $0xc04] ss:$16 sps:$4 sm:$0xff]  }
 0x251   : > { %7135 = vmatpush1.bf16.msra.mxu0 %v15472_v52  ;;  %7791 = vmatpush1.bf16.msra.mxu1 %v15475_v53  ;;  %v15568_v52 = vld [vmem:[#allocation3 + $0xc0c] ss:$16 sps:$4 sm:$0xff]   ;;  %v627_v53 = vcombine.high %v17439_v25, %v17439_v25 }
 0x252   : > { %7136 = vmatprep.subr.bf16.mxu0 %v15480_v54  ;;  %7792 = vmatprep.subr.bf16.mxu1 %v15483_v55  ;;  %v739_v54 = vpack.c.bf16 %v17426_v40, %v17426_v40  ;;  %v15563_v55 = vld [vmem:[#allocation3 + $0xc00] ss:$16 sps:$4 sm:$0xff]  }
 0x253   : > { %v15575_v40 = vld [vmem:[#allocation3 + $0xc40] ss:$16 sps:$4 sm:$0xff]  }
 0x255   : > { %7137 = vmatpush1.bf16.msra.mxu0 %v15478_v32  ;;  %7793 = vmatpush1.bf16.msra.mxu1 %v15481_v56  ;;  %v15566_v32 = vld [vmem:[#allocation3 + $0xc08] ss:$16 sps:$4 sm:$0xff]   ;;  %v15571_v56 = vld [vmem:[#allocation3 + $0xc24] ss:$16 sps:$4 sm:$0xff]  }
 0x256   : > { %7138 = vmatprep.subr.bf16.mxu0 %v15486_v57  ;;  %7794 = vmatprep.subr.bf16.mxu1 %v15489_v58  ;;  %v15574_v57 = vld [vmem:[#allocation3 + $0xc2c] ss:$16 sps:$4 sm:$0xff]   ;;  %v742_v58 = vpack.c.bf16 %v627_v53, %v627_v53  ;;  %v15647_v53 = vld [vmem:[#allocation3 + $0xdc0] ss:$16 sps:$4 sm:$0xff]  }
 0x259   : > { %7139 = vmatpush1.bf16.msra.mxu0 %v15484_v59  ;;  %7795 = vmatpush1.bf16.msra.mxu1 %v15487_v60  ;;  %v15569_v59 = vld [vmem:[#allocation3 + $0xc20] ss:$16 sps:$4 sm:$0xff]   ;;  %v15572_v60 = vld [vmem:[#allocation3 + $0xc28] ss:$16 sps:$4 sm:$0xff]  }
 0x25a   : > { %7140 = vmatprep.subr.bf16.mxu0 %v15492_v61  ;;  %7796 = vmatprep.subr.bf16.mxu1 %v15495_v62  ;;  %v15577_v61 = vld [vmem:[#allocation3 + $0xc44] ss:$16 sps:$4 sm:$0xff]   ;;  %v15580_v62 = vld [vmem:[#allocation3 + $0xc4c] ss:$16 sps:$4 sm:$0xff]  }
 0x25d   : > { %7141 = vmatpush1.bf16.msra.mxu0 %v15490_v63  ;;  %7797 = vmatpush1.bf16.msra.mxu1 %v15493_v0  ;;  %v15578_v63 = vld [vmem:[#allocation3 + $0xc48] ss:$16 sps:$4 sm:$0xff]   ;;  %v15583_v0 = vld [vmem:[#allocation3 + $0xc64] ss:$16 sps:$4 sm:$0xff]  }
 0x25e   : > { %7142 = vmatprep.subr.bf16.mxu0 %v15498_v1  ;;  %7798 = vmatprep.subr.bf16.mxu1 %v15501_v2  ;;  %v15586_v1 = vld [vmem:[#allocation3 + $0xc6c] ss:$16 sps:$4 sm:$0xff]   ;;  %v15581_v2 = vld [vmem:[#allocation3 + $0xc60] ss:$16 sps:$4 sm:$0xff]  }
 0x261   : > { %7143 = vmatpush1.bf16.msra.mxu0 %v15496_v3  ;;  %7799 = vmatpush1.bf16.msra.mxu1 %v15499_v4  ;;  %v15584_v3 = vld [vmem:[#allocation3 + $0xc68] ss:$16 sps:$4 sm:$0xff]   ;;  %v15589_v4 = vld [vmem:[#allocation3 + $0xc84] ss:$16 sps:$4 sm:$0xff]  }
 0x262   : > { %7144 = vmatprep.subr.bf16.mxu0 %v15504_v5  ;;  %7800 = vmatprep.subr.bf16.mxu1 %v15507_v6  ;;  %v15592_v5 = vld [vmem:[#allocation3 + $0xc8c] ss:$16 sps:$4 sm:$0xff]   ;;  %v15587_v6 = vld [vmem:[#allocation3 + $0xc80] ss:$16 sps:$4 sm:$0xff]  }
 0x265   : > { %7145 = vmatpush1.bf16.msra.mxu0 %v15502_v7  ;;  %7801 = vmatpush1.bf16.msra.mxu1 %v15505_v8  ;;  %v15590_v7 = vld [vmem:[#allocation3 + $0xc88] ss:$16 sps:$4 sm:$0xff]   ;;  %v15595_v8 = vld [vmem:[#allocation3 + $0xca4] ss:$16 sps:$4 sm:$0xff]  }
 0x266   : > { %7146 = vmatprep.subr.bf16.mxu0 %v15510_v10  ;;  %7802 = vmatprep.subr.bf16.mxu1 %v15513_v11  ;;  %v15598_v10 = vld [vmem:[#allocation3 + $0xcac] ss:$16 sps:$4 sm:$0xff]   ;;  %v15593_v11 = vld [vmem:[#allocation3 + $0xca0] ss:$16 sps:$4 sm:$0xff]  }
 0x269   : > { %7147 = vmatpush1.bf16.msra.mxu0 %v15508_v12  ;;  %7803 = vmatpush1.bf16.msra.mxu1 %v15511_v13  ;;  %v15596_v12 = vld [vmem:[#allocation3 + $0xca8] ss:$16 sps:$4 sm:$0xff]   ;;  %v15601_v13 = vld [vmem:[#allocation3 + $0xcc4] ss:$16 sps:$4 sm:$0xff]  }
 0x26a   : > { %7148 = vmatprep.subr.bf16.mxu0 %v15516_v14  ;;  %7804 = vmatprep.subr.bf16.mxu1 %v15519_v15  ;;  %v15604_v14 = vld [vmem:[#allocation3 + $0xccc] ss:$16 sps:$4 sm:$0xff]   ;;  %v15599_v15 = vld [vmem:[#allocation3 + $0xcc0] ss:$16 sps:$4 sm:$0xff]  }
 0x26d   : > { %7149 = vmatpush1.bf16.msra.mxu0 %v15514_v16  ;;  %7805 = vmatpush1.bf16.msra.mxu1 %v15517_v17  ;;  %v15602_v16 = vld [vmem:[#allocation3 + $0xcc8] ss:$16 sps:$4 sm:$0xff]   ;;  %v15607_v17 = vld [vmem:[#allocation3 + $0xce4] ss:$16 sps:$4 sm:$0xff]  }
 0x26e   : > { %7150 = vmatprep.subr.bf16.mxu0 %v15522_v18  ;;  %7806 = vmatprep.subr.bf16.mxu1 %v15525_v19  ;;  %v15610_v18 = vld [vmem:[#allocation3 + $0xcec] ss:$16 sps:$4 sm:$0xff]   ;;  %v15605_v19 = vld [vmem:[#allocation3 + $0xce0] ss:$16 sps:$4 sm:$0xff]  }
 0x271   : > { %7151 = vmatpush1.bf16.msra.mxu0 %v15520_v20  ;;  %7807 = vmatpush1.bf16.msra.mxu1 %v15523_v21  ;;  %v15608_v20 = vld [vmem:[#allocation3 + $0xce8] ss:$16 sps:$4 sm:$0xff]   ;;  %v15613_v21 = vld [vmem:[#allocation3 + $0xd04] ss:$16 sps:$4 sm:$0xff]  }
 0x272   : > { %7152 = vmatprep.subr.bf16.mxu0 %v15528_v22  ;;  %7808 = vmatprep.subr.bf16.mxu1 %v15531_v24  ;;  %v15616_v22 = vld [vmem:[#allocation3 + $0xd0c] ss:$16 sps:$4 sm:$0xff]   ;;  %v15611_v24 = vld [vmem:[#allocation3 + $0xd00] ss:$16 sps:$4 sm:$0xff]  }
 0x275   : > { %7153 = vmatpush1.bf16.msra.mxu0 %v15526_v9  ;;  %7809 = vmatpush1.bf16.msra.mxu1 %v15529_v27  ;;  %v15614_v9 = vld [vmem:[#allocation3 + $0xd08] ss:$16 sps:$4 sm:$0xff]   ;;  %v15619_v27 = vld [vmem:[#allocation3 + $0xd24] ss:$16 sps:$4 sm:$0xff]  }
 0x276   : > { %7154 = vmatprep.subr.bf16.mxu0 %v15534_v28  ;;  %7810 = vmatprep.subr.bf16.mxu1 %v15537_v23  ;;  %v15622_v28 = vld [vmem:[#allocation3 + $0xd2c] ss:$16 sps:$4 sm:$0xff]   ;;  %v15617_v23 = vld [vmem:[#allocation3 + $0xd20] ss:$16 sps:$4 sm:$0xff]  }
 0x279   : > { %7155 = vmatpush1.bf16.msra.mxu0 %v15532_v30  ;;  %7811 = vmatpush1.bf16.msra.mxu1 %v15535_v31  ;;  %v15620_v30 = vld [vmem:[#allocation3 + $0xd28] ss:$16 sps:$4 sm:$0xff]   ;;  %v15625_v31 = vld [vmem:[#allocation3 + $0xd44] ss:$16 sps:$4 sm:$0xff]  }
 0x27a   : > { %7156 = vmatprep.subr.bf16.mxu0 %v15540_v33  ;;  %7812 = vmatprep.subr.bf16.mxu1 %v15543_v34  ;;  %v15628_v33 = vld [vmem:[#allocation3 + $0xd4c] ss:$16 sps:$4 sm:$0xff]   ;;  %v15623_v34 = vld [vmem:[#allocation3 + $0xd40] ss:$16 sps:$4 sm:$0xff]  }
 0x27d   : > { %7157 = vmatpush1.bf16.msra.mxu0 %v15538_v35  ;;  %7813 = vmatpush1.bf16.msra.mxu1 %v15541_v36  ;;  %v15626_v35 = vld [vmem:[#allocation3 + $0xd48] ss:$16 sps:$4 sm:$0xff]   ;;  %v15631_v36 = vld [vmem:[#allocation3 + $0xd64] ss:$16 sps:$4 sm:$0xff]  }
 0x27e   : > { %7158 = vmatprep.subr.bf16.mxu0 %v15546_v37  ;;  %7814 = vmatprep.subr.bf16.mxu1 %v15549_v38  ;;  %v15634_v37 = vld [vmem:[#allocation3 + $0xd6c] ss:$16 sps:$4 sm:$0xff]   ;;  %v15629_v38 = vld [vmem:[#allocation3 + $0xd60] ss:$16 sps:$4 sm:$0xff]  }
 0x281   : > { %7159 = vmatpush1.bf16.msra.mxu0 %v15544_v39  ;;  %7815 = vmatpush1.bf16.msra.mxu1 %v15547_v26  ;;  %v15632_v39 = vld [vmem:[#allocation3 + $0xd68] ss:$16 sps:$4 sm:$0xff]   ;;  %v15637_v26 = vld [vmem:[#allocation3 + $0xd84] ss:$16 sps:$4 sm:$0xff]  }
 0x282   : > { %7160 = vmatprep.subr.bf16.mxu0 %v15552_v41  ;;  %7816 = vmatprep.subr.bf16.mxu1 %v15555_v42  ;;  %v15640_v41 = vld [vmem:[#allocation3 + $0xd8c] ss:$16 sps:$4 sm:$0xff]   ;;  %v15635_v42 = vld [vmem:[#allocation3 + $0xd80] ss:$16 sps:$4 sm:$0xff]  }
 0x285   : > { %7161 = vmatpush1.bf16.msra.mxu0 %v15550_v45  ;;  %7817 = vmatpush1.bf16.msra.mxu1 %v15553_v29  ;;  %v15638_v45 = vld [vmem:[#allocation3 + $0xd88] ss:$16 sps:$4 sm:$0xff]   ;;  %v15643_v29 = vld [vmem:[#allocation3 + $0xda4] ss:$16 sps:$4 sm:$0xff]  }
 0x286   : > { %7162 = vmatprep.subr.bf16.mxu0 %v15558_v46  ;;  %7818 = vmatprep.subr.bf16.mxu1 %v15561_v47  ;;  %v15646_v46 = vld [vmem:[#allocation3 + $0xdac] ss:$16 sps:$4 sm:$0xff]   ;;  %v15641_v47 = vld [vmem:[#allocation3 + $0xda0] ss:$16 sps:$4 sm:$0xff]  }
 0x289   : > { %7163 = vmatpush1.bf16.msra.mxu0 %v15556_v48  ;;  %7819 = vmatpush1.bf16.msra.mxu1 %v15559_v50  ;;  %v15644_v48 = vld [vmem:[#allocation3 + $0xda8] ss:$16 sps:$4 sm:$0xff]   ;;  %v15649_v50 = vld [vmem:[#allocation3 + $0xdc4] ss:$16 sps:$4 sm:$0xff]  }
 0x28a   : > { %7173 = vmatprep.subr.bf16.mxu0 %v15565_v51  ;;  %7829 = vmatprep.subr.bf16.mxu1 %v15568_v52  ;;  %v15652_v51 = vld [vmem:[#allocation3 + $0xdcc] ss:$16 sps:$4 sm:$0xff]   ;;  %v612_v52 = vcombine.high %v17435_v44, %v17435_v44 }
 0x28c   : > { %7165 = vmatmul.mubr.bf16.vlgmr.msra.gmra.mrb[0].mxu0 %v739_v54  ;;  %7821 = vmatmul.mubr.bf16.vlgmr.msra.gmra.mrb[0].mxu1 %v739_v54  ;;  %v15650_v54 = vld [vmem:[#allocation3 + $0xdc8] ss:$16 sps:$4 sm:$0xff]  }
 0x28d   : > { %7174 = vmatpush1.bf16.msra.mxu0 %v15563_v55  ;;  %7830 = vmatpush1.bf16.msra.mxu1 %v15566_v32  ;;  %v15655_v55 = vld [vmem:[#allocation3 + $0xde4] ss:$16 sps:$4 sm:$0xff]   ;;  %v15658_v32 = vld [vmem:[#allocation3 + $0xdec] ss:$16 sps:$4 sm:$0xff]  }
 0x28e   : > { %7175 = vmatprep.subr.bf16.mxu0 %v15571_v56  ;;  %7831 = vmatprep.subr.bf16.mxu1 %v15574_v57  ;;  %v17448_v56 = vrot.slane %v612_v52, %v17377_v49  ;;  %v15653_v57 = vld [vmem:[#allocation3 + $0xde0] ss:$16 sps:$4 sm:$0xff]   ;;  %v15734_v52 = vld [vmem:[#allocation3 + $0xf88] ss:$16 sps:$4 sm:$0xff]  }
 0x28f   : > { %7205 = vmatprep.mubr.bf16.mxu0 %v742_v58  ;;  %7861 = vmatprep.mubr.bf16.mxu1 %v742_v58  ;;  %v15656_v58 = vld [vmem:[#allocation3 + $0xde8] ss:$16 sps:$4 sm:$0xff]  }
 0x290   : > { %v628_v44 = vcombine.high %v17448_v56, %v17448_v56 }
 0x291   : > { %7176 = vmatpush1.bf16.msra.mxu0 %v15569_v59  ;;  %7832 = vmatpush1.bf16.msra.mxu1 %v15572_v60  ;;  %v15661_v59 = vld [vmem:[#allocation3 + $0xe04] ss:$16 sps:$4 sm:$0xff]   ;;  %v15664_v60 = vld [vmem:[#allocation3 + $0xe0c] ss:$16 sps:$4 sm:$0xff]  }
 0x292   : > { %7177 = vmatprep.subr.bf16.mxu0 %v15577_v61  ;;  %7833 = vmatprep.subr.bf16.mxu1 %v15580_v62  ;;  %v741_v61 = vpack.c.bf16 %v17439_v25, %v17439_v25  ;;  %v15659_v62 = vld [vmem:[#allocation3 + $0xe00] ss:$16 sps:$4 sm:$0xff]  }
 0x293   : > { %v15671_v25 = vld [vmem:[#allocation3 + $0xe40] ss:$16 sps:$4 sm:$0xff]  }
 0x295   : > { %7178 = vmatpush1.bf16.msra.mxu0 %v15575_v40  ;;  %7834 = vmatpush1.bf16.msra.mxu1 %v15578_v63  ;;  %v15662_v40 = vld [vmem:[#allocation3 + $0xe08] ss:$16 sps:$4 sm:$0xff]   ;;  %v15667_v63 = vld [vmem:[#allocation3 + $0xe24] ss:$16 sps:$4 sm:$0xff]  }
 0x296   : > { %7179 = vmatprep.subr.bf16.mxu0 %v15583_v0  ;;  %7835 = vmatprep.subr.bf16.mxu1 %v15586_v1  ;;  %v15670_v0 = vld [vmem:[#allocation3 + $0xe2c] ss:$16 sps:$4 sm:$0xff]   ;;  %v744_v1 = vpack.c.bf16 %v628_v44, %v628_v44  ;;  %v15746_v44 = vld [vmem:[#allocation3 + $0xfc8] ss:$16 sps:$4 sm:$0xff]  }
 0x299   : > { %7180 = vmatpush1.bf16.msra.mxu0 %v15581_v2  ;;  %7836 = vmatpush1.bf16.msra.mxu1 %v15584_v3  ;;  %v15665_v2 = vld [vmem:[#allocation3 + $0xe20] ss:$16 sps:$4 sm:$0xff]   ;;  %v15668_v3 = vld [vmem:[#allocation3 + $0xe28] ss:$16 sps:$4 sm:$0xff]  }
 0x29a   : > { %7181 = vmatprep.subr.bf16.mxu0 %v15589_v4  ;;  %7837 = vmatprep.subr.bf16.mxu1 %v15592_v5  ;;  %v15673_v4 = vld [vmem:[#allocation3 + $0xe44] ss:$16 sps:$4 sm:$0xff]   ;;  %v15676_v5 = vld [vmem:[#allocation3 + $0xe4c] ss:$16 sps:$4 sm:$0xff]  }
 0x29d   : > { %7182 = vmatpush1.bf16.msra.mxu0 %v15587_v6  ;;  %7838 = vmatpush1.bf16.msra.mxu1 %v15590_v7  ;;  %v15674_v6 = vld [vmem:[#allocation3 + $0xe48] ss:$16 sps:$4 sm:$0xff]   ;;  %v15679_v7 = vld [vmem:[#allocation3 + $0xe64] ss:$16 sps:$4 sm:$0xff]  }
 0x29e   : > { %7183 = vmatprep.subr.bf16.mxu0 %v15595_v8  ;;  %7839 = vmatprep.subr.bf16.mxu1 %v15598_v10  ;;  %v15682_v8 = vld [vmem:[#allocation3 + $0xe6c] ss:$16 sps:$4 sm:$0xff]   ;;  %v15677_v10 = vld [vmem:[#allocation3 + $0xe60] ss:$16 sps:$4 sm:$0xff]  }
 0x2a1   : > { %7184 = vmatpush1.bf16.msra.mxu0 %v15593_v11  ;;  %7840 = vmatpush1.bf16.msra.mxu1 %v15596_v12  ;;  %v15680_v11 = vld [vmem:[#allocation3 + $0xe68] ss:$16 sps:$4 sm:$0xff]   ;;  %v15685_v12 = vld [vmem:[#allocation3 + $0xe84] ss:$16 sps:$4 sm:$0xff]  }
 0x2a2   : > { %7185 = vmatprep.subr.bf16.mxu0 %v15601_v13  ;;  %7841 = vmatprep.subr.bf16.mxu1 %v15604_v14  ;;  %v15688_v13 = vld [vmem:[#allocation3 + $0xe8c] ss:$16 sps:$4 sm:$0xff]   ;;  %v15683_v14 = vld [vmem:[#allocation3 + $0xe80] ss:$16 sps:$4 sm:$0xff]  }
 0x2a5   : > { %7186 = vmatpush1.bf16.msra.mxu0 %v15599_v15  ;;  %7842 = vmatpush1.bf16.msra.mxu1 %v15602_v16  ;;  %v15686_v15 = vld [vmem:[#allocation3 + $0xe88] ss:$16 sps:$4 sm:$0xff]   ;;  %v15691_v16 = vld [vmem:[#allocation3 + $0xea4] ss:$16 sps:$4 sm:$0xff]  }
 0x2a6   : > { %7187 = vmatprep.subr.bf16.mxu0 %v15607_v17  ;;  %7843 = vmatprep.subr.bf16.mxu1 %v15610_v18  ;;  %v15694_v17 = vld [vmem:[#allocation3 + $0xeac] ss:$16 sps:$4 sm:$0xff]   ;;  %v15689_v18 = vld [vmem:[#allocation3 + $0xea0] ss:$16 sps:$4 sm:$0xff]  }
 0x2a9   : > { %7188 = vmatpush1.bf16.msra.mxu0 %v15605_v19  ;;  %7844 = vmatpush1.bf16.msra.mxu1 %v15608_v20  ;;  %v15692_v19 = vld [vmem:[#allocation3 + $0xea8] ss:$16 sps:$4 sm:$0xff]   ;;  %v15697_v20 = vld [vmem:[#allocation3 + $0xec4] ss:$16 sps:$4 sm:$0xff]  }
 0x2aa   : > { %7189 = vmatprep.subr.bf16.mxu0 %v15613_v21  ;;  %7845 = vmatprep.subr.bf16.mxu1 %v15616_v22  ;;  %v15700_v21 = vld [vmem:[#allocation3 + $0xecc] ss:$16 sps:$4 sm:$0xff]   ;;  %v15695_v22 = vld [vmem:[#allocation3 + $0xec0] ss:$16 sps:$4 sm:$0xff]  }
 0x2ad   : > { %7190 = vmatpush1.bf16.msra.mxu0 %v15611_v24  ;;  %7846 = vmatpush1.bf16.msra.mxu1 %v15614_v9  ;;  %v15698_v24 = vld [vmem:[#allocation3 + $0xec8] ss:$16 sps:$4 sm:$0xff]   ;;  %v15703_v9 = vld [vmem:[#allocation3 + $0xee4] ss:$16 sps:$4 sm:$0xff]  }
 0x2ae   : > { %7191 = vmatprep.subr.bf16.mxu0 %v15619_v27  ;;  %7847 = vmatprep.subr.bf16.mxu1 %v15622_v28  ;;  %v15706_v27 = vld [vmem:[#allocation3 + $0xeec] ss:$16 sps:$4 sm:$0xff]   ;;  %v15701_v28 = vld [vmem:[#allocation3 + $0xee0] ss:$16 sps:$4 sm:$0xff]  }
 0x2b1   : > { %7192 = vmatpush1.bf16.msra.mxu0 %v15617_v23  ;;  %7848 = vmatpush1.bf16.msra.mxu1 %v15620_v30  ;;  %v15704_v23 = vld [vmem:[#allocation3 + $0xee8] ss:$16 sps:$4 sm:$0xff]   ;;  %v15709_v30 = vld [vmem:[#allocation3 + $0xf04] ss:$16 sps:$4 sm:$0xff]  }
 0x2b2   : > { %7193 = vmatprep.subr.bf16.mxu0 %v15625_v31  ;;  %7849 = vmatprep.subr.bf16.mxu1 %v15628_v33  ;;  %v15712_v31 = vld [vmem:[#allocation3 + $0xf0c] ss:$16 sps:$4 sm:$0xff]   ;;  %v15707_v33 = vld [vmem:[#allocation3 + $0xf00] ss:$16 sps:$4 sm:$0xff]  }
 0x2b5   : > { %7194 = vmatpush1.bf16.msra.mxu0 %v15623_v34  ;;  %7850 = vmatpush1.bf16.msra.mxu1 %v15626_v35  ;;  %v15710_v34 = vld [vmem:[#allocation3 + $0xf08] ss:$16 sps:$4 sm:$0xff]   ;;  %v15715_v35 = vld [vmem:[#allocation3 + $0xf24] ss:$16 sps:$4 sm:$0xff]  }
 0x2b6   : > { %7195 = vmatprep.subr.bf16.mxu0 %v15631_v36  ;;  %7851 = vmatprep.subr.bf16.mxu1 %v15634_v37  ;;  %v15718_v36 = vld [vmem:[#allocation3 + $0xf2c] ss:$16 sps:$4 sm:$0xff]   ;;  %v15713_v37 = vld [vmem:[#allocation3 + $0xf20] ss:$16 sps:$4 sm:$0xff]  }
 0x2b9   : > { %7196 = vmatpush1.bf16.msra.mxu0 %v15629_v38  ;;  %7852 = vmatpush1.bf16.msra.mxu1 %v15632_v39  ;;  %v15716_v38 = vld [vmem:[#allocation3 + $0xf28] ss:$16 sps:$4 sm:$0xff]   ;;  %v15721_v39 = vld [vmem:[#allocation3 + $0xf44] ss:$16 sps:$4 sm:$0xff]  }
 0x2ba   : > { %7197 = vmatprep.subr.bf16.mxu0 %v15637_v26  ;;  %7853 = vmatprep.subr.bf16.mxu1 %v15640_v41  ;;  %v15724_v26 = vld [vmem:[#allocation3 + $0xf4c] ss:$16 sps:$4 sm:$0xff]   ;;  %v15719_v41 = vld [vmem:[#allocation3 + $0xf40] ss:$16 sps:$4 sm:$0xff]  }
 0x2bd   : > { %7198 = vmatpush1.bf16.msra.mxu0 %v15635_v42  ;;  %7854 = vmatpush1.bf16.msra.mxu1 %v15638_v45  ;;  %v15722_v42 = vld [vmem:[#allocation3 + $0xf48] ss:$16 sps:$4 sm:$0xff]   ;;  %v15727_v45 = vld [vmem:[#allocation3 + $0xf64] ss:$16 sps:$4 sm:$0xff]  }
 0x2be   : > { %7199 = vmatprep.subr.bf16.mxu0 %v15643_v29  ;;  %7855 = vmatprep.subr.bf16.mxu1 %v15646_v46  ;;  %v15730_v29 = vld [vmem:[#allocation3 + $0xf6c] ss:$16 sps:$4 sm:$0xff]   ;;  %v15725_v46 = vld [vmem:[#allocation3 + $0xf60] ss:$16 sps:$4 sm:$0xff]  }
 0x2c1   : > { %7200 = vmatpush1.bf16.msra.mxu0 %v15641_v47  ;;  %7856 = vmatpush1.bf16.msra.mxu1 %v15644_v48  ;;  %v15728_v47 = vld [vmem:[#allocation3 + $0xf68] ss:$16 sps:$4 sm:$0xff]   ;;  %v15733_v48 = vld [vmem:[#allocation3 + $0xf84] ss:$16 sps:$4 sm:$0xff]  }
 0x2c2   : > { %7201 = vmatprep.subr.bf16.mxu0 %v15649_v50  ;;  %7857 = vmatprep.subr.bf16.mxu1 %v15652_v51  ;;  %v15736_v50 = vld [vmem:[#allocation3 + $0xf8c] ss:$16 sps:$4 sm:$0xff]   ;;  %v15731_v51 = vld [vmem:[#allocation3 + $0xf80] ss:$16 sps:$4 sm:$0xff]  }
 0x2c5   : > { %7202 = vmatpush1.bf16.msra.mxu0 %v15647_v53  ;;  %7858 = vmatpush1.bf16.msra.mxu1 %v15650_v54  ;;  %v15739_v53 = vld [vmem:[#allocation3 + $0xfa4] ss:$16 sps:$4 sm:$0xff]   ;;  %v15742_v54 = vld [vmem:[#allocation3 + $0xfac] ss:$16 sps:$4 sm:$0xff]  }
 0x2c6   : > { %7203 = vmatprep.subr.bf16.mxu0 %v15655_v55  ;;  %7859 = vmatprep.subr.bf16.mxu1 %v15658_v32  ;;  %v15737_v55 = vld [vmem:[#allocation3 + $0xfa0] ss:$16 sps:$4 sm:$0xff]   ;;  %v15740_v32 = vld [vmem:[#allocation3 + $0xfa8] ss:$16 sps:$4 sm:$0xff]  }
 0x2c9   : > { %7204 = vmatpush1.bf16.msra.mxu0 %v15653_v57  ;;  %7860 = vmatpush1.bf16.msra.mxu1 %v15656_v58  ;;  %v15745_v57 = vld [vmem:[#allocation3 + $0xfc4] ss:$16 sps:$4 sm:$0xff]   ;;  %v15748_v58 = vld [vmem:[#allocation3 + $0xfcc] ss:$16 sps:$4 sm:$0xff]  }
 0x2ca   : > { %7214 = vmatprep.subr.bf16.mxu0 %v15661_v59  ;;  %7870 = vmatprep.subr.bf16.mxu1 %v15664_v60  ;;  %v17457_v59 = vld [vmem:[%s18495_s0 + $0x20] sm:$0xff] }
 0x2cb   : > { %v15743_v60 = vld [vmem:[#allocation3 + $0xfc0] ss:$16 sps:$4 sm:$0xff]  }
 0x2cc   : > { %7206 = vmatmul.mubr.bf16.vlgmr.msra.gmra.mrb[0].mxu0 %v741_v61  ;;  %7862 = vmatmul.mubr.bf16.vlgmr.msra.gmra.mrb[0].mxu1 %v741_v61  ;;  %v15751_v61 = vld [vmem:[#allocation3 + $0xfe4] ss:$16 sps:$4 sm:$0xff]  }
 0x2cd   : > { %7215 = vmatpush1.bf16.msra.mxu0 %v15659_v62  ;;  %7871 = vmatpush1.bf16.msra.mxu1 %v15662_v40  ;;  %v15754_v62 = vld [vmem:[#allocation3 + $0xfec] ss:$16 sps:$4 sm:$0xff]   ;;  %v17461_v40 = vrot.slane %v17457_v59, %v17377_v49 }
 0x2ce   : > { %7216 = vmatprep.subr.bf16.mxu0 %v15667_v63  ;;  %7872 = vmatprep.subr.bf16.mxu1 %v15670_v0  ;;  %v15749_v63 = vld [vmem:[#allocation3 + $0xfe0] ss:$16 sps:$4 sm:$0xff]   ;;  %v15752_v0 = vld [vmem:[#allocation3 + $0xfe8] ss:$16 sps:$4 sm:$0xff]  }
 0x2cf   : > { %7246 = vmatprep.mubr.bf16.mxu0 %v744_v1  ;;  %7902 = vmatprep.mubr.bf16.mxu1 %v744_v1  ;;  %v15758_v1 = vld [vmem:[#allocation3 + $0x1004] ss:$16 sps:$4 sm:$0xff]  }
 0x2d1   : > { %7217 = vmatpush1.bf16.msra.mxu0 %v15665_v2  ;;  %7873 = vmatpush1.bf16.msra.mxu1 %v15668_v3  ;;  %v15761_v2 = vld [vmem:[#allocation3 + $0x100c] ss:$16 sps:$4 sm:$0xff]   ;;  %v644_v3 = vcombine.high %v17461_v40, %v17461_v40 }
 0x2d2   : > { %7218 = vmatprep.subr.bf16.mxu0 %v15673_v4  ;;  %7874 = vmatprep.subr.bf16.mxu1 %v15676_v5  ;;  %v743_v4 = vpack.c.bf16 %v17448_v56, %v17448_v56  ;;  %v15756_v5 = vld [vmem:[#allocation3 + $0x1000] ss:$16 sps:$4 sm:$0xff]  }
 0x2d3   : > { %v15768_v56 = vld [vmem:[#allocation3 + $0x1040] ss:$16 sps:$4 sm:$0xff]  }
 0x2d5   : > { %7219 = vmatpush1.bf16.msra.mxu0 %v15671_v25  ;;  %7875 = vmatpush1.bf16.msra.mxu1 %v15674_v6  ;;  %v15759_v25 = vld [vmem:[#allocation3 + $0x1008] ss:$16 sps:$4 sm:$0xff]   ;;  %v15764_v6 = vld [vmem:[#allocation3 + $0x1024] ss:$16 sps:$4 sm:$0xff]  }
 0x2d6   : > { %7220 = vmatprep.subr.bf16.mxu0 %v15679_v7  ;;  %7876 = vmatprep.subr.bf16.mxu1 %v15682_v8  ;;  %v15767_v7 = vld [vmem:[#allocation3 + $0x102c] ss:$16 sps:$4 sm:$0xff]   ;;  %v746_v8 = vpack.c.bf16 %v644_v3, %v644_v3  ;;  %v15840_v3 = vld [vmem:[#allocation3 + $0x11c0] ss:$16 sps:$4 sm:$0xff]  }
 0x2d9   : > { %7221 = vmatpush1.bf16.msra.mxu0 %v15677_v10  ;;  %7877 = vmatpush1.bf16.msra.mxu1 %v15680_v11  ;;  %v15762_v10 = vld [vmem:[#allocation3 + $0x1020] ss:$16 sps:$4 sm:$0xff]   ;;  %v15765_v11 = vld [vmem:[#allocation3 + $0x1028] ss:$16 sps:$4 sm:$0xff]  }
 0x2da   : > { %7222 = vmatprep.subr.bf16.mxu0 %v15685_v12  ;;  %7878 = vmatprep.subr.bf16.mxu1 %v15688_v13  ;;  %v15770_v12 = vld [vmem:[#allocation3 + $0x1044] ss:$16 sps:$4 sm:$0xff]   ;;  %v15773_v13 = vld [vmem:[#allocation3 + $0x104c] ss:$16 sps:$4 sm:$0xff]  }
 0x2dd   : > { %7223 = vmatpush1.bf16.msra.mxu0 %v15683_v14  ;;  %7879 = vmatpush1.bf16.msra.mxu1 %v15686_v15  ;;  %v15771_v14 = vld [vmem:[#allocation3 + $0x1048] ss:$16 sps:$4 sm:$0xff]   ;;  %v15776_v15 = vld [vmem:[#allocation3 + $0x1064] ss:$16 sps:$4 sm:$0xff]  }
 0x2de   : > { %7224 = vmatprep.subr.bf16.mxu0 %v15691_v16  ;;  %7880 = vmatprep.subr.bf16.mxu1 %v15694_v17  ;;  %v15779_v16 = vld [vmem:[#allocation3 + $0x106c] ss:$16 sps:$4 sm:$0xff]   ;;  %v15774_v17 = vld [vmem:[#allocation3 + $0x1060] ss:$16 sps:$4 sm:$0xff]  }
 0x2e1   : > { %7225 = vmatpush1.bf16.msra.mxu0 %v15689_v18  ;;  %7881 = vmatpush1.bf16.msra.mxu1 %v15692_v19  ;;  %v15777_v18 = vld [vmem:[#allocation3 + $0x1068] ss:$16 sps:$4 sm:$0xff]   ;;  %v15782_v19 = vld [vmem:[#allocation3 + $0x1084] ss:$16 sps:$4 sm:$0xff]  }
 0x2e2   : > { %7226 = vmatprep.subr.bf16.mxu0 %v15697_v20  ;;  %7882 = vmatprep.subr.bf16.mxu1 %v15700_v21  ;;  %v15785_v20 = vld [vmem:[#allocation3 + $0x108c] ss:$16 sps:$4 sm:$0xff]   ;;  %v15780_v21 = vld [vmem:[#allocation3 + $0x1080] ss:$16 sps:$4 sm:$0xff]  }
 0x2e5   : > { %7227 = vmatpush1.bf16.msra.mxu0 %v15695_v22  ;;  %7883 = vmatpush1.bf16.msra.mxu1 %v15698_v24  ;;  %v15783_v22 = vld [vmem:[#allocation3 + $0x1088] ss:$16 sps:$4 sm:$0xff]   ;;  %v15788_v24 = vld [vmem:[#allocation3 + $0x10a4] ss:$16 sps:$4 sm:$0xff]  }
 0x2e6   : > { %7228 = vmatprep.subr.bf16.mxu0 %v15703_v9  ;;  %7884 = vmatprep.subr.bf16.mxu1 %v15706_v27  ;;  %v15791_v9 = vld [vmem:[#allocation3 + $0x10ac] ss:$16 sps:$4 sm:$0xff]   ;;  %v15786_v27 = vld [vmem:[#allocation3 + $0x10a0] ss:$16 sps:$4 sm:$0xff]  }
 0x2e9   : > { %7229 = vmatpush1.bf16.msra.mxu0 %v15701_v28  ;;  %7885 = vmatpush1.bf16.msra.mxu1 %v15704_v23  ;;  %v15789_v28 = vld [vmem:[#allocation3 + $0x10a8] ss:$16 sps:$4 sm:$0xff]   ;;  %v15794_v23 = vld [vmem:[#allocation3 + $0x10c4] ss:$16 sps:$4 sm:$0xff]  }
 0x2ea   : > { %7230 = vmatprep.subr.bf16.mxu0 %v15709_v30  ;;  %7886 = vmatprep.subr.bf16.mxu1 %v15712_v31  ;;  %v15797_v30 = vld [vmem:[#allocation3 + $0x10cc] ss:$16 sps:$4 sm:$0xff]   ;;  %v15792_v31 = vld [vmem:[#allocation3 + $0x10c0] ss:$16 sps:$4 sm:$0xff]  }
 0x2ed   : > { %7231 = vmatpush1.bf16.msra.mxu0 %v15707_v33  ;;  %7887 = vmatpush1.bf16.msra.mxu1 %v15710_v34  ;;  %v15795_v33 = vld [vmem:[#allocation3 + $0x10c8] ss:$16 sps:$4 sm:$0xff]   ;;  %v15800_v34 = vld [vmem:[#allocation3 + $0x10e4] ss:$16 sps:$4 sm:$0xff]  }
 0x2ee   : > { %7232 = vmatprep.subr.bf16.mxu0 %v15715_v35  ;;  %7888 = vmatprep.subr.bf16.mxu1 %v15718_v36  ;;  %v15803_v35 = vld [vmem:[#allocation3 + $0x10ec] ss:$16 sps:$4 sm:$0xff]   ;;  %v15798_v36 = vld [vmem:[#allocation3 + $0x10e0] ss:$16 sps:$4 sm:$0xff]  }
 0x2f1   : > { %7233 = vmatpush1.bf16.msra.mxu0 %v15713_v37  ;;  %7889 = vmatpush1.bf16.msra.mxu1 %v15716_v38  ;;  %v15801_v37 = vld [vmem:[#allocation3 + $0x10e8] ss:$16 sps:$4 sm:$0xff]   ;;  %v15806_v38 = vld [vmem:[#allocation3 + $0x1104] ss:$16 sps:$4 sm:$0xff]  }
 0x2f2   : > { %7234 = vmatprep.subr.bf16.mxu0 %v15721_v39  ;;  %7890 = vmatprep.subr.bf16.mxu1 %v15724_v26  ;;  %v15809_v39 = vld [vmem:[#allocation3 + $0x110c] ss:$16 sps:$4 sm:$0xff]   ;;  %v15804_v26 = vld [vmem:[#allocation3 + $0x1100] ss:$16 sps:$4 sm:$0xff]  }
 0x2f5   : > { %7235 = vmatpush1.bf16.msra.mxu0 %v15719_v41  ;;  %7891 = vmatpush1.bf16.msra.mxu1 %v15722_v42  ;;  %v15807_v41 = vld [vmem:[#allocation3 + $0x1108] ss:$16 sps:$4 sm:$0xff]   ;;  %v15812_v42 = vld [vmem:[#allocation3 + $0x1124] ss:$16 sps:$4 sm:$0xff]  }
 0x2f6   : > { %7236 = vmatprep.subr.bf16.mxu0 %v15727_v45  ;;  %7892 = vmatprep.subr.bf16.mxu1 %v15730_v29  ;;  %v15815_v45 = vld [vmem:[#allocation3 + $0x112c] ss:$16 sps:$4 sm:$0xff]   ;;  %v15810_v29 = vld [vmem:[#allocation3 + $0x1120] ss:$16 sps:$4 sm:$0xff]  }
 0x2f9   : > { %7237 = vmatpush1.bf16.msra.mxu0 %v15725_v46  ;;  %7893 = vmatpush1.bf16.msra.mxu1 %v15728_v47  ;;  %v15813_v46 = vld [vmem:[#allocation3 + $0x1128] ss:$16 sps:$4 sm:$0xff]   ;;  %v15818_v47 = vld [vmem:[#allocation3 + $0x1144] ss:$16 sps:$4 sm:$0xff]  }
 0x2fa   : > { %7238 = vmatprep.subr.bf16.mxu0 %v15733_v48  ;;  %7894 = vmatprep.subr.bf16.mxu1 %v15736_v50  ;;  %v15821_v48 = vld [vmem:[#allocation3 + $0x114c] ss:$16 sps:$4 sm:$0xff]   ;;  %v15816_v50 = vld [vmem:[#allocation3 + $0x1140] ss:$16 sps:$4 sm:$0xff]  }
 0x2fd   : > { %7239 = vmatpush1.bf16.msra.mxu0 %v15731_v51  ;;  %7895 = vmatpush1.bf16.msra.mxu1 %v15734_v52  ;;  %v15819_v51 = vld [vmem:[#allocation3 + $0x1148] ss:$16 sps:$4 sm:$0xff]   ;;  %v15824_v52 = vld [vmem:[#allocation3 + $0x1164] ss:$16 sps:$4 sm:$0xff]  }
 0x2fe   : > { %7240 = vmatprep.subr.bf16.mxu0 %v15739_v53  ;;  %7896 = vmatprep.subr.bf16.mxu1 %v15742_v54  ;;  %v15827_v53 = vld [vmem:[#allocation3 + $0x116c] ss:$16 sps:$4 sm:$0xff]   ;;  %v15822_v54 = vld [vmem:[#allocation3 + $0x1160] ss:$16 sps:$4 sm:$0xff]  }
 0x301   : > { %7241 = vmatpush1.bf16.msra.mxu0 %v15737_v55  ;;  %7897 = vmatpush1.bf16.msra.mxu1 %v15740_v32  ;;  %v15825_v55 = vld [vmem:[#allocation3 + $0x1168] ss:$16 sps:$4 sm:$0xff]   ;;  %v15830_v32 = vld [vmem:[#allocation3 + $0x1184] ss:$16 sps:$4 sm:$0xff]  }
 0x302   : > { %7242 = vmatprep.subr.bf16.mxu0 %v15745_v57  ;;  %7898 = vmatprep.subr.bf16.mxu1 %v15748_v58  ;;  %v15833_v57 = vld [vmem:[#allocation3 + $0x118c] ss:$16 sps:$4 sm:$0xff]   ;;  %v15828_v58 = vld [vmem:[#allocation3 + $0x1180] ss:$16 sps:$4 sm:$0xff]  }
 0x305   : > { %7243 = vmatpush1.bf16.msra.mxu0 %v15743_v60  ;;  %7899 = vmatpush1.bf16.msra.mxu1 %v15746_v44  ;;  %v15831_v60 = vld [vmem:[#allocation3 + $0x1188] ss:$16 sps:$4 sm:$0xff]   ;;  %v15836_v44 = vld [vmem:[#allocation3 + $0x11a4] ss:$16 sps:$4 sm:$0xff]  }
 0x306   : > { %7244 = vmatprep.subr.bf16.mxu0 %v15751_v61  ;;  %7900 = vmatprep.subr.bf16.mxu1 %v15754_v62  ;;  %v15839_v61 = vld [vmem:[#allocation3 + $0x11ac] ss:$16 sps:$4 sm:$0xff]   ;;  %v15834_v62 = vld [vmem:[#allocation3 + $0x11a0] ss:$16 sps:$4 sm:$0xff]  }
 0x309   : > { %7245 = vmatpush1.bf16.msra.mxu0 %v15749_v63  ;;  %7901 = vmatpush1.bf16.msra.mxu1 %v15752_v0  ;;  %v15837_v63 = vld [vmem:[#allocation3 + $0x11a8] ss:$16 sps:$4 sm:$0xff]   ;;  %v15842_v0 = vld [vmem:[#allocation3 + $0x11c4] ss:$16 sps:$4 sm:$0xff]  }
 0x30a   : > { %7255 = vmatprep.subr.bf16.mxu0 %v15758_v1  ;;  %7911 = vmatprep.subr.bf16.mxu1 %v15761_v2  ;;  %v15845_v1 = vld [vmem:[#allocation3 + $0x11cc] ss:$16 sps:$4 sm:$0xff]   ;;  %v629_v2 = vcombine.high %v17457_v59, %v17457_v59 }
 0x30c   : > { %7247 = vmatmul.mubr.bf16.vlgmr.msra.gmra.mrb[0].mxu0 %v743_v4  ;;  %7903 = vmatmul.mubr.bf16.vlgmr.msra.gmra.mrb[0].mxu1 %v743_v4  ;;  %v15843_v4 = vld [vmem:[#allocation3 + $0x11c8] ss:$16 sps:$4 sm:$0xff]  }
 0x30d   : > { %7256 = vmatpush1.bf16.msra.mxu0 %v15756_v5  ;;  %7912 = vmatpush1.bf16.msra.mxu1 %v15759_v25  ;;  %v15848_v5 = vld [vmem:[#allocation3 + $0x11e4] ss:$16 sps:$4 sm:$0xff]   ;;  %v15851_v25 = vld [vmem:[#allocation3 + $0x11ec] ss:$16 sps:$4 sm:$0xff]  }
 0x30e   : > { %7257 = vmatprep.subr.bf16.mxu0 %v15764_v6  ;;  %7913 = vmatprep.subr.bf16.mxu1 %v15767_v7  ;;  %v17470_v6 = vrot.slane %v629_v2, %v17377_v49  ;;  %v15846_v7 = vld [vmem:[#allocation3 + $0x11e0] ss:$16 sps:$4 sm:$0xff]   ;;  %v15927_v2 = vld [vmem:[#allocation3 + $0x1388] ss:$16 sps:$4 sm:$0xff]  }
 0x30f   : > { %7287 = vmatprep.mubr.bf16.mxu0 %v746_v8  ;;  %7943 = vmatprep.mubr.bf16.mxu1 %v746_v8  ;;  %v15849_v8 = vld [vmem:[#allocation3 + $0x11e8] ss:$16 sps:$4 sm:$0xff]  }
 0x310   : > { %v645_v59 = vcombine.high %v17470_v6, %v17470_v6 }
 0x311   : > { %7258 = vmatpush1.bf16.msra.mxu0 %v15762_v10  ;;  %7914 = vmatpush1.bf16.msra.mxu1 %v15765_v11  ;;  %v15854_v10 = vld [vmem:[#allocation3 + $0x1204] ss:$16 sps:$4 sm:$0xff]   ;;  %v15857_v11 = vld [vmem:[#allocation3 + $0x120c] ss:$16 sps:$4 sm:$0xff]  }
 0x312   : > { %7259 = vmatprep.subr.bf16.mxu0 %v15770_v12  ;;  %7915 = vmatprep.subr.bf16.mxu1 %v15773_v13  ;;  %v745_v12 = vpack.c.bf16 %v17461_v40, %v17461_v40  ;;  %v15852_v13 = vld [vmem:[#allocation3 + $0x1200] ss:$16 sps:$4 sm:$0xff]  }
 0x313   : > { %v15864_v40 = vld [vmem:[#allocation3 + $0x1240] ss:$16 sps:$4 sm:$0xff]  }
 0x315   : > { %7260 = vmatpush1.bf16.msra.mxu0 %v15768_v56  ;;  %7916 = vmatpush1.bf16.msra.mxu1 %v15771_v14  ;;  %v15855_v56 = vld [vmem:[#allocation3 + $0x1208] ss:$16 sps:$4 sm:$0xff]   ;;  %v15860_v14 = vld [vmem:[#allocation3 + $0x1224] ss:$16 sps:$4 sm:$0xff]  }
 0x316   : > { %7261 = vmatprep.subr.bf16.mxu0 %v15776_v15  ;;  %7917 = vmatprep.subr.bf16.mxu1 %v15779_v16  ;;  %v15863_v15 = vld [vmem:[#allocation3 + $0x122c] ss:$16 sps:$4 sm:$0xff]   ;;  %v748_v16 = vpack.c.bf16 %v645_v59, %v645_v59  ;;  %v15939_v59 = vld [vmem:[#allocation3 + $0x13c8] ss:$16 sps:$4 sm:$0xff]  }
 0x319   : > { %7262 = vmatpush1.bf16.msra.mxu0 %v15774_v17  ;;  %7918 = vmatpush1.bf16.msra.mxu1 %v15777_v18  ;;  %v15858_v17 = vld [vmem:[#allocation3 + $0x1220] ss:$16 sps:$4 sm:$0xff]   ;;  %v15861_v18 = vld [vmem:[#allocation3 + $0x1228] ss:$16 sps:$4 sm:$0xff]  }
 0x31a   : > { %7263 = vmatprep.subr.bf16.mxu0 %v15782_v19  ;;  %7919 = vmatprep.subr.bf16.mxu1 %v15785_v20  ;;  %v15866_v19 = vld [vmem:[#allocation3 + $0x1244] ss:$16 sps:$4 sm:$0xff]   ;;  %v15869_v20 = vld [vmem:[#allocation3 + $0x124c] ss:$16 sps:$4 sm:$0xff]  }
 0x31d   : > { %7264 = vmatpush1.bf16.msra.mxu0 %v15780_v21  ;;  %7920 = vmatpush1.bf16.msra.mxu1 %v15783_v22  ;;  %v15867_v21 = vld [vmem:[#allocation3 + $0x1248] ss:$16 sps:$4 sm:$0xff]   ;;  %v15872_v22 = vld [vmem:[#allocation3 + $0x1264] ss:$16 sps:$4 sm:$0xff]  }
 0x31e   : > { %7265 = vmatprep.subr.bf16.mxu0 %v15788_v24  ;;  %7921 = vmatprep.subr.bf16.mxu1 %v15791_v9  ;;  %v15875_v24 = vld [vmem:[#allocation3 + $0x126c] ss:$16 sps:$4 sm:$0xff]   ;;  %v15870_v9 = vld [vmem:[#allocation3 + $0x1260] ss:$16 sps:$4 sm:$0xff]  }
 0x321   : > { %7266 = vmatpush1.bf16.msra.mxu0 %v15786_v27  ;;  %7922 = vmatpush1.bf16.msra.mxu1 %v15789_v28  ;;  %v15873_v27 = vld [vmem:[#allocation3 + $0x1268] ss:$16 sps:$4 sm:$0xff]   ;;  %v15878_v28 = vld [vmem:[#allocation3 + $0x1284] ss:$16 sps:$4 sm:$0xff]  }
 0x322   : > { %7267 = vmatprep.subr.bf16.mxu0 %v15794_v23  ;;  %7923 = vmatprep.subr.bf16.mxu1 %v15797_v30  ;;  %v15881_v23 = vld [vmem:[#allocation3 + $0x128c] ss:$16 sps:$4 sm:$0xff]   ;;  %v15876_v30 = vld [vmem:[#allocation3 + $0x1280] ss:$16 sps:$4 sm:$0xff]  }
 0x325   : > { %7268 = vmatpush1.bf16.msra.mxu0 %v15792_v31  ;;  %7924 = vmatpush1.bf16.msra.mxu1 %v15795_v33  ;;  %v15879_v31 = vld [vmem:[#allocation3 + $0x1288] ss:$16 sps:$4 sm:$0xff]   ;;  %v15884_v33 = vld [vmem:[#allocation3 + $0x12a4] ss:$16 sps:$4 sm:$0xff]  }
 0x326   : > { %7269 = vmatprep.subr.bf16.mxu0 %v15800_v34  ;;  %7925 = vmatprep.subr.bf16.mxu1 %v15803_v35  ;;  %v15887_v34 = vld [vmem:[#allocation3 + $0x12ac] ss:$16 sps:$4 sm:$0xff]   ;;  %v15882_v35 = vld [vmem:[#allocation3 + $0x12a0] ss:$16 sps:$4 sm:$0xff]  }
 0x329   : > { %7270 = vmatpush1.bf16.msra.mxu0 %v15798_v36  ;;  %7926 = vmatpush1.bf16.msra.mxu1 %v15801_v37  ;;  %v15885_v36 = vld [vmem:[#allocation3 + $0x12a8] ss:$16 sps:$4 sm:$0xff]   ;;  %v15890_v37 = vld [vmem:[#allocation3 + $0x12c4] ss:$16 sps:$4 sm:$0xff]  }
 0x32a   : > { %7271 = vmatprep.subr.bf16.mxu0 %v15806_v38  ;;  %7927 = vmatprep.subr.bf16.mxu1 %v15809_v39  ;;  %v15893_v38 = vld [vmem:[#allocation3 + $0x12cc] ss:$16 sps:$4 sm:$0xff]   ;;  %v15888_v39 = vld [vmem:[#allocation3 + $0x12c0] ss:$16 sps:$4 sm:$0xff]  }
 0x32d   : > { %7272 = vmatpush1.bf16.msra.mxu0 %v15804_v26  ;;  %7928 = vmatpush1.bf16.msra.mxu1 %v15807_v41  ;;  %v15891_v26 = vld [vmem:[#allocation3 + $0x12c8] ss:$16 sps:$4 sm:$0xff]   ;;  %v15896_v41 = vld [vmem:[#allocation3 + $0x12e4] ss:$16 sps:$4 sm:$0xff]  }
 0x32e   : > { %7273 = vmatprep.subr.bf16.mxu0 %v15812_v42  ;;  %7929 = vmatprep.subr.bf16.mxu1 %v15815_v45  ;;  %v15899_v42 = vld [vmem:[#allocation3 + $0x12ec] ss:$16 sps:$4 sm:$0xff]   ;;  %v15894_v45 = vld [vmem:[#allocation3 + $0x12e0] ss:$16 sps:$4 sm:$0xff]  }
 0x331   : > { %7274 = vmatpush1.bf16.msra.mxu0 %v15810_v29  ;;  %7930 = vmatpush1.bf16.msra.mxu1 %v15813_v46  ;;  %v15897_v29 = vld [vmem:[#allocation3 + $0x12e8] ss:$16 sps:$4 sm:$0xff]   ;;  %v15902_v46 = vld [vmem:[#allocation3 + $0x1304] ss:$16 sps:$4 sm:$0xff]  }
 0x332   : > { %7275 = vmatprep.subr.bf16.mxu0 %v15818_v47  ;;  %7931 = vmatprep.subr.bf16.mxu1 %v15821_v48  ;;  %v15905_v47 = vld [vmem:[#allocation3 + $0x130c] ss:$16 sps:$4 sm:$0xff]   ;;  %v15900_v48 = vld [vmem:[#allocation3 + $0x1300] ss:$16 sps:$4 sm:$0xff]  }
 0x335   : > { %7276 = vmatpush1.bf16.msra.mxu0 %v15816_v50  ;;  %7932 = vmatpush1.bf16.msra.mxu1 %v15819_v51  ;;  %v15903_v50 = vld [vmem:[#allocation3 + $0x1308] ss:$16 sps:$4 sm:$0xff]   ;;  %v15908_v51 = vld [vmem:[#allocation3 + $0x1324] ss:$16 sps:$4 sm:$0xff]  }
 0x336   : > { %7277 = vmatprep.subr.bf16.mxu0 %v15824_v52  ;;  %7933 = vmatprep.subr.bf16.mxu1 %v15827_v53  ;;  %v15911_v52 = vld [vmem:[#allocation3 + $0x132c] ss:$16 sps:$4 sm:$0xff]   ;;  %v15906_v53 = vld [vmem:[#allocation3 + $0x1320] ss:$16 sps:$4 sm:$0xff]  }
 0x339   : > { %7278 = vmatpush1.bf16.msra.mxu0 %v15822_v54  ;;  %7934 = vmatpush1.bf16.msra.mxu1 %v15825_v55  ;;  %v15909_v54 = vld [vmem:[#allocation3 + $0x1328] ss:$16 sps:$4 sm:$0xff]   ;;  %v15914_v55 = vld [vmem:[#allocation3 + $0x1344] ss:$16 sps:$4 sm:$0xff]  }
 0x33a   : > { %7279 = vmatprep.subr.bf16.mxu0 %v15830_v32  ;;  %7935 = vmatprep.subr.bf16.mxu1 %v15833_v57  ;;  %v15917_v32 = vld [vmem:[#allocation3 + $0x134c] ss:$16 sps:$4 sm:$0xff]   ;;  %v15912_v57 = vld [vmem:[#allocation3 + $0x1340] ss:$16 sps:$4 sm:$0xff]  }
 0x33d   : > { %7280 = vmatpush1.bf16.msra.mxu0 %v15828_v58  ;;  %7936 = vmatpush1.bf16.msra.mxu1 %v15831_v60  ;;  %v15915_v58 = vld [vmem:[#allocation3 + $0x1348] ss:$16 sps:$4 sm:$0xff]   ;;  %v15920_v60 = vld [vmem:[#allocation3 + $0x1364] ss:$16 sps:$4 sm:$0xff]  }
 0x33e   : > { %7281 = vmatprep.subr.bf16.mxu0 %v15836_v44  ;;  %7937 = vmatprep.subr.bf16.mxu1 %v15839_v61  ;;  %v15923_v44 = vld [vmem:[#allocation3 + $0x136c] ss:$16 sps:$4 sm:$0xff]   ;;  %v15918_v61 = vld [vmem:[#allocation3 + $0x1360] ss:$16 sps:$4 sm:$0xff]  }
 0x341   : > { %7282 = vmatpush1.bf16.msra.mxu0 %v15834_v62  ;;  %7938 = vmatpush1.bf16.msra.mxu1 %v15837_v63  ;;  %v15921_v62 = vld [vmem:[#allocation3 + $0x1368] ss:$16 sps:$4 sm:$0xff]   ;;  %v15926_v63 = vld [vmem:[#allocation3 + $0x1384] ss:$16 sps:$4 sm:$0xff]  }
 0x342   : > { %7283 = vmatprep.subr.bf16.mxu0 %v15842_v0  ;;  %7939 = vmatprep.subr.bf16.mxu1 %v15845_v1  ;;  %v15929_v0 = vld [vmem:[#allocation3 + $0x138c] ss:$16 sps:$4 sm:$0xff]   ;;  %v15924_v1 = vld [vmem:[#allocation3 + $0x1380] ss:$16 sps:$4 sm:$0xff]  }
 0x345   : > { %7284 = vmatpush1.bf16.msra.mxu0 %v15840_v3  ;;  %7940 = vmatpush1.bf16.msra.mxu1 %v15843_v4  ;;  %v15932_v3 = vld [vmem:[#allocation3 + $0x13a4] ss:$16 sps:$4 sm:$0xff]   ;;  %v15935_v4 = vld [vmem:[#allocation3 + $0x13ac] ss:$16 sps:$4 sm:$0xff]  }
 0x346   : > { %7285 = vmatprep.subr.bf16.mxu0 %v15848_v5  ;;  %7941 = vmatprep.subr.bf16.mxu1 %v15851_v25  ;;  %v15930_v5 = vld [vmem:[#allocation3 + $0x13a0] ss:$16 sps:$4 sm:$0xff]   ;;  %v15933_v25 = vld [vmem:[#allocation3 + $0x13a8] ss:$16 sps:$4 sm:$0xff]  }
 0x349   : > { %7286 = vmatpush1.bf16.msra.mxu0 %v15846_v7  ;;  %7942 = vmatpush1.bf16.msra.mxu1 %v15849_v8  ;;  %v15938_v7 = vld [vmem:[#allocation3 + $0x13c4] ss:$16 sps:$4 sm:$0xff]   ;;  %v15941_v8 = vld [vmem:[#allocation3 + $0x13cc] ss:$16 sps:$4 sm:$0xff]  }
 0x34a   : > { %7296 = vmatprep.subr.bf16.mxu0 %v15854_v10  ;;  %7952 = vmatprep.subr.bf16.mxu1 %v15857_v11  ;;  %v17479_v10 = vld [vmem:[%s18495_s0 + $0x28] sm:$0xff]  ;;  %v15936_v11 = vld [vmem:[#allocation3 + $0x13c0] ss:$16 sps:$4 sm:$0xff]  }
 0x34c   : > { %7288 = vmatmul.mubr.bf16.vlgmr.msra.gmra.mrb[0].mxu0 %v745_v12  ;;  %7944 = vmatmul.mubr.bf16.vlgmr.msra.gmra.mrb[0].mxu1 %v745_v12  ;;  %v15944_v12 = vld [vmem:[#allocation3 + $0x13e4] ss:$16 sps:$4 sm:$0xff]  }
 0x34d   : > { %7297 = vmatpush1.bf16.msra.mxu0 %v15852_v13  ;;  %7953 = vmatpush1.bf16.msra.mxu1 %v15855_v56  ;;  %v15947_v13 = vld [vmem:[#allocation3 + $0x13ec] ss:$16 sps:$4 sm:$0xff]   ;;  %v17483_v56 = vrot.slane %v17479_v10, %v17377_v49 }
 0x34e   : > { %7298 = vmatprep.subr.bf16.mxu0 %v15860_v14  ;;  %7954 = vmatprep.subr.bf16.mxu1 %v15863_v15  ;;  %v15942_v14 = vld [vmem:[#allocation3 + $0x13e0] ss:$16 sps:$4 sm:$0xff]   ;;  %v15945_v15 = vld [vmem:[#allocation3 + $0x13e8] ss:$16 sps:$4 sm:$0xff]  }
 0x34f   : > { %7328 = vmatprep.mubr.bf16.mxu0 %v748_v16  ;;  %7984 = vmatprep.mubr.bf16.mxu1 %v748_v16  ;;  %v15951_v16 = vld [vmem:[#allocation3 + $0x1404] ss:$16 sps:$4 sm:$0xff]  }
 0x351   : > { %7299 = vmatpush1.bf16.msra.mxu0 %v15858_v17  ;;  %7955 = vmatpush1.bf16.msra.mxu1 %v15861_v18  ;;  %v15954_v17 = vld [vmem:[#allocation3 + $0x140c] ss:$16 sps:$4 sm:$0xff]   ;;  %v661_v18 = vcombine.high %v17483_v56, %v17483_v56 }
 0x352   : > { %7300 = vmatprep.subr.bf16.mxu0 %v15866_v19  ;;  %7956 = vmatprep.subr.bf16.mxu1 %v15869_v20  ;;  %v747_v19 = vpack.c.bf16 %v17470_v6, %v17470_v6  ;;  %v15949_v20 = vld [vmem:[#allocation3 + $0x1400] ss:$16 sps:$4 sm:$0xff]  }
 0x353   : > { %v15961_v6 = vld [vmem:[#allocation3 + $0x1440] ss:$16 sps:$4 sm:$0xff]  }
 0x355   : > { %7301 = vmatpush1.bf16.msra.mxu0 %v15864_v40  ;;  %7957 = vmatpush1.bf16.msra.mxu1 %v15867_v21  ;;  %v15952_v40 = vld [vmem:[#allocation3 + $0x1408] ss:$16 sps:$4 sm:$0xff]   ;;  %v15957_v21 = vld [vmem:[#allocation3 + $0x1424] ss:$16 sps:$4 sm:$0xff]  }
 0x356   : > { %7302 = vmatprep.subr.bf16.mxu0 %v15872_v22  ;;  %7958 = vmatprep.subr.bf16.mxu1 %v15875_v24  ;;  %v15960_v22 = vld [vmem:[#allocation3 + $0x142c] ss:$16 sps:$4 sm:$0xff]   ;;  %v750_v24 = vpack.c.bf16 %v661_v18, %v661_v18  ;;  %v16033_v18 = vld [vmem:[#allocation3 + $0x15c0] ss:$16 sps:$4 sm:$0xff]  }
 0x359   : > { %7303 = vmatpush1.bf16.msra.mxu0 %v15870_v9  ;;  %7959 = vmatpush1.bf16.msra.mxu1 %v15873_v27  ;;  %v15955_v9 = vld [vmem:[#allocation3 + $0x1420] ss:$16 sps:$4 sm:$0xff]   ;;  %v15958_v27 = vld [vmem:[#allocation3 + $0x1428] ss:$16 sps:$4 sm:$0xff]  }
 0x35a   : > { %7304 = vmatprep.subr.bf16.mxu0 %v15878_v28  ;;  %7960 = vmatprep.subr.bf16.mxu1 %v15881_v23  ;;  %v15963_v28 = vld [vmem:[#allocation3 + $0x1444] ss:$16 sps:$4 sm:$0xff]   ;;  %v15966_v23 = vld [vmem:[#allocation3 + $0x144c] ss:$16 sps:$4 sm:$0xff]  }
 0x35d   : > { %7305 = vmatpush1.bf16.msra.mxu0 %v15876_v30  ;;  %7961 = vmatpush1.bf16.msra.mxu1 %v15879_v31  ;;  %v15964_v30 = vld [vmem:[#allocation3 + $0x1448] ss:$16 sps:$4 sm:$0xff]   ;;  %v15969_v31 = vld [vmem:[#allocation3 + $0x1464] ss:$16 sps:$4 sm:$0xff]  }
 0x35e   : > { %7306 = vmatprep.subr.bf16.mxu0 %v15884_v33  ;;  %7962 = vmatprep.subr.bf16.mxu1 %v15887_v34  ;;  %v15972_v33 = vld [vmem:[#allocation3 + $0x146c] ss:$16 sps:$4 sm:$0xff]   ;;  %v15967_v34 = vld [vmem:[#allocation3 + $0x1460] ss:$16 sps:$4 sm:$0xff]  }
 0x361   : > { %7307 = vmatpush1.bf16.msra.mxu0 %v15882_v35  ;;  %7963 = vmatpush1.bf16.msra.mxu1 %v15885_v36  ;;  %v15970_v35 = vld [vmem:[#allocation3 + $0x1468] ss:$16 sps:$4 sm:$0xff]   ;;  %v15975_v36 = vld [vmem:[#allocation3 + $0x1484] ss:$16 sps:$4 sm:$0xff]  }
 0x362   : > { %7308 = vmatprep.subr.bf16.mxu0 %v15890_v37  ;;  %7964 = vmatprep.subr.bf16.mxu1 %v15893_v38  ;;  %v15978_v37 = vld [vmem:[#allocation3 + $0x148c] ss:$16 sps:$4 sm:$0xff]   ;;  %v15973_v38 = vld [vmem:[#allocation3 + $0x1480] ss:$16 sps:$4 sm:$0xff]  }
 0x365   : > { %7309 = vmatpush1.bf16.msra.mxu0 %v15888_v39  ;;  %7965 = vmatpush1.bf16.msra.mxu1 %v15891_v26  ;;  %v15976_v39 = vld [vmem:[#allocation3 + $0x1488] ss:$16 sps:$4 sm:$0xff]   ;;  %v15981_v26 = vld [vmem:[#allocation3 + $0x14a4] ss:$16 sps:$4 sm:$0xff]  }
 0x366   : > { %7310 = vmatprep.subr.bf16.mxu0 %v15896_v41  ;;  %7966 = vmatprep.subr.bf16.mxu1 %v15899_v42  ;;  %v15984_v41 = vld [vmem:[#allocation3 + $0x14ac] ss:$16 sps:$4 sm:$0xff]   ;;  %v15979_v42 = vld [vmem:[#allocation3 + $0x14a0] ss:$16 sps:$4 sm:$0xff]  }
 0x369   : > { %7311 = vmatpush1.bf16.msra.mxu0 %v15894_v45  ;;  %7967 = vmatpush1.bf16.msra.mxu1 %v15897_v29  ;;  %v15982_v45 = vld [vmem:[#allocation3 + $0x14a8] ss:$16 sps:$4 sm:$0xff]   ;;  %v15987_v29 = vld [vmem:[#allocation3 + $0x14c4] ss:$16 sps:$4 sm:$0xff]  }
 0x36a   : > { %7312 = vmatprep.subr.bf16.mxu0 %v15902_v46  ;;  %7968 = vmatprep.subr.bf16.mxu1 %v15905_v47  ;;  %v15990_v46 = vld [vmem:[#allocation3 + $0x14cc] ss:$16 sps:$4 sm:$0xff]   ;;  %v15985_v47 = vld [vmem:[#allocation3 + $0x14c0] ss:$16 sps:$4 sm:$0xff]  }
 0x36d   : > { %7313 = vmatpush1.bf16.msra.mxu0 %v15900_v48  ;;  %7969 = vmatpush1.bf16.msra.mxu1 %v15903_v50  ;;  %v15988_v48 = vld [vmem:[#allocation3 + $0x14c8] ss:$16 sps:$4 sm:$0xff]   ;;  %v15993_v50 = vld [vmem:[#allocation3 + $0x14e4] ss:$16 sps:$4 sm:$0xff]  }
 0x36e   : > { %7314 = vmatprep.subr.bf16.mxu0 %v15908_v51  ;;  %7970 = vmatprep.subr.bf16.mxu1 %v15911_v52  ;;  %v15996_v51 = vld [vmem:[#allocation3 + $0x14ec] ss:$16 sps:$4 sm:$0xff]   ;;  %v15991_v52 = vld [vmem:[#allocation3 + $0x14e0] ss:$16 sps:$4 sm:$0xff]  }
 0x371   : > { %7315 = vmatpush1.bf16.msra.mxu0 %v15906_v53  ;;  %7971 = vmatpush1.bf16.msra.mxu1 %v15909_v54  ;;  %v15994_v53 = vld [vmem:[#allocation3 + $0x14e8] ss:$16 sps:$4 sm:$0xff]   ;;  %v15999_v54 = vld [vmem:[#allocation3 + $0x1504] ss:$16 sps:$4 sm:$0xff]  }
 0x372   : > { %7316 = vmatprep.subr.bf16.mxu0 %v15914_v55  ;;  %7972 = vmatprep.subr.bf16.mxu1 %v15917_v32  ;;  %v16002_v55 = vld [vmem:[#allocation3 + $0x150c] ss:$16 sps:$4 sm:$0xff]   ;;  %v15997_v32 = vld [vmem:[#allocation3 + $0x1500] ss:$16 sps:$4 sm:$0xff]  }
 0x375   : > { %7317 = vmatpush1.bf16.msra.mxu0 %v15912_v57  ;;  %7973 = vmatpush1.bf16.msra.mxu1 %v15915_v58  ;;  %v16000_v57 = vld [vmem:[#allocation3 + $0x1508] ss:$16 sps:$4 sm:$0xff]   ;;  %v16005_v58 = vld [vmem:[#allocation3 + $0x1524] ss:$16 sps:$4 sm:$0xff]  }
 0x376   : > { %7318 = vmatprep.subr.bf16.mxu0 %v15920_v60  ;;  %7974 = vmatprep.subr.bf16.mxu1 %v15923_v44  ;;  %v16008_v60 = vld [vmem:[#allocation3 + $0x152c] ss:$16 sps:$4 sm:$0xff]   ;;  %v16003_v44 = vld [vmem:[#allocation3 + $0x1520] ss:$16 sps:$4 sm:$0xff]  }
 0x379   : > { %7319 = vmatpush1.bf16.msra.mxu0 %v15918_v61  ;;  %7975 = vmatpush1.bf16.msra.mxu1 %v15921_v62  ;;  %v16006_v61 = vld [vmem:[#allocation3 + $0x1528] ss:$16 sps:$4 sm:$0xff]   ;;  %v16011_v62 = vld [vmem:[#allocation3 + $0x1544] ss:$16 sps:$4 sm:$0xff]  }
 0x37a   : > { %7320 = vmatprep.subr.bf16.mxu0 %v15926_v63  ;;  %7976 = vmatprep.subr.bf16.mxu1 %v15929_v0  ;;  %v16014_v63 = vld [vmem:[#allocation3 + $0x154c] ss:$16 sps:$4 sm:$0xff]   ;;  %v16009_v0 = vld [vmem:[#allocation3 + $0x1540] ss:$16 sps:$4 sm:$0xff]  }
 0x37d   : > { %7321 = vmatpush1.bf16.msra.mxu0 %v15924_v1  ;;  %7977 = vmatpush1.bf16.msra.mxu1 %v15927_v2  ;;  %v16012_v1 = vld [vmem:[#allocation3 + $0x1548] ss:$16 sps:$4 sm:$0xff]   ;;  %v16017_v2 = vld [vmem:[#allocation3 + $0x1564] ss:$16 sps:$4 sm:$0xff]  }
 0x37e   : > { %7322 = vmatprep.subr.bf16.mxu0 %v15932_v3  ;;  %7978 = vmatprep.subr.bf16.mxu1 %v15935_v4  ;;  %v16020_v3 = vld [vmem:[#allocation3 + $0x156c] ss:$16 sps:$4 sm:$0xff]   ;;  %v16015_v4 = vld [vmem:[#allocation3 + $0x1560] ss:$16 sps:$4 sm:$0xff]  }
 0x381   : > { %7323 = vmatpush1.bf16.msra.mxu0 %v15930_v5  ;;  %7979 = vmatpush1.bf16.msra.mxu1 %v15933_v25  ;;  %v16018_v5 = vld [vmem:[#allocation3 + $0x1568] ss:$16 sps:$4 sm:$0xff]   ;;  %v16023_v25 = vld [vmem:[#allocation3 + $0x1584] ss:$16 sps:$4 sm:$0xff]  }
 0x382   : > { %7324 = vmatprep.subr.bf16.mxu0 %v15938_v7  ;;  %7980 = vmatprep.subr.bf16.mxu1 %v15941_v8  ;;  %v16026_v7 = vld [vmem:[#allocation3 + $0x158c] ss:$16 sps:$4 sm:$0xff]   ;;  %v16021_v8 = vld [vmem:[#allocation3 + $0x1580] ss:$16 sps:$4 sm:$0xff]  }
 0x385   : > { %7325 = vmatpush1.bf16.msra.mxu0 %v15936_v11  ;;  %7981 = vmatpush1.bf16.msra.mxu1 %v15939_v59  ;;  %v16024_v11 = vld [vmem:[#allocation3 + $0x1588] ss:$16 sps:$4 sm:$0xff]   ;;  %v16029_v59 = vld [vmem:[#allocation3 + $0x15a4] ss:$16 sps:$4 sm:$0xff]  }
 0x386   : > { %7326 = vmatprep.subr.bf16.mxu0 %v15944_v12  ;;  %7982 = vmatprep.subr.bf16.mxu1 %v15947_v13  ;;  %v16032_v12 = vld [vmem:[#allocation3 + $0x15ac] ss:$16 sps:$4 sm:$0xff]   ;;  %v16027_v13 = vld [vmem:[#allocation3 + $0x15a0] ss:$16 sps:$4 sm:$0xff]  }
 0x389   : > { %7327 = vmatpush1.bf16.msra.mxu0 %v15942_v14  ;;  %7983 = vmatpush1.bf16.msra.mxu1 %v15945_v15  ;;  %v16030_v14 = vld [vmem:[#allocation3 + $0x15a8] ss:$16 sps:$4 sm:$0xff]   ;;  %v16035_v15 = vld [vmem:[#allocation3 + $0x15c4] ss:$16 sps:$4 sm:$0xff]  }
 0x38a   : > { %7337 = vmatprep.subr.bf16.mxu0 %v15951_v16  ;;  %7993 = vmatprep.subr.bf16.mxu1 %v15954_v17  ;;  %v16038_v16 = vld [vmem:[#allocation3 + $0x15cc] ss:$16 sps:$4 sm:$0xff]   ;;  %v646_v17 = vcombine.high %v17479_v10, %v17479_v10 }
 0x38c   : > { %7329 = vmatmul.mubr.bf16.vlgmr.msra.gmra.mrb[0].mxu0 %v747_v19  ;;  %7985 = vmatmul.mubr.bf16.vlgmr.msra.gmra.mrb[0].mxu1 %v747_v19  ;;  %v16036_v19 = vld [vmem:[#allocation3 + $0x15c8] ss:$16 sps:$4 sm:$0xff]  }
 0x38d   : > { %7338 = vmatpush1.bf16.msra.mxu0 %v15949_v20  ;;  %7994 = vmatpush1.bf16.msra.mxu1 %v15952_v40  ;;  %v16041_v20 = vld [vmem:[#allocation3 + $0x15e4] ss:$16 sps:$4 sm:$0xff]   ;;  %v16044_v40 = vld [vmem:[#allocation3 + $0x15ec] ss:$16 sps:$4 sm:$0xff]  }
 0x38e   : > { %7339 = vmatprep.subr.bf16.mxu0 %v15957_v21  ;;  %7995 = vmatprep.subr.bf16.mxu1 %v15960_v22  ;;  %v17492_v21 = vrot.slane %v646_v17, %v17377_v49  ;;  %v16039_v22 = vld [vmem:[#allocation3 + $0x15e0] ss:$16 sps:$4 sm:$0xff]   ;;  %v16120_v17 = vld [vmem:[#allocation3 + $0x1788] ss:$16 sps:$4 sm:$0xff]  }
 0x38f   : > { %7369 = vmatprep.mubr.bf16.mxu0 %v750_v24  ;;  %8025 = vmatprep.mubr.bf16.mxu1 %v750_v24  ;;  %v16042_v24 = vld [vmem:[#allocation3 + $0x15e8] ss:$16 sps:$4 sm:$0xff]  }
 0x390   : > { %v662_v10 = vcombine.high %v17492_v21, %v17492_v21 }
 0x391   : > { %7340 = vmatpush1.bf16.msra.mxu0 %v15955_v9  ;;  %7996 = vmatpush1.bf16.msra.mxu1 %v15958_v27  ;;  %v16047_v9 = vld [vmem:[#allocation3 + $0x1604] ss:$16 sps:$4 sm:$0xff]   ;;  %v16050_v27 = vld [vmem:[#allocation3 + $0x160c] ss:$16 sps:$4 sm:$0xff]  }
 0x392   : > { %7341 = vmatprep.subr.bf16.mxu0 %v15963_v28  ;;  %7997 = vmatprep.subr.bf16.mxu1 %v15966_v23  ;;  %v749_v28 = vpack.c.bf16 %v17483_v56, %v17483_v56  ;;  %v16045_v23 = vld [vmem:[#allocation3 + $0x1600] ss:$16 sps:$4 sm:$0xff]  }
 0x393   : > { %v16057_v56 = vld [vmem:[#allocation3 + $0x1640] ss:$16 sps:$4 sm:$0xff]  }
 0x395   : > { %7342 = vmatpush1.bf16.msra.mxu0 %v15961_v6  ;;  %7998 = vmatpush1.bf16.msra.mxu1 %v15964_v30  ;;  %v16048_v6 = vld [vmem:[#allocation3 + $0x1608] ss:$16 sps:$4 sm:$0xff]   ;;  %v16053_v30 = vld [vmem:[#allocation3 + $0x1624] ss:$16 sps:$4 sm:$0xff]  }
 0x396   : > { %7343 = vmatprep.subr.bf16.mxu0 %v15969_v31  ;;  %7999 = vmatprep.subr.bf16.mxu1 %v15972_v33  ;;  %v16056_v31 = vld [vmem:[#allocation3 + $0x162c] ss:$16 sps:$4 sm:$0xff]   ;;  %v752_v33 = vpack.c.bf16 %v662_v10, %v662_v10  ;;  %v16132_v10 = vld [vmem:[#allocation3 + $0x17c8] ss:$16 sps:$4 sm:$0xff]  }
 0x399   : > { %7344 = vmatpush1.bf16.msra.mxu0 %v15967_v34  ;;  %8000 = vmatpush1.bf16.msra.mxu1 %v15970_v35  ;;  %v16051_v34 = vld [vmem:[#allocation3 + $0x1620] ss:$16 sps:$4 sm:$0xff]   ;;  %v16054_v35 = vld [vmem:[#allocation3 + $0x1628] ss:$16 sps:$4 sm:$0xff]  }
 0x39a   : > { %7345 = vmatprep.subr.bf16.mxu0 %v15975_v36  ;;  %8001 = vmatprep.subr.bf16.mxu1 %v15978_v37  ;;  %v16059_v36 = vld [vmem:[#allocation3 + $0x1644] ss:$16 sps:$4 sm:$0xff]   ;;  %v16062_v37 = vld [vmem:[#allocation3 + $0x164c] ss:$16 sps:$4 sm:$0xff]  }
 0x39d   : > { %7346 = vmatpush1.bf16.msra.mxu0 %v15973_v38  ;;  %8002 = vmatpush1.bf16.msra.mxu1 %v15976_v39  ;;  %v16060_v38 = vld [vmem:[#allocation3 + $0x1648] ss:$16 sps:$4 sm:$0xff]   ;;  %v16065_v39 = vld [vmem:[#allocation3 + $0x1664] ss:$16 sps:$4 sm:$0xff]  }
 0x39e   : > { %7347 = vmatprep.subr.bf16.mxu0 %v15981_v26  ;;  %8003 = vmatprep.subr.bf16.mxu1 %v15984_v41  ;;  %v16068_v26 = vld [vmem:[#allocation3 + $0x166c] ss:$16 sps:$4 sm:$0xff]   ;;  %v16063_v41 = vld [vmem:[#allocation3 + $0x1660] ss:$16 sps:$4 sm:$0xff]  }
 0x3a1   : > { %7348 = vmatpush1.bf16.msra.mxu0 %v15979_v42  ;;  %8004 = vmatpush1.bf16.msra.mxu1 %v15982_v45  ;;  %v16066_v42 = vld [vmem:[#allocation3 + $0x1668] ss:$16 sps:$4 sm:$0xff]   ;;  %v16071_v45 = vld [vmem:[#allocation3 + $0x1684] ss:$16 sps:$4 sm:$0xff]  }
 0x3a2   : > { %7349 = vmatprep.subr.bf16.mxu0 %v15987_v29  ;;  %8005 = vmatprep.subr.bf16.mxu1 %v15990_v46  ;;  %v16074_v29 = vld [vmem:[#allocation3 + $0x168c] ss:$16 sps:$4 sm:$0xff]   ;;  %v16069_v46 = vld [vmem:[#allocation3 + $0x1680] ss:$16 sps:$4 sm:$0xff]  }
 0x3a5   : > { %7350 = vmatpush1.bf16.msra.mxu0 %v15985_v47  ;;  %8006 = vmatpush1.bf16.msra.mxu1 %v15988_v48  ;;  %v16072_v47 = vld [vmem:[#allocation3 + $0x1688] ss:$16 sps:$4 sm:$0xff]   ;;  %v16077_v48 = vld [vmem:[#allocation3 + $0x16a4] ss:$16 sps:$4 sm:$0xff]  }
 0x3a6   : > { %7351 = vmatprep.subr.bf16.mxu0 %v15993_v50  ;;  %8007 = vmatprep.subr.bf16.mxu1 %v15996_v51  ;;  %v16080_v50 = vld [vmem:[#allocation3 + $0x16ac] ss:$16 sps:$4 sm:$0xff]   ;;  %v16075_v51 = vld [vmem:[#allocation3 + $0x16a0] ss:$16 sps:$4 sm:$0xff]  }
 0x3a9   : > { %7352 = vmatpush1.bf16.msra.mxu0 %v15991_v52  ;;  %8008 = vmatpush1.bf16.msra.mxu1 %v15994_v53  ;;  %v16078_v52 = vld [vmem:[#allocation3 + $0x16a8] ss:$16 sps:$4 sm:$0xff]   ;;  %v16083_v53 = vld [vmem:[#allocation3 + $0x16c4] ss:$16 sps:$4 sm:$0xff]  }
 0x3aa   : > { %7353 = vmatprep.subr.bf16.mxu0 %v15999_v54  ;;  %8009 = vmatprep.subr.bf16.mxu1 %v16002_v55  ;;  %v16086_v54 = vld [vmem:[#allocation3 + $0x16cc] ss:$16 sps:$4 sm:$0xff]   ;;  %v16081_v55 = vld [vmem:[#allocation3 + $0x16c0] ss:$16 sps:$4 sm:$0xff]  }
 0x3ad   : > { %7354 = vmatpush1.bf16.msra.mxu0 %v15997_v32  ;;  %8010 = vmatpush1.bf16.msra.mxu1 %v16000_v57  ;;  %v16084_v32 = vld [vmem:[#allocation3 + $0x16c8] ss:$16 sps:$4 sm:$0xff]   ;;  %v16089_v57 = vld [vmem:[#allocation3 + $0x16e4] ss:$16 sps:$4 sm:$0xff]  }
 0x3ae   : > { %7355 = vmatprep.subr.bf16.mxu0 %v16005_v58  ;;  %8011 = vmatprep.subr.bf16.mxu1 %v16008_v60  ;;  %v16092_v58 = vld [vmem:[#allocation3 + $0x16ec] ss:$16 sps:$4 sm:$0xff]   ;;  %v16087_v60 = vld [vmem:[#allocation3 + $0x16e0] ss:$16 sps:$4 sm:$0xff]  }
 0x3b1   : > { %7356 = vmatpush1.bf16.msra.mxu0 %v16003_v44  ;;  %8012 = vmatpush1.bf16.msra.mxu1 %v16006_v61  ;;  %v16090_v44 = vld [vmem:[#allocation3 + $0x16e8] ss:$16 sps:$4 sm:$0xff]   ;;  %v16095_v61 = vld [vmem:[#allocation3 + $0x1704] ss:$16 sps:$4 sm:$0xff]  }
 0x3b2   : > { %7357 = vmatprep.subr.bf16.mxu0 %v16011_v62  ;;  %8013 = vmatprep.subr.bf16.mxu1 %v16014_v63  ;;  %v16098_v62 = vld [vmem:[#allocation3 + $0x170c] ss:$16 sps:$4 sm:$0xff]   ;;  %v16093_v63 = vld [vmem:[#allocation3 + $0x1700] ss:$16 sps:$4 sm:$0xff]  }
 0x3b5   : > { %7358 = vmatpush1.bf16.msra.mxu0 %v16009_v0  ;;  %8014 = vmatpush1.bf16.msra.mxu1 %v16012_v1  ;;  %v16096_v0 = vld [vmem:[#allocation3 + $0x1708] ss:$16 sps:$4 sm:$0xff]   ;;  %v16101_v1 = vld [vmem:[#allocation3 + $0x1724] ss:$16 sps:$4 sm:$0xff]  }
 0x3b6   : > { %7359 = vmatprep.subr.bf16.mxu0 %v16017_v2  ;;  %8015 = vmatprep.subr.bf16.mxu1 %v16020_v3  ;;  %v16104_v2 = vld [vmem:[#allocation3 + $0x172c] ss:$16 sps:$4 sm:$0xff]   ;;  %v16099_v3 = vld [vmem:[#allocation3 + $0x1720] ss:$16 sps:$4 sm:$0xff]  }
 0x3b9   : > { %7360 = vmatpush1.bf16.msra.mxu0 %v16015_v4  ;;  %8016 = vmatpush1.bf16.msra.mxu1 %v16018_v5  ;;  %v16102_v4 = vld [vmem:[#allocation3 + $0x1728] ss:$16 sps:$4 sm:$0xff]   ;;  %v16107_v5 = vld [vmem:[#allocation3 + $0x1744] ss:$16 sps:$4 sm:$0xff]  }
 0x3ba   : > { %7361 = vmatprep.subr.bf16.mxu0 %v16023_v25  ;;  %8017 = vmatprep.subr.bf16.mxu1 %v16026_v7  ;;  %v16110_v25 = vld [vmem:[#allocation3 + $0x174c] ss:$16 sps:$4 sm:$0xff]   ;;  %v16105_v7 = vld [vmem:[#allocation3 + $0x1740] ss:$16 sps:$4 sm:$0xff]  }
 0x3bd   : > { %7362 = vmatpush1.bf16.msra.mxu0 %v16021_v8  ;;  %8018 = vmatpush1.bf16.msra.mxu1 %v16024_v11  ;;  %v16108_v8 = vld [vmem:[#allocation3 + $0x1748] ss:$16 sps:$4 sm:$0xff]   ;;  %v16113_v11 = vld [vmem:[#allocation3 + $0x1764] ss:$16 sps:$4 sm:$0xff]  }
 0x3be   : > { %7363 = vmatprep.subr.bf16.mxu0 %v16029_v59  ;;  %8019 = vmatprep.subr.bf16.mxu1 %v16032_v12  ;;  %v16116_v59 = vld [vmem:[#allocation3 + $0x176c] ss:$16 sps:$4 sm:$0xff]   ;;  %v16111_v12 = vld [vmem:[#allocation3 + $0x1760] ss:$16 sps:$4 sm:$0xff]  }
 0x3c1   : > { %7364 = vmatpush1.bf16.msra.mxu0 %v16027_v13  ;;  %8020 = vmatpush1.bf16.msra.mxu1 %v16030_v14  ;;  %v16114_v13 = vld [vmem:[#allocation3 + $0x1768] ss:$16 sps:$4 sm:$0xff]   ;;  %v16119_v14 = vld [vmem:[#allocation3 + $0x1784] ss:$16 sps:$4 sm:$0xff]  }
 0x3c2   : > { %7365 = vmatprep.subr.bf16.mxu0 %v16035_v15  ;;  %8021 = vmatprep.subr.bf16.mxu1 %v16038_v16  ;;  %v16122_v15 = vld [vmem:[#allocation3 + $0x178c] ss:$16 sps:$4 sm:$0xff]   ;;  %v16117_v16 = vld [vmem:[#allocation3 + $0x1780] ss:$16 sps:$4 sm:$0xff]  }
 0x3c5   : > { %7366 = vmatpush1.bf16.msra.mxu0 %v16033_v18  ;;  %8022 = vmatpush1.bf16.msra.mxu1 %v16036_v19  ;;  %v16125_v18 = vld [vmem:[#allocation3 + $0x17a4] ss:$16 sps:$4 sm:$0xff]   ;;  %v16128_v19 = vld [vmem:[#allocation3 + $0x17ac] ss:$16 sps:$4 sm:$0xff]  }
 0x3c6   : > { %7367 = vmatprep.subr.bf16.mxu0 %v16041_v20  ;;  %8023 = vmatprep.subr.bf16.mxu1 %v16044_v40  ;;  %v16123_v20 = vld [vmem:[#allocation3 + $0x17a0] ss:$16 sps:$4 sm:$0xff]   ;;  %v16126_v40 = vld [vmem:[#allocation3 + $0x17a8] ss:$16 sps:$4 sm:$0xff]  }
 0x3c9   : > { %7368 = vmatpush1.bf16.msra.mxu0 %v16039_v22  ;;  %8024 = vmatpush1.bf16.msra.mxu1 %v16042_v24  ;;  %v16131_v22 = vld [vmem:[#allocation3 + $0x17c4] ss:$16 sps:$4 sm:$0xff]   ;;  %v16134_v24 = vld [vmem:[#allocation3 + $0x17cc] ss:$16 sps:$4 sm:$0xff]  }
 0x3ca   : > { %7378 = vmatprep.subr.bf16.mxu0 %v16047_v9  ;;  %8034 = vmatprep.subr.bf16.mxu1 %v16050_v27  ;;  %v17501_v9 = vld [vmem:[%s18495_s0 + $0x30] sm:$0xff] }
 0x3cb   : > { %v16129_v27 = vld [vmem:[#allocation3 + $0x17c0] ss:$16 sps:$4 sm:$0xff]  }
 0x3cc   : > { %7370 = vmatmul.mubr.bf16.vlgmr.msra.gmra.mrb[0].mxu0 %v749_v28  ;;  %8026 = vmatmul.mubr.bf16.vlgmr.msra.gmra.mrb[0].mxu1 %v749_v28  ;;  %v16137_v28 = vld [vmem:[#allocation3 + $0x17e4] ss:$16 sps:$4 sm:$0xff]  }
 0x3cd   : > { %7379 = vmatpush1.bf16.msra.mxu0 %v16045_v23  ;;  %8035 = vmatpush1.bf16.msra.mxu1 %v16048_v6  ;;  %v16140_v23 = vld [vmem:[#allocation3 + $0x17ec] ss:$16 sps:$4 sm:$0xff]   ;;  %v17505_v6 = vrot.slane %v17501_v9, %v17377_v49 }
 0x3ce   : > { %7380 = vmatprep.subr.bf16.mxu0 %v16053_v30  ;;  %8036 = vmatprep.subr.bf16.mxu1 %v16056_v31  ;;  %v16135_v30 = vld [vmem:[#allocation3 + $0x17e0] ss:$16 sps:$4 sm:$0xff]   ;;  %v16138_v31 = vld [vmem:[#allocation3 + $0x17e8] ss:$16 sps:$4 sm:$0xff]  }
 0x3cf   : > { %7410 = vmatprep.mubr.bf16.mxu0 %v752_v33  ;;  %8066 = vmatprep.mubr.bf16.mxu1 %v752_v33  ;;  %v16144_v33 = vld [vmem:[#allocation3 + $0x1804] ss:$16 sps:$4 sm:$0xff]  }
 0x3d1   : > { %7381 = vmatpush1.bf16.msra.mxu0 %v16051_v34  ;;  %8037 = vmatpush1.bf16.msra.mxu1 %v16054_v35  ;;  %v16147_v34 = vld [vmem:[#allocation3 + $0x180c] ss:$16 sps:$4 sm:$0xff]   ;;  %v678_v35 = vcombine.high %v17505_v6, %v17505_v6 }
 0x3d2   : > { %7382 = vmatprep.subr.bf16.mxu0 %v16059_v36  ;;  %8038 = vmatprep.subr.bf16.mxu1 %v16062_v37  ;;  %v751_v36 = vpack.c.bf16 %v17492_v21, %v17492_v21  ;;  %v16142_v37 = vld [vmem:[#allocation3 + $0x1800] ss:$16 sps:$4 sm:$0xff]  }
 0x3d3   : > { %v16154_v21 = vld [vmem:[#allocation3 + $0x1840] ss:$16 sps:$4 sm:$0xff]  }
 0x3d5   : > { %7383 = vmatpush1.bf16.msra.mxu0 %v16057_v56  ;;  %8039 = vmatpush1.bf16.msra.mxu1 %v16060_v38  ;;  %v16145_v56 = vld [vmem:[#allocation3 + $0x1808] ss:$16 sps:$4 sm:$0xff]   ;;  %v16150_v38 = vld [vmem:[#allocation3 + $0x1824] ss:$16 sps:$4 sm:$0xff]  }
 0x3d6   : > { %7384 = vmatprep.subr.bf16.mxu0 %v16065_v39  ;;  %8040 = vmatprep.subr.bf16.mxu1 %v16068_v26  ;;  %v16153_v39 = vld [vmem:[#allocation3 + $0x182c] ss:$16 sps:$4 sm:$0xff]   ;;  %v754_v26 = vpack.c.bf16 %v678_v35, %v678_v35  ;;  %v16226_v35 = vld [vmem:[#allocation3 + $0x19c0] ss:$16 sps:$4 sm:$0xff]  }
 0x3d9   : > { %7385 = vmatpush1.bf16.msra.mxu0 %v16063_v41  ;;  %8041 = vmatpush1.bf16.msra.mxu1 %v16066_v42  ;;  %v16148_v41 = vld [vmem:[#allocation3 + $0x1820] ss:$16 sps:$4 sm:$0xff]   ;;  %v16151_v42 = vld [vmem:[#allocation3 + $0x1828] ss:$16 sps:$4 sm:$0xff]  }
 0x3da   : > { %7386 = vmatprep.subr.bf16.mxu0 %v16071_v45  ;;  %8042 = vmatprep.subr.bf16.mxu1 %v16074_v29  ;;  %v16156_v45 = vld [vmem:[#allocation3 + $0x1844] ss:$16 sps:$4 sm:$0xff]   ;;  %v16159_v29 = vld [vmem:[#allocation3 + $0x184c] ss:$16 sps:$4 sm:$0xff]  }
 0x3dd   : > { %7387 = vmatpush1.bf16.msra.mxu0 %v16069_v46  ;;  %8043 = vmatpush1.bf16.msra.mxu1 %v16072_v47  ;;  %v16157_v46 = vld [vmem:[#allocation3 + $0x1848] ss:$16 sps:$4 sm:$0xff]   ;;  %v16162_v47 = vld [vmem:[#allocation3 + $0x1864] ss:$16 sps:$4 sm:$0xff]  }
 0x3de   : > { %7388 = vmatprep.subr.bf16.mxu0 %v16077_v48  ;;  %8044 = vmatprep.subr.bf16.mxu1 %v16080_v50  ;;  %v16165_v48 = vld [vmem:[#allocation3 + $0x186c] ss:$16 sps:$4 sm:$0xff]   ;;  %v16160_v50 = vld [vmem:[#allocation3 + $0x1860] ss:$16 sps:$4 sm:$0xff]  }
 0x3e1   : > { %7389 = vmatpush1.bf16.msra.mxu0 %v16075_v51  ;;  %8045 = vmatpush1.bf16.msra.mxu1 %v16078_v52  ;;  %v16163_v51 = vld [vmem:[#allocation3 + $0x1868] ss:$16 sps:$4 sm:$0xff]   ;;  %v16168_v52 = vld [vmem:[#allocation3 + $0x1884] ss:$16 sps:$4 sm:$0xff]  }
 0x3e2   : > { %7390 = vmatprep.subr.bf16.mxu0 %v16083_v53  ;;  %8046 = vmatprep.subr.bf16.mxu1 %v16086_v54  ;;  %v16171_v53 = vld [vmem:[#allocation3 + $0x188c] ss:$16 sps:$4 sm:$0xff]   ;;  %v16166_v54 = vld [vmem:[#allocation3 + $0x1880] ss:$16 sps:$4 sm:$0xff]  }
 0x3e5   : > { %7391 = vmatpush1.bf16.msra.mxu0 %v16081_v55  ;;  %8047 = vmatpush1.bf16.msra.mxu1 %v16084_v32  ;;  %v16169_v55 = vld [vmem:[#allocation3 + $0x1888] ss:$16 sps:$4 sm:$0xff]   ;;  %v16174_v32 = vld [vmem:[#allocation3 + $0x18a4] ss:$16 sps:$4 sm:$0xff]  }
 0x3e6   : > { %7392 = vmatprep.subr.bf16.mxu0 %v16089_v57  ;;  %8048 = vmatprep.subr.bf16.mxu1 %v16092_v58  ;;  %v16177_v57 = vld [vmem:[#allocation3 + $0x18ac] ss:$16 sps:$4 sm:$0xff]   ;;  %v16172_v58 = vld [vmem:[#allocation3 + $0x18a0] ss:$16 sps:$4 sm:$0xff]  }
 0x3e9   : > { %7393 = vmatpush1.bf16.msra.mxu0 %v16087_v60  ;;  %8049 = vmatpush1.bf16.msra.mxu1 %v16090_v44  ;;  %v16175_v60 = vld [vmem:[#allocation3 + $0x18a8] ss:$16 sps:$4 sm:$0xff]   ;;  %v16180_v44 = vld [vmem:[#allocation3 + $0x18c4] ss:$16 sps:$4 sm:$0xff]  }
 0x3ea   : > { %7394 = vmatprep.subr.bf16.mxu0 %v16095_v61  ;;  %8050 = vmatprep.subr.bf16.mxu1 %v16098_v62  ;;  %v16183_v61 = vld [vmem:[#allocation3 + $0x18cc] ss:$16 sps:$4 sm:$0xff]   ;;  %v16178_v62 = vld [vmem:[#allocation3 + $0x18c0] ss:$16 sps:$4 sm:$0xff]  }
 0x3ed   : > { %7395 = vmatpush1.bf16.msra.mxu0 %v16093_v63  ;;  %8051 = vmatpush1.bf16.msra.mxu1 %v16096_v0  ;;  %v16181_v63 = vld [vmem:[#allocation3 + $0x18c8] ss:$16 sps:$4 sm:$0xff]   ;;  %v16186_v0 = vld [vmem:[#allocation3 + $0x18e4] ss:$16 sps:$4 sm:$0xff]  }
 0x3ee   : > { %7396 = vmatprep.subr.bf16.mxu0 %v16101_v1  ;;  %8052 = vmatprep.subr.bf16.mxu1 %v16104_v2  ;;  %v16189_v1 = vld [vmem:[#allocation3 + $0x18ec] ss:$16 sps:$4 sm:$0xff]   ;;  %v16184_v2 = vld [vmem:[#allocation3 + $0x18e0] ss:$16 sps:$4 sm:$0xff]  }
 0x3f1   : > { %7397 = vmatpush1.bf16.msra.mxu0 %v16099_v3  ;;  %8053 = vmatpush1.bf16.msra.mxu1 %v16102_v4  ;;  %v16187_v3 = vld [vmem:[#allocation3 + $0x18e8] ss:$16 sps:$4 sm:$0xff]   ;;  %v16192_v4 = vld [vmem:[#allocation3 + $0x1904] ss:$16 sps:$4 sm:$0xff]  }
 0x3f2   : > { %7398 = vmatprep.subr.bf16.mxu0 %v16107_v5  ;;  %8054 = vmatprep.subr.bf16.mxu1 %v16110_v25  ;;  %v16195_v5 = vld [vmem:[#allocation3 + $0x190c] ss:$16 sps:$4 sm:$0xff]   ;;  %v16190_v25 = vld [vmem:[#allocation3 + $0x1900] ss:$16 sps:$4 sm:$0xff]  }
 0x3f5   : > { %7399 = vmatpush1.bf16.msra.mxu0 %v16105_v7  ;;  %8055 = vmatpush1.bf16.msra.mxu1 %v16108_v8  ;;  %v16193_v7 = vld [vmem:[#allocation3 + $0x1908] ss:$16 sps:$4 sm:$0xff]   ;;  %v16198_v8 = vld [vmem:[#allocation3 + $0x1924] ss:$16 sps:$4 sm:$0xff]  }
 0x3f6   : > { %7400 = vmatprep.subr.bf16.mxu0 %v16113_v11  ;;  %8056 = vmatprep.subr.bf16.mxu1 %v16116_v59  ;;  %v16201_v11 = vld [vmem:[#allocation3 + $0x192c] ss:$16 sps:$4 sm:$0xff]   ;;  %v16196_v59 = vld [vmem:[#allocation3 + $0x1920] ss:$16 sps:$4 sm:$0xff]  }
 0x3f9   : > { %7401 = vmatpush1.bf16.msra.mxu0 %v16111_v12  ;;  %8057 = vmatpush1.bf16.msra.mxu1 %v16114_v13  ;;  %v16199_v12 = vld [vmem:[#allocation3 + $0x1928] ss:$16 sps:$4 sm:$0xff]   ;;  %v16204_v13 = vld [vmem:[#allocation3 + $0x1944] ss:$16 sps:$4 sm:$0xff]  }
 0x3fa   : > { %7402 = vmatprep.subr.bf16.mxu0 %v16119_v14  ;;  %8058 = vmatprep.subr.bf16.mxu1 %v16122_v15  ;;  %v16207_v14 = vld [vmem:[#allocation3 + $0x194c] ss:$16 sps:$4 sm:$0xff]   ;;  %v16202_v15 = vld [vmem:[#allocation3 + $0x1940] ss:$16 sps:$4 sm:$0xff]  }
 0x3fd   : > { %7403 = vmatpush1.bf16.msra.mxu0 %v16117_v16  ;;  %8059 = vmatpush1.bf16.msra.mxu1 %v16120_v17  ;;  %v16205_v16 = vld [vmem:[#allocation3 + $0x1948] ss:$16 sps:$4 sm:$0xff]   ;;  %v16210_v17 = vld [vmem:[#allocation3 + $0x1964] ss:$16 sps:$4 sm:$0xff]  }
 0x3fe   : > { %7404 = vmatprep.subr.bf16.mxu0 %v16125_v18  ;;  %8060 = vmatprep.subr.bf16.mxu1 %v16128_v19  ;;  %v16213_v18 = vld [vmem:[#allocation3 + $0x196c] ss:$16 sps:$4 sm:$0xff]   ;;  %v16208_v19 = vld [vmem:[#allocation3 + $0x1960] ss:$16 sps:$4 sm:$0xff]  }
 0x401   : > { %7405 = vmatpush1.bf16.msra.mxu0 %v16123_v20  ;;  %8061 = vmatpush1.bf16.msra.mxu1 %v16126_v40  ;;  %v16211_v20 = vld [vmem:[#allocation3 + $0x1968] ss:$16 sps:$4 sm:$0xff]   ;;  %v16216_v40 = vld [vmem:[#allocation3 + $0x1984] ss:$16 sps:$4 sm:$0xff]  }
 0x402   : > { %7406 = vmatprep.subr.bf16.mxu0 %v16131_v22  ;;  %8062 = vmatprep.subr.bf16.mxu1 %v16134_v24  ;;  %v16219_v22 = vld [vmem:[#allocation3 + $0x198c] ss:$16 sps:$4 sm:$0xff]   ;;  %v16214_v24 = vld [vmem:[#allocation3 + $0x1980] ss:$16 sps:$4 sm:$0xff]  }
 0x405   : > { %7407 = vmatpush1.bf16.msra.mxu0 %v16129_v27  ;;  %8063 = vmatpush1.bf16.msra.mxu1 %v16132_v10  ;;  %v16217_v27 = vld [vmem:[#allocation3 + $0x1988] ss:$16 sps:$4 sm:$0xff]   ;;  %v16222_v10 = vld [vmem:[#allocation3 + $0x19a4] ss:$16 sps:$4 sm:$0xff]  }
 0x406   : > { %7408 = vmatprep.subr.bf16.mxu0 %v16137_v28  ;;  %8064 = vmatprep.subr.bf16.mxu1 %v16140_v23  ;;  %v16225_v28 = vld [vmem:[#allocation3 + $0x19ac] ss:$16 sps:$4 sm:$0xff]   ;;  %v16220_v23 = vld [vmem:[#allocation3 + $0x19a0] ss:$16 sps:$4 sm:$0xff]  }
 0x409   : > { %7409 = vmatpush1.bf16.msra.mxu0 %v16135_v30  ;;  %8065 = vmatpush1.bf16.msra.mxu1 %v16138_v31  ;;  %v16223_v30 = vld [vmem:[#allocation3 + $0x19a8] ss:$16 sps:$4 sm:$0xff]   ;;  %v16228_v31 = vld [vmem:[#allocation3 + $0x19c4] ss:$16 sps:$4 sm:$0xff]  }
 0x40a   : > { %7419 = vmatprep.subr.bf16.mxu0 %v16144_v33  ;;  %8075 = vmatprep.subr.bf16.mxu1 %v16147_v34  ;;  %v16231_v33 = vld [vmem:[#allocation3 + $0x19cc] ss:$16 sps:$4 sm:$0xff]   ;;  %v663_v34 = vcombine.high %v17501_v9, %v17501_v9 }
 0x40c   : > { %7411 = vmatmul.mubr.bf16.vlgmr.msra.gmra.mrb[0].mxu0 %v751_v36  ;;  %8067 = vmatmul.mubr.bf16.vlgmr.msra.gmra.mrb[0].mxu1 %v751_v36  ;;  %v16229_v36 = vld [vmem:[#allocation3 + $0x19c8] ss:$16 sps:$4 sm:$0xff]  }
 0x40d   : > { %7420 = vmatpush1.bf16.msra.mxu0 %v16142_v37  ;;  %8076 = vmatpush1.bf16.msra.mxu1 %v16145_v56  ;;  %v16234_v37 = vld [vmem:[#allocation3 + $0x19e4] ss:$16 sps:$4 sm:$0xff]   ;;  %v16237_v56 = vld [vmem:[#allocation3 + $0x19ec] ss:$16 sps:$4 sm:$0xff]  }
 0x40e   : > { %7421 = vmatprep.subr.bf16.mxu0 %v16150_v38  ;;  %8077 = vmatprep.subr.bf16.mxu1 %v16153_v39  ;;  %v17514_v38 = vrot.slane %v663_v34, %v17377_v49  ;;  %v16232_v39 = vld [vmem:[#allocation3 + $0x19e0] ss:$16 sps:$4 sm:$0xff]   ;;  %v16313_v34 = vld [vmem:[#allocation3 + $0x1b88] ss:$16 sps:$4 sm:$0xff]  }
 0x40f   : > { %7451 = vmatprep.mubr.bf16.mxu0 %v754_v26  ;;  %8107 = vmatprep.mubr.bf16.mxu1 %v754_v26  ;;  %v16235_v26 = vld [vmem:[#allocation3 + $0x19e8] ss:$16 sps:$4 sm:$0xff]  }
 0x410   : > { %v679_v9 = vcombine.high %v17514_v38, %v17514_v38 }
 0x411   : > { %7422 = vmatpush1.bf16.msra.mxu0 %v16148_v41  ;;  %8078 = vmatpush1.bf16.msra.mxu1 %v16151_v42  ;;  %v16240_v41 = vld [vmem:[#allocation3 + $0x1a04] ss:$16 sps:$4 sm:$0xff]   ;;  %v16243_v42 = vld [vmem:[#allocation3 + $0x1a0c] ss:$16 sps:$4 sm:$0xff]  }
 0x412   : > { %7423 = vmatprep.subr.bf16.mxu0 %v16156_v45  ;;  %8079 = vmatprep.subr.bf16.mxu1 %v16159_v29  ;;  %v753_v45 = vpack.c.bf16 %v17505_v6, %v17505_v6  ;;  %v16238_v29 = vld [vmem:[#allocation3 + $0x1a00] ss:$16 sps:$4 sm:$0xff]  }
 0x413   : > { %v16250_v6 = vld [vmem:[#allocation3 + $0x1a40] ss:$16 sps:$4 sm:$0xff]  }
 0x415   : > { %7424 = vmatpush1.bf16.msra.mxu0 %v16154_v21  ;;  %8080 = vmatpush1.bf16.msra.mxu1 %v16157_v46  ;;  %v16241_v21 = vld [vmem:[#allocation3 + $0x1a08] ss:$16 sps:$4 sm:$0xff]   ;;  %v16246_v46 = vld [vmem:[#allocation3 + $0x1a24] ss:$16 sps:$4 sm:$0xff]  }
 0x416   : > { %7425 = vmatprep.subr.bf16.mxu0 %v16162_v47  ;;  %8081 = vmatprep.subr.bf16.mxu1 %v16165_v48  ;;  %v16249_v47 = vld [vmem:[#allocation3 + $0x1a2c] ss:$16 sps:$4 sm:$0xff]   ;;  %v756_v48 = vpack.c.bf16 %v679_v9, %v679_v9  ;;  %v16325_v9 = vld [vmem:[#allocation3 + $0x1bc8] ss:$16 sps:$4 sm:$0xff]  }
 0x419   : > { %7426 = vmatpush1.bf16.msra.mxu0 %v16160_v50  ;;  %8082 = vmatpush1.bf16.msra.mxu1 %v16163_v51  ;;  %v16244_v50 = vld [vmem:[#allocation3 + $0x1a20] ss:$16 sps:$4 sm:$0xff]   ;;  %v16247_v51 = vld [vmem:[#allocation3 + $0x1a28] ss:$16 sps:$4 sm:$0xff]  }
 0x41a   : > { %7427 = vmatprep.subr.bf16.mxu0 %v16168_v52  ;;  %8083 = vmatprep.subr.bf16.mxu1 %v16171_v53  ;;  %v16252_v52 = vld [vmem:[#allocation3 + $0x1a44] ss:$16 sps:$4 sm:$0xff]   ;;  %v16255_v53 = vld [vmem:[#allocation3 + $0x1a4c] ss:$16 sps:$4 sm:$0xff]  }
 0x41d   : > { %7428 = vmatpush1.bf16.msra.mxu0 %v16166_v54  ;;  %8084 = vmatpush1.bf16.msra.mxu1 %v16169_v55  ;;  %v16253_v54 = vld [vmem:[#allocation3 + $0x1a48] ss:$16 sps:$4 sm:$0xff]   ;;  %v16258_v55 = vld [vmem:[#allocation3 + $0x1a64] ss:$16 sps:$4 sm:$0xff]  }
 0x41e   : > { %7429 = vmatprep.subr.bf16.mxu0 %v16174_v32  ;;  %8085 = vmatprep.subr.bf16.mxu1 %v16177_v57  ;;  %v16261_v32 = vld [vmem:[#allocation3 + $0x1a6c] ss:$16 sps:$4 sm:$0xff]   ;;  %v16256_v57 = vld [vmem:[#allocation3 + $0x1a60] ss:$16 sps:$4 sm:$0xff]  }
 0x421   : > { %7430 = vmatpush1.bf16.msra.mxu0 %v16172_v58  ;;  %8086 = vmatpush1.bf16.msra.mxu1 %v16175_v60  ;;  %v16259_v58 = vld [vmem:[#allocation3 + $0x1a68] ss:$16 sps:$4 sm:$0xff]   ;;  %v16264_v60 = vld [vmem:[#allocation3 + $0x1a84] ss:$16 sps:$4 sm:$0xff]  }
 0x422   : > { %7431 = vmatprep.subr.bf16.mxu0 %v16180_v44  ;;  %8087 = vmatprep.subr.bf16.mxu1 %v16183_v61  ;;  %v16267_v44 = vld [vmem:[#allocation3 + $0x1a8c] ss:$16 sps:$4 sm:$0xff]   ;;  %v16262_v61 = vld [vmem:[#allocation3 + $0x1a80] ss:$16 sps:$4 sm:$0xff]  }
 0x425   : > { %7432 = vmatpush1.bf16.msra.mxu0 %v16178_v62  ;;  %8088 = vmatpush1.bf16.msra.mxu1 %v16181_v63  ;;  %v16265_v62 = vld [vmem:[#allocation3 + $0x1a88] ss:$16 sps:$4 sm:$0xff]   ;;  %v16270_v63 = vld [vmem:[#allocation3 + $0x1aa4] ss:$16 sps:$4 sm:$0xff]  }
 0x426   : > { %7433 = vmatprep.subr.bf16.mxu0 %v16186_v0  ;;  %8089 = vmatprep.subr.bf16.mxu1 %v16189_v1  ;;  %v16273_v0 = vld [vmem:[#allocation3 + $0x1aac] ss:$16 sps:$4 sm:$0xff]   ;;  %v16268_v1 = vld [vmem:[#allocation3 + $0x1aa0] ss:$16 sps:$4 sm:$0xff]  }
 0x429   : > { %7434 = vmatpush1.bf16.msra.mxu0 %v16184_v2  ;;  %8090 = vmatpush1.bf16.msra.mxu1 %v16187_v3  ;;  %v16271_v2 = vld [vmem:[#allocation3 + $0x1aa8] ss:$16 sps:$4 sm:$0xff]   ;;  %v16276_v3 = vld [vmem:[#allocation3 + $0x1ac4] ss:$16 sps:$4 sm:$0xff]  }
 0x42a   : > { %7435 = vmatprep.subr.bf16.mxu0 %v16192_v4  ;;  %8091 = vmatprep.subr.bf16.mxu1 %v16195_v5  ;;  %v16279_v4 = vld [vmem:[#allocation3 + $0x1acc] ss:$16 sps:$4 sm:$0xff]   ;;  %v16274_v5 = vld [vmem:[#allocation3 + $0x1ac0] ss:$16 sps:$4 sm:$0xff]  }
 0x42d   : > { %7436 = vmatpush1.bf16.msra.mxu0 %v16190_v25  ;;  %8092 = vmatpush1.bf16.msra.mxu1 %v16193_v7  ;;  %v16277_v25 = vld [vmem:[#allocation3 + $0x1ac8] ss:$16 sps:$4 sm:$0xff]   ;;  %v16282_v7 = vld [vmem:[#allocation3 + $0x1ae4] ss:$16 sps:$4 sm:$0xff]  }
 0x42e   : > { %7437 = vmatprep.subr.bf16.mxu0 %v16198_v8  ;;  %8093 = vmatprep.subr.bf16.mxu1 %v16201_v11  ;;  %v16285_v8 = vld [vmem:[#allocation3 + $0x1aec] ss:$16 sps:$4 sm:$0xff]   ;;  %v16280_v11 = vld [vmem:[#allocation3 + $0x1ae0] ss:$16 sps:$4 sm:$0xff]  }
 0x431   : > { %7438 = vmatpush1.bf16.msra.mxu0 %v16196_v59  ;;  %8094 = vmatpush1.bf16.msra.mxu1 %v16199_v12  ;;  %v16283_v59 = vld [vmem:[#allocation3 + $0x1ae8] ss:$16 sps:$4 sm:$0xff]   ;;  %v16288_v12 = vld [vmem:[#allocation3 + $0x1b04] ss:$16 sps:$4 sm:$0xff]  }
 0x432   : > { %7439 = vmatprep.subr.bf16.mxu0 %v16204_v13  ;;  %8095 = vmatprep.subr.bf16.mxu1 %v16207_v14  ;;  %v16291_v13 = vld [vmem:[#allocation3 + $0x1b0c] ss:$16 sps:$4 sm:$0xff]   ;;  %v16286_v14 = vld [vmem:[#allocation3 + $0x1b00] ss:$16 sps:$4 sm:$0xff]  }
 0x435   : > { %7440 = vmatpush1.bf16.msra.mxu0 %v16202_v15  ;;  %8096 = vmatpush1.bf16.msra.mxu1 %v16205_v16  ;;  %v16289_v15 = vld [vmem:[#allocation3 + $0x1b08] ss:$16 sps:$4 sm:$0xff]   ;;  %v16294_v16 = vld [vmem:[#allocation3 + $0x1b24] ss:$16 sps:$4 sm:$0xff]  }
 0x436   : > { %7441 = vmatprep.subr.bf16.mxu0 %v16210_v17  ;;  %8097 = vmatprep.subr.bf16.mxu1 %v16213_v18  ;;  %v16297_v17 = vld [vmem:[#allocation3 + $0x1b2c] ss:$16 sps:$4 sm:$0xff]   ;;  %v16292_v18 = vld [vmem:[#allocation3 + $0x1b20] ss:$16 sps:$4 sm:$0xff]  }
 0x439   : > { %7442 = vmatpush1.bf16.msra.mxu0 %v16208_v19  ;;  %8098 = vmatpush1.bf16.msra.mxu1 %v16211_v20  ;;  %v16295_v19 = vld [vmem:[#allocation3 + $0x1b28] ss:$16 sps:$4 sm:$0xff]   ;;  %v16300_v20 = vld [vmem:[#allocation3 + $0x1b44] ss:$16 sps:$4 sm:$0xff]  }
 0x43a   : > { %7443 = vmatprep.subr.bf16.mxu0 %v16216_v40  ;;  %8099 = vmatprep.subr.bf16.mxu1 %v16219_v22  ;;  %v16303_v40 = vld [vmem:[#allocation3 + $0x1b4c] ss:$16 sps:$4 sm:$0xff]   ;;  %v16298_v22 = vld [vmem:[#allocation3 + $0x1b40] ss:$16 sps:$4 sm:$0xff]  }
 0x43d   : > { %7444 = vmatpush1.bf16.msra.mxu0 %v16214_v24  ;;  %8100 = vmatpush1.bf16.msra.mxu1 %v16217_v27  ;;  %v16301_v24 = vld [vmem:[#allocation3 + $0x1b48] ss:$16 sps:$4 sm:$0xff]   ;;  %v16306_v27 = vld [vmem:[#allocation3 + $0x1b64] ss:$16 sps:$4 sm:$0xff]  }
 0x43e   : > { %7445 = vmatprep.subr.bf16.mxu0 %v16222_v10  ;;  %8101 = vmatprep.subr.bf16.mxu1 %v16225_v28  ;;  %v16309_v10 = vld [vmem:[#allocation3 + $0x1b6c] ss:$16 sps:$4 sm:$0xff]   ;;  %v16304_v28 = vld [vmem:[#allocation3 + $0x1b60] ss:$16 sps:$4 sm:$0xff]  }
 0x441   : > { %7446 = vmatpush1.bf16.msra.mxu0 %v16220_v23  ;;  %8102 = vmatpush1.bf16.msra.mxu1 %v16223_v30  ;;  %v16307_v23 = vld [vmem:[#allocation3 + $0x1b68] ss:$16 sps:$4 sm:$0xff]   ;;  %v16312_v30 = vld [vmem:[#allocation3 + $0x1b84] ss:$16 sps:$4 sm:$0xff]  }
 0x442   : > { %7447 = vmatprep.subr.bf16.mxu0 %v16228_v31  ;;  %8103 = vmatprep.subr.bf16.mxu1 %v16231_v33  ;;  %v16315_v31 = vld [vmem:[#allocation3 + $0x1b8c] ss:$16 sps:$4 sm:$0xff]   ;;  %v16310_v33 = vld [vmem:[#allocation3 + $0x1b80] ss:$16 sps:$4 sm:$0xff]  }
 0x445   : > { %7448 = vmatpush1.bf16.msra.mxu0 %v16226_v35  ;;  %8104 = vmatpush1.bf16.msra.mxu1 %v16229_v36  ;;  %v16318_v35 = vld [vmem:[#allocation3 + $0x1ba4] ss:$16 sps:$4 sm:$0xff]   ;;  %v16321_v36 = vld [vmem:[#allocation3 + $0x1bac] ss:$16 sps:$4 sm:$0xff]  }
 0x446   : > { %7449 = vmatprep.subr.bf16.mxu0 %v16234_v37  ;;  %8105 = vmatprep.subr.bf16.mxu1 %v16237_v56  ;;  %v16316_v37 = vld [vmem:[#allocation3 + $0x1ba0] ss:$16 sps:$4 sm:$0xff]   ;;  %v16319_v56 = vld [vmem:[#allocation3 + $0x1ba8] ss:$16 sps:$4 sm:$0xff]  }
 0x449   : > { %7450 = vmatpush1.bf16.msra.mxu0 %v16232_v39  ;;  %8106 = vmatpush1.bf16.msra.mxu1 %v16235_v26  ;;  %v16324_v39 = vld [vmem:[#allocation3 + $0x1bc4] ss:$16 sps:$4 sm:$0xff]   ;;  %v16327_v26 = vld [vmem:[#allocation3 + $0x1bcc] ss:$16 sps:$4 sm:$0xff]  }
 0x44a   : > { %7460 = vmatprep.subr.bf16.mxu0 %v16240_v41  ;;  %8116 = vmatprep.subr.bf16.mxu1 %v16243_v42  ;;  %v17523_v41 = vld [vmem:[%s18495_s0 + $0x38] sm:$0xff]  ;;  %v16322_v42 = vld [vmem:[#allocation3 + $0x1bc0] ss:$16 sps:$4 sm:$0xff]  }
 0x44c   : > { %7452 = vmatmul.mubr.bf16.vlgmr.msra.gmra.mrb[0].mxu0 %v753_v45  ;;  %8108 = vmatmul.mubr.bf16.vlgmr.msra.gmra.mrb[0].mxu1 %v753_v45  ;;  %v16330_v45 = vld [vmem:[#allocation3 + $0x1be4] ss:$16 sps:$4 sm:$0xff]  }
 0x44d   : > { %7461 = vmatpush1.bf16.msra.mxu0 %v16238_v29  ;;  %8117 = vmatpush1.bf16.msra.mxu1 %v16241_v21  ;;  %v16333_v29 = vld [vmem:[#allocation3 + $0x1bec] ss:$16 sps:$4 sm:$0xff]   ;;  %v17527_v21 = vrot.slane %v17523_v41, %v17377_v49 }
 0x44e   : > { %7462 = vmatprep.subr.bf16.mxu0 %v16246_v46  ;;  %8118 = vmatprep.subr.bf16.mxu1 %v16249_v47  ;;  %v16328_v46 = vld [vmem:[#allocation3 + $0x1be0] ss:$16 sps:$4 sm:$0xff]   ;;  %v16331_v47 = vld [vmem:[#allocation3 + $0x1be8] ss:$16 sps:$4 sm:$0xff]  }
 0x44f   : > { %7492 = vmatprep.mubr.bf16.mxu0 %v756_v48  ;;  %8148 = vmatprep.mubr.bf16.mxu1 %v756_v48  ;;  %v16337_v48 = vld [vmem:[#allocation3 + $0x1c04] ss:$16 sps:$4 sm:$0xff]  }
 0x451   : > { %7463 = vmatpush1.bf16.msra.mxu0 %v16244_v50  ;;  %8119 = vmatpush1.bf16.msra.mxu1 %v16247_v51  ;;  %v16340_v50 = vld [vmem:[#allocation3 + $0x1c0c] ss:$16 sps:$4 sm:$0xff]   ;;  %v695_v51 = vcombine.high %v17527_v21, %v17527_v21 }
 0x452   : > { %7464 = vmatprep.subr.bf16.mxu0 %v16252_v52  ;;  %8120 = vmatprep.subr.bf16.mxu1 %v16255_v53  ;;  %v755_v52 = vpack.c.bf16 %v17514_v38, %v17514_v38  ;;  %v16335_v53 = vld [vmem:[#allocation3 + $0x1c00] ss:$16 sps:$4 sm:$0xff]  }
 0x453   : > { %v16347_v38 = vld [vmem:[#allocation3 + $0x1c40] ss:$16 sps:$4 sm:$0xff]  }
 0x455   : > { %7465 = vmatpush1.bf16.msra.mxu0 %v16250_v6  ;;  %8121 = vmatpush1.bf16.msra.mxu1 %v16253_v54  ;;  %v16338_v6 = vld [vmem:[#allocation3 + $0x1c08] ss:$16 sps:$4 sm:$0xff]   ;;  %v16343_v54 = vld [vmem:[#allocation3 + $0x1c24] ss:$16 sps:$4 sm:$0xff]  }
 0x456   : > { %7466 = vmatprep.subr.bf16.mxu0 %v16258_v55  ;;  %8122 = vmatprep.subr.bf16.mxu1 %v16261_v32  ;;  %v16346_v55 = vld [vmem:[#allocation3 + $0x1c2c] ss:$16 sps:$4 sm:$0xff]   ;;  %v758_v32 = vpack.c.bf16 %v695_v51, %v695_v51  ;;  %v16419_v51 = vld [vmem:[#allocation3 + $0x1dc0] ss:$16 sps:$4 sm:$0xff]  }
 0x459   : > { %7467 = vmatpush1.bf16.msra.mxu0 %v16256_v57  ;;  %8123 = vmatpush1.bf16.msra.mxu1 %v16259_v58  ;;  %v16341_v57 = vld [vmem:[#allocation3 + $0x1c20] ss:$16 sps:$4 sm:$0xff]   ;;  %v16344_v58 = vld [vmem:[#allocation3 + $0x1c28] ss:$16 sps:$4 sm:$0xff]  }
 0x45a   : > { %7468 = vmatprep.subr.bf16.mxu0 %v16264_v60  ;;  %8124 = vmatprep.subr.bf16.mxu1 %v16267_v44  ;;  %v16349_v60 = vld [vmem:[#allocation3 + $0x1c44] ss:$16 sps:$4 sm:$0xff]   ;;  %v16352_v44 = vld [vmem:[#allocation3 + $0x1c4c] ss:$16 sps:$4 sm:$0xff]  }
 0x45d   : > { %7469 = vmatpush1.bf16.msra.mxu0 %v16262_v61  ;;  %8125 = vmatpush1.bf16.msra.mxu1 %v16265_v62  ;;  %v16350_v61 = vld [vmem:[#allocation3 + $0x1c48] ss:$16 sps:$4 sm:$0xff]   ;;  %v16355_v62 = vld [vmem:[#allocation3 + $0x1c64] ss:$16 sps:$4 sm:$0xff]  }
 0x45e   : > { %7470 = vmatprep.subr.bf16.mxu0 %v16270_v63  ;;  %8126 = vmatprep.subr.bf16.mxu1 %v16273_v0  ;;  %v16358_v63 = vld [vmem:[#allocation3 + $0x1c6c] ss:$16 sps:$4 sm:$0xff]   ;;  %v16353_v0 = vld [vmem:[#allocation3 + $0x1c60] ss:$16 sps:$4 sm:$0xff]  }
 0x461   : > { %7471 = vmatpush1.bf16.msra.mxu0 %v16268_v1  ;;  %8127 = vmatpush1.bf16.msra.mxu1 %v16271_v2  ;;  %v16356_v1 = vld [vmem:[#allocation3 + $0x1c68] ss:$16 sps:$4 sm:$0xff]   ;;  %v16361_v2 = vld [vmem:[#allocation3 + $0x1c84] ss:$16 sps:$4 sm:$0xff]  }
 0x462   : > { %7472 = vmatprep.subr.bf16.mxu0 %v16276_v3  ;;  %8128 = vmatprep.subr.bf16.mxu1 %v16279_v4  ;;  %v16364_v3 = vld [vmem:[#allocation3 + $0x1c8c] ss:$16 sps:$4 sm:$0xff]   ;;  %v16359_v4 = vld [vmem:[#allocation3 + $0x1c80] ss:$16 sps:$4 sm:$0xff]  }
 0x465   : > { %7473 = vmatpush1.bf16.msra.mxu0 %v16274_v5  ;;  %8129 = vmatpush1.bf16.msra.mxu1 %v16277_v25  ;;  %v16362_v5 = vld [vmem:[#allocation3 + $0x1c88] ss:$16 sps:$4 sm:$0xff]   ;;  %v16367_v25 = vld [vmem:[#allocation3 + $0x1ca4] ss:$16 sps:$4 sm:$0xff]  }
 0x466   : > { %7474 = vmatprep.subr.bf16.mxu0 %v16282_v7  ;;  %8130 = vmatprep.subr.bf16.mxu1 %v16285_v8  ;;  %v16370_v7 = vld [vmem:[#allocation3 + $0x1cac] ss:$16 sps:$4 sm:$0xff]   ;;  %v16365_v8 = vld [vmem:[#allocation3 + $0x1ca0] ss:$16 sps:$4 sm:$0xff]  }
 0x469   : > { %7475 = vmatpush1.bf16.msra.mxu0 %v16280_v11  ;;  %8131 = vmatpush1.bf16.msra.mxu1 %v16283_v59  ;;  %v16368_v11 = vld [vmem:[#allocation3 + $0x1ca8] ss:$16 sps:$4 sm:$0xff]   ;;  %v16373_v59 = vld [vmem:[#allocation3 + $0x1cc4] ss:$16 sps:$4 sm:$0xff]  }
 0x46a   : > { %7476 = vmatprep.subr.bf16.mxu0 %v16288_v12  ;;  %8132 = vmatprep.subr.bf16.mxu1 %v16291_v13  ;;  %v16376_v12 = vld [vmem:[#allocation3 + $0x1ccc] ss:$16 sps:$4 sm:$0xff]   ;;  %v16371_v13 = vld [vmem:[#allocation3 + $0x1cc0] ss:$16 sps:$4 sm:$0xff]  }
 0x46d   : > { %7477 = vmatpush1.bf16.msra.mxu0 %v16286_v14  ;;  %8133 = vmatpush1.bf16.msra.mxu1 %v16289_v15  ;;  %v16374_v14 = vld [vmem:[#allocation3 + $0x1cc8] ss:$16 sps:$4 sm:$0xff]   ;;  %v16379_v15 = vld [vmem:[#allocation3 + $0x1ce4] ss:$16 sps:$4 sm:$0xff]  }
 0x46e   : > { %7478 = vmatprep.subr.bf16.mxu0 %v16294_v16  ;;  %8134 = vmatprep.subr.bf16.mxu1 %v16297_v17  ;;  %v16382_v16 = vld [vmem:[#allocation3 + $0x1cec] ss:$16 sps:$4 sm:$0xff]   ;;  %v16377_v17 = vld [vmem:[#allocation3 + $0x1ce0] ss:$16 sps:$4 sm:$0xff]  }
 0x471   : > { %7479 = vmatpush1.bf16.msra.mxu0 %v16292_v18  ;;  %8135 = vmatpush1.bf16.msra.mxu1 %v16295_v19  ;;  %v16380_v18 = vld [vmem:[#allocation3 + $0x1ce8] ss:$16 sps:$4 sm:$0xff]   ;;  %v16385_v19 = vld [vmem:[#allocation3 + $0x1d04] ss:$16 sps:$4 sm:$0xff]  }
 0x472   : > { %7480 = vmatprep.subr.bf16.mxu0 %v16300_v20  ;;  %8136 = vmatprep.subr.bf16.mxu1 %v16303_v40  ;;  %v16388_v20 = vld [vmem:[#allocation3 + $0x1d0c] ss:$16 sps:$4 sm:$0xff]   ;;  %v16383_v40 = vld [vmem:[#allocation3 + $0x1d00] ss:$16 sps:$4 sm:$0xff]  }
 0x475   : > { %7481 = vmatpush1.bf16.msra.mxu0 %v16298_v22  ;;  %8137 = vmatpush1.bf16.msra.mxu1 %v16301_v24  ;;  %v16386_v22 = vld [vmem:[#allocation3 + $0x1d08] ss:$16 sps:$4 sm:$0xff]   ;;  %v16391_v24 = vld [vmem:[#allocation3 + $0x1d24] ss:$16 sps:$4 sm:$0xff]  }
 0x476   : > { %7482 = vmatprep.subr.bf16.mxu0 %v16306_v27  ;;  %8138 = vmatprep.subr.bf16.mxu1 %v16309_v10  ;;  %v16394_v27 = vld [vmem:[#allocation3 + $0x1d2c] ss:$16 sps:$4 sm:$0xff]   ;;  %v16389_v10 = vld [vmem:[#allocation3 + $0x1d20] ss:$16 sps:$4 sm:$0xff]  }
 0x479   : > { %7483 = vmatpush1.bf16.msra.mxu0 %v16304_v28  ;;  %8139 = vmatpush1.bf16.msra.mxu1 %v16307_v23  ;;  %v16392_v28 = vld [vmem:[#allocation3 + $0x1d28] ss:$16 sps:$4 sm:$0xff]   ;;  %v16397_v23 = vld [vmem:[#allocation3 + $0x1d44] ss:$16 sps:$4 sm:$0xff]  }
 0x47a   : > { %7484 = vmatprep.subr.bf16.mxu0 %v16312_v30  ;;  %8140 = vmatprep.subr.bf16.mxu1 %v16315_v31  ;;  %v16400_v30 = vld [vmem:[#allocation3 + $0x1d4c] ss:$16 sps:$4 sm:$0xff]   ;;  %v16395_v31 = vld [vmem:[#allocation3 + $0x1d40] ss:$16 sps:$4 sm:$0xff]  }
 0x47d   : > { %7485 = vmatpush1.bf16.msra.mxu0 %v16310_v33  ;;  %8141 = vmatpush1.bf16.msra.mxu1 %v16313_v34  ;;  %v16398_v33 = vld [vmem:[#allocation3 + $0x1d48] ss:$16 sps:$4 sm:$0xff]   ;;  %v16403_v34 = vld [vmem:[#allocation3 + $0x1d64] ss:$16 sps:$4 sm:$0xff]  }
 0x47e   : > { %7486 = vmatprep.subr.bf16.mxu0 %v16318_v35  ;;  %8142 = vmatprep.subr.bf16.mxu1 %v16321_v36  ;;  %v16406_v35 = vld [vmem:[#allocation3 + $0x1d6c] ss:$16 sps:$4 sm:$0xff]   ;;  %v16401_v36 = vld [vmem:[#allocation3 + $0x1d60] ss:$16 sps:$4 sm:$0xff]  }
 0x481   : > { %7487 = vmatpush1.bf16.msra.mxu0 %v16316_v37  ;;  %8143 = vmatpush1.bf16.msra.mxu1 %v16319_v56  ;;  %v16404_v37 = vld [vmem:[#allocation3 + $0x1d68] ss:$16 sps:$4 sm:$0xff]   ;;  %v16409_v56 = vld [vmem:[#allocation3 + $0x1d84] ss:$16 sps:$4 sm:$0xff]  }
 0x482   : > { %7488 = vmatprep.subr.bf16.mxu0 %v16324_v39  ;;  %8144 = vmatprep.subr.bf16.mxu1 %v16327_v26  ;;  %v16412_v39 = vld [vmem:[#allocation3 + $0x1d8c] ss:$16 sps:$4 sm:$0xff]   ;;  %v16407_v26 = vld [vmem:[#allocation3 + $0x1d80] ss:$16 sps:$4 sm:$0xff]  }
 0x485   : > { %7489 = vmatpush1.bf16.msra.mxu0 %v16322_v42  ;;  %8145 = vmatpush1.bf16.msra.mxu1 %v16325_v9  ;;  %v16410_v42 = vld [vmem:[#allocation3 + $0x1d88] ss:$16 sps:$4 sm:$0xff]   ;;  %v16415_v9 = vld [vmem:[#allocation3 + $0x1da4] ss:$16 sps:$4 sm:$0xff]  }
 0x486   : > { %7490 = vmatprep.subr.bf16.mxu0 %v16330_v45  ;;  %8146 = vmatprep.subr.bf16.mxu1 %v16333_v29  ;;  %v16418_v45 = vld [vmem:[#allocation3 + $0x1dac] ss:$16 sps:$4 sm:$0xff]   ;;  %v16413_v29 = vld [vmem:[#allocation3 + $0x1da0] ss:$16 sps:$4 sm:$0xff]  }
 0x489   : > { %7491 = vmatpush1.bf16.msra.mxu0 %v16328_v46  ;;  %8147 = vmatpush1.bf16.msra.mxu1 %v16331_v47  ;;  %v16416_v46 = vld [vmem:[#allocation3 + $0x1da8] ss:$16 sps:$4 sm:$0xff]   ;;  %v16421_v47 = vld [vmem:[#allocation3 + $0x1dc4] ss:$16 sps:$4 sm:$0xff]  }
 0x48a   : > { %7501 = vmatprep.subr.bf16.mxu0 %v16337_v48  ;;  %8157 = vmatprep.subr.bf16.mxu1 %v16340_v50  ;;  %v16424_v48 = vld [vmem:[#allocation3 + $0x1dcc] ss:$16 sps:$4 sm:$0xff]   ;;  %v680_v50 = vcombine.high %v17523_v41, %v17523_v41 }
 0x48c   : > { %7493 = vmatmul.mubr.bf16.vlgmr.msra.gmra.mrb[0].mxu0 %v755_v52  ;;  %8149 = vmatmul.mubr.bf16.vlgmr.msra.gmra.mrb[0].mxu1 %v755_v52  ;;  %v16422_v52 = vld [vmem:[#allocation3 + $0x1dc8] ss:$16 sps:$4 sm:$0xff]  }
 0x48d   : > { %7502 = vmatpush1.bf16.msra.mxu0 %v16335_v53  ;;  %8158 = vmatpush1.bf16.msra.mxu1 %v16338_v6  ;;  %v16427_v53 = vld [vmem:[#allocation3 + $0x1de4] ss:$16 sps:$4 sm:$0xff]   ;;  %v16430_v6 = vld [vmem:[#allocation3 + $0x1dec] ss:$16 sps:$4 sm:$0xff]  }
 0x48e   : > { %7503 = vmatprep.subr.bf16.mxu0 %v16343_v54  ;;  %8159 = vmatprep.subr.bf16.mxu1 %v16346_v55  ;;  %v17536_v54 = vrot.slane %v680_v50, %v17377_v49  ;;  %v16425_v55 = vld [vmem:[#allocation3 + $0x1de0] ss:$16 sps:$4 sm:$0xff]   ;;  %v16506_v50 = vld [vmem:[#allocation3 + $0x1f88] ss:$16 sps:$4 sm:$0xff]  }
 0x48f   : > { %7533 = vmatprep.mubr.bf16.mxu0 %v758_v32  ;;  %8189 = vmatprep.mubr.bf16.mxu1 %v758_v32  ;;  %v16428_v32 = vld [vmem:[#allocation3 + $0x1de8] ss:$16 sps:$4 sm:$0xff]  }
 0x490   : > { %v696_v41 = vcombine.high %v17536_v54, %v17536_v54 }
 0x491   : > { %7504 = vmatpush1.bf16.msra.mxu0 %v16341_v57  ;;  %8160 = vmatpush1.bf16.msra.mxu1 %v16344_v58  ;;  %v16433_v57 = vld [vmem:[#allocation3 + $0x1e04] ss:$16 sps:$4 sm:$0xff]   ;;  %v16436_v58 = vld [vmem:[#allocation3 + $0x1e0c] ss:$16 sps:$4 sm:$0xff]  }
 0x492   : > { %7505 = vmatprep.subr.bf16.mxu0 %v16349_v60  ;;  %8161 = vmatprep.subr.bf16.mxu1 %v16352_v44  ;;  %v757_v60 = vpack.c.bf16 %v17527_v21, %v17527_v21  ;;  %v16431_v44 = vld [vmem:[#allocation3 + $0x1e00] ss:$16 sps:$4 sm:$0xff]  }
 0x493   : > { %v16443_v21 = vld [vmem:[#allocation3 + $0x1e40] ss:$16 sps:$4 sm:$0xff]  }
 0x495   : > { %7506 = vmatpush1.bf16.msra.mxu0 %v16347_v38  ;;  %8162 = vmatpush1.bf16.msra.mxu1 %v16350_v61  ;;  %v16434_v38 = vld [vmem:[#allocation3 + $0x1e08] ss:$16 sps:$4 sm:$0xff]   ;;  %v16439_v61 = vld [vmem:[#allocation3 + $0x1e24] ss:$16 sps:$4 sm:$0xff]  }
 0x496   : > { %7507 = vmatprep.subr.bf16.mxu0 %v16355_v62  ;;  %8163 = vmatprep.subr.bf16.mxu1 %v16358_v63  ;;  %v16442_v62 = vld [vmem:[#allocation3 + $0x1e2c] ss:$16 sps:$4 sm:$0xff]   ;;  %v760_v63 = vpack.c.bf16 %v696_v41, %v696_v41  ;;  %v16523_v41 = vld [vmem:[#allocation3 + $0x1fe4] ss:$16 sps:$4 sm:$0xff]  }
 0x499   : > { %7508 = vmatpush1.bf16.msra.mxu0 %v16353_v0  ;;  %8164 = vmatpush1.bf16.msra.mxu1 %v16356_v1  ;;  %v16437_v0 = vld [vmem:[#allocation3 + $0x1e20] ss:$16 sps:$4 sm:$0xff]   ;;  %v16440_v1 = vld [vmem:[#allocation3 + $0x1e28] ss:$16 sps:$4 sm:$0xff]  }
 0x49a   : > { %7509 = vmatprep.subr.bf16.mxu0 %v16361_v2  ;;  %8165 = vmatprep.subr.bf16.mxu1 %v16364_v3  ;;  %v16445_v2 = vld [vmem:[#allocation3 + $0x1e44] ss:$16 sps:$4 sm:$0xff]   ;;  %v16448_v3 = vld [vmem:[#allocation3 + $0x1e4c] ss:$16 sps:$4 sm:$0xff]  }
 0x49d   : > { %7510 = vmatpush1.bf16.msra.mxu0 %v16359_v4  ;;  %8166 = vmatpush1.bf16.msra.mxu1 %v16362_v5  ;;  %v16446_v4 = vld [vmem:[#allocation3 + $0x1e48] ss:$16 sps:$4 sm:$0xff]   ;;  %v16451_v5 = vld [vmem:[#allocation3 + $0x1e64] ss:$16 sps:$4 sm:$0xff]  }
 0x49e   : > { %7511 = vmatprep.subr.bf16.mxu0 %v16367_v25  ;;  %8167 = vmatprep.subr.bf16.mxu1 %v16370_v7  ;;  %v16454_v25 = vld [vmem:[#allocation3 + $0x1e6c] ss:$16 sps:$4 sm:$0xff]   ;;  %v16449_v7 = vld [vmem:[#allocation3 + $0x1e60] ss:$16 sps:$4 sm:$0xff]  }
 0x4a1   : > { %7512 = vmatpush1.bf16.msra.mxu0 %v16365_v8  ;;  %8168 = vmatpush1.bf16.msra.mxu1 %v16368_v11  ;;  %v16452_v8 = vld [vmem:[#allocation3 + $0x1e68] ss:$16 sps:$4 sm:$0xff]   ;;  %v16457_v11 = vld [vmem:[#allocation3 + $0x1e84] ss:$16 sps:$4 sm:$0xff]  }
 0x4a2   : > { %7513 = vmatprep.subr.bf16.mxu0 %v16373_v59  ;;  %8169 = vmatprep.subr.bf16.mxu1 %v16376_v12  ;;  %v16460_v59 = vld [vmem:[#allocation3 + $0x1e8c] ss:$16 sps:$4 sm:$0xff]   ;;  %v16455_v12 = vld [vmem:[#allocation3 + $0x1e80] ss:$16 sps:$4 sm:$0xff]  }
 0x4a5   : > { %7514 = vmatpush1.bf16.msra.mxu0 %v16371_v13  ;;  %8170 = vmatpush1.bf16.msra.mxu1 %v16374_v14  ;;  %v16458_v13 = vld [vmem:[#allocation3 + $0x1e88] ss:$16 sps:$4 sm:$0xff]   ;;  %v16463_v14 = vld [vmem:[#allocation3 + $0x1ea4] ss:$16 sps:$4 sm:$0xff]  }
 0x4a6   : > { %7515 = vmatprep.subr.bf16.mxu0 %v16379_v15  ;;  %8171 = vmatprep.subr.bf16.mxu1 %v16382_v16  ;;  %v16466_v15 = vld [vmem:[#allocation3 + $0x1eac] ss:$16 sps:$4 sm:$0xff]   ;;  %v16461_v16 = vld [vmem:[#allocation3 + $0x1ea0] ss:$16 sps:$4 sm:$0xff]  }
 0x4a9   : > { %7516 = vmatpush1.bf16.msra.mxu0 %v16377_v17  ;;  %8172 = vmatpush1.bf16.msra.mxu1 %v16380_v18  ;;  %v16464_v17 = vld [vmem:[#allocation3 + $0x1ea8] ss:$16 sps:$4 sm:$0xff]   ;;  %v16469_v18 = vld [vmem:[#allocation3 + $0x1ec4] ss:$16 sps:$4 sm:$0xff]  }
 0x4aa   : > { %7517 = vmatprep.subr.bf16.mxu0 %v16385_v19  ;;  %8173 = vmatprep.subr.bf16.mxu1 %v16388_v20  ;;  %v16472_v19 = vld [vmem:[#allocation3 + $0x1ecc] ss:$16 sps:$4 sm:$0xff]   ;;  %v16467_v20 = vld [vmem:[#allocation3 + $0x1ec0] ss:$16 sps:$4 sm:$0xff]  }
 0x4ad   : > { %7518 = vmatpush1.bf16.msra.mxu0 %v16383_v40  ;;  %8174 = vmatpush1.bf16.msra.mxu1 %v16386_v22  ;;  %v16470_v40 = vld [vmem:[#allocation3 + $0x1ec8] ss:$16 sps:$4 sm:$0xff]   ;;  %v16475_v22 = vld [vmem:[#allocation3 + $0x1ee4] ss:$16 sps:$4 sm:$0xff]  }
 0x4ae   : > { %7519 = vmatprep.subr.bf16.mxu0 %v16391_v24  ;;  %8175 = vmatprep.subr.bf16.mxu1 %v16394_v27  ;;  %v16478_v24 = vld [vmem:[#allocation3 + $0x1eec] ss:$16 sps:$4 sm:$0xff]   ;;  %v16473_v27 = vld [vmem:[#allocation3 + $0x1ee0] ss:$16 sps:$4 sm:$0xff]  }
 0x4b1   : > { %7520 = vmatpush1.bf16.msra.mxu0 %v16389_v10  ;;  %8176 = vmatpush1.bf16.msra.mxu1 %v16392_v28  ;;  %v16476_v10 = vld [vmem:[#allocation3 + $0x1ee8] ss:$16 sps:$4 sm:$0xff]   ;;  %v16481_v28 = vld [vmem:[#allocation3 + $0x1f04] ss:$16 sps:$4 sm:$0xff]  }
 0x4b2   : > { %7521 = vmatprep.subr.bf16.mxu0 %v16397_v23  ;;  %8177 = vmatprep.subr.bf16.mxu1 %v16400_v30  ;;  %v16484_v23 = vld [vmem:[#allocation3 + $0x1f0c] ss:$16 sps:$4 sm:$0xff]   ;;  %v16479_v30 = vld [vmem:[#allocation3 + $0x1f00] ss:$16 sps:$4 sm:$0xff]  }
 0x4b5   : > { %7522 = vmatpush1.bf16.msra.mxu0 %v16395_v31  ;;  %8178 = vmatpush1.bf16.msra.mxu1 %v16398_v33  ;;  %v16482_v31 = vld [vmem:[#allocation3 + $0x1f08] ss:$16 sps:$4 sm:$0xff]   ;;  %v16487_v33 = vld [vmem:[#allocation3 + $0x1f24] ss:$16 sps:$4 sm:$0xff]  }
 0x4b6   : > { %7523 = vmatprep.subr.bf16.mxu0 %v16403_v34  ;;  %8179 = vmatprep.subr.bf16.mxu1 %v16406_v35  ;;  %v16490_v34 = vld [vmem:[#allocation3 + $0x1f2c] ss:$16 sps:$4 sm:$0xff]   ;;  %v16485_v35 = vld [vmem:[#allocation3 + $0x1f20] ss:$16 sps:$4 sm:$0xff]  }
 0x4b9   : > { %7524 = vmatpush1.bf16.msra.mxu0 %v16401_v36  ;;  %8180 = vmatpush1.bf16.msra.mxu1 %v16404_v37  ;;  %v16488_v36 = vld [vmem:[#allocation3 + $0x1f28] ss:$16 sps:$4 sm:$0xff]   ;;  %v16493_v37 = vld [vmem:[#allocation3 + $0x1f44] ss:$16 sps:$4 sm:$0xff]  }
 0x4ba   : > { %7525 = vmatprep.subr.bf16.mxu0 %v16409_v56  ;;  %8181 = vmatprep.subr.bf16.mxu1 %v16412_v39  ;;  %v16496_v56 = vld [vmem:[#allocation3 + $0x1f4c] ss:$16 sps:$4 sm:$0xff]   ;;  %v16491_v39 = vld [vmem:[#allocation3 + $0x1f40] ss:$16 sps:$4 sm:$0xff]  }
 0x4bd   : > { %7526 = vmatpush1.bf16.msra.mxu0 %v16407_v26  ;;  %8182 = vmatpush1.bf16.msra.mxu1 %v16410_v42  ;;  %v16494_v26 = vld [vmem:[#allocation3 + $0x1f48] ss:$16 sps:$4 sm:$0xff]   ;;  %v16499_v42 = vld [vmem:[#allocation3 + $0x1f64] ss:$16 sps:$4 sm:$0xff]  }
 0x4be   : > { %7527 = vmatprep.subr.bf16.mxu0 %v16415_v9  ;;  %8183 = vmatprep.subr.bf16.mxu1 %v16418_v45  ;;  %v16502_v9 = vld [vmem:[#allocation3 + $0x1f6c] ss:$16 sps:$4 sm:$0xff]   ;;  %v16497_v45 = vld [vmem:[#allocation3 + $0x1f60] ss:$16 sps:$4 sm:$0xff]  }
 0x4c1   : > { %7528 = vmatpush1.bf16.msra.mxu0 %v16413_v29  ;;  %8184 = vmatpush1.bf16.msra.mxu1 %v16416_v46  ;;  %v16500_v29 = vld [vmem:[#allocation3 + $0x1f68] ss:$16 sps:$4 sm:$0xff]   ;;  %v16505_v46 = vld [vmem:[#allocation3 + $0x1f84] ss:$16 sps:$4 sm:$0xff]  }
 0x4c2   : > { %7529 = vmatprep.subr.bf16.mxu0 %v16421_v47  ;;  %8185 = vmatprep.subr.bf16.mxu1 %v16424_v48  ;;  %v16508_v47 = vld [vmem:[#allocation3 + $0x1f8c] ss:$16 sps:$4 sm:$0xff]   ;;  %v16503_v48 = vld [vmem:[#allocation3 + $0x1f80] ss:$16 sps:$4 sm:$0xff]  }
 0x4c5   : > { %7530 = vmatpush1.bf16.msra.mxu0 %v16419_v51  ;;  %8186 = vmatpush1.bf16.msra.mxu1 %v16422_v52  ;;  %v16511_v51 = vld [vmem:[#allocation3 + $0x1fa4] ss:$16 sps:$4 sm:$0xff]   ;;  %v16514_v52 = vld [vmem:[#allocation3 + $0x1fac] ss:$16 sps:$4 sm:$0xff]  }
 0x4c6   : > { %7531 = vmatprep.subr.bf16.mxu0 %v16427_v53  ;;  %8187 = vmatprep.subr.bf16.mxu1 %v16430_v6  ;;  %v16509_v53 = vld [vmem:[#allocation3 + $0x1fa0] ss:$16 sps:$4 sm:$0xff]   ;;  %v16512_v6 = vld [vmem:[#allocation3 + $0x1fa8] ss:$16 sps:$4 sm:$0xff]  }
 0x4c9   : > { %7532 = vmatpush1.bf16.msra.mxu0 %v16425_v55  ;;  %8188 = vmatpush1.bf16.msra.mxu1 %v16428_v32  ;;  %v16517_v55 = vld [vmem:[#allocation3 + $0x1fc4] ss:$16 sps:$4 sm:$0xff]   ;;  %v16520_v32 = vld [vmem:[#allocation3 + $0x1fcc] ss:$16 sps:$4 sm:$0xff]  }
 0x4ca   : > { %7542 = vmatprep.subr.bf16.mxu0 %v16433_v57  ;;  %8198 = vmatprep.subr.bf16.mxu1 %v16436_v58  ;;  %v16515_v57 = vld [vmem:[#allocation3 + $0x1fc0] ss:$16 sps:$4 sm:$0xff]   ;;  %v16518_v58 = vld [vmem:[#allocation3 + $0x1fc8] ss:$16 sps:$4 sm:$0xff]  }
 0x4cc   : > { %7534 = vmatmul.mubr.bf16.vlgmr.msra.gmra.mrb[0].mxu0 %v757_v60  ;;  %8190 = vmatmul.mubr.bf16.vlgmr.msra.gmra.mrb[0].mxu1 %v757_v60  ;;  %v16526_v60 = vld [vmem:[#allocation3 + $0x1fec] ss:$16 sps:$4 sm:$0xff]  }
 0x4cd   : > { %7543 = vmatpush1.bf16.msra.mxu0 %v16431_v44  ;;  %8199 = vmatpush1.bf16.msra.mxu1 %v16434_v38  ;;  %v8259_v44 = vld [vmem:[%s18566_s29 + $0x80] sm:$0xff]  ;;  %v8260_v38 = vld [vmem:[%s18566_s29 + $0x88] sm:$0xff] }
 0x4ce   : > { %7544 = vmatprep.subr.bf16.mxu0 %v16439_v61  ;;  %8200 = vmatprep.subr.bf16.mxu1 %v16442_v62  ;;  %v8291_v61 = vld [vmem:[%s18566_s29 + $0x180] sm:$0xff]  ;;  %v8292_v62 = vld [vmem:[%s18566_s29 + $0x188] sm:$0xff] }
 0x4cf   : > { %7574 = vmatprep.mubr.bf16.mxu0 %v760_v63  ;;  %8230 = vmatprep.mubr.bf16.mxu1 %v760_v63  ;;  %v16521_v63 = vld [vmem:[#allocation3 + $0x1fe0] ss:$16 sps:$4 sm:$0xff]  }
 0x4d1   : > { %7545 = vmatpush1.bf16.msra.mxu0 %v16437_v0  ;;  %8201 = vmatpush1.bf16.msra.mxu1 %v16440_v1  ;;  %v16524_v0 = vld [vmem:[#allocation3 + $0x1fe8] ss:$16 sps:$4 sm:$0xff]   ;;  %v8243_v1 = vld [vmem:[%s18566_s29] sm:$0xff] }
 0x4d2   : > { %7546 = vmatprep.subr.bf16.mxu0 %v16445_v2  ;;  %8202 = vmatprep.subr.bf16.mxu1 %v16448_v3  ;;  %v8244_v2 = vld [vmem:[%s18566_s29 + $0x8] sm:$0xff]  ;;  %v14611_v3 = vpack.c.bf16 %v8260_v38, %v8259_v44  ;;  %v8270_v44 = vld [vmem:[%s18566_s29 + $0xd8] sm:$0xff]  ;;  %v8301_v38 = vld [vmem:[%s18566_s29 + $0x1d0] sm:$0xff] }
 0x4d5   : > { %7547 = vmatpush1.bf16.msra.mxu0 %v16443_v21  ;;  %8203 = vmatpush1.bf16.msra.mxu1 %v16446_v4  ;;  %v14643_v21 = vpack.c.bf16 %v8292_v62, %v8291_v61  ;;  %v8275_v4 = vld [vmem:[%s18566_s29 + $0x100] sm:$0xff]  ;;  %v8302_v61 = vld [vmem:[%s18566_s29 + $0x1d8] sm:$0xff] }
 0x4d6   : > { %7548 = vmatprep.subr.bf16.mxu0 %v16451_v5  ;;  %8204 = vmatprep.subr.bf16.mxu1 %v16454_v25  ;;  %v8276_v5 = vld [vmem:[%s18566_s29 + $0x108] sm:$0xff]  ;;  %v8261_v25 = vld [vmem:[%s18566_s29 + $0x90] sm:$0xff] }
 0x4d9   : > { %7549 = vmatpush1.bf16.msra.mxu0 %v16449_v7  ;;  %8205 = vmatpush1.bf16.msra.mxu1 %v16452_v8  ;;  %v8262_v7 = vld [vmem:[%s18566_s29 + $0x98] sm:$0xff]  ;;  %v8293_v8 = vld [vmem:[%s18566_s29 + $0x190] sm:$0xff] }
 0x4da   : > { %7550 = vmatprep.subr.bf16.mxu0 %v16457_v11  ;;  %8206 = vmatprep.subr.bf16.mxu1 %v16460_v59  ;;  %v8294_v11 = vld [vmem:[%s18566_s29 + $0x198] sm:$0xff]  ;;  %v759_v59 = vpack.c.bf16 %v17536_v54, %v17536_v54  ;;  %v8277_v54 = vld [vmem:[%s18566_s29 + $0x110] sm:$0xff] }
 0x4dd   : > { %7551 = vmatpush1.bf16.msra.mxu0 %v16455_v12  ;;  %8207 = vmatpush1.bf16.msra.mxu1 %v16458_v13  ;;  %v14613_v12 = vpack.c.bf16 %v8244_v2, %v8243_v1  ;;  %v14645_v13 = vpack.c.bf16 %v8276_v5, %v8275_v4  ;;  %v8254_v1 = vld [vmem:[%s18566_s29 + $0x58] sm:$0xff]  ;;  %v8271_v5 = vld [vmem:[%s18566_s29 + $0xe0] sm:$0xff] }
 0x4de   : > { %7552 = vmatprep.subr.bf16.mxu0 %v16463_v14  ;;  %8208 = vmatprep.subr.bf16.mxu1 %v16466_v15  ;;  %v8245_v14 = vld [vmem:[%s18566_s29 + $0x10] sm:$0xff]  ;;  %v8246_v15 = vld [vmem:[%s18566_s29 + $0x18] sm:$0xff] }
 0x4df   : > { %v8286_v4 = vld [vmem:[%s18566_s29 + $0x158] sm:$0xff] }
 0x4e1   : > { %7553 = vmatpush1.bf16.msra.mxu0 %v16461_v16  ;;  %8209 = vmatpush1.bf16.msra.mxu1 %v16464_v17  ;;  %v14615_v16 = vpack.c.bf16 %v8262_v7, %v8261_v25  ;;  %v14647_v17 = vpack.c.bf16 %v8294_v11, %v8293_v8  ;;  %v8272_v25 = vld [vmem:[%s18566_s29 + $0xe8] sm:$0xff]  ;;  %v8303_v7 = vld [vmem:[%s18566_s29 + $0x1e0] sm:$0xff] }
 0x4e2   : > { %7554 = vmatprep.subr.bf16.mxu0 %v16469_v18  ;;  %8210 = vmatprep.subr.bf16.mxu1 %v16472_v19  ;;  %v8278_v18 = vld [vmem:[%s18566_s29 + $0x118] sm:$0xff]  ;;  %v8263_v19 = vld [vmem:[%s18566_s29 + $0xa0] sm:$0xff]  ;;  %v8304_v8 = vld [vmem:[%s18566_s29 + $0x1e8] sm:$0xff] }
 0x4e5   : > { %7555 = vmatpush1.bf16.msra.mxu0 %v16467_v20  ;;  %8211 = vmatpush1.bf16.msra.mxu1 %v16470_v40  ;;  %v8264_v20 = vld [vmem:[%s18566_s29 + $0xa8] sm:$0xff]  ;;  %v8295_v40 = vld [vmem:[%s18566_s29 + $0x1a0] sm:$0xff] }
 0x4e6   : > { %7556 = vmatprep.subr.bf16.mxu0 %v16475_v22  ;;  %8212 = vmatprep.subr.bf16.mxu1 %v16478_v24  ;;  %v8296_v22 = vld [vmem:[%s18566_s29 + $0x1a8] sm:$0xff]  ;;  %v14617_v24 = vpack.c.bf16 %v8246_v15, %v8245_v14  ;;  %v8255_v14 = vld [vmem:[%s18566_s29 + $0x60] sm:$0xff] }
 0x4e7   : > { %v8256_v15 = vld [vmem:[%s18566_s29 + $0x68] sm:$0xff] }
 0x4e9   : > { %7557 = vmatpush1.bf16.msra.mxu0 %v16473_v27  ;;  %8213 = vmatpush1.bf16.msra.mxu1 %v16476_v10  ;;  %v14649_v27 = vpack.c.bf16 %v8278_v18, %v8277_v54  ;;  %v8247_v10 = vld [vmem:[%s18566_s29 + $0x20] sm:$0xff]  ;;  %v8288_v54 = vld [vmem:[%s18566_s29 + $0x168] sm:$0xff] }
 0x4ea   : > { %7558 = vmatprep.subr.bf16.mxu0 %v16481_v28  ;;  %8214 = vmatprep.subr.bf16.mxu1 %v16484_v23  ;;  %v8248_v28 = vld [vmem:[%s18566_s29 + $0x28] sm:$0xff]  ;;  %v14619_v23 = vpack.c.bf16 %v8264_v20, %v8263_v19  ;;  %v8273_v19 = vld [vmem:[%s18566_s29 + $0xf0] sm:$0xff]  ;;  %v8274_v20 = vld [vmem:[%s18566_s29 + $0xf8] sm:$0xff] }
 0x4ed   : > { %7559 = vmatpush1.bf16.msra.mxu0 %v16479_v30  ;;  %8215 = vmatpush1.bf16.msra.mxu1 %v16482_v31  ;;  %v14651_v30 = vpack.c.bf16 %v8296_v22, %v8295_v40  ;;  %v8279_v31 = vld [vmem:[%s18566_s29 + $0x120] sm:$0xff]  ;;  %v8305_v40 = vld [vmem:[%s18566_s29 + $0x1f0] sm:$0xff]  ;;  %v14639_v22 = vpack.c.bf16 %v8274_v20, %v8273_v19 }
 0x4ee   : > { %7560 = vmatprep.subr.bf16.mxu0 %v16487_v33  ;;  %8216 = vmatprep.subr.bf16.mxu1 %v16490_v34  ;;  %v8280_v33 = vld [vmem:[%s18566_s29 + $0x128] sm:$0xff]  ;;  %v8265_v34 = vld [vmem:[%s18566_s29 + $0xb0] sm:$0xff] }
 0x4f1   : > { %7561 = vmatpush1.bf16.msra.mxu0 %v16485_v35  ;;  %8217 = vmatpush1.bf16.msra.mxu1 %v16488_v36  ;;  %v8266_v35 = vld [vmem:[%s18566_s29 + $0xb8] sm:$0xff]  ;;  %v8297_v36 = vld [vmem:[%s18566_s29 + $0x1b0] sm:$0xff] }
 0x4f2   : > { %7562 = vmatprep.subr.bf16.mxu0 %v16493_v37  ;;  %8218 = vmatprep.subr.bf16.mxu1 %v16496_v56  ;;  %v8298_v37 = vld [vmem:[%s18566_s29 + $0x1b8] sm:$0xff]  ;;  %v14621_v56 = vpack.c.bf16 %v8248_v28, %v8247_v10 }
 0x4f3   : > { %v8258_v10 = vld [vmem:[%s18566_s29 + $0x78] sm:$0xff] }
 0x4f5   : > { %7563 = vmatpush1.bf16.msra.mxu0 %v16491_v39  ;;  %8219 = vmatpush1.bf16.msra.mxu1 %v16494_v26  ;;  %v14653_v39 = vpack.c.bf16 %v8280_v33, %v8279_v31  ;;  %v8249_v26 = vld [vmem:[%s18566_s29 + $0x30] sm:$0xff]  ;;  %v8290_v31 = vld [vmem:[%s18566_s29 + $0x178] sm:$0xff] }
 0x4f6   : > { %7564 = vmatprep.subr.bf16.mxu0 %v16499_v42  ;;  %8220 = vmatprep.subr.bf16.mxu1 %v16502_v9  ;;  %v8250_v42 = vld [vmem:[%s18566_s29 + $0x38] sm:$0xff]  ;;  %v14623_v9 = vpack.c.bf16 %v8266_v35, %v8265_v34  ;;  %v1789_v34 = vsub.s32 0, %v17374_v43  ;;  %v1797_v35 = vsub.s32 2, %v17374_v43 }
 0x4f9   : > { %7565 = vmatpush1.bf16.msra.mxu0 %v16497_v45  ;;  %8221 = vmatpush1.bf16.msra.mxu1 %v16500_v29  ;;  %v14655_v45 = vpack.c.bf16 %v8298_v37, %v8297_v36  ;;  %v8281_v29 = vld [vmem:[%s18566_s29 + $0x130] sm:$0xff]  ;;  %v1785_v36 = vld [vmem:[#allocation6] sm:$0xf]  ;;  %v1793_v37 = vsub.s32 1, %v17374_v43 }
 0x4fa   : > { %7566 = vmatprep.subr.bf16.mxu0 %v16505_v46  ;;  %8222 = vmatprep.subr.bf16.mxu1 %v16508_v47  ;;  %v8282_v46 = vld [vmem:[%s18566_s29 + $0x138] sm:$0xff]  ;;  %v8267_v47 = vld [vmem:[%s18566_s29 + $0xc0] sm:$0xff] }
 0x4fd   : > { %7567 = vmatpush1.bf16.msra.mxu0 %v16503_v48  ;;  %8223 = vmatpush1.bf16.msra.mxu1 %v16506_v50  ;;  %v8268_v48 = vld [vmem:[%s18566_s29 + $0xc8] sm:$0xff]  ;;  %v8299_v50 = vld [vmem:[%s18566_s29 + $0x1c0] sm:$0xff] }
 0x4fe   : > { %7568 = vmatprep.subr.bf16.mxu0 %v16511_v51  ;;  %8224 = vmatprep.subr.bf16.mxu1 %v16514_v52  ;;  %v8300_v51 = vld [vmem:[%s18566_s29 + $0x1c8] sm:$0xff]  ;;  %v14625_v52 = vpack.c.bf16 %v8250_v42, %v8249_v26  ;;  %v1798_v26 = vrot.slane %v1785_v36, %v1797_v35  ;;  %v1794_v42 = vrot.slane %v1785_v36, %v1793_v37 }
 0x501   : > { %7569 = vmatpush1.bf16.msra.mxu0 %v16509_v53  ;;  %8225 = vmatpush1.bf16.msra.mxu1 %v16512_v6  ;;  %v14657_v53 = vpack.c.bf16 %v8282_v46, %v8281_v29  ;;  %v8251_v6 = vld [vmem:[%s18566_s29 + $0x40] sm:$0xff] }
 0x502   : > { %7570 = vmatprep.subr.bf16.mxu0 %v16517_v55  ;;  %8226 = vmatprep.subr.bf16.mxu1 %v16520_v32  ;;  %v8252_v55 = vld [vmem:[%s18566_s29 + $0x48] sm:$0xff]  ;;  %v14627_v32 = vpack.c.bf16 %v8268_v48, %v8267_v47 }
 0x503   : > { %v14629_v62 = vpack.c.bf16 %v8252_v55, %v8251_v6 }
 0x505   : > { %7571 = vmatpush1.bf16.msra.mxu0 %v16515_v57  ;;  %8227 = vmatpush1.bf16.msra.mxu1 %v16518_v58  ;;  %v14659_v57 = vpack.c.bf16 %v8300_v51, %v8299_v50  ;;  %v8283_v58 = vld [vmem:[%s18566_s29 + $0x140] sm:$0xff] }
 0x506   : > { %7572 = vmatprep.subr.bf16.mxu0 %v16523_v41  ;;  %8228 = vmatprep.subr.bf16.mxu1 %v16526_v60  ;;  %v8284_v41 = vld [vmem:[%s18566_s29 + $0x148] sm:$0xff]  ;;  %v8269_v60 = vld [vmem:[%s18566_s29 + $0xd0] sm:$0xff] }
 0x507   : > { %v14631_v2 = vpack.c.bf16 %v8270_v44, %v8269_v60  ;;  %v8464_v44 = vld [vmem:[#allocation9] sm:$0xff] }
 0x509   : > { %7573 = vmatpush1.bf16.msra.mxu0 %v16521_v63  ;;  %8229 = vmatpush1.bf16.msra.mxu1 %v16524_v0  ;;  %v14661_v63 = vpack.c.bf16 %v8284_v41, %v8283_v58  ;;  %v8253_v0 = vld [vmem:[%s18566_s29 + $0x50] sm:$0xff] }
 0x50a   : > { %14612 = vmatprep.subr.bf16.mxu0 %v14611_v3  ;;  %14644 = vmatprep.subr.bf16.mxu1 %v14643_v21  ;;  %v14663_v3 = vpack.c.bf16 %v8302_v61, %v8301_v38  ;;  %v8285_v21 = vld [vmem:[%s18566_s29 + $0x150] sm:$0xff]  ;;  %v14633_v11 = vpack.c.bf16 %v8254_v1, %v8253_v0  ;;  %v8495_v38 = vrot.slane %v8464_v44, %v17377_v49 }
 0x50b   : > { %v8488_v61 = vcombine.high %v8464_v44, %v8464_v44 }
 0x50c   : > { %7575 = vmatmul.mubr.bf16.vlgmr.msra.gmra.mrb[0].mxu0 %v759_v59  ;;  %8231 = vmatmul.mubr.bf16.vlgmr.msra.gmra.mrb[0].mxu1 %v759_v59  ;;  %v14665_v59 = vpack.c.bf16 %v8286_v4, %v8285_v21 }
 0x50d   : > { %14614 = vmatpush3.bf16.msra.mxu0 %v14613_v12  ;;  %14646 = vmatpush3.bf16.msra.mxu1 %v14645_v13  ;;  %v14635_v12 = vpack.c.bf16 %v8272_v25, %v8271_v5  ;;  %v14667_v13 = vpack.c.bf16 %v8304_v8, %v8303_v7 }
 0x50e   : > { %14616 = vmatprep.subr.bf16.mxu0 %v14615_v16  ;;  %14648 = vmatprep.subr.bf16.mxu1 %v14647_v17  ;;  %v8287_v16 = vld [vmem:[%s18566_s29 + $0x160] sm:$0xff]  ;;  %v14637_v17 = vpack.c.bf16 %v8256_v15, %v8255_v14 }
 0x50f   : > { %v14669_v18 = vpack.c.bf16 %v8288_v54, %v8287_v16  ;;  %v8465_v54 = vld [vmem:[#allocation11] sm:$0xf] }
 0x510   : > { %v8470_v20 = vrot.slane %v8465_v54, %v1789_v34 }
 0x511   : > { %14618 = vmatpush3.bf16.msra.mxu0 %v14617_v24  ;;  %14650 = vmatpush3.bf16.msra.mxu1 %v14649_v27  ;;  %v8306_v24 = vld [vmem:[%s18566_s29 + $0x1f8] sm:$0xff]  ;;  %v8257_v27 = vld [vmem:[%s18566_s29 + $0x70] sm:$0xff] }
 0x512   : > { %14620 = vmatprep.subr.bf16.mxu0 %v14619_v23  ;;  %14652 = vmatprep.subr.bf16.mxu1 %v14651_v30  ;;  %v14671_v28 = vpack.c.bf16 %v8306_v24, %v8305_v40  ;;  %v14641_v23 = vpack.c.bf16 %v8258_v10, %v8257_v27  ;;  %v8289_v30 = vld [vmem:[%s18566_s29 + $0x170] sm:$0xff]  ;;  %v8478_v40 = vrot.slane %v8465_v54, %v1797_v35 }
 0x513   : > { %v14673_v33 = vpack.c.bf16 %v8290_v31, %v8289_v30 }
 0x515   : > { %14622 = vmatpush3.bf16.msra.mxu0 %v14621_v56  ;;  %14654 = vmatpush3.bf16.msra.mxu1 %v14653_v39  ;;  %v1801_v56 = vsub.s32 3, %v17374_v43  ;;  %v1790_v39 = vrot.slane %v1785_v36, %v1789_v34 }
 0x516   : > { %14624 = vmatprep.subr.bf16.mxu0 %v14623_v9  ;;  %14656 = vmatprep.subr.bf16.mxu1 %v14655_v45 }
 0x517   : > { %v1802_v9 = vrot.slane %v1785_v36, %v1801_v56  ;;  %v8482_v24 = vrot.slane %v8465_v54, %v1801_v56 }
 0x519   : > { %14626 = vmatpush3.bf16.msra.mxu0 %v14625_v52  ;;  %14658 = vmatpush3.bf16.msra.mxu1 %v14657_v53 }
 0x51a   : > { %14628 = vmatprep.subr.bf16.mxu0 %v14627_v32  ;;  %14660 = vmatprep.subr.bf16.mxu1 %v14659_v57 }
 0x51d   : > { %14630 = vmatpush3.bf16.msra.mxu0 %v14629_v62  ;;  %14662 = vmatpush3.bf16.msra.mxu1 %v14661_v63  ;;  %v8503_v62 = vcombine.high %v8495_v38, %v8495_v38  ;;  %v8502_v63 = vrot.slane %v8488_v61, %v17377_v49  ;;  %v16977_v49 = vmov 0.0  }
 0x51e   : > { %14632 = vmatprep.subr.bf16.mxu0 %v14631_v2  ;;  %14664 = vmatprep.subr.bf16.mxu1 %v14663_v3  ;;  %v13990_v3 = vld [vmem:[#allocation8] ss:$0 sm:$0xff] }
 0x51f   : > { %v8504_v0 = vcombine.high %v8502_v63, %v8502_v63 }
 0x521   : > { %14634 = vmatpush3.bf16.msra.mxu0 %v14633_v11  ;;  %14666 = vmatpush3.bf16.msra.mxu1 %v14665_v59 }
 0x522   : > { %14636 = vmatprep.subr.bf16.mxu0 %v14635_v12  ;;  %14668 = vmatprep.subr.bf16.mxu1 %v14667_v13  ;;  %v8454_v13 = vld [vmem:[#allocation12] sm:$0x3] }
 0x525   : > { %14638 = vmatpush3.bf16.msra.mxu0 %v14637_v17  ;;  %14670 = vmatpush3.bf16.msra.mxu1 %v14669_v18  ;;  %v16979_v18 = vmov 1966171168  }
 0x526   : > { %14640 = vmatprep.subr.bf16.mxu0 %v14639_v22  ;;  %14672 = vmatprep.subr.bf16.mxu1 %v14671_v28  ;;  %v8675_v19 = vunpack.c.l.s4 %v16979_v18  ;;  %v8474_v22 = vrot.slane %v8465_v54, %v1793_v37 }
 0x528   : > { %v8676_v28 = vunpack.c.0.s8 %v8675_v19 }
 0x529   : > { %14642 = vmatpush3.bf16.msra.mxu0 %v14641_v23  ;;  %14674 = vmatpush3.bf16.msra.mxu1 %v14673_v33 }
 0x52a   : > { %13991 = vmatprep.subr.msk.mxu0 %vm8509_vm0, %v8503_v62  ;;  %13994 = vmatprep.subr.msk.mxu1 %vm8509_vm0, %v8504_v0  ;;  %v8679_v35 = vsub.s32 %v8676_v28, %v17374_v43 }
 0x5df   : > { %v7576_v45 = vpop.f32.mrb[0].mxu0  ;;  %v8232_v29 = vpop.f32.mrb[0].mxu1 }
 0x5e0   : > { %v14675_v46 = vadd.f32 %v7576_v45, %v1790_v39  ;;  %v14677_v47 = vadd.f32 %v8232_v29, %v1798_v26  ;;  %v7578_v48 = vpop.f32.mrb[1].mxu0  ;;  %v8234_v50 = vpop.f32.mrb[1].mxu1 }
 0x5e1   : > { %v14676_v51 = vadd.f32 %v7578_v48, %v1794_v42  ;;  %v14678_v52 = vadd.f32 %v8234_v50, %v1802_v9  ;;  %v7580_v53 = vpop.f32.mrb[2].mxu0  ;;  %v8236_v6 = vpop.f32.mrb[2].mxu1 }
 0x5e2   : > { %v7581_v55 = vpop.f32.mrb[3].mxu0  ;;  %v8237_v32 = vpop.f32.mrb[3].mxu1  ;;  %v8239_v41 = vmax.f32 %v14675_v46, 0.0  ;;  %v8241_v60 = vmax.f32 %v14677_v47, 0.0 }
 0x5e3   : > { %v8240_v57 = vmax.f32 %v14676_v51, 0.0  ;;  %v8242_v58 = vmax.f32 %v14678_v52, 0.0 }
 0x5e5   : > { %8378 = vmatprep.mubr.f32.mxu0 %v8240_v57  ;;  %8448 = vmatprep.mubr.f32.mxu1 %v8242_v58 }
 0x5e6   : > { %8379 = vmatmul.mubr.f32.vlgmr.msra.gmra.mrb[4].mxu0 %v8239_v41  ;;  %8449 = vmatmul.mubr.f32.vlgmr.msra.gmra.mrb[4].mxu1 %v8241_v60 }
 0x5e7   : > { %13992 = vmatpush1.msk.msra.mxu0 %vm8509_vm0, %v8495_v38  ;;  %13995 = vmatpush1.msk.msra.mxu1 %vm8509_vm0, %v8502_v63 }
 0x5e8   : > { %8582 = vmatprep.mubr.f32.mxu0 %v16977_v49  ;;  %8653 = vmatprep.mubr.f32.mxu1 %v16977_v49 }
 0x6b9   : > { %v14573_v1 = vpop.f32.mrb[4].mxu0  ;;  %v14608_v2 = vpop.f32.mrb[4].mxu1 }
 0x6ba   : > { %v14574_v21 = vpop.f32.mrb[5].mxu0  ;;  %v14609_v4 = vpop.f32.mrb[5].mxu1 }
 0x6bb   : > { %v14575_v5 = vadd.f32 %v14574_v21, %v14573_v1  ;;  %v14610_v25 = vadd.f32 %v14609_v4, %v14608_v2 }
 0x6bd   : > { %v8381_v7 = vadd.f32 %v14575_v5, %v13990_v3 }
 0x6bf   : > { %v8451_v8 = vadd.f32 %v14610_v25, %v8381_v7 }
 0x6c1   : > { %v8455_v11 = vmul.f32 0.5, %v8451_v8  ;;  %8699 = vst.msk [vmem:[#allocation17] sm:$0x3] %vm8698_vm1, %v8451_v8 }
 0x6c3   : > { %v8456_v59 = vmul.f32 1.442695, %v8455_v11 }
 0x6c5   : > { %16529 = vpow2.f32 %v8456_v59 }
 0x6cf   : > { %v16530_v12 = vpop.eup %16529 }
 0x6d0   : > { %8459 = vrot.lane.b32.xlu0 %v16530_v12, %s16978_s3 }
 0x6d4   : > { %8701 = vrot.lane.b32.xlu0 %v8451_v8, %s16978_s3 }
 0x742   : > { %v8460_v14 = vpop.permute.xlu0 %8459 }
 0x743   : > { %v8462_v15 = vmul.f32 %v8460_v14, %v8454_v13 }
 0x745   : > { %v8463_v16 = vadd.f32 %v8462_v15, %v8451_v8 }
 0x746   : > { %v8702_v17 = vpop.permute.xlu0 %8701 }
 0x747   : > { %8704 = vst.msk [vmem:[#allocation19] sm:$0x3] %vm8698_vm1, %v8702_v17  ;;  %13993 = vmatmul.mubr.msk.f32.vlgmr.msra.gmra.mrb[6].mxu0 %vm8505_vm2, %v8463_v16  ;;  %13996 = vmatmul.mubr.msk.f32.vlgmr.msra.gmra.mrb[6].mxu1 %vm8505_vm2, %v8463_v16 }
 0x81a   : > { %v8584_v27 = vpop.f32.mrb[6].mxu0  ;;  %v8655_v10 = vpop.f32.mrb[6].mxu1 }
 0x81b   : > { %v8585_v23 = vadd.f32 %v8584_v27, %v8470_v20  ;;  %v8656_v30 = vadd.f32 %v8655_v10, %v8478_v40  ;;  %v8586_v31 = vpop.f32.mrb[7].mxu0  ;;  %v8657_v33 = vpop.f32.mrb[7].mxu1 }
 0x81c   : > { %v8587_v36 = vadd.f32 %v8586_v31, %v8474_v22  ;;  %v8658_v39 = vadd.f32 %v8657_v33, %v8482_v24 }
 0x81d   : > { %v8660_v26 = vmax.f32 %v8585_v23, 0.0  ;;  %v8662_v34 = vmax.f32 %v8656_v30, 0.0 }
 0x81e   : > { %v8661_v42 = vmax.f32 %v8587_v36, 0.0  ;;  %v8663_v9 = vmax.f32 %v8658_v39, 0.0 }
 0x820   : > { %v13997_v45 = vpack.c.bf16 %v8661_v42, %v8660_v26  ;;  %v13998_v37 = vpack.c.bf16 %v8663_v9, %v8662_v34 }
 0x822   : > { %v8680_v29 = vrot.slane %v13997_v45, %v8679_v35  ;;  %v8687_v46 = vrot.slane %v13998_v37, %v8679_v35 }
 0x824   : > { %v8688_v56 = vcombine.low %v8680_v29, %v8687_v46 }
 0x826   : > { %13999 = vst.sshfl [vmem:[#allocation2] sm:$0x55 pattern:$0x73625140] %v8688_v56 }
 0x827 PF: > { %v8706_v47 = vld [vmem:[%s17360_s1] sm:$0xff]  ;;  %v8707_v48 = vld [vmem:[%s17360_s1 + $0x8] sm:$0xff]  ;;  %v9222_v15 = vlaneseq  ;;  %v16980_v16 = vmov 1966171168   ;;  %p18567_p4 = scmp.eq.s32.totalorder %s17071_s27, 1 }
 0x828   : > { %v8714_v43 = vld [vmem:[%s17360_s1 + $0x40] sm:$0xff]  ;;  %v8715_v51 = vld [vmem:[%s17360_s1 + $0x48] sm:$0xff]  ;;  %v9312_v17 = vunpack.c.l.s4 %v16980_v16 }
 0x829   : > { %v14002_v50 = vcombine.high %v8706_v47, %v8714_v43  ;;  %v14001_v52 = vcombine.low %v8706_v47, %v8714_v43  ;;  %v8722_v53 = vld [vmem:[%s17360_s1 + $0x80] sm:$0xff]  ;;  %v14004_v55 = vcombine.high %v8707_v48, %v8715_v51  ;;  %v14003_v32 = vcombine.low %v8707_v48, %v8715_v51  ;;  %v8723_v58 = vld [vmem:[%s17360_s1 + $0x88] sm:$0xff] }
 0x82a   : > { %v8730_v6 = vld [vmem:[%s17360_s1 + $0xc0] sm:$0xff]  ;;  %v8731_v41 = vld [vmem:[%s17360_s1 + $0xc8] sm:$0xff]  ;;  %v17785_v10 = vshrl.u32 %v9222_v15, 7  ;;  %v9313_v28 = vunpack.c.0.s8 %v9312_v17 }
 0x82b   : > { %v14018_v57 = vcombine.high %v8722_v53, %v8730_v6  ;;  %v8738_v60 = vld [vmem:[%s17360_s1 + $0x100] sm:$0xff]  ;;  %11891 = vmatprep.subr.bf16.mxu0 %v14002_v50  ;;  %v14020_v44 = vcombine.high %v8723_v58, %v8731_v41  ;;  %v8739_v61 = vld [vmem:[%s17360_s1 + $0x108] sm:$0xff]  ;;  %11973 = vmatprep.subr.bf16.mxu1 %v14004_v55  ;;  %v14017_v63 = vcombine.low %v8722_v53, %v8730_v6 }
 0x82c   : > { %v8746_v38 = vld [vmem:[%s17360_s1 + $0x140] sm:$0xff]  ;;  %v8747_v62 = vld [vmem:[%s17360_s1 + $0x148] sm:$0xff]  ;;  %11892 = vmatpush1.bf16.msra.mxu0 %v14001_v52  ;;  %11974 = vmatpush1.bf16.msra.mxu1 %v14003_v32  ;;  %v14019_v0 = vcombine.low %v8723_v58, %v8731_v41  ;;  %v17792_v42 = vsub.s32 %v9313_v28, %v17785_v10 }
 0x82d   : > { %11893 = vmatprep.subr.bf16.mxu0 %v14018_v57  ;;  %v14034_v1 = vcombine.high %v8738_v60, %v8746_v38  ;;  %11975 = vmatprep.subr.bf16.mxu1 %v14020_v44  ;;  %v14036_v2 = vcombine.high %v8739_v61, %v8747_v62  ;;  %v8754_v3 = vld [vmem:[%s17360_s1 + $0x180] sm:$0xff]  ;;  %v8755_v4 = vld [vmem:[%s17360_s1 + $0x188] sm:$0xff]  ;;  %v14033_v25 = vcombine.low %v8738_v60, %v8746_v38 }
 0x82e   : > { %v8762_v21 = vld [vmem:[%s17360_s1 + $0x1c0] sm:$0xff]  ;;  %v8763_v5 = vld [vmem:[%s17360_s1 + $0x1c8] sm:$0xff]  ;;  %v14035_v7 = vcombine.low %v8739_v61, %v8747_v62 }
 0x82f   : > { %v14050_v8 = vcombine.high %v8754_v3, %v8762_v21  ;;  %v14052_v11 = vcombine.high %v8755_v4, %v8763_v5  ;;  %v8770_v59 = vld [vmem:[%s17360_s1 + $0x200] sm:$0xff]  ;;  %v8771_v12 = vld [vmem:[%s17360_s1 + $0x208] sm:$0xff]  ;;  %v14049_v14 = vcombine.low %v8754_v3, %v8762_v21  ;;  %v14051_v54 = vcombine.low %v8755_v4, %v8763_v5 }
 0x830   : > { %11894 = vmatpush1.bf16.msra.mxu0 %v14017_v63  ;;  %11976 = vmatpush1.bf16.msra.mxu1 %v14019_v0  ;;  %v8778_v49 = vld [vmem:[%s17360_s1 + $0x240] sm:$0xff]  ;;  %v8779_v13 = vld [vmem:[%s17360_s1 + $0x248] sm:$0xff] }
 0x831   : > { %11895 = vmatprep.subr.bf16.mxu0 %v14034_v1  ;;  %11977 = vmatprep.subr.bf16.mxu1 %v14036_v2  ;;  %v14066_v18 = vcombine.high %v8770_v59, %v8778_v49  ;;  %v14068_v19 = vcombine.high %v8771_v12, %v8779_v13  ;;  %v8786_v20 = vld [vmem:[%s17360_s1 + $0x280] sm:$0xff]  ;;  %v8787_v22 = vld [vmem:[%s17360_s1 + $0x288] sm:$0xff]  ;;  %v14065_v27 = vcombine.low %v8770_v59, %v8778_v49 }
 0x832   : > { %v8794_v40 = vld [vmem:[%s17360_s1 + $0x2c0] sm:$0xff]  ;;  %v8795_v24 = vld [vmem:[%s17360_s1 + $0x2c8] sm:$0xff]  ;;  %v14067_v23 = vcombine.low %v8771_v12, %v8779_v13 }
 0x833   : > { %v14082_v30 = vcombine.high %v8786_v20, %v8794_v40  ;;  %v14084_v31 = vcombine.high %v8787_v22, %v8795_v24  ;;  %v8802_v33 = vld [vmem:[%s17360_s1 + $0x300] sm:$0xff]  ;;  %v8803_v39 = vld [vmem:[%s17360_s1 + $0x308] sm:$0xff]  ;;  %v14081_v34 = vcombine.low %v8786_v20, %v8794_v40  ;;  %v14083_v35 = vcombine.low %v8787_v22, %v8795_v24 }
 0x834   : > { %11896 = vmatpush1.bf16.msra.mxu0 %v14033_v25  ;;  %11978 = vmatpush1.bf16.msra.mxu1 %v14035_v7  ;;  %v8810_v36 = vld [vmem:[%s17360_s1 + $0x340] sm:$0xff]  ;;  %v8811_v26 = vld [vmem:[%s17360_s1 + $0x348] sm:$0xff] }
 0x835   : > { %11897 = vmatprep.subr.bf16.mxu0 %v14050_v8  ;;  %11979 = vmatprep.subr.bf16.mxu1 %v14052_v11  ;;  %v14098_v9 = vcombine.high %v8802_v33, %v8810_v36  ;;  %v17794_v45 = vld.sshfl [vmem:[#allocation2] sm:$0x33 pattern:$0x75316420]  ;;  %v14100_v37 = vcombine.high %v8803_v39, %v8811_v26  ;;  %v8818_v29 = vld [vmem:[%s17360_s1 + $0x380] sm:$0xff]  ;;  %v14097_v48 = vcombine.low %v8802_v33, %v8810_v36 }
 0x836   : > { %v8826_v46 = vld [vmem:[%s17360_s1 + $0x3c0] sm:$0xff]  ;;  %v9310_v56 = vcombine.high %v17794_v45, %v17794_v45  ;;  %v8819_v47 = vld [vmem:[%s17360_s1 + $0x388] sm:$0xff]  ;;  %v14099_v51 = vcombine.low %v8803_v39, %v8811_v26 }
 0x837   : > { %v8827_v43 = vld [vmem:[%s17360_s1 + $0x3c8] sm:$0xff]  ;;  %v14114_v52 = vcombine.high %v8818_v29, %v8826_v46  ;;  %v8834_v6 = vld [vmem:[%s17360_s1 + $0x400] sm:$0xff]  ;;  %v14113_v58 = vcombine.low %v8818_v29, %v8826_v46 }
 0x838   : > { %11898 = vmatpush1.bf16.msra.mxu0 %v14049_v14  ;;  %11980 = vmatpush1.bf16.msra.mxu1 %v14051_v54  ;;  %v17803_v50 = vrot.slane %v9310_v56, %v17792_v42  ;;  %v14116_v53 = vcombine.high %v8819_v47, %v8827_v43  ;;  %v8842_v55 = vld [vmem:[%s17360_s1 + $0x440] sm:$0xff]  ;;  %v8835_v32 = vld [vmem:[%s17360_s1 + $0x408] sm:$0xff]  ;;  %v14115_v41 = vcombine.low %v8819_v47, %v8827_v43 }
 0x839   : > { %11899 = vmatprep.subr.bf16.mxu0 %v14066_v18  ;;  %11981 = vmatprep.subr.bf16.mxu1 %v14068_v19  ;;  %v8843_v57 = vld [vmem:[%s17360_s1 + $0x448] sm:$0xff]  ;;  %v14130_v60 = vcombine.high %v8834_v6, %v8842_v55  ;;  %v8850_v38 = vld [vmem:[%s17360_s1 + $0x480] sm:$0xff]  ;;  %v14129_v0 = vcombine.low %v8834_v6, %v8842_v55 }
 0x83a   : > { %11923 = vmatprep.mubr.bf16.mxu0 %v17803_v50  ;;  %12005 = vmatprep.mubr.bf16.mxu1 %v17803_v50  ;;  %v14132_v44 = vcombine.high %v8835_v32, %v8843_v57  ;;  %v8858_v61 = vld [vmem:[%s17360_s1 + $0x4c0] sm:$0xff]  ;;  %v8851_v62 = vld [vmem:[%s17360_s1 + $0x488] sm:$0xff]  ;;  %v14131_v1 = vcombine.low %v8835_v32, %v8843_v57 }
 0x83b   : > { %v8859_v63 = vld [vmem:[%s17360_s1 + $0x4c8] sm:$0xff]  ;;  %v14146_v2 = vcombine.high %v8850_v38, %v8858_v61  ;;  %v8866_v21 = vld [vmem:[%s17360_s1 + $0x500] sm:$0xff]  ;;  %v14145_v7 = vcombine.low %v8850_v38, %v8858_v61 }
 0x83c   : > { %11900 = vmatpush1.bf16.msra.mxu0 %v14065_v27  ;;  %11982 = vmatpush1.bf16.msra.mxu1 %v14067_v23  ;;  %v14148_v3 = vcombine.high %v8851_v62, %v8859_v63  ;;  %v8874_v4 = vld [vmem:[%s17360_s1 + $0x540] sm:$0xff]  ;;  %v8867_v5 = vld [vmem:[%s17360_s1 + $0x508] sm:$0xff]  ;;  %v14147_v8 = vcombine.low %v8851_v62, %v8859_v63 }
 0x83d   : > { %11901 = vmatprep.subr.bf16.mxu0 %v14082_v30  ;;  %11983 = vmatprep.subr.bf16.mxu1 %v14084_v31  ;;  %v8875_v25 = vld [vmem:[%s17360_s1 + $0x548] sm:$0xff]  ;;  %v14162_v11 = vcombine.high %v8866_v21, %v8874_v4  ;;  %v8882_v49 = vld [vmem:[%s17360_s1 + $0x580] sm:$0xff]  ;;  %v14161_v15 = vcombine.low %v8866_v21, %v8874_v4 }
 0x83e   : > { %v14164_v59 = vcombine.high %v8867_v5, %v8875_v25  ;;  %v8890_v12 = vld [vmem:[%s17360_s1 + $0x5c0] sm:$0xff]  ;;  %v8883_v13 = vld [vmem:[%s17360_s1 + $0x588] sm:$0xff]  ;;  %v14163_v16 = vcombine.low %v8867_v5, %v8875_v25 }
 0x83f   : > { %v8891_v14 = vld [vmem:[%s17360_s1 + $0x5c8] sm:$0xff]  ;;  %v14178_v17 = vcombine.high %v8882_v49, %v8890_v12  ;;  %v8898_v18 = vld [vmem:[%s17360_s1 + $0x600] sm:$0xff]  ;;  %v14177_v22 = vcombine.low %v8882_v49, %v8890_v12 }
 0x840   : > { %11902 = vmatpush1.bf16.msra.mxu0 %v14081_v34  ;;  %11984 = vmatpush1.bf16.msra.mxu1 %v14083_v35  ;;  %v14180_v54 = vcombine.high %v8883_v13, %v8891_v14  ;;  %v8906_v19 = vld [vmem:[%s17360_s1 + $0x640] sm:$0xff]  ;;  %v8899_v20 = vld [vmem:[%s17360_s1 + $0x608] sm:$0xff]  ;;  %v14179_v24 = vcombine.low %v8883_v13, %v8891_v14 }
 0x841   : > { %11903 = vmatprep.subr.bf16.mxu0 %v14098_v9  ;;  %11985 = vmatprep.subr.bf16.mxu1 %v14100_v37  ;;  %v8907_v40 = vld [vmem:[%s17360_s1 + $0x648] sm:$0xff]  ;;  %v14194_v27 = vcombine.high %v8898_v18, %v8906_v19  ;;  %v8914_v23 = vld [vmem:[%s17360_s1 + $0x680] sm:$0xff]  ;;  %v14193_v36 = vcombine.low %v8898_v18, %v8906_v19 }
 0x842   : > { %v14196_v28 = vcombine.high %v8899_v20, %v8907_v40  ;;  %v8922_v30 = vld [vmem:[%s17360_s1 + $0x6c0] sm:$0xff]  ;;  %v8915_v31 = vld [vmem:[%s17360_s1 + $0x688] sm:$0xff]  ;;  %v14195_v39 = vcombine.low %v8899_v20, %v8907_v40 }
 0x843   : > { %v8923_v33 = vld [vmem:[%s17360_s1 + $0x6c8] sm:$0xff]  ;;  %v14210_v26 = vcombine.high %v8914_v23, %v8922_v30  ;;  %v8930_v35 = vld [vmem:[%s17360_s1 + $0x700] sm:$0xff]  ;;  %v14209_v46 = vcombine.low %v8914_v23, %v8922_v30 }
 0x844   : > { %11904 = vmatpush1.bf16.msra.mxu0 %v14097_v48  ;;  %11986 = vmatpush1.bf16.msra.mxu1 %v14099_v51  ;;  %v14212_v34 = vcombine.high %v8915_v31, %v8923_v33  ;;  %v8938_v9 = vld [vmem:[%s17360_s1 + $0x740] sm:$0xff]  ;;  %v8931_v37 = vld [vmem:[%s17360_s1 + $0x708] sm:$0xff]  ;;  %v14211_v56 = vcombine.low %v8915_v31, %v8923_v33 }
 0x845   : > { %11905 = vmatprep.subr.bf16.mxu0 %v14114_v52  ;;  %11987 = vmatprep.subr.bf16.mxu1 %v14116_v53  ;;  %v8939_v29 = vld [vmem:[%s17360_s1 + $0x748] sm:$0xff]  ;;  %v14226_v47 = vcombine.high %v8930_v35, %v8938_v9  ;;  %v8946_v48 = vld [vmem:[%s17360_s1 + $0x780] sm:$0xff]  ;;  %v14225_v6 = vcombine.low %v8930_v35, %v8938_v9 }
 0x846   : > { %v14228_v43 = vcombine.high %v8931_v37, %v8939_v29  ;;  %v8954_v51 = vld [vmem:[%s17360_s1 + $0x7c0] sm:$0xff]  ;;  %v8947_v52 = vld [vmem:[%s17360_s1 + $0x788] sm:$0xff]  ;;  %v14227_v55 = vcombine.low %v8931_v37, %v8939_v29 }
 0x847   : > { %v8955_v53 = vld [vmem:[%s17360_s1 + $0x7c8] sm:$0xff]  ;;  %v14242_v32 = vcombine.high %v8946_v48, %v8954_v51  ;;  %v14241_v38 = vcombine.low %v8946_v48, %v8954_v51 }
 0x848   : > { %11906 = vmatpush1.bf16.msra.mxu0 %v14113_v58  ;;  %11988 = vmatpush1.bf16.msra.mxu1 %v14115_v41  ;;  %v14244_v57 = vcombine.high %v8947_v52, %v8955_v53  ;;  %v8962_v58 = vld [vmem:[%s17360_s1 + $0x800] sm:$0xff]  ;;  %v14243_v61 = vcombine.low %v8947_v52, %v8955_v53  ;;  %v8987_v21 = vld [vmem:[%s17360_s1 + $0x8c8] sm:$0xff] }
 0x849   : > { %11907 = vmatprep.subr.bf16.mxu0 %v14130_v60  ;;  %11989 = vmatprep.subr.bf16.mxu1 %v14132_v44  ;;  %v8970_v41 = vld [vmem:[%s17360_s1 + $0x840] sm:$0xff]  ;;  %v8963_v60 = vld [vmem:[%s17360_s1 + $0x808] sm:$0xff] }
 0x84a   : > { %v8971_v44 = vld [vmem:[%s17360_s1 + $0x848] sm:$0xff]  ;;  %v14258_v62 = vcombine.high %v8962_v58, %v8970_v41  ;;  %v14257_v4 = vcombine.low %v8962_v58, %v8970_v41 }
 0x84b   : > { %v14260_v63 = vcombine.high %v8963_v60, %v8971_v44  ;;  %v14259_v5 = vcombine.low %v8963_v60, %v8971_v44 }
 0x84c   : > { %11908 = vmatpush1.bf16.msra.mxu0 %v14129_v0  ;;  %11990 = vmatpush1.bf16.msra.mxu1 %v14131_v1  ;;  %v8978_v0 = vld [vmem:[%s17360_s1 + $0x880] sm:$0xff] }
 0x84d   : > { %11909 = vmatprep.subr.bf16.mxu0 %v14146_v2  ;;  %11991 = vmatprep.subr.bf16.mxu1 %v14148_v3  ;;  %v8986_v1 = vld [vmem:[%s17360_s1 + $0x8c0] sm:$0xff]  ;;  %v17847_v2 = vrot.slane %v17794_v45, %v17792_v42  ;;  %v8979_v3 = vld [vmem:[%s17360_s1 + $0x888] sm:$0xff] }
 0x84e   : > { %v14274_v25 = vcombine.high %v8978_v0, %v8986_v1  ;;  %v8995_v42 = vld [vmem:[%s17360_s1 + $0x908] sm:$0xff]  ;;  %v14273_v49 = vcombine.low %v8978_v0, %v8986_v1  ;;  %v14275_v12 = vcombine.low %v8979_v3, %v8987_v21 }
 0x84f   : > { %v9003_v45 = vld [vmem:[%s17360_s1 + $0x948] sm:$0xff] }
 0x850   : > { %11910 = vmatpush1.bf16.msra.mxu0 %v14145_v7  ;;  %11992 = vmatpush1.bf16.msra.mxu1 %v14147_v8  ;;  %v14276_v7 = vcombine.high %v8979_v3, %v8987_v21  ;;  %v8994_v8 = vld [vmem:[%s17360_s1 + $0x900] sm:$0xff]  ;;  %v14292_v14 = vcombine.high %v8995_v42, %v9003_v45  ;;  %v14291_v19 = vcombine.low %v8995_v42, %v9003_v45 }
 0x851   : > { %11911 = vmatprep.subr.bf16.mxu0 %v14162_v11  ;;  %11993 = vmatprep.subr.bf16.mxu1 %v14164_v59  ;;  %v9002_v11 = vld [vmem:[%s17360_s1 + $0x940] sm:$0xff]  ;;  %v17855_v59 = vcombine.high %v17803_v50, %v17803_v50 }
 0x852   : > { %v14290_v13 = vcombine.high %v8994_v8, %v9002_v11  ;;  %v14289_v18 = vcombine.low %v8994_v8, %v9002_v11 }
 0x854   : > { %11912 = vmatpush1.bf16.msra.mxu0 %v14161_v15  ;;  %11994 = vmatpush1.bf16.msra.mxu1 %v14163_v16  ;;  %v9010_v15 = vld [vmem:[%s17360_s1 + $0x980] sm:$0xff] }
 0x855   : > { %11913 = vmatprep.subr.bf16.mxu0 %v14178_v17  ;;  %11995 = vmatprep.subr.bf16.mxu1 %v14180_v54  ;;  %v9018_v16 = vld [vmem:[%s17360_s1 + $0x9c0] sm:$0xff]  ;;  %v9011_v17 = vld [vmem:[%s17360_s1 + $0x988] sm:$0xff] }
 0x856   : > { %v9019_v54 = vld [vmem:[%s17360_s1 + $0x9c8] sm:$0xff]  ;;  %v14306_v20 = vcombine.high %v9010_v15, %v9018_v16  ;;  %v14305_v23 = vcombine.low %v9010_v15, %v9018_v16 }
 0x857   : > { %v14308_v40 = vcombine.high %v9011_v17, %v9019_v54  ;;  %v14307_v30 = vcombine.low %v9011_v17, %v9019_v54 }
 0x858   : > { %11914 = vmatpush1.bf16.msra.mxu0 %v14177_v22  ;;  %11996 = vmatpush1.bf16.msra.mxu1 %v14179_v24  ;;  %v9026_v22 = vld [vmem:[%s17360_s1 + $0xa00] sm:$0xff] }
 0x859   : > { %11915 = vmatprep.subr.bf16.mxu0 %v14194_v27  ;;  %11997 = vmatprep.subr.bf16.mxu1 %v14196_v28  ;;  %v9034_v24 = vld [vmem:[%s17360_s1 + $0xa40] sm:$0xff]  ;;  %v9027_v27 = vld [vmem:[%s17360_s1 + $0xa08] sm:$0xff] }
 0x85a   : > { %v9035_v28 = vld [vmem:[%s17360_s1 + $0xa48] sm:$0xff]  ;;  %v14322_v31 = vcombine.high %v9026_v22, %v9034_v24  ;;  %v14321_v35 = vcombine.low %v9026_v22, %v9034_v24 }
 0x85b   : > { %v14324_v33 = vcombine.high %v9027_v27, %v9035_v28  ;;  %v14323_v9 = vcombine.low %v9027_v27, %v9035_v28 }
 0x85c   : > { %11916 = vmatpush1.bf16.msra.mxu0 %v14193_v36  ;;  %11998 = vmatpush1.bf16.msra.mxu1 %v14195_v39  ;;  %v9042_v36 = vld [vmem:[%s17360_s1 + $0xa80] sm:$0xff] }
 0x85d   : > { %11917 = vmatprep.subr.bf16.mxu0 %v14210_v26  ;;  %11999 = vmatprep.subr.bf16.mxu1 %v14212_v34  ;;  %v9050_v39 = vld [vmem:[%s17360_s1 + $0xac0] sm:$0xff]  ;;  %v9043_v26 = vld [vmem:[%s17360_s1 + $0xa88] sm:$0xff] }
 0x85e   : > { %v9051_v34 = vld [vmem:[%s17360_s1 + $0xac8] sm:$0xff]  ;;  %v14338_v37 = vcombine.high %v9042_v36, %v9050_v39  ;;  %v14337_v48 = vcombine.low %v9042_v36, %v9050_v39 }
 0x85f   : > { %v14340_v29 = vcombine.high %v9043_v26, %v9051_v34  ;;  %v14339_v51 = vcombine.low %v9043_v26, %v9051_v34 }
 0x860   : > { %11918 = vmatpush1.bf16.msra.mxu0 %v14209_v46  ;;  %12000 = vmatpush1.bf16.msra.mxu1 %v14211_v56  ;;  %v9058_v46 = vld [vmem:[%s17360_s1 + $0xb00] sm:$0xff] }
 0x861   : > { %11919 = vmatprep.subr.bf16.mxu0 %v14226_v47  ;;  %12001 = vmatprep.subr.bf16.mxu1 %v14228_v43  ;;  %v9066_v56 = vld [vmem:[%s17360_s1 + $0xb40] sm:$0xff]  ;;  %v9059_v47 = vld [vmem:[%s17360_s1 + $0xb08] sm:$0xff] }
 0x862   : > { %v9067_v43 = vld [vmem:[%s17360_s1 + $0xb48] sm:$0xff]  ;;  %v14354_v52 = vcombine.high %v9058_v46, %v9066_v56  ;;  %v14353_v58 = vcombine.low %v9058_v46, %v9066_v56 }
 0x863   : > { %v14356_v53 = vcombine.high %v9059_v47, %v9067_v43  ;;  %v14355_v41 = vcombine.low %v9059_v47, %v9067_v43 }
 0x864   : > { %11920 = vmatpush1.bf16.msra.mxu0 %v14225_v6  ;;  %12002 = vmatpush1.bf16.msra.mxu1 %v14227_v55  ;;  %v9074_v6 = vld [vmem:[%s17360_s1 + $0xb80] sm:$0xff] }
 0x865   : > { %11921 = vmatprep.subr.bf16.mxu0 %v14242_v32  ;;  %12003 = vmatprep.subr.bf16.mxu1 %v14244_v57  ;;  %v9082_v55 = vld [vmem:[%s17360_s1 + $0xbc0] sm:$0xff]  ;;  %v9075_v32 = vld [vmem:[%s17360_s1 + $0xb88] sm:$0xff] }
 0x866   : > { %v9083_v57 = vld [vmem:[%s17360_s1 + $0xbc8] sm:$0xff]  ;;  %v14370_v60 = vcombine.high %v9074_v6, %v9082_v55  ;;  %v14369_v0 = vcombine.low %v9074_v6, %v9082_v55 }
 0x867   : > { %v14372_v44 = vcombine.high %v9075_v32, %v9083_v57  ;;  %v14371_v1 = vcombine.low %v9075_v32, %v9083_v57 }
 0x868   : > { %11922 = vmatpush1.bf16.msra.mxu0 %v14241_v38  ;;  %12004 = vmatpush1.bf16.msra.mxu1 %v14243_v61  ;;  %v9090_v38 = vld [vmem:[%s17360_s1 + $0xc00] sm:$0xff] }
 0x869   : > { %11932 = vmatprep.subr.bf16.mxu0 %v14258_v62  ;;  %12014 = vmatprep.subr.bf16.mxu1 %v14260_v63  ;;  %v9098_v61 = vld [vmem:[%s17360_s1 + $0xc40] sm:$0xff]  ;;  %v9091_v62 = vld [vmem:[%s17360_s1 + $0xc08] sm:$0xff] }
 0x86a   : > { %v9099_v63 = vld [vmem:[%s17360_s1 + $0xc48] sm:$0xff]  ;;  %v14386_v3 = vcombine.high %v9090_v38, %v9098_v61  ;;  %v14385_v8 = vcombine.low %v9090_v38, %v9098_v61 }
 0x86b   : > { %11924 = vmatmul.mubr.bf16.vlgmr.msra.gmra.mrb[0].mxu0 %v17847_v2  ;;  %12006 = vmatmul.mubr.bf16.vlgmr.msra.gmra.mrb[0].mxu1 %v17847_v2  ;;  %v14388_v21 = vcombine.high %v9091_v62, %v9099_v63  ;;  %v14387_v11 = vcombine.low %v9091_v62, %v9099_v63 }
 0x86c   : > { %11933 = vmatpush1.bf16.msra.mxu0 %v14257_v4  ;;  %12015 = vmatpush1.bf16.msra.mxu1 %v14259_v5  ;;  %v9106_v4 = vld [vmem:[%s17360_s1 + $0xc80] sm:$0xff] }
 0x86d   : > { %11934 = vmatprep.subr.bf16.mxu0 %v14274_v25  ;;  %12016 = vmatprep.subr.bf16.mxu1 %v14276_v7  ;;  %v9114_v5 = vld [vmem:[%s17360_s1 + $0xcc0] sm:$0xff]  ;;  %v9107_v25 = vld [vmem:[%s17360_s1 + $0xc88] sm:$0xff] }
 0x86e   : > { %11964 = vmatprep.mubr.bf16.mxu0 %v17855_v59  ;;  %12046 = vmatprep.mubr.bf16.mxu1 %v17855_v59  ;;  %v9115_v7 = vld [vmem:[%s17360_s1 + $0xcc8] sm:$0xff]  ;;  %v14402_v42 = vcombine.high %v9106_v4, %v9114_v5  ;;  %v14401_v15 = vcombine.low %v9106_v4, %v9114_v5 }
 0x86f   : > { %v14404_v45 = vcombine.high %v9107_v25, %v9115_v7  ;;  %v14403_v16 = vcombine.low %v9107_v25, %v9115_v7 }
 0x870   : > { %11935 = vmatpush1.bf16.msra.mxu0 %v14273_v49  ;;  %12017 = vmatpush1.bf16.msra.mxu1 %v14275_v12  ;;  %v9122_v49 = vld [vmem:[%s17360_s1 + $0xd00] sm:$0xff] }
 0x871   : > { %11936 = vmatprep.subr.bf16.mxu0 %v14290_v13  ;;  %12018 = vmatprep.subr.bf16.mxu1 %v14292_v14  ;;  %v9130_v12 = vld [vmem:[%s17360_s1 + $0xd40] sm:$0xff]  ;;  %v9123_v13 = vld [vmem:[%s17360_s1 + $0xd08] sm:$0xff] }
 0x872   : > { %v9131_v14 = vld [vmem:[%s17360_s1 + $0xd48] sm:$0xff]  ;;  %v14418_v17 = vcombine.high %v9122_v49, %v9130_v12  ;;  %v14417_v22 = vcombine.low %v9122_v49, %v9130_v12  ;;  %v8733_v49 = vld [vmem:[%s17360_s1 + $0xd8] sm:$0xff] }
 0x873   : > { %v14420_v54 = vcombine.high %v9123_v13, %v9131_v14  ;;  %v14419_v24 = vcombine.low %v9123_v13, %v9131_v14 }
 0x874   : > { %11937 = vmatpush1.bf16.msra.mxu0 %v14289_v18  ;;  %12019 = vmatpush1.bf16.msra.mxu1 %v14291_v19  ;;  %v9138_v18 = vld [vmem:[%s17360_s1 + $0xd80] sm:$0xff] }
 0x875   : > { %11938 = vmatprep.subr.bf16.mxu0 %v14306_v20  ;;  %12020 = vmatprep.subr.bf16.mxu1 %v14308_v40  ;;  %v9146_v19 = vld [vmem:[%s17360_s1 + $0xdc0] sm:$0xff]  ;;  %v9139_v20 = vld [vmem:[%s17360_s1 + $0xd88] sm:$0xff] }
 0x876   : > { %v9147_v40 = vld [vmem:[%s17360_s1 + $0xdc8] sm:$0xff]  ;;  %v14434_v27 = vcombine.high %v9138_v18, %v9146_v19  ;;  %v14433_v36 = vcombine.low %v9138_v18, %v9146_v19  ;;  %v8749_v18 = vld [vmem:[%s17360_s1 + $0x158] sm:$0xff] }
 0x877   : > { %v14436_v28 = vcombine.high %v9139_v20, %v9147_v40  ;;  %v14435_v39 = vcombine.low %v9139_v20, %v9147_v40 }
 0x878   : > { %11939 = vmatpush1.bf16.msra.mxu0 %v14305_v23  ;;  %12021 = vmatpush1.bf16.msra.mxu1 %v14307_v30  ;;  %v9154_v23 = vld [vmem:[%s17360_s1 + $0xe00] sm:$0xff] }
 0x879   : > { %11940 = vmatprep.subr.bf16.mxu0 %v14322_v31  ;;  %12022 = vmatprep.subr.bf16.mxu1 %v14324_v33  ;;  %v9162_v30 = vld [vmem:[%s17360_s1 + $0xe40] sm:$0xff]  ;;  %v9155_v31 = vld [vmem:[%s17360_s1 + $0xe08] sm:$0xff] }
 0x87a   : > { %v9163_v33 = vld [vmem:[%s17360_s1 + $0xe48] sm:$0xff]  ;;  %v14450_v26 = vcombine.high %v9154_v23, %v9162_v30  ;;  %v14449_v46 = vcombine.low %v9154_v23, %v9162_v30  ;;  %v8765_v23 = vld [vmem:[%s17360_s1 + $0x1d8] sm:$0xff] }
 0x87b   : > { %v14452_v34 = vcombine.high %v9155_v31, %v9163_v33  ;;  %v14451_v56 = vcombine.low %v9155_v31, %v9163_v33 }
 0x87c   : > { %11941 = vmatpush1.bf16.msra.mxu0 %v14321_v35  ;;  %12023 = vmatpush1.bf16.msra.mxu1 %v14323_v9  ;;  %v9170_v35 = vld [vmem:[%s17360_s1 + $0xe80] sm:$0xff] }
 0x87d   : > { %11942 = vmatprep.subr.bf16.mxu0 %v14338_v37  ;;  %12024 = vmatprep.subr.bf16.mxu1 %v14340_v29  ;;  %v9178_v9 = vld [vmem:[%s17360_s1 + $0xec0] sm:$0xff]  ;;  %v9171_v37 = vld [vmem:[%s17360_s1 + $0xe88] sm:$0xff] }
 0x87e   : > { %v9179_v29 = vld [vmem:[%s17360_s1 + $0xec8] sm:$0xff]  ;;  %v14466_v47 = vcombine.high %v9170_v35, %v9178_v9  ;;  %v14465_v6 = vcombine.low %v9170_v35, %v9178_v9  ;;  %v8781_v35 = vld [vmem:[%s17360_s1 + $0x258] sm:$0xff] }
 0x87f   : > { %v14468_v43 = vcombine.high %v9171_v37, %v9179_v29  ;;  %v14467_v55 = vcombine.low %v9171_v37, %v9179_v29 }
 0x880   : > { %11943 = vmatpush1.bf16.msra.mxu0 %v14337_v48  ;;  %12025 = vmatpush1.bf16.msra.mxu1 %v14339_v51  ;;  %v9186_v48 = vld [vmem:[%s17360_s1 + $0xf00] sm:$0xff] }
 0x881   : > { %11944 = vmatprep.subr.bf16.mxu0 %v14354_v52  ;;  %12026 = vmatprep.subr.bf16.mxu1 %v14356_v53  ;;  %v9194_v51 = vld [vmem:[%s17360_s1 + $0xf40] sm:$0xff]  ;;  %v9187_v52 = vld [vmem:[%s17360_s1 + $0xf08] sm:$0xff] }
 0x882   : > { %v9195_v53 = vld [vmem:[%s17360_s1 + $0xf48] sm:$0xff]  ;;  %v14482_v32 = vcombine.high %v9186_v48, %v9194_v51  ;;  %v14481_v38 = vcombine.low %v9186_v48, %v9194_v51  ;;  %v8797_v48 = vld [vmem:[%s17360_s1 + $0x2d8] sm:$0xff] }
 0x883   : > { %v14484_v57 = vcombine.high %v9187_v52, %v9195_v53  ;;  %v14483_v61 = vcombine.low %v9187_v52, %v9195_v53 }
 0x884   : > { %11945 = vmatpush1.bf16.msra.mxu0 %v14353_v58  ;;  %12027 = vmatpush1.bf16.msra.mxu1 %v14355_v41  ;;  %v9202_v58 = vld [vmem:[%s17360_s1 + $0xf80] sm:$0xff] }
 0x885   : > { %11946 = vmatprep.subr.bf16.mxu0 %v14370_v60  ;;  %12028 = vmatprep.subr.bf16.mxu1 %v14372_v44  ;;  %v9210_v41 = vld [vmem:[%s17360_s1 + $0xfc0] sm:$0xff]  ;;  %v9203_v60 = vld [vmem:[%s17360_s1 + $0xf88] sm:$0xff] }
 0x886   : > { %v9211_v44 = vld [vmem:[%s17360_s1 + $0xfc8] sm:$0xff]  ;;  %v14498_v62 = vcombine.high %v9202_v58, %v9210_v41  ;;  %v14497_v4 = vcombine.low %v9202_v58, %v9210_v41  ;;  %v8813_v58 = vld [vmem:[%s17360_s1 + $0x358] sm:$0xff] }
 0x887   : > { %v14500_v63 = vcombine.high %v9203_v60, %v9211_v44  ;;  %v14499_v5 = vcombine.low %v9203_v60, %v9211_v44 }
 0x888   : > { %11947 = vmatpush1.bf16.msra.mxu0 %v14369_v0  ;;  %12029 = vmatpush1.bf16.msra.mxu1 %v14371_v1  ;;  %v8708_v0 = vld [vmem:[%s17360_s1 + $0x10] sm:$0xff] }
 0x889   : > { %11948 = vmatprep.subr.bf16.mxu0 %v14386_v3  ;;  %12030 = vmatprep.subr.bf16.mxu1 %v14388_v21  ;;  %v8716_v1 = vld [vmem:[%s17360_s1 + $0x50] sm:$0xff]  ;;  %v8709_v3 = vld [vmem:[%s17360_s1 + $0x18] sm:$0xff] }
 0x88a   : > { %v8717_v21 = vld [vmem:[%s17360_s1 + $0x58] sm:$0xff]  ;;  %v14006_v25 = vcombine.high %v8708_v0, %v8716_v1  ;;  %v14005_v12 = vcombine.low %v8708_v0, %v8716_v1 }
 0x88b   : > { %v14008_v7 = vcombine.high %v8709_v3, %v8717_v21  ;;  %v14007_v13 = vcombine.low %v8709_v3, %v8717_v21  ;;  %v8829_v0 = vld [vmem:[%s17360_s1 + $0x3d8] sm:$0xff] }
 0x88c   : > { %11949 = vmatpush1.bf16.msra.mxu0 %v14385_v8  ;;  %12031 = vmatpush1.bf16.msra.mxu1 %v14387_v11  ;;  %v8724_v8 = vld [vmem:[%s17360_s1 + $0x90] sm:$0xff] }
 0x88d   : > { %11950 = vmatprep.subr.bf16.mxu0 %v14402_v42  ;;  %12032 = vmatprep.subr.bf16.mxu1 %v14404_v45  ;;  %v8732_v11 = vld [vmem:[%s17360_s1 + $0xd0] sm:$0xff]  ;;  %v17923_v42 = vcombine.high %v17847_v2, %v17847_v2  ;;  %v8725_v45 = vld [vmem:[%s17360_s1 + $0x98] sm:$0xff] }
 0x88e   : > { %v14022_v14 = vcombine.high %v8724_v8, %v8732_v11  ;;  %v14021_v19 = vcombine.low %v8724_v8, %v8732_v11  ;;  %v14023_v20 = vcombine.low %v8725_v45, %v8733_v49  ;;  %v8845_v8 = vld [vmem:[%s17360_s1 + $0x458] sm:$0xff] }
 0x890   : > { %11951 = vmatpush1.bf16.msra.mxu0 %v14401_v15  ;;  %12033 = vmatpush1.bf16.msra.mxu1 %v14403_v16  ;;  %v14024_v15 = vcombine.high %v8725_v45, %v8733_v49  ;;  %v8740_v16 = vld [vmem:[%s17360_s1 + $0x110] sm:$0xff] }
 0x891   : > { %11952 = vmatprep.subr.bf16.mxu0 %v14418_v17  ;;  %12034 = vmatprep.subr.bf16.mxu1 %v14420_v54  ;;  %v8748_v17 = vld [vmem:[%s17360_s1 + $0x150] sm:$0xff]  ;;  %v8741_v54 = vld [vmem:[%s17360_s1 + $0x118] sm:$0xff] }
 0x892   : > { %v14038_v40 = vcombine.high %v8740_v16, %v8748_v17  ;;  %v14037_v30 = vcombine.low %v8740_v16, %v8748_v17  ;;  %v14039_v31 = vcombine.low %v8741_v54, %v8749_v18  ;;  %v8861_v16 = vld [vmem:[%s17360_s1 + $0x4d8] sm:$0xff] }
 0x894   : > { %11953 = vmatpush1.bf16.msra.mxu0 %v14417_v22  ;;  %12035 = vmatpush1.bf16.msra.mxu1 %v14419_v24  ;;  %v14040_v22 = vcombine.high %v8741_v54, %v8749_v18  ;;  %v8756_v24 = vld [vmem:[%s17360_s1 + $0x190] sm:$0xff] }
 0x895   : > { %11954 = vmatprep.subr.bf16.mxu0 %v14434_v27  ;;  %12036 = vmatprep.subr.bf16.mxu1 %v14436_v28  ;;  %v8764_v27 = vld [vmem:[%s17360_s1 + $0x1d0] sm:$0xff]  ;;  %v8757_v28 = vld [vmem:[%s17360_s1 + $0x198] sm:$0xff] }
 0x896   : > { %v14054_v33 = vcombine.high %v8756_v24, %v8764_v27  ;;  %v14053_v9 = vcombine.low %v8756_v24, %v8764_v27  ;;  %v14055_v37 = vcombine.low %v8757_v28, %v8765_v23  ;;  %v8877_v24 = vld [vmem:[%s17360_s1 + $0x558] sm:$0xff] }
 0x898   : > { %11955 = vmatpush1.bf16.msra.mxu0 %v14433_v36  ;;  %12037 = vmatpush1.bf16.msra.mxu1 %v14435_v39  ;;  %v14056_v36 = vcombine.high %v8757_v28, %v8765_v23  ;;  %v8772_v39 = vld [vmem:[%s17360_s1 + $0x210] sm:$0xff] }
 0x899   : > { %11956 = vmatprep.subr.bf16.mxu0 %v14450_v26  ;;  %12038 = vmatprep.subr.bf16.mxu1 %v14452_v34  ;;  %v8780_v26 = vld [vmem:[%s17360_s1 + $0x250] sm:$0xff]  ;;  %v8773_v34 = vld [vmem:[%s17360_s1 + $0x218] sm:$0xff] }
 0x89a   : > { %v14070_v29 = vcombine.high %v8772_v39, %v8780_v26  ;;  %v14069_v51 = vcombine.low %v8772_v39, %v8780_v26  ;;  %v14071_v52 = vcombine.low %v8773_v34, %v8781_v35  ;;  %v8893_v39 = vld [vmem:[%s17360_s1 + $0x5d8] sm:$0xff] }
 0x89c   : > { %11957 = vmatpush1.bf16.msra.mxu0 %v14449_v46  ;;  %12039 = vmatpush1.bf16.msra.mxu1 %v14451_v56  ;;  %v14072_v46 = vcombine.high %v8773_v34, %v8781_v35  ;;  %v8788_v56 = vld [vmem:[%s17360_s1 + $0x290] sm:$0xff] }
 0x89d   : > { %11958 = vmatprep.subr.bf16.mxu0 %v14466_v47  ;;  %12040 = vmatprep.subr.bf16.mxu1 %v14468_v43  ;;  %v8796_v47 = vld [vmem:[%s17360_s1 + $0x2d0] sm:$0xff]  ;;  %v8789_v43 = vld [vmem:[%s17360_s1 + $0x298] sm:$0xff] }
 0x89e   : > { %v14086_v53 = vcombine.high %v8788_v56, %v8796_v47  ;;  %v14085_v41 = vcombine.low %v8788_v56, %v8796_v47  ;;  %v14087_v60 = vcombine.low %v8789_v43, %v8797_v48  ;;  %v8909_v56 = vld [vmem:[%s17360_s1 + $0x658] sm:$0xff] }
 0x8a0   : > { %11959 = vmatpush1.bf16.msra.mxu0 %v14465_v6  ;;  %12041 = vmatpush1.bf16.msra.mxu1 %v14467_v55  ;;  %v14088_v6 = vcombine.high %v8789_v43, %v8797_v48  ;;  %v8804_v55 = vld [vmem:[%s17360_s1 + $0x310] sm:$0xff] }
 0x8a1   : > { %11960 = vmatprep.subr.bf16.mxu0 %v14482_v32  ;;  %12042 = vmatprep.subr.bf16.mxu1 %v14484_v57  ;;  %v8812_v32 = vld [vmem:[%s17360_s1 + $0x350] sm:$0xff]  ;;  %v8805_v57 = vld [vmem:[%s17360_s1 + $0x318] sm:$0xff] }
 0x8a2   : > { %v14102_v44 = vcombine.high %v8804_v55, %v8812_v32  ;;  %v14101_v1 = vcombine.low %v8804_v55, %v8812_v32  ;;  %v14103_v3 = vcombine.low %v8805_v57, %v8813_v58  ;;  %v8925_v55 = vld [vmem:[%s17360_s1 + $0x6d8] sm:$0xff] }
 0x8a4   : > { %11961 = vmatpush1.bf16.msra.mxu0 %v14481_v38  ;;  %12043 = vmatpush1.bf16.msra.mxu1 %v14483_v61  ;;  %v14104_v38 = vcombine.high %v8805_v57, %v8813_v58  ;;  %v8820_v61 = vld [vmem:[%s17360_s1 + $0x390] sm:$0xff] }
 0x8a5   : > { %11962 = vmatprep.subr.bf16.mxu0 %v14498_v62  ;;  %12044 = vmatprep.subr.bf16.mxu1 %v14500_v63  ;;  %v8828_v62 = vld [vmem:[%s17360_s1 + $0x3d0] sm:$0xff]  ;;  %v8821_v63 = vld [vmem:[%s17360_s1 + $0x398] sm:$0xff] }
 0x8a6   : > { %v14118_v21 = vcombine.high %v8820_v61, %v8828_v62  ;;  %v14117_v11 = vcombine.low %v8820_v61, %v8828_v62  ;;  %v14119_v45 = vcombine.low %v8821_v63, %v8829_v0  ;;  %v8941_v61 = vld [vmem:[%s17360_s1 + $0x758] sm:$0xff] }
 0x8a8   : > { %11963 = vmatpush1.bf16.msra.mxu0 %v14497_v4  ;;  %12045 = vmatpush1.bf16.msra.mxu1 %v14499_v5  ;;  %v14120_v4 = vcombine.high %v8821_v63, %v8829_v0  ;;  %v8836_v5 = vld [vmem:[%s17360_s1 + $0x410] sm:$0xff] }
 0x8a9   : > { %12055 = vmatprep.subr.bf16.mxu0 %v14006_v25  ;;  %12137 = vmatprep.subr.bf16.mxu1 %v14008_v7  ;;  %v8844_v25 = vld [vmem:[%s17360_s1 + $0x450] sm:$0xff]  ;;  %v8837_v7 = vld [vmem:[%s17360_s1 + $0x418] sm:$0xff] }
 0x8aa   : > { %v14134_v49 = vcombine.high %v8836_v5, %v8844_v25  ;;  %v14133_v17 = vcombine.low %v8836_v5, %v8844_v25  ;;  %v14135_v54 = vcombine.low %v8837_v7, %v8845_v8  ;;  %v8957_v5 = vld [vmem:[%s17360_s1 + $0x7d8] sm:$0xff] }
 0x8ab   : > { %11965 = vmatmul.mubr.bf16.vlgmr.msra.gmra.mrb[0].mxu0 %v17923_v42  ;;  %12047 = vmatmul.mubr.bf16.vlgmr.msra.gmra.mrb[0].mxu1 %v17923_v42 }
 0x8ac   : > { %12056 = vmatpush1.bf16.msra.mxu0 %v14005_v12  ;;  %12138 = vmatpush1.bf16.msra.mxu1 %v14007_v13  ;;  %v14136_v12 = vcombine.high %v8837_v7, %v8845_v8  ;;  %v8852_v13 = vld [vmem:[%s17360_s1 + $0x490] sm:$0xff] }
 0x8ad   : > { %12057 = vmatprep.subr.bf16.mxu0 %v14022_v14  ;;  %12139 = vmatprep.subr.bf16.mxu1 %v14024_v15  ;;  %v8860_v14 = vld [vmem:[%s17360_s1 + $0x4d0] sm:$0xff]  ;;  %v8853_v15 = vld [vmem:[%s17360_s1 + $0x498] sm:$0xff] }
 0x8ae   : > { %12087 = vmatprep.mubr.bf16.mxu0 %v17803_v50  ;;  %12169 = vmatprep.mubr.bf16.mxu1 %v17803_v50  ;;  %v14150_v18 = vcombine.high %v8852_v13, %v8860_v14  ;;  %v14149_v27 = vcombine.low %v8852_v13, %v8860_v14  ;;  %v14151_v28 = vcombine.low %v8853_v15, %v8861_v16  ;;  %v8973_v13 = vld [vmem:[%s17360_s1 + $0x858] sm:$0xff] }
 0x8b0   : > { %12058 = vmatpush1.bf16.msra.mxu0 %v14021_v19  ;;  %12140 = vmatpush1.bf16.msra.mxu1 %v14023_v20  ;;  %v14152_v19 = vcombine.high %v8853_v15, %v8861_v16  ;;  %v8868_v20 = vld [vmem:[%s17360_s1 + $0x510] sm:$0xff] }
 0x8b1   : > { %12059 = vmatprep.subr.bf16.mxu0 %v14038_v40  ;;  %12141 = vmatprep.subr.bf16.mxu1 %v14040_v22  ;;  %v8876_v40 = vld [vmem:[%s17360_s1 + $0x550] sm:$0xff]  ;;  %v8869_v22 = vld [vmem:[%s17360_s1 + $0x518] sm:$0xff] }
 0x8b2   : > { %v14166_v23 = vcombine.high %v8868_v20, %v8876_v40  ;;  %v14165_v26 = vcombine.low %v8868_v20, %v8876_v40  ;;  %v14167_v34 = vcombine.low %v8869_v22, %v8877_v24  ;;  %v8989_v20 = vld [vmem:[%s17360_s1 + $0x8d8] sm:$0xff] }
 0x8b4   : > { %12060 = vmatpush1.bf16.msra.mxu0 %v14037_v30  ;;  %12142 = vmatpush1.bf16.msra.mxu1 %v14039_v31  ;;  %v14168_v30 = vcombine.high %v8869_v22, %v8877_v24  ;;  %v8884_v31 = vld [vmem:[%s17360_s1 + $0x590] sm:$0xff] }
 0x8b5   : > { %12061 = vmatprep.subr.bf16.mxu0 %v14054_v33  ;;  %12143 = vmatprep.subr.bf16.mxu1 %v14056_v36  ;;  %v8892_v33 = vld [vmem:[%s17360_s1 + $0x5d0] sm:$0xff]  ;;  %v8885_v36 = vld [vmem:[%s17360_s1 + $0x598] sm:$0xff] }
 0x8b6   : > { %v14182_v35 = vcombine.high %v8884_v31, %v8892_v33  ;;  %v14181_v47 = vcombine.low %v8884_v31, %v8892_v33  ;;  %v14183_v43 = vcombine.low %v8885_v36, %v8893_v39  ;;  %v9005_v31 = vld [vmem:[%s17360_s1 + $0x958] sm:$0xff] }
 0x8b8   : > { %12062 = vmatpush1.bf16.msra.mxu0 %v14053_v9  ;;  %12144 = vmatpush1.bf16.msra.mxu1 %v14055_v37  ;;  %v14184_v9 = vcombine.high %v8885_v36, %v8893_v39  ;;  %v8900_v37 = vld [vmem:[%s17360_s1 + $0x610] sm:$0xff] }
 0x8b9   : > { %12063 = vmatprep.subr.bf16.mxu0 %v14070_v29  ;;  %12145 = vmatprep.subr.bf16.mxu1 %v14072_v46  ;;  %v8908_v29 = vld [vmem:[%s17360_s1 + $0x650] sm:$0xff]  ;;  %v8901_v46 = vld [vmem:[%s17360_s1 + $0x618] sm:$0xff] }
 0x8ba   : > { %v14198_v48 = vcombine.high %v8900_v37, %v8908_v29  ;;  %v14197_v32 = vcombine.low %v8900_v37, %v8908_v29  ;;  %v14199_v57 = vcombine.low %v8901_v46, %v8909_v56  ;;  %v9021_v37 = vld [vmem:[%s17360_s1 + $0x9d8] sm:$0xff] }
 0x8bc   : > { %12064 = vmatpush1.bf16.msra.mxu0 %v14069_v51  ;;  %12146 = vmatpush1.bf16.msra.mxu1 %v14071_v52  ;;  %v14200_v51 = vcombine.high %v8901_v46, %v8909_v56  ;;  %v8916_v52 = vld [vmem:[%s17360_s1 + $0x690] sm:$0xff] }
 0x8bd   : > { %12065 = vmatprep.subr.bf16.mxu0 %v14086_v53  ;;  %12147 = vmatprep.subr.bf16.mxu1 %v14088_v6  ;;  %v8924_v53 = vld [vmem:[%s17360_s1 + $0x6d0] sm:$0xff]  ;;  %v8917_v6 = vld [vmem:[%s17360_s1 + $0x698] sm:$0xff] }
 0x8be   : > { %v14214_v58 = vcombine.high %v8916_v52, %v8924_v53  ;;  %v14213_v62 = vcombine.low %v8916_v52, %v8924_v53  ;;  %v14215_v63 = vcombine.low %v8917_v6, %v8925_v55  ;;  %v9037_v52 = vld [vmem:[%s17360_s1 + $0xa58] sm:$0xff] }
 0x8c0   : > { %12066 = vmatpush1.bf16.msra.mxu0 %v14085_v41  ;;  %12148 = vmatpush1.bf16.msra.mxu1 %v14087_v60  ;;  %v14216_v41 = vcombine.high %v8917_v6, %v8925_v55  ;;  %v8932_v60 = vld [vmem:[%s17360_s1 + $0x710] sm:$0xff] }
 0x8c1   : > { %12067 = vmatprep.subr.bf16.mxu0 %v14102_v44  ;;  %12149 = vmatprep.subr.bf16.mxu1 %v14104_v38  ;;  %v8940_v44 = vld [vmem:[%s17360_s1 + $0x750] sm:$0xff]  ;;  %v8933_v38 = vld [vmem:[%s17360_s1 + $0x718] sm:$0xff] }
 0x8c2   : > { %v14230_v0 = vcombine.high %v8932_v60, %v8940_v44  ;;  %v14229_v25 = vcombine.low %v8932_v60, %v8940_v44  ;;  %v14231_v7 = vcombine.low %v8933_v38, %v8941_v61  ;;  %v9053_v60 = vld [vmem:[%s17360_s1 + $0xad8] sm:$0xff] }
 0x8c4   : > { %12068 = vmatpush1.bf16.msra.mxu0 %v14101_v1  ;;  %12150 = vmatpush1.bf16.msra.mxu1 %v14103_v3  ;;  %v14232_v1 = vcombine.high %v8933_v38, %v8941_v61  ;;  %v8948_v3 = vld [vmem:[%s17360_s1 + $0x790] sm:$0xff] }
 0x8c5   : > { %12069 = vmatprep.subr.bf16.mxu0 %v14118_v21  ;;  %12151 = vmatprep.subr.bf16.mxu1 %v14120_v4  ;;  %v8956_v21 = vld [vmem:[%s17360_s1 + $0x7d0] sm:$0xff]  ;;  %v8949_v4 = vld [vmem:[%s17360_s1 + $0x798] sm:$0xff] }
 0x8c6   : > { %v14246_v8 = vcombine.high %v8948_v3, %v8956_v21  ;;  %v14245_v14 = vcombine.low %v8948_v3, %v8956_v21  ;;  %v14247_v15 = vcombine.low %v8949_v4, %v8957_v5  ;;  %v9069_v3 = vld [vmem:[%s17360_s1 + $0xb58] sm:$0xff] }
 0x8c8   : > { %12070 = vmatpush1.bf16.msra.mxu0 %v14117_v11  ;;  %12152 = vmatpush1.bf16.msra.mxu1 %v14119_v45  ;;  %v14248_v11 = vcombine.high %v8949_v4, %v8957_v5  ;;  %v8964_v45 = vld [vmem:[%s17360_s1 + $0x810] sm:$0xff] }
 0x8c9   : > { %12071 = vmatprep.subr.bf16.mxu0 %v14134_v49  ;;  %12153 = vmatprep.subr.bf16.mxu1 %v14136_v12  ;;  %v8972_v49 = vld [vmem:[%s17360_s1 + $0x850] sm:$0xff]  ;;  %v8965_v12 = vld [vmem:[%s17360_s1 + $0x818] sm:$0xff] }
 0x8ca   : > { %v14262_v16 = vcombine.high %v8964_v45, %v8972_v49  ;;  %v14261_v40 = vcombine.low %v8964_v45, %v8972_v49  ;;  %v14263_v22 = vcombine.low %v8965_v12, %v8973_v13  ;;  %v9085_v45 = vld [vmem:[%s17360_s1 + $0xbd8] sm:$0xff] }
 0x8cc   : > { %12072 = vmatpush1.bf16.msra.mxu0 %v14133_v17  ;;  %12154 = vmatpush1.bf16.msra.mxu1 %v14135_v54  ;;  %v14264_v17 = vcombine.high %v8965_v12, %v8973_v13  ;;  %v8980_v54 = vld [vmem:[%s17360_s1 + $0x890] sm:$0xff] }
 0x8cd   : > { %12073 = vmatprep.subr.bf16.mxu0 %v14150_v18  ;;  %12155 = vmatprep.subr.bf16.mxu1 %v14152_v19  ;;  %v8988_v18 = vld [vmem:[%s17360_s1 + $0x8d0] sm:$0xff]  ;;  %v8981_v19 = vld [vmem:[%s17360_s1 + $0x898] sm:$0xff] }
 0x8ce   : > { %v14278_v24 = vcombine.high %v8980_v54, %v8988_v18  ;;  %v14277_v33 = vcombine.low %v8980_v54, %v8988_v18  ;;  %v14279_v36 = vcombine.low %v8981_v19, %v8989_v20  ;;  %v9101_v54 = vld [vmem:[%s17360_s1 + $0xc58] sm:$0xff] }
 0x8d0   : > { %12074 = vmatpush1.bf16.msra.mxu0 %v14149_v27  ;;  %12156 = vmatpush1.bf16.msra.mxu1 %v14151_v28  ;;  %v14280_v27 = vcombine.high %v8981_v19, %v8989_v20  ;;  %v8996_v28 = vld [vmem:[%s17360_s1 + $0x910] sm:$0xff] }
 0x8d1   : > { %12075 = vmatprep.subr.bf16.mxu0 %v14166_v23  ;;  %12157 = vmatprep.subr.bf16.mxu1 %v14168_v30  ;;  %v9004_v23 = vld [vmem:[%s17360_s1 + $0x950] sm:$0xff]  ;;  %v8997_v30 = vld [vmem:[%s17360_s1 + $0x918] sm:$0xff] }
 0x8d2   : > { %v14294_v39 = vcombine.high %v8996_v28, %v9004_v23  ;;  %v14293_v29 = vcombine.low %v8996_v28, %v9004_v23  ;;  %v14295_v46 = vcombine.low %v8997_v30, %v9005_v31  ;;  %v9117_v28 = vld [vmem:[%s17360_s1 + $0xcd8] sm:$0xff] }
 0x8d4   : > { %12076 = vmatpush1.bf16.msra.mxu0 %v14165_v26  ;;  %12158 = vmatpush1.bf16.msra.mxu1 %v14167_v34  ;;  %v14296_v26 = vcombine.high %v8997_v30, %v9005_v31  ;;  %v9012_v34 = vld [vmem:[%s17360_s1 + $0x990] sm:$0xff] }
 0x8d5   : > { %12077 = vmatprep.subr.bf16.mxu0 %v14182_v35  ;;  %12159 = vmatprep.subr.bf16.mxu1 %v14184_v9  ;;  %v9020_v35 = vld [vmem:[%s17360_s1 + $0x9d0] sm:$0xff]  ;;  %v9013_v9 = vld [vmem:[%s17360_s1 + $0x998] sm:$0xff] }
 0x8d6   : > { %v14310_v56 = vcombine.high %v9012_v34, %v9020_v35  ;;  %v14309_v53 = vcombine.low %v9012_v34, %v9020_v35  ;;  %v14311_v6 = vcombine.low %v9013_v9, %v9021_v37  ;;  %v9133_v34 = vld [vmem:[%s17360_s1 + $0xd58] sm:$0xff] }
 0x8d8   : > { %12078 = vmatpush1.bf16.msra.mxu0 %v14181_v47  ;;  %12160 = vmatpush1.bf16.msra.mxu1 %v14183_v43  ;;  %v14312_v47 = vcombine.high %v9013_v9, %v9021_v37  ;;  %v9028_v43 = vld [vmem:[%s17360_s1 + $0xa10] sm:$0xff] }
 0x8d9   : > { %12079 = vmatprep.subr.bf16.mxu0 %v14198_v48  ;;  %12161 = vmatprep.subr.bf16.mxu1 %v14200_v51  ;;  %v9036_v48 = vld [vmem:[%s17360_s1 + $0xa50] sm:$0xff]  ;;  %v9029_v51 = vld [vmem:[%s17360_s1 + $0xa18] sm:$0xff] }
 0x8da   : > { %v14326_v55 = vcombine.high %v9028_v43, %v9036_v48  ;;  %v14325_v44 = vcombine.low %v9028_v43, %v9036_v48  ;;  %v14327_v38 = vcombine.low %v9029_v51, %v9037_v52  ;;  %v9149_v43 = vld [vmem:[%s17360_s1 + $0xdd8] sm:$0xff] }
 0x8dc   : > { %12080 = vmatpush1.bf16.msra.mxu0 %v14197_v32  ;;  %12162 = vmatpush1.bf16.msra.mxu1 %v14199_v57  ;;  %v14328_v32 = vcombine.high %v9029_v51, %v9037_v52  ;;  %v9044_v57 = vld [vmem:[%s17360_s1 + $0xa90] sm:$0xff] }
 0x8dd   : > { %12081 = vmatprep.subr.bf16.mxu0 %v14214_v58  ;;  %12163 = vmatprep.subr.bf16.mxu1 %v14216_v41  ;;  %v9052_v58 = vld [vmem:[%s17360_s1 + $0xad0] sm:$0xff]  ;;  %v9045_v41 = vld [vmem:[%s17360_s1 + $0xa98] sm:$0xff] }
 0x8de   : > { %v14342_v61 = vcombine.high %v9044_v57, %v9052_v58  ;;  %v14341_v21 = vcombine.low %v9044_v57, %v9052_v58  ;;  %v14343_v4 = vcombine.low %v9045_v41, %v9053_v60  ;;  %v9165_v57 = vld [vmem:[%s17360_s1 + $0xe58] sm:$0xff] }
 0x8e0   : > { %12082 = vmatpush1.bf16.msra.mxu0 %v14213_v62  ;;  %12164 = vmatpush1.bf16.msra.mxu1 %v14215_v63  ;;  %v14344_v62 = vcombine.high %v9045_v41, %v9053_v60  ;;  %v9060_v63 = vld [vmem:[%s17360_s1 + $0xb10] sm:$0xff] }
 0x8e1   : > { %12083 = vmatprep.subr.bf16.mxu0 %v14230_v0  ;;  %12165 = vmatprep.subr.bf16.mxu1 %v14232_v1  ;;  %v9068_v0 = vld [vmem:[%s17360_s1 + $0xb50] sm:$0xff]  ;;  %v9061_v1 = vld [vmem:[%s17360_s1 + $0xb18] sm:$0xff] }
 0x8e2   : > { %v14358_v5 = vcombine.high %v9060_v63, %v9068_v0  ;;  %v14357_v49 = vcombine.low %v9060_v63, %v9068_v0  ;;  %v14359_v12 = vcombine.low %v9061_v1, %v9069_v3  ;;  %v9181_v63 = vld [vmem:[%s17360_s1 + $0xed8] sm:$0xff] }
 0x8e4   : > { %12084 = vmatpush1.bf16.msra.mxu0 %v14229_v25  ;;  %12166 = vmatpush1.bf16.msra.mxu1 %v14231_v7  ;;  %v14360_v25 = vcombine.high %v9061_v1, %v9069_v3  ;;  %v9076_v7 = vld [vmem:[%s17360_s1 + $0xb90] sm:$0xff] }
 0x8e5   : > { %12085 = vmatprep.subr.bf16.mxu0 %v14246_v8  ;;  %12167 = vmatprep.subr.bf16.mxu1 %v14248_v11  ;;  %v9084_v8 = vld [vmem:[%s17360_s1 + $0xbd0] sm:$0xff]  ;;  %v9077_v11 = vld [vmem:[%s17360_s1 + $0xb98] sm:$0xff] }
 0x8e6   : > { %v14374_v13 = vcombine.high %v9076_v7, %v9084_v8  ;;  %v14373_v18 = vcombine.low %v9076_v7, %v9084_v8  ;;  %v14375_v19 = vcombine.low %v9077_v11, %v9085_v45  ;;  %v9197_v7 = vld [vmem:[%s17360_s1 + $0xf58] sm:$0xff] }
 0x8e8   : > { %12086 = vmatpush1.bf16.msra.mxu0 %v14245_v14  ;;  %12168 = vmatpush1.bf16.msra.mxu1 %v14247_v15  ;;  %v14376_v14 = vcombine.high %v9077_v11, %v9085_v45  ;;  %v9092_v15 = vld [vmem:[%s17360_s1 + $0xc10] sm:$0xff] }
 0x8e9   : > { %12096 = vmatprep.subr.bf16.mxu0 %v14262_v16  ;;  %12178 = vmatprep.subr.bf16.mxu1 %v14264_v17  ;;  %v9100_v16 = vld [vmem:[%s17360_s1 + $0xc50] sm:$0xff]  ;;  %v9093_v17 = vld [vmem:[%s17360_s1 + $0xc18] sm:$0xff] }
 0x8ea   : > { %v14390_v20 = vcombine.high %v9092_v15, %v9100_v16  ;;  %v14389_v23 = vcombine.low %v9092_v15, %v9100_v16  ;;  %v14391_v30 = vcombine.low %v9093_v17, %v9101_v54  ;;  %v9213_v15 = vld [vmem:[%s17360_s1 + $0xfd8] sm:$0xff] }
 0x8eb   : > { %12088 = vmatmul.mubr.bf16.vlgmr.msra.gmra.mrb[4].mxu0 %v17847_v2  ;;  %12170 = vmatmul.mubr.bf16.vlgmr.msra.gmra.mrb[4].mxu1 %v17847_v2 }
 0x8ec   : > { %12097 = vmatpush1.bf16.msra.mxu0 %v14261_v40  ;;  %12179 = vmatpush1.bf16.msra.mxu1 %v14263_v22  ;;  %v14392_v40 = vcombine.high %v9093_v17, %v9101_v54  ;;  %v9108_v22 = vld [vmem:[%s17360_s1 + $0xc90] sm:$0xff] }
 0x8ed   : > { %12098 = vmatprep.subr.bf16.mxu0 %v14278_v24  ;;  %12180 = vmatprep.subr.bf16.mxu1 %v14280_v27  ;;  %v9116_v24 = vld [vmem:[%s17360_s1 + $0xcd0] sm:$0xff]  ;;  %v9109_v27 = vld [vmem:[%s17360_s1 + $0xc98] sm:$0xff] }
 0x8ee   : > { %12128 = vmatprep.mubr.bf16.mxu0 %v17855_v59  ;;  %12210 = vmatprep.mubr.bf16.mxu1 %v17855_v59  ;;  %v14406_v31 = vcombine.high %v9108_v22, %v9116_v24  ;;  %v14405_v35 = vcombine.low %v9108_v22, %v9116_v24  ;;  %v14407_v9 = vcombine.low %v9109_v27, %v9117_v28  ;;  %v8719_v22 = vld [vmem:[%s17360_s1 + $0x68] sm:$0xff] }
 0x8f0   : > { %12099 = vmatpush1.bf16.msra.mxu0 %v14277_v33  ;;  %12181 = vmatpush1.bf16.msra.mxu1 %v14279_v36  ;;  %v14408_v33 = vcombine.high %v9109_v27, %v9117_v28  ;;  %v9124_v36 = vld [vmem:[%s17360_s1 + $0xd10] sm:$0xff] }
 0x8f1   : > { %12100 = vmatprep.subr.bf16.mxu0 %v14294_v39  ;;  %12182 = vmatprep.subr.bf16.mxu1 %v14296_v26  ;;  %v9132_v39 = vld [vmem:[%s17360_s1 + $0xd50] sm:$0xff]  ;;  %v9125_v26 = vld [vmem:[%s17360_s1 + $0xd18] sm:$0xff] }
 0x8f2   : > { %v14422_v37 = vcombine.high %v9124_v36, %v9132_v39  ;;  %v14421_v48 = vcombine.low %v9124_v36, %v9132_v39  ;;  %v14423_v51 = vcombine.low %v9125_v26, %v9133_v34  ;;  %v8735_v36 = vld [vmem:[%s17360_s1 + $0xe8] sm:$0xff] }
 0x8f4   : > { %12101 = vmatpush1.bf16.msra.mxu0 %v14293_v29  ;;  %12183 = vmatpush1.bf16.msra.mxu1 %v14295_v46  ;;  %v14424_v29 = vcombine.high %v9125_v26, %v9133_v34  ;;  %v9140_v46 = vld [vmem:[%s17360_s1 + $0xd90] sm:$0xff] }
 0x8f5   : > { %12102 = vmatprep.subr.bf16.mxu0 %v14310_v56  ;;  %12184 = vmatprep.subr.bf16.mxu1 %v14312_v47  ;;  %v9148_v56 = vld [vmem:[%s17360_s1 + $0xdd0] sm:$0xff]  ;;  %v9141_v47 = vld [vmem:[%s17360_s1 + $0xd98] sm:$0xff] }
 0x8f6   : > { %v14438_v52 = vcombine.high %v9140_v46, %v9148_v56  ;;  %v14437_v58 = vcombine.low %v9140_v46, %v9148_v56  ;;  %v14439_v41 = vcombine.low %v9141_v47, %v9149_v43  ;;  %v8751_v46 = vld [vmem:[%s17360_s1 + $0x168] sm:$0xff] }
 0x8f8   : > { %12103 = vmatpush1.bf16.msra.mxu0 %v14309_v53  ;;  %12185 = vmatpush1.bf16.msra.mxu1 %v14311_v6  ;;  %v14440_v53 = vcombine.high %v9141_v47, %v9149_v43  ;;  %v9156_v6 = vld [vmem:[%s17360_s1 + $0xe10] sm:$0xff] }
 0x8f9   : > { %12104 = vmatprep.subr.bf16.mxu0 %v14326_v55  ;;  %12186 = vmatprep.subr.bf16.mxu1 %v14328_v32  ;;  %v9164_v55 = vld [vmem:[%s17360_s1 + $0xe50] sm:$0xff]  ;;  %v9157_v32 = vld [vmem:[%s17360_s1 + $0xe18] sm:$0xff] }
 0x8fa   : > { %v14454_v60 = vcombine.high %v9156_v6, %v9164_v55  ;;  %v14453_v0 = vcombine.low %v9156_v6, %v9164_v55  ;;  %v14455_v1 = vcombine.low %v9157_v32, %v9165_v57  ;;  %v8767_v6 = vld [vmem:[%s17360_s1 + $0x1e8] sm:$0xff] }
 0x8fc   : > { %12105 = vmatpush1.bf16.msra.mxu0 %v14325_v44  ;;  %12187 = vmatpush1.bf16.msra.mxu1 %v14327_v38  ;;  %v14456_v44 = vcombine.high %v9157_v32, %v9165_v57  ;;  %v9172_v38 = vld [vmem:[%s17360_s1 + $0xe90] sm:$0xff] }
 0x8fd   : > { %12106 = vmatprep.subr.bf16.mxu0 %v14342_v61  ;;  %12188 = vmatprep.subr.bf16.mxu1 %v14344_v62  ;;  %v9180_v61 = vld [vmem:[%s17360_s1 + $0xed0] sm:$0xff]  ;;  %v9173_v62 = vld [vmem:[%s17360_s1 + $0xe98] sm:$0xff] }
 0x8fe   : > { %v14470_v3 = vcombine.high %v9172_v38, %v9180_v61  ;;  %v14469_v8 = vcombine.low %v9172_v38, %v9180_v61  ;;  %v14471_v11 = vcombine.low %v9173_v62, %v9181_v63  ;;  %v8783_v38 = vld [vmem:[%s17360_s1 + $0x268] sm:$0xff] }
 0x900   : > { %12107 = vmatpush1.bf16.msra.mxu0 %v14341_v21  ;;  %12189 = vmatpush1.bf16.msra.mxu1 %v14343_v4  ;;  %v14472_v21 = vcombine.high %v9173_v62, %v9181_v63  ;;  %v9188_v4 = vld [vmem:[%s17360_s1 + $0xf10] sm:$0xff] }
 0x901   : > { %12108 = vmatprep.subr.bf16.mxu0 %v14358_v5  ;;  %12190 = vmatprep.subr.bf16.mxu1 %v14360_v25  ;;  %v9196_v5 = vld [vmem:[%s17360_s1 + $0xf50] sm:$0xff]  ;;  %v9189_v25 = vld [vmem:[%s17360_s1 + $0xf18] sm:$0xff] }
 0x902   : > { %v14486_v45 = vcombine.high %v9188_v4, %v9196_v5  ;;  %v14485_v16 = vcombine.low %v9188_v4, %v9196_v5  ;;  %v14487_v17 = vcombine.low %v9189_v25, %v9197_v7  ;;  %v8799_v4 = vld [vmem:[%s17360_s1 + $0x2e8] sm:$0xff] }
 0x904   : > { %12109 = vmatpush1.bf16.msra.mxu0 %v14357_v49  ;;  %12191 = vmatpush1.bf16.msra.mxu1 %v14359_v12  ;;  %v14488_v49 = vcombine.high %v9189_v25, %v9197_v7  ;;  %v9204_v12 = vld [vmem:[%s17360_s1 + $0xf90] sm:$0xff] }
 0x905   : > { %12110 = vmatprep.subr.bf16.mxu0 %v14374_v13  ;;  %12192 = vmatprep.subr.bf16.mxu1 %v14376_v14  ;;  %v9212_v13 = vld [vmem:[%s17360_s1 + $0xfd0] sm:$0xff]  ;;  %v9205_v14 = vld [vmem:[%s17360_s1 + $0xf98] sm:$0xff] }
 0x906   : > { %v14502_v54 = vcombine.high %v9204_v12, %v9212_v13  ;;  %v14501_v24 = vcombine.low %v9204_v12, %v9212_v13  ;;  %v14503_v27 = vcombine.low %v9205_v14, %v9213_v15  ;;  %v8815_v12 = vld [vmem:[%s17360_s1 + $0x368] sm:$0xff] }
 0x908   : > { %12111 = vmatpush1.bf16.msra.mxu0 %v14373_v18  ;;  %12193 = vmatpush1.bf16.msra.mxu1 %v14375_v19  ;;  %v14504_v18 = vcombine.high %v9205_v14, %v9213_v15  ;;  %v8710_v19 = vld [vmem:[%s17360_s1 + $0x20] sm:$0xff] }
 0x909   : > { %12112 = vmatprep.subr.bf16.mxu0 %v14390_v20  ;;  %12194 = vmatprep.subr.bf16.mxu1 %v14392_v40  ;;  %v8718_v20 = vld [vmem:[%s17360_s1 + $0x60] sm:$0xff]  ;;  %v8711_v40 = vld [vmem:[%s17360_s1 + $0x28] sm:$0xff] }
 0x90a   : > { %v14010_v28 = vcombine.high %v8710_v19, %v8718_v20  ;;  %v14009_v39 = vcombine.low %v8710_v19, %v8718_v20  ;;  %v14011_v26 = vcombine.low %v8711_v40, %v8719_v22  ;;  %v8831_v19 = vld [vmem:[%s17360_s1 + $0x3e8] sm:$0xff] }
 0x90c   : > { %12113 = vmatpush1.bf16.msra.mxu0 %v14389_v23  ;;  %12195 = vmatpush1.bf16.msra.mxu1 %v14391_v30  ;;  %v14012_v23 = vcombine.high %v8711_v40, %v8719_v22  ;;  %v8726_v30 = vld [vmem:[%s17360_s1 + $0xa0] sm:$0xff] }
 0x90d   : > { %12114 = vmatprep.subr.bf16.mxu0 %v14406_v31  ;;  %12196 = vmatprep.subr.bf16.mxu1 %v14408_v33  ;;  %v8734_v31 = vld [vmem:[%s17360_s1 + $0xe0] sm:$0xff]  ;;  %v8727_v33 = vld [vmem:[%s17360_s1 + $0xa8] sm:$0xff] }
 0x90e   : > { %v14026_v34 = vcombine.high %v8726_v30, %v8734_v31  ;;  %v14025_v56 = vcombine.low %v8726_v30, %v8734_v31  ;;  %v14027_v47 = vcombine.low %v8727_v33, %v8735_v36  ;;  %v8847_v30 = vld [vmem:[%s17360_s1 + $0x468] sm:$0xff] }
 0x910   : > { %12115 = vmatpush1.bf16.msra.mxu0 %v14405_v35  ;;  %12197 = vmatpush1.bf16.msra.mxu1 %v14407_v9  ;;  %v14028_v35 = vcombine.high %v8727_v33, %v8735_v36  ;;  %v8742_v9 = vld [vmem:[%s17360_s1 + $0x120] sm:$0xff] }
 0x911   : > { %12116 = vmatprep.subr.bf16.mxu0 %v14422_v37  ;;  %12198 = vmatprep.subr.bf16.mxu1 %v14424_v29  ;;  %v8750_v37 = vld [vmem:[%s17360_s1 + $0x160] sm:$0xff]  ;;  %v8743_v29 = vld [vmem:[%s17360_s1 + $0x128] sm:$0xff] }
 0x912   : > { %v14042_v43 = vcombine.high %v8742_v9, %v8750_v37  ;;  %v14041_v55 = vcombine.low %v8742_v9, %v8750_v37  ;;  %v14043_v32 = vcombine.low %v8743_v29, %v8751_v46  ;;  %v8863_v9 = vld [vmem:[%s17360_s1 + $0x4e8] sm:$0xff] }
 0x914   : > { %12117 = vmatpush1.bf16.msra.mxu0 %v14421_v48  ;;  %12199 = vmatpush1.bf16.msra.mxu1 %v14423_v51  ;;  %v14044_v48 = vcombine.high %v8743_v29, %v8751_v46  ;;  %v8758_v51 = vld [vmem:[%s17360_s1 + $0x1a0] sm:$0xff] }
 0x915   : > { %12118 = vmatprep.subr.bf16.mxu0 %v14438_v52  ;;  %12200 = vmatprep.subr.bf16.mxu1 %v14440_v53  ;;  %v8766_v52 = vld [vmem:[%s17360_s1 + $0x1e0] sm:$0xff]  ;;  %v8759_v53 = vld [vmem:[%s17360_s1 + $0x1a8] sm:$0xff] }
 0x916   : > { %v14058_v57 = vcombine.high %v8758_v51, %v8766_v52  ;;  %v14057_v61 = vcombine.low %v8758_v51, %v8766_v52  ;;  %v14059_v62 = vcombine.low %v8759_v53, %v8767_v6  ;;  %v8879_v51 = vld [vmem:[%s17360_s1 + $0x568] sm:$0xff] }
 0x918   : > { %12119 = vmatpush1.bf16.msra.mxu0 %v14437_v58  ;;  %12201 = vmatpush1.bf16.msra.mxu1 %v14439_v41  ;;  %v14060_v58 = vcombine.high %v8759_v53, %v8767_v6  ;;  %v8774_v41 = vld [vmem:[%s17360_s1 + $0x220] sm:$0xff] }
 0x919   : > { %12120 = vmatprep.subr.bf16.mxu0 %v14454_v60  ;;  %12202 = vmatprep.subr.bf16.mxu1 %v14456_v44  ;;  %v8782_v60 = vld [vmem:[%s17360_s1 + $0x260] sm:$0xff]  ;;  %v8775_v44 = vld [vmem:[%s17360_s1 + $0x228] sm:$0xff] }
 0x91a   : > { %v14074_v63 = vcombine.high %v8774_v41, %v8782_v60  ;;  %v14073_v5 = vcombine.low %v8774_v41, %v8782_v60  ;;  %v14075_v25 = vcombine.low %v8775_v44, %v8783_v38  ;;  %v8895_v41 = vld [vmem:[%s17360_s1 + $0x5e8] sm:$0xff] }
 0x91c   : > { %12121 = vmatpush1.bf16.msra.mxu0 %v14453_v0  ;;  %12203 = vmatpush1.bf16.msra.mxu1 %v14455_v1  ;;  %v14076_v0 = vcombine.high %v8775_v44, %v8783_v38  ;;  %v8790_v1 = vld [vmem:[%s17360_s1 + $0x2a0] sm:$0xff] }
 0x91d   : > { %12122 = vmatprep.subr.bf16.mxu0 %v14470_v3  ;;  %12204 = vmatprep.subr.bf16.mxu1 %v14472_v21  ;;  %v8798_v3 = vld [vmem:[%s17360_s1 + $0x2e0] sm:$0xff]  ;;  %v8791_v21 = vld [vmem:[%s17360_s1 + $0x2a8] sm:$0xff] }
 0x91e   : > { %v14090_v7 = vcombine.high %v8790_v1, %v8798_v3  ;;  %v14089_v13 = vcombine.low %v8790_v1, %v8798_v3  ;;  %v14091_v14 = vcombine.low %v8791_v21, %v8799_v4  ;;  %v8911_v1 = vld [vmem:[%s17360_s1 + $0x668] sm:$0xff] }
 0x920   : > { %12123 = vmatpush1.bf16.msra.mxu0 %v14469_v8  ;;  %12205 = vmatpush1.bf16.msra.mxu1 %v14471_v11  ;;  %v14092_v8 = vcombine.high %v8791_v21, %v8799_v4  ;;  %v8806_v11 = vld [vmem:[%s17360_s1 + $0x320] sm:$0xff] }
 0x921   : > { %12124 = vmatprep.subr.bf16.mxu0 %v14486_v45  ;;  %12206 = vmatprep.subr.bf16.mxu1 %v14488_v49  ;;  %v8814_v45 = vld [vmem:[%s17360_s1 + $0x360] sm:$0xff]  ;;  %v8807_v49 = vld [vmem:[%s17360_s1 + $0x328] sm:$0xff] }
 0x922   : > { %v14106_v15 = vcombine.high %v8806_v11, %v8814_v45  ;;  %v14105_v20 = vcombine.low %v8806_v11, %v8814_v45  ;;  %v14107_v40 = vcombine.low %v8807_v49, %v8815_v12  ;;  %v8927_v11 = vld [vmem:[%s17360_s1 + $0x6e8] sm:$0xff] }
 0x924   : > { %12125 = vmatpush1.bf16.msra.mxu0 %v14485_v16  ;;  %12207 = vmatpush1.bf16.msra.mxu1 %v14487_v17  ;;  %v14108_v16 = vcombine.high %v8807_v49, %v8815_v12  ;;  %v8822_v17 = vld [vmem:[%s17360_s1 + $0x3a0] sm:$0xff] }
 0x925   : > { %12126 = vmatprep.subr.bf16.mxu0 %v14502_v54  ;;  %12208 = vmatprep.subr.bf16.mxu1 %v14504_v18  ;;  %v8830_v54 = vld [vmem:[%s17360_s1 + $0x3e0] sm:$0xff]  ;;  %v8823_v18 = vld [vmem:[%s17360_s1 + $0x3a8] sm:$0xff] }
 0x926   : > { %v14122_v22 = vcombine.high %v8822_v17, %v8830_v54  ;;  %v14121_v31 = vcombine.low %v8822_v17, %v8830_v54  ;;  %v14123_v33 = vcombine.low %v8823_v18, %v8831_v19  ;;  %v8943_v17 = vld [vmem:[%s17360_s1 + $0x768] sm:$0xff] }
 0x928   : > { %12127 = vmatpush1.bf16.msra.mxu0 %v14501_v24  ;;  %12209 = vmatpush1.bf16.msra.mxu1 %v14503_v27  ;;  %v14124_v24 = vcombine.high %v8823_v18, %v8831_v19  ;;  %v8838_v27 = vld [vmem:[%s17360_s1 + $0x420] sm:$0xff] }
 0x929   : > { %12219 = vmatprep.subr.bf16.mxu0 %v14010_v28  ;;  %12301 = vmatprep.subr.bf16.mxu1 %v14012_v23  ;;  %v8846_v28 = vld [vmem:[%s17360_s1 + $0x460] sm:$0xff]  ;;  %v8839_v23 = vld [vmem:[%s17360_s1 + $0x428] sm:$0xff] }
 0x92a   : > { %v14138_v36 = vcombine.high %v8838_v27, %v8846_v28  ;;  %v14137_v37 = vcombine.low %v8838_v27, %v8846_v28  ;;  %v14139_v29 = vcombine.low %v8839_v23, %v8847_v30  ;;  %v8959_v27 = vld [vmem:[%s17360_s1 + $0x7e8] sm:$0xff] }
 0x92b   : > { %12129 = vmatmul.mubr.bf16.vlgmr.msra.gmra.mrb[4].mxu0 %v17923_v42  ;;  %12211 = vmatmul.mubr.bf16.vlgmr.msra.gmra.mrb[4].mxu1 %v17923_v42 }
 0x92c   : > { %12220 = vmatpush1.bf16.msra.mxu0 %v14009_v39  ;;  %12302 = vmatpush1.bf16.msra.mxu1 %v14011_v26  ;;  %v14140_v39 = vcombine.high %v8839_v23, %v8847_v30  ;;  %v8854_v26 = vld [vmem:[%s17360_s1 + $0x4a0] sm:$0xff] }
 0x92d   : > { %12221 = vmatprep.subr.bf16.mxu0 %v14026_v34  ;;  %12303 = vmatprep.subr.bf16.mxu1 %v14028_v35  ;;  %v8862_v34 = vld [vmem:[%s17360_s1 + $0x4e0] sm:$0xff]  ;;  %v8855_v35 = vld [vmem:[%s17360_s1 + $0x4a8] sm:$0xff] }
 0x92e   : > { %12251 = vmatprep.mubr.bf16.mxu0 %v17803_v50  ;;  %12333 = vmatprep.mubr.bf16.mxu1 %v17803_v50  ;;  %v14154_v46 = vcombine.high %v8854_v26, %v8862_v34  ;;  %v14153_v52 = vcombine.low %v8854_v26, %v8862_v34  ;;  %v14155_v53 = vcombine.low %v8855_v35, %v8863_v9  ;;  %v8975_v26 = vld [vmem:[%s17360_s1 + $0x868] sm:$0xff] }
 0x930   : > { %12222 = vmatpush1.bf16.msra.mxu0 %v14025_v56  ;;  %12304 = vmatpush1.bf16.msra.mxu1 %v14027_v47  ;;  %v14156_v56 = vcombine.high %v8855_v35, %v8863_v9  ;;  %v8870_v47 = vld [vmem:[%s17360_s1 + $0x520] sm:$0xff] }
 0x931   : > { %12223 = vmatprep.subr.bf16.mxu0 %v14042_v43  ;;  %12305 = vmatprep.subr.bf16.mxu1 %v14044_v48  ;;  %v8878_v43 = vld [vmem:[%s17360_s1 + $0x560] sm:$0xff]  ;;  %v8871_v48 = vld [vmem:[%s17360_s1 + $0x528] sm:$0xff] }
 0x932   : > { %v14170_v6 = vcombine.high %v8870_v47, %v8878_v43  ;;  %v14169_v60 = vcombine.low %v8870_v47, %v8878_v43  ;;  %v14171_v44 = vcombine.low %v8871_v48, %v8879_v51  ;;  %v8991_v47 = vld [vmem:[%s17360_s1 + $0x8e8] sm:$0xff] }
 0x934   : > { %12224 = vmatpush1.bf16.msra.mxu0 %v14041_v55  ;;  %12306 = vmatpush1.bf16.msra.mxu1 %v14043_v32  ;;  %v14172_v55 = vcombine.high %v8871_v48, %v8879_v51  ;;  %v8886_v32 = vld [vmem:[%s17360_s1 + $0x5a0] sm:$0xff] }
 0x935   : > { %12225 = vmatprep.subr.bf16.mxu0 %v14058_v57  ;;  %12307 = vmatprep.subr.bf16.mxu1 %v14060_v58  ;;  %v8894_v57 = vld [vmem:[%s17360_s1 + $0x5e0] sm:$0xff]  ;;  %v8887_v58 = vld [vmem:[%s17360_s1 + $0x5a8] sm:$0xff] }
 0x936   : > { %v14186_v38 = vcombine.high %v8886_v32, %v8894_v57  ;;  %v14185_v3 = vcombine.low %v8886_v32, %v8894_v57  ;;  %v14187_v21 = vcombine.low %v8887_v58, %v8895_v41  ;;  %v9007_v32 = vld [vmem:[%s17360_s1 + $0x968] sm:$0xff] }
 0x938   : > { %12226 = vmatpush1.bf16.msra.mxu0 %v14057_v61  ;;  %12308 = vmatpush1.bf16.msra.mxu1 %v14059_v62  ;;  %v14188_v61 = vcombine.high %v8887_v58, %v8895_v41  ;;  %v8902_v62 = vld [vmem:[%s17360_s1 + $0x620] sm:$0xff] }
 0x939   : > { %12227 = vmatprep.subr.bf16.mxu0 %v14074_v63  ;;  %12309 = vmatprep.subr.bf16.mxu1 %v14076_v0  ;;  %v8910_v63 = vld [vmem:[%s17360_s1 + $0x660] sm:$0xff]  ;;  %v8903_v0 = vld [vmem:[%s17360_s1 + $0x628] sm:$0xff] }
 0x93a   : > { %v14202_v4 = vcombine.high %v8902_v62, %v8910_v63  ;;  %v14201_v45 = vcombine.low %v8902_v62, %v8910_v63  ;;  %v14203_v49 = vcombine.low %v8903_v0, %v8911_v1  ;;  %v9023_v62 = vld [vmem:[%s17360_s1 + $0x9e8] sm:$0xff] }
 0x93c   : > { %12228 = vmatpush1.bf16.msra.mxu0 %v14073_v5  ;;  %12310 = vmatpush1.bf16.msra.mxu1 %v14075_v25  ;;  %v14204_v5 = vcombine.high %v8903_v0, %v8911_v1  ;;  %v8918_v25 = vld [vmem:[%s17360_s1 + $0x6a0] sm:$0xff] }
 0x93d   : > { %12229 = vmatprep.subr.bf16.mxu0 %v14090_v7  ;;  %12311 = vmatprep.subr.bf16.mxu1 %v14092_v8  ;;  %v8926_v7 = vld [vmem:[%s17360_s1 + $0x6e0] sm:$0xff]  ;;  %v8919_v8 = vld [vmem:[%s17360_s1 + $0x6a8] sm:$0xff] }
 0x93e   : > { %v14218_v12 = vcombine.high %v8918_v25, %v8926_v7  ;;  %v14217_v54 = vcombine.low %v8918_v25, %v8926_v7  ;;  %v14219_v18 = vcombine.low %v8919_v8, %v8927_v11  ;;  %v9039_v25 = vld [vmem:[%s17360_s1 + $0xa68] sm:$0xff] }
 0x940   : > { %12230 = vmatpush1.bf16.msra.mxu0 %v14089_v13  ;;  %12312 = vmatpush1.bf16.msra.mxu1 %v14091_v14  ;;  %v14220_v13 = vcombine.high %v8919_v8, %v8927_v11  ;;  %v8934_v14 = vld [vmem:[%s17360_s1 + $0x720] sm:$0xff] }
 0x941   : > { %12231 = vmatprep.subr.bf16.mxu0 %v14106_v15  ;;  %12313 = vmatprep.subr.bf16.mxu1 %v14108_v16  ;;  %v8942_v15 = vld [vmem:[%s17360_s1 + $0x760] sm:$0xff]  ;;  %v8935_v16 = vld [vmem:[%s17360_s1 + $0x728] sm:$0xff] }
 0x942   : > { %v14234_v19 = vcombine.high %v8934_v14, %v8942_v15  ;;  %v14233_v28 = vcombine.low %v8934_v14, %v8942_v15  ;;  %v14235_v23 = vcombine.low %v8935_v16, %v8943_v17  ;;  %v9047_v14 = vld [vmem:[%s17360_s1 + $0xaa8] sm:$0xff] }
 0x943   : > { %v9055_v15 = vld [vmem:[%s17360_s1 + $0xae8] sm:$0xff] }
 0x944   : > { %12232 = vmatpush1.bf16.msra.mxu0 %v14105_v20  ;;  %12314 = vmatpush1.bf16.msra.mxu1 %v14107_v40  ;;  %v14236_v20 = vcombine.high %v8935_v16, %v8943_v17  ;;  %v8950_v40 = vld [vmem:[%s17360_s1 + $0x7a0] sm:$0xff] }
 0x945   : > { %12233 = vmatprep.subr.bf16.mxu0 %v14122_v22  ;;  %12315 = vmatprep.subr.bf16.mxu1 %v14124_v24  ;;  %v8958_v22 = vld [vmem:[%s17360_s1 + $0x7e0] sm:$0xff]  ;;  %v8951_v24 = vld [vmem:[%s17360_s1 + $0x7a8] sm:$0xff] }
 0x946   : > { %v14250_v30 = vcombine.high %v8950_v40, %v8958_v22  ;;  %v14249_v34 = vcombine.low %v8950_v40, %v8958_v22  ;;  %v14251_v35 = vcombine.low %v8951_v24, %v8959_v27  ;;  %v18153_v17 = vld [vmem:[%s17368_s12] sm:$0xff]  ;;  %v14348_v22 = vcombine.high %v9047_v14, %v9055_v15 }
 0x948   : > { %12234 = vmatpush1.bf16.msra.mxu0 %v14121_v31  ;;  %12316 = vmatpush1.bf16.msra.mxu1 %v14123_v33  ;;  %v14252_v31 = vcombine.high %v8951_v24, %v8959_v27  ;;  %v8966_v33 = vld [vmem:[%s17360_s1 + $0x820] sm:$0xff] }
 0x949   : > { %12235 = vmatprep.subr.bf16.mxu0 %v14138_v36  ;;  %12317 = vmatprep.subr.bf16.mxu1 %v14140_v39  ;;  %v8974_v36 = vld [vmem:[%s17360_s1 + $0x860] sm:$0xff]  ;;  %v8967_v39 = vld [vmem:[%s17360_s1 + $0x828] sm:$0xff] }
 0x94a   : > { %v14266_v9 = vcombine.high %v8966_v33, %v8974_v36  ;;  %v14265_v43 = vcombine.low %v8966_v33, %v8974_v36  ;;  %v14267_v48 = vcombine.low %v8967_v39, %v8975_v26  ;;  %v9062_v24 = vld [vmem:[%s17360_s1 + $0xb20] sm:$0xff] }
 0x94b   : > { %v9070_v27 = vld [vmem:[%s17360_s1 + $0xb60] sm:$0xff] }
 0x94c   : > { %12236 = vmatpush1.bf16.msra.mxu0 %v14137_v37  ;;  %12318 = vmatpush1.bf16.msra.mxu1 %v14139_v29  ;;  %v14268_v37 = vcombine.high %v8967_v39, %v8975_v26  ;;  %v8982_v29 = vld [vmem:[%s17360_s1 + $0x8a0] sm:$0xff]  ;;  %v14347_v26 = vcombine.low %v9047_v14, %v9055_v15 }
 0x94d   : > { %12237 = vmatprep.subr.bf16.mxu0 %v14154_v46  ;;  %12319 = vmatprep.subr.bf16.mxu1 %v14156_v56  ;;  %v8990_v46 = vld [vmem:[%s17360_s1 + $0x8e0] sm:$0xff]  ;;  %v8983_v56 = vld [vmem:[%s17360_s1 + $0x8a8] sm:$0xff] }
 0x94e   : > { %v14282_v51 = vcombine.high %v8982_v29, %v8990_v46  ;;  %v14281_v57 = vcombine.low %v8982_v29, %v8990_v46  ;;  %v14283_v58 = vcombine.low %v8983_v56, %v8991_v47  ;;  %v9086_v29 = vld [vmem:[%s17360_s1 + $0xbe0] sm:$0xff] }
 0x950   : > { %12238 = vmatpush1.bf16.msra.mxu0 %v14153_v52  ;;  %12320 = vmatpush1.bf16.msra.mxu1 %v14155_v53  ;;  %v14284_v52 = vcombine.high %v8983_v56, %v8991_v47  ;;  %v8998_v53 = vld [vmem:[%s17360_s1 + $0x920] sm:$0xff] }
 0x951   : > { %12239 = vmatprep.subr.bf16.mxu0 %v14170_v6  ;;  %12321 = vmatprep.subr.bf16.mxu1 %v14172_v55  ;;  %v9006_v6 = vld [vmem:[%s17360_s1 + $0x960] sm:$0xff]  ;;  %v8999_v55 = vld [vmem:[%s17360_s1 + $0x928] sm:$0xff] }
 0x952   : > { %v14298_v41 = vcombine.high %v8998_v53, %v9006_v6  ;;  %v14297_v63 = vcombine.low %v8998_v53, %v9006_v6  ;;  %v14299_v0 = vcombine.low %v8999_v55, %v9007_v32 }
 0x954   : > { %12240 = vmatpush1.bf16.msra.mxu0 %v14169_v60  ;;  %12322 = vmatpush1.bf16.msra.mxu1 %v14171_v44  ;;  %v14300_v60 = vcombine.high %v8999_v55, %v9007_v32  ;;  %v9014_v44 = vld [vmem:[%s17360_s1 + $0x9a0] sm:$0xff]  ;;  %v14361_v55 = vcombine.low %v9062_v24, %v9070_v27 }
 0x955   : > { %12241 = vmatprep.subr.bf16.mxu0 %v14186_v38  ;;  %12323 = vmatprep.subr.bf16.mxu1 %v14188_v61  ;;  %v9022_v38 = vld [vmem:[%s17360_s1 + $0x9e0] sm:$0xff]  ;;  %v9015_v61 = vld [vmem:[%s17360_s1 + $0x9a8] sm:$0xff] }
 0x956   : > { %v14314_v1 = vcombine.high %v9014_v44, %v9022_v38  ;;  %v14313_v7 = vcombine.low %v9014_v44, %v9022_v38  ;;  %v14315_v8 = vcombine.low %v9015_v61, %v9023_v62  ;;  %v9094_v38 = vld [vmem:[%s17360_s1 + $0xc20] sm:$0xff] }
 0x958   : > { %12242 = vmatpush1.bf16.msra.mxu0 %v14185_v3  ;;  %12324 = vmatpush1.bf16.msra.mxu1 %v14187_v21  ;;  %v14316_v3 = vcombine.high %v9015_v61, %v9023_v62  ;;  %v9030_v21 = vld [vmem:[%s17360_s1 + $0xa20] sm:$0xff] }
 0x959   : > { %12243 = vmatprep.subr.bf16.mxu0 %v14202_v4  ;;  %12325 = vmatprep.subr.bf16.mxu1 %v14204_v5  ;;  %v9038_v4 = vld [vmem:[%s17360_s1 + $0xa60] sm:$0xff]  ;;  %v9031_v5 = vld [vmem:[%s17360_s1 + $0xa28] sm:$0xff] }
 0x95a   : > { %v14330_v11 = vcombine.high %v9030_v21, %v9038_v4  ;;  %v14329_v16 = vcombine.low %v9030_v21, %v9038_v4  ;;  %v9095_v21 = vld [vmem:[%s17360_s1 + $0xc28] sm:$0xff] }
 0x95b   : > { %v9103_v4 = vld [vmem:[%s17360_s1 + $0xc68] sm:$0xff] }
 0x95c   : > { %12244 = vmatpush1.bf16.msra.mxu0 %v14201_v45  ;;  %12326 = vmatpush1.bf16.msra.mxu1 %v14203_v49  ;;  %v14332_v45 = vcombine.high %v9031_v5, %v9039_v25  ;;  %v9046_v49 = vld [vmem:[%s17360_s1 + $0xaa0] sm:$0xff]  ;;  %v14395_v15 = vcombine.low %v9095_v21, %v9103_v4 }
 0x95d   : > { %12245 = vmatprep.subr.bf16.mxu0 %v14218_v12  ;;  %12327 = vmatprep.subr.bf16.mxu1 %v14220_v13  ;;  %v9054_v12 = vld [vmem:[%s17360_s1 + $0xae0] sm:$0xff]  ;;  %v9224_v13 = vsub.s32 0, %v17785_v10 }
 0x95e   : > { %v14346_v40 = vcombine.high %v9046_v49, %v9054_v12  ;;  %v14345_v36 = vcombine.low %v9046_v49, %v9054_v12  ;;  %v9111_v49 = vld [vmem:[%s17360_s1 + $0xca8] sm:$0xff] }
 0x95f   : > { %v9119_v12 = vld [vmem:[%s17360_s1 + $0xce8] sm:$0xff] }
 0x960   : > { %12246 = vmatpush1.bf16.msra.mxu0 %v14217_v54  ;;  %12328 = vmatpush1.bf16.msra.mxu1 %v14219_v18  ;;  %v9232_v54 = vsub.s32 2, %v17785_v10  ;;  %v9228_v18 = vsub.s32 1, %v17785_v10 }
 0x961   : > { %12247 = vmatprep.subr.bf16.mxu0 %v14234_v19  ;;  %12329 = vmatprep.subr.bf16.mxu1 %v14236_v20  ;;  %v14331_v19 = vcombine.low %v9031_v5, %v9039_v25  ;;  %v9236_v20 = vsub.s32 3, %v17785_v10 }
 0x962   : > { %v9229_v33 = vrot.slane %v18153_v17, %v9228_v18 }
 0x963   : > { %v9237_v39 = vrot.slane %v18153_v17, %v9236_v20 }
 0x964   : > { %12248 = vmatpush1.bf16.msra.mxu0 %v14233_v28  ;;  %12330 = vmatpush1.bf16.msra.mxu1 %v14235_v23  ;;  %v9225_v28 = vrot.slane %v18153_v17, %v9224_v13  ;;  %v9063_v23 = vld [vmem:[%s17360_s1 + $0xb28] sm:$0xff] }
 0x965   : > { %12249 = vmatprep.subr.bf16.mxu0 %v14250_v30  ;;  %12331 = vmatprep.subr.bf16.mxu1 %v14252_v31  ;;  %v9071_v30 = vld [vmem:[%s17360_s1 + $0xb68] sm:$0xff]  ;;  %v9233_v31 = vrot.slane %v18153_v17, %v9232_v54 }
 0x968   : > { %12250 = vmatpush1.bf16.msra.mxu0 %v14249_v34  ;;  %12332 = vmatpush1.bf16.msra.mxu1 %v14251_v35  ;;  %v14362_v34 = vcombine.high %v9062_v24, %v9070_v27  ;;  %v9127_v24 = vld [vmem:[%s17360_s1 + $0xd28] sm:$0xff] }
 0x969   : > { %12260 = vmatprep.subr.bf16.mxu0 %v14266_v9  ;;  %12342 = vmatprep.subr.bf16.mxu1 %v14268_v37  ;;  %v14364_v9 = vcombine.high %v9063_v23, %v9071_v30  ;;  %v9078_v37 = vld [vmem:[%s17360_s1 + $0xba0] sm:$0xff]  ;;  %v9135_v27 = vld [vmem:[%s17360_s1 + $0xd68] sm:$0xff] }
 0x96a   : > { %v14378_v44 = vcombine.high %v9078_v37, %v9086_v29  ;;  %v14377_v5 = vcombine.low %v9078_v37, %v9086_v29  ;;  %v9143_v37 = vld [vmem:[%s17360_s1 + $0xda8] sm:$0xff] }
 0x96b   : > { %12252 = vmatmul.mubr.bf16.vlgmr.msra.gmra.mrb[8].mxu0 %v17847_v2  ;;  %12334 = vmatmul.mubr.bf16.vlgmr.msra.gmra.mrb[8].mxu1 %v17847_v2  ;;  %v9151_v29 = vld [vmem:[%s17360_s1 + $0xde8] sm:$0xff] }
 0x96c   : > { %12261 = vmatpush1.bf16.msra.mxu0 %v14265_v43  ;;  %12343 = vmatpush1.bf16.msra.mxu1 %v14267_v48  ;;  %v9079_v43 = vld [vmem:[%s17360_s1 + $0xba8] sm:$0xff] }
 0x96d   : > { %12262 = vmatprep.subr.bf16.mxu0 %v14282_v51  ;;  %12344 = vmatprep.subr.bf16.mxu1 %v14284_v52  ;;  %v9087_v48 = vld [vmem:[%s17360_s1 + $0xbe8] sm:$0xff] }
 0x96e   : > { %12292 = vmatprep.mubr.bf16.mxu0 %v17855_v59  ;;  %12374 = vmatprep.mubr.bf16.mxu1 %v17855_v59  ;;  %v14379_v25 = vcombine.low %v9079_v43, %v9087_v48 }
 0x970   : > { %12263 = vmatpush1.bf16.msra.mxu0 %v14281_v57  ;;  %12345 = vmatpush1.bf16.msra.mxu1 %v14283_v58 }
 0x971   : > { %12264 = vmatprep.subr.bf16.mxu0 %v14298_v41  ;;  %12346 = vmatprep.subr.bf16.mxu1 %v14300_v60  ;;  %v14363_v60 = vcombine.low %v9063_v23, %v9071_v30  ;;  %v14411_v30 = vcombine.low %v9111_v49, %v9119_v12 }
 0x974   : > { %12265 = vmatpush1.bf16.msra.mxu0 %v14297_v63  ;;  %12347 = vmatpush1.bf16.msra.mxu1 %v14299_v0  ;;  %v14380_v0 = vcombine.high %v9079_v43, %v9087_v48  ;;  %v14427_v48 = vcombine.low %v9127_v24, %v9135_v27 }
 0x975   : > { %12266 = vmatprep.subr.bf16.mxu0 %v14314_v1  ;;  %12348 = vmatprep.subr.bf16.mxu1 %v14316_v3  ;;  %v9102_v1 = vld [vmem:[%s17360_s1 + $0xc60] sm:$0xff] }
 0x976   : > { %v14393_v14 = vcombine.low %v9094_v38, %v9102_v1 }
 0x978   : > { %12267 = vmatpush1.bf16.msra.mxu0 %v14313_v7  ;;  %12349 = vmatpush1.bf16.msra.mxu1 %v14315_v8  ;;  %v14394_v7 = vcombine.high %v9094_v38, %v9102_v1  ;;  %v14396_v8 = vcombine.high %v9095_v21, %v9103_v4 }
 0x979   : > { %12268 = vmatprep.subr.bf16.mxu0 %v14330_v11  ;;  %12350 = vmatprep.subr.bf16.mxu1 %v14332_v45  ;;  %v9110_v11 = vld [vmem:[%s17360_s1 + $0xca0] sm:$0xff] }
 0x97a   : > { %v9118_v45 = vld [vmem:[%s17360_s1 + $0xce0] sm:$0xff] }
 0x97c   : > { %12269 = vmatpush1.bf16.msra.mxu0 %v14329_v16  ;;  %12351 = vmatpush1.bf16.msra.mxu1 %v14331_v19  ;;  %v14410_v16 = vcombine.high %v9110_v11, %v9118_v45  ;;  %v14412_v19 = vcombine.high %v9111_v49, %v9119_v12  ;;  %v9199_v49 = vld [vmem:[%s17360_s1 + $0xf68] sm:$0xff] }
 0x97d   : > { %12270 = vmatprep.subr.bf16.mxu0 %v14346_v40  ;;  %12352 = vmatprep.subr.bf16.mxu1 %v14348_v22  ;;  %v9126_v40 = vld [vmem:[%s17360_s1 + $0xd20] sm:$0xff] }
 0x97e   : > { %v11966_v35 = vpop.f32.mrb[0].mxu0  ;;  %v12048_v56 = vpop.f32.mrb[0].mxu1  ;;  %v9134_v22 = vld [vmem:[%s17360_s1 + $0xd60] sm:$0xff] }
 0x97f   : > { %v14799_v46 = vadd.f32 %v11966_v35, %v9225_v28  ;;  %v11968_v47 = vpop.f32.mrb[1].mxu0  ;;  %v14801_v51 = vadd.f32 %v12048_v56, %v9233_v31  ;;  %v12050_v53 = vpop.f32.mrb[1].mxu1  ;;  %v14409_v28 = vcombine.low %v9110_v11, %v9118_v45  ;;  %v14426_v31 = vcombine.high %v9126_v40, %v9134_v22  ;;  %v9191_v45 = vld [vmem:[%s17360_s1 + $0xf28] sm:$0xff] }
 0x980   : > { %v14800_v52 = vadd.f32 %v11968_v47, %v9229_v33  ;;  %v11970_v6 = vpop.f32.mrb[2].mxu0  ;;  %12271 = vmatpush1.bf16.msra.mxu0 %v14345_v36  ;;  %v14802_v57 = vadd.f32 %v12050_v53, %v9237_v39  ;;  %v12052_v58 = vpop.f32.mrb[2].mxu1  ;;  %12353 = vmatpush1.bf16.msra.mxu1 %v14347_v26  ;;  %v14428_v39 = vcombine.high %v9127_v24, %v9135_v27  ;;  %v9142_v26 = vld [vmem:[%s17360_s1 + $0xda0] sm:$0xff] }
 0x981   : > { %v14513_v32 = vmul.f32 -1.442695, %v14799_v46  ;;  %v11971_v41 = vpop.f32.mrb[3].mxu0  ;;  %12272 = vmatprep.subr.bf16.mxu0 %v14362_v34  ;;  %v14515_v61 = vmul.f32 -1.442695, %v14801_v51  ;;  %v12053_v63 = vpop.f32.mrb[3].mxu1  ;;  %12354 = vmatprep.subr.bf16.mxu1 %v14364_v9  ;;  %v14425_v47 = vcombine.low %v9126_v40, %v9134_v22  ;;  %v14492_v27 = vcombine.high %v9191_v45, %v9199_v49 }
 0x982   : > { %v14514_v62 = vmul.f32 -1.442695, %v14800_v52  ;;  %v14516_v3 = vmul.f32 -1.442695, %v14802_v57  ;;  %v9150_v34 = vld [vmem:[%s17360_s1 + $0xde0] sm:$0xff]  ;;  %v14444_v52 = vcombine.high %v9143_v37, %v9151_v29  ;;  %v9175_v63 = vld [vmem:[%s17360_s1 + $0xea8] sm:$0xff] }
 0x983   : > { %16531 = vpow2.f32 %v14513_v32  ;;  %v14442_v51 = vcombine.high %v9142_v26, %v9150_v34  ;;  %v9158_v53 = vld [vmem:[%s17360_s1 + $0xe20] sm:$0xff]  ;;  %v9167_v32 = vld [vmem:[%s17360_s1 + $0xe68] sm:$0xff]  ;;  %v16981_v57 = vmov 1983009808   ;;  %v14441_v41 = vcombine.low %v9142_v26, %v9150_v34 }
 0x984   : > { %16533 = vpow2.f32 %v14515_v61  ;;  %12273 = vmatpush1.bf16.msra.mxu0 %v14361_v55  ;;  %12355 = vmatpush1.bf16.msra.mxu1 %v14363_v60  ;;  %v9166_v6 = vld [vmem:[%s17360_s1 + $0xe60] sm:$0xff]  ;;  %v9159_v55 = vld [vmem:[%s17360_s1 + $0xe28] sm:$0xff]  ;;  %v12662_v58 = vunpack.c.l.s4 %v16981_v57  ;;  %v14443_v60 = vcombine.low %v9143_v37, %v9151_v29  ;;  %v14491_v26 = vcombine.low %v9191_v45, %v9199_v49  ;;  %v8720_v37 = vld [vmem:[%s17360_s1 + $0x70] sm:$0xff] }
 0x985   : > { %16535 = vpow2.f32 %v14514_v62  ;;  %12274 = vmatprep.subr.bf16.mxu0 %v14378_v44  ;;  %12356 = vmatprep.subr.bf16.mxu1 %v14380_v0  ;;  %v14458_v44 = vcombine.high %v9158_v53, %v9166_v6  ;;  %v14460_v38 = vcombine.high %v9159_v55, %v9167_v32  ;;  %v9174_v61 = vld [vmem:[%s17360_s1 + $0xea0] sm:$0xff]  ;;  %v9183_v0 = vld [vmem:[%s17360_s1 + $0xee8] sm:$0xff]  ;;  %v14459_v21 = vcombine.low %v9159_v55, %v9167_v32  ;;  %v8737_v55 = vld [vmem:[%s17360_s1 + $0xf8] sm:$0xff] }
 0x986   : > { %16537 = vpow2.f32 %v14516_v3  ;;  %v9182_v62 = vld [vmem:[%s17360_s1 + $0xee0] sm:$0xff]  ;;  %v12663_v1 = vunpack.c.0.s8 %v12662_v58  ;;  %v14457_v3 = vcombine.low %v9158_v53, %v9166_v6  ;;  %v14475_v40 = vcombine.low %v9175_v63, %v9183_v0  ;;  %v8736_v53 = vld [vmem:[%s17360_s1 + $0xf0] sm:$0xff]  ;;  %v8729_v6 = vld [vmem:[%s17360_s1 + $0xb8] sm:$0xff] }
 0x987   : > { %v14474_v4 = vcombine.high %v9174_v61, %v9182_v62  ;;  %v8776_v45 = vld [vmem:[%s17360_s1 + $0x230] sm:$0xff] }
 0x988   : > { %12275 = vmatpush1.bf16.msra.mxu0 %v14377_v5  ;;  %12357 = vmatpush1.bf16.msra.mxu1 %v14379_v25  ;;  %v14476_v25 = vcombine.high %v9175_v63, %v9183_v0  ;;  %v18207_v12 = vsub.s32 %v12663_v1, %v17785_v10  ;;  %v14031_v63 = vcombine.low %v8729_v6, %v8737_v55  ;;  %v8784_v49 = vld [vmem:[%s17360_s1 + $0x270] sm:$0xff] }
 0x989   : > { %12276 = vmatprep.subr.bf16.mxu0 %v14394_v7  ;;  %12358 = vmatprep.subr.bf16.mxu1 %v14396_v8  ;;  %v9190_v7 = vld [vmem:[%s17360_s1 + $0xf20] sm:$0xff] }
 0x98a   : > { %v9198_v8 = vld [vmem:[%s17360_s1 + $0xf60] sm:$0xff] }
 0x98b   : > { %v14490_v22 = vcombine.high %v9190_v7, %v9198_v8 }
 0x98c   : > { %12277 = vmatpush1.bf16.msra.mxu0 %v14393_v14  ;;  %12359 = vmatpush1.bf16.msra.mxu1 %v14395_v15  ;;  %v14473_v15 = vcombine.low %v9174_v61, %v9182_v62  ;;  %v8753_v61 = vld [vmem:[%s17360_s1 + $0x178] sm:$0xff] }
 0x98d   : > { %v16532_v23 = vpop.eup %16531  ;;  %12278 = vmatprep.subr.bf16.mxu0 %v14410_v16  ;;  %12360 = vmatprep.subr.bf16.mxu1 %v14412_v19 }
 0x98e   : > { %v16534_v33 = vpop.eup %16533  ;;  %v12595_v36 = vadd.f32 1.0, %v16532_v23  ;;  %v9214_v23 = vld [vmem:[%s17360_s1 + $0xfe0] sm:$0xff] }
 0x98f   : > { %v16536_v35 = vpop.eup %16535  ;;  %v12597_v9 = vadd.f32 1.0, %v16534_v33 }
 0x990   : > { %v16538_v46 = vpop.eup %16537  ;;  %16539 = vrcp.f32 %v12595_v36  ;;  %v12596_v56 = vadd.f32 1.0, %v16536_v35  ;;  %12279 = vmatpush1.bf16.msra.mxu0 %v14409_v28  ;;  %12361 = vmatpush1.bf16.msra.mxu1 %v14411_v30  ;;  %v9206_v28 = vld [vmem:[%s17360_s1 + $0xfa0] sm:$0xff]  ;;  %v9207_v30 = vld [vmem:[%s17360_s1 + $0xfa8] sm:$0xff]  ;;  %v14489_v36 = vcombine.low %v9190_v7, %v9198_v8 }
 0x991   : > { %16541 = vrcp.f32 %v12597_v9  ;;  %v12598_v43 = vadd.f32 1.0, %v16538_v46  ;;  %12280 = vmatprep.subr.bf16.mxu0 %v14426_v31  ;;  %12362 = vmatprep.subr.bf16.mxu1 %v14428_v39  ;;  %v9215_v31 = vld [vmem:[%s17360_s1 + $0xfe8] sm:$0xff]  ;;  %v14506_v34 = vcombine.high %v9206_v28, %v9214_v23  ;;  %v8712_v9 = vld [vmem:[%s17360_s1 + $0x30] sm:$0xff]  ;;  %v8713_v46 = vld [vmem:[%s17360_s1 + $0x38] sm:$0xff] }
 0x992   : > { %16543 = vrcp.f32 %v12596_v56  ;;  %v14508_v35 = vcombine.high %v9207_v30, %v9215_v31  ;;  %v8721_v56 = vld [vmem:[%s17360_s1 + $0x78] sm:$0xff]  ;;  %v14013_v32 = vcombine.low %v8712_v9, %v8720_v37 }
 0x993   : > { %16545 = vrcp.f32 %v12598_v43  ;;  %v14507_v43 = vcombine.low %v9207_v30, %v9215_v31  ;;  %v14015_v57 = vcombine.low %v8713_v46, %v8721_v56 }
 0x994   : > { %12281 = vmatpush1.bf16.msra.mxu0 %v14425_v47  ;;  %12363 = vmatpush1.bf16.msra.mxu1 %v14427_v48  ;;  %v14505_v47 = vcombine.low %v9206_v28, %v9214_v23  ;;  %v14014_v48 = vcombine.high %v8712_v9, %v8720_v37  ;;  %v8801_v28 = vld [vmem:[%s17360_s1 + $0x2f8] sm:$0xff]  ;;  %v14077_v23 = vcombine.low %v8776_v45, %v8784_v49 }
 0x995   : > { %12282 = vmatprep.subr.bf16.mxu0 %v14442_v51  ;;  %12364 = vmatprep.subr.bf16.mxu1 %v14444_v52  ;;  %v14016_v51 = vcombine.high %v8713_v46, %v8721_v56  ;;  %v8728_v52 = vld [vmem:[%s17360_s1 + $0xb0] sm:$0xff] }
 0x996   : > { %v14030_v58 = vcombine.high %v8728_v52, %v8736_v53  ;;  %v14029_v62 = vcombine.low %v8728_v52, %v8736_v53  ;;  %v8824_v46 = vld [vmem:[%s17360_s1 + $0x3b0] sm:$0xff] }
 0x997   : > { %v8832_v56 = vld [vmem:[%s17360_s1 + $0x3f0] sm:$0xff] }
 0x998   : > { %12283 = vmatpush1.bf16.msra.mxu0 %v14441_v41  ;;  %12365 = vmatpush1.bf16.msra.mxu1 %v14443_v60  ;;  %v14032_v41 = vcombine.high %v8729_v6, %v8737_v55  ;;  %v8744_v60 = vld [vmem:[%s17360_s1 + $0x130] sm:$0xff]  ;;  %v14126_v52 = vcombine.high %v8824_v46, %v8832_v56 }
 0x999   : > { %12284 = vmatprep.subr.bf16.mxu0 %v14458_v44  ;;  %12366 = vmatprep.subr.bf16.mxu1 %v14460_v38  ;;  %v8752_v44 = vld [vmem:[%s17360_s1 + $0x170] sm:$0xff]  ;;  %v8745_v38 = vld [vmem:[%s17360_s1 + $0x138] sm:$0xff] }
 0x99a   : > { %v16540_v5 = vpop.eup %16539  ;;  %v14046_v0 = vcombine.high %v8744_v60, %v8752_v44  ;;  %v14048_v1 = vcombine.high %v8745_v38, %v8753_v61  ;;  %v14047_v7 = vcombine.low %v8745_v38, %v8753_v61  ;;  %v8840_v6 = vld [vmem:[%s17360_s1 + $0x430] sm:$0xff] }
 0x99b   : > { %v16542_v11 = vpop.eup %16541  ;;  %v8848_v55 = vld [vmem:[%s17360_s1 + $0x470] sm:$0xff] }
 0x99c   : > { %v16544_v14 = vpop.eup %16543  ;;  %12285 = vmatpush1.bf16.msra.mxu0 %v14457_v3  ;;  %12367 = vmatpush1.bf16.msra.mxu1 %v14459_v21  ;;  %v8760_v3 = vld [vmem:[%s17360_s1 + $0x1b0] sm:$0xff] }
 0x99d   : > { %v16546_v16 = vpop.eup %16545  ;;  %v12659_v19 = vcombine.low %v16540_v5, %v16544_v14  ;;  %12286 = vmatprep.subr.bf16.mxu0 %v14474_v4  ;;  %12368 = vmatprep.subr.bf16.mxu1 %v14476_v25  ;;  %v8768_v21 = vld [vmem:[%s17360_s1 + $0x1f0] sm:$0xff]  ;;  %v8761_v4 = vld [vmem:[%s17360_s1 + $0x1b8] sm:$0xff]  ;;  %v14045_v25 = vcombine.low %v8744_v60, %v8752_v44  ;;  %v14142_v60 = vcombine.high %v8840_v6, %v8848_v55 }
 0x99e   : > { %v12660_v24 = vcombine.low %v16542_v11, %v16546_v16  ;;  %v8769_v5 = vld [vmem:[%s17360_s1 + $0x1f8] sm:$0xff]  ;;  %v14062_v8 = vcombine.high %v8760_v3, %v8768_v21  ;;  %v14061_v16 = vcombine.low %v8760_v3, %v8768_v21  ;;  %v8856_v38 = vld [vmem:[%s17360_s1 + $0x4b0] sm:$0xff] }
 0x99f   : > { %v12667_v33 = vrot.slane %v12659_v19, %v18207_v12  ;;  %v14064_v11 = vcombine.high %v8761_v4, %v8769_v5  ;;  %v8777_v14 = vld [vmem:[%s17360_s1 + $0x238] sm:$0xff]  ;;  %v14078_v19 = vcombine.high %v8776_v45, %v8784_v49  ;;  %v8864_v61 = vld [vmem:[%s17360_s1 + $0x4f0] sm:$0xff] }
 0x9a0   : > { %12287 = vmatpush1.bf16.msra.mxu0 %v14473_v15  ;;  %v12674_v39 = vrot.slane %v12660_v24, %v18207_v12  ;;  %12369 = vmatpush1.bf16.msra.mxu1 %v14475_v40  ;;  %v8785_v15 = vld [vmem:[%s17360_s1 + $0x278] sm:$0xff]  ;;  %v8800_v24 = vld [vmem:[%s17360_s1 + $0x2f0] sm:$0xff]  ;;  %v14158_v3 = vcombine.high %v8856_v38, %v8864_v61 }
 0x9a1   : > { %12288 = vmatprep.subr.bf16.mxu0 %v14490_v22  ;;  %12370 = vmatprep.subr.bf16.mxu1 %v14492_v27  ;;  %v14080_v40 = vcombine.high %v8777_v14, %v8785_v15  ;;  %v8792_v22 = vld [vmem:[%s17360_s1 + $0x2b0] sm:$0xff]  ;;  %v8793_v27 = vld [vmem:[%s17360_s1 + $0x2b8] sm:$0xff]  ;;  %v14079_v30 = vcombine.low %v8777_v14, %v8785_v15 }
 0x9a2   : > { %v12675_v29 = vcombine.low %v12667_v33, %v12674_v39  ;;  %v14094_v31 = vcombine.high %v8792_v22, %v8800_v24  ;;  %v14096_v33 = vcombine.high %v8793_v27, %v8801_v28  ;;  %v8816_v39 = vld [vmem:[%s17360_s1 + $0x370] sm:$0xff]  ;;  %v14095_v9 = vcombine.low %v8793_v27, %v8801_v28 }
 0x9a3   : > { %v8888_v14 = vld [vmem:[%s17360_s1 + $0x5b0] sm:$0xff] }
 0x9a4   : > { %12289 = vmatpush1.bf16.msra.mxu0 %v14489_v36  ;;  %12731 = vst [vmem:[%s17370_s25] sm:$0xff] %v12675_v29  ;;  %12371 = vmatpush1.bf16.msra.mxu1 %v14491_v26  ;;  %v8808_v36 = vld [vmem:[%s17360_s1 + $0x330] sm:$0xff]  ;;  %v8809_v26 = vld [vmem:[%s17360_s1 + $0x338] sm:$0xff] }
 0x9a5   : > { %12290 = vmatprep.subr.bf16.mxu0 %v14506_v34  ;;  %12372 = vmatprep.subr.bf16.mxu1 %v14508_v35  ;;  %v8817_v34 = vld [vmem:[%s17360_s1 + $0x378] sm:$0xff]  ;;  %v14093_v35 = vcombine.low %v8792_v22, %v8800_v24  ;;  %v14110_v37 = vcombine.high %v8808_v36, %v8816_v39  ;;  %v8896_v15 = vld [vmem:[%s17360_s1 + $0x5f0] sm:$0xff] }
 0x9a6   : > { %v14112_v29 = vcombine.high %v8809_v26, %v8817_v34  ;;  %v14190_v22 = vcombine.high %v8888_v14, %v8896_v15  ;;  %v8904_v27 = vld [vmem:[%s17360_s1 + $0x630] sm:$0xff] }
 0x9a7   : > { %v8912_v28 = vld [vmem:[%s17360_s1 + $0x670] sm:$0xff] }
 0x9a8   : > { %12291 = vmatpush1.bf16.msra.mxu0 %v14505_v47  ;;  %12373 = vmatpush1.bf16.msra.mxu1 %v14507_v43  ;;  %v8825_v47 = vld [vmem:[%s17360_s1 + $0x3b8] sm:$0xff] }
 0x9a9   : > { %12383 = vmatprep.subr.bf16.mxu0 %v14014_v48  ;;  %12465 = vmatprep.subr.bf16.mxu1 %v14016_v51  ;;  %v8833_v43 = vld [vmem:[%s17360_s1 + $0x3f8] sm:$0xff]  ;;  %v14109_v48 = vcombine.low %v8808_v36, %v8816_v39  ;;  %v14111_v51 = vcombine.low %v8809_v26, %v8817_v34  ;;  %v14206_v36 = vcombine.high %v8904_v27, %v8912_v28  ;;  %v8920_v26 = vld [vmem:[%s17360_s1 + $0x6b0] sm:$0xff] }
 0x9aa   : > { %v14128_v53 = vcombine.high %v8825_v47, %v8833_v43  ;;  %v8928_v34 = vld [vmem:[%s17360_s1 + $0x6f0] sm:$0xff] }
 0x9ab   : > { %12293 = vmatmul.mubr.bf16.vlgmr.msra.gmra.mrb[8].mxu0 %v17923_v42  ;;  %12375 = vmatmul.mubr.bf16.vlgmr.msra.gmra.mrb[8].mxu1 %v17923_v42 }
 0x9ac   : > { %12384 = vmatpush1.bf16.msra.mxu0 %v14013_v32  ;;  %12466 = vmatpush1.bf16.msra.mxu1 %v14015_v57  ;;  %v8841_v32 = vld [vmem:[%s17360_s1 + $0x438] sm:$0xff] }
 0x9ad   : > { %12385 = vmatprep.subr.bf16.mxu0 %v14030_v58  ;;  %12467 = vmatprep.subr.bf16.mxu1 %v14032_v41  ;;  %v8849_v57 = vld [vmem:[%s17360_s1 + $0x478] sm:$0xff]  ;;  %v14125_v58 = vcombine.low %v8824_v46, %v8832_v56  ;;  %v14127_v41 = vcombine.low %v8825_v47, %v8833_v43  ;;  %v14222_v46 = vcombine.high %v8920_v26, %v8928_v34  ;;  %v8936_v47 = vld [vmem:[%s17360_s1 + $0x730] sm:$0xff] }
 0x9ae   : > { %12415 = vmatprep.mubr.bf16.mxu0 %v17803_v50  ;;  %12497 = vmatprep.mubr.bf16.mxu1 %v17803_v50  ;;  %v14063_v50 = vcombine.low %v8761_v4, %v8769_v5  ;;  %v14144_v44 = vcombine.high %v8841_v32, %v8849_v57  ;;  %v8872_v4 = vld [vmem:[%s17360_s1 + $0x530] sm:$0xff] }
 0x9af   : > { %v8880_v5 = vld [vmem:[%s17360_s1 + $0x570] sm:$0xff] }
 0x9b0   : > { %12386 = vmatpush1.bf16.msra.mxu0 %v14029_v62  ;;  %12468 = vmatpush1.bf16.msra.mxu1 %v14031_v63  ;;  %v8857_v62 = vld [vmem:[%s17360_s1 + $0x4b8] sm:$0xff]  ;;  %v14174_v45 = vcombine.high %v8872_v4, %v8880_v5  ;;  %v8944_v43 = vld [vmem:[%s17360_s1 + $0x770] sm:$0xff] }
 0x9b1   : > { %12387 = vmatprep.subr.bf16.mxu0 %v14046_v0  ;;  %12469 = vmatprep.subr.bf16.mxu1 %v14048_v1  ;;  %v8865_v63 = vld [vmem:[%s17360_s1 + $0x4f8] sm:$0xff]  ;;  %v14141_v0 = vcombine.low %v8840_v6, %v8848_v55  ;;  %v14143_v1 = vcombine.low %v8841_v32, %v8849_v57  ;;  %v14238_v6 = vcombine.high %v8936_v47, %v8944_v43  ;;  %v8952_v32 = vld [vmem:[%s17360_s1 + $0x7b0] sm:$0xff] }
 0x9b2   : > { %v14160_v21 = vcombine.high %v8857_v62, %v8865_v63  ;;  %v8960_v57 = vld [vmem:[%s17360_s1 + $0x7f0] sm:$0xff] }
 0x9b4   : > { %12388 = vmatpush1.bf16.msra.mxu0 %v14045_v25  ;;  %12470 = vmatpush1.bf16.msra.mxu1 %v14047_v7  ;;  %v8873_v25 = vld [vmem:[%s17360_s1 + $0x538] sm:$0xff] }
 0x9b5   : > { %12389 = vmatprep.subr.bf16.mxu0 %v14062_v8  ;;  %12471 = vmatprep.subr.bf16.mxu1 %v14064_v11  ;;  %v8881_v7 = vld [vmem:[%s17360_s1 + $0x578] sm:$0xff]  ;;  %v14157_v8 = vcombine.low %v8856_v38, %v8864_v61  ;;  %v14159_v11 = vcombine.low %v8857_v62, %v8865_v63  ;;  %v14254_v38 = vcombine.high %v8952_v32, %v8960_v57  ;;  %v8968_v62 = vld [vmem:[%s17360_s1 + $0x830] sm:$0xff] }
 0x9b6   : > { %v14176_v49 = vcombine.high %v8873_v25, %v8881_v7  ;;  %v8976_v63 = vld [vmem:[%s17360_s1 + $0x870] sm:$0xff] }
 0x9b8   : > { %12390 = vmatpush1.bf16.msra.mxu0 %v14061_v16  ;;  %12472 = vmatpush1.bf16.msra.mxu1 %v14063_v50  ;;  %v8889_v16 = vld [vmem:[%s17360_s1 + $0x5b8] sm:$0xff] }
 0x9b9   : > { %12391 = vmatprep.subr.bf16.mxu0 %v14078_v19  ;;  %12473 = vmatprep.subr.bf16.mxu1 %v14080_v40  ;;  %v8897_v50 = vld [vmem:[%s17360_s1 + $0x5f8] sm:$0xff]  ;;  %v14173_v19 = vcombine.low %v8872_v4, %v8880_v5  ;;  %v14175_v40 = vcombine.low %v8873_v25, %v8881_v7  ;;  %v14270_v4 = vcombine.high %v8968_v62, %v8976_v63  ;;  %v8984_v25 = vld [vmem:[%s17360_s1 + $0x8b0] sm:$0xff] }
 0x9ba   : > { %v14192_v24 = vcombine.high %v8889_v16, %v8897_v50  ;;  %v8992_v7 = vld [vmem:[%s17360_s1 + $0x8f0] sm:$0xff] }
 0x9bc   : > { %12392 = vmatpush1.bf16.msra.mxu0 %v14077_v23  ;;  %12474 = vmatpush1.bf16.msra.mxu1 %v14079_v30  ;;  %v8905_v23 = vld [vmem:[%s17360_s1 + $0x638] sm:$0xff] }
 0x9bd   : > { %12393 = vmatprep.subr.bf16.mxu0 %v14094_v31  ;;  %12475 = vmatprep.subr.bf16.mxu1 %v14096_v33  ;;  %v8913_v30 = vld [vmem:[%s17360_s1 + $0x678] sm:$0xff]  ;;  %v14189_v31 = vcombine.low %v8888_v14, %v8896_v15  ;;  %v14191_v33 = vcombine.low %v8889_v16, %v8897_v50  ;;  %v14286_v14 = vcombine.high %v8984_v25, %v8992_v7  ;;  %v9000_v16 = vld [vmem:[%s17360_s1 + $0x930] sm:$0xff] }
 0x9be   : > { %v14208_v39 = vcombine.high %v8905_v23, %v8913_v30  ;;  %v9008_v50 = vld [vmem:[%s17360_s1 + $0x970] sm:$0xff] }
 0x9c0   : > { %12394 = vmatpush1.bf16.msra.mxu0 %v14093_v35  ;;  %12476 = vmatpush1.bf16.msra.mxu1 %v14095_v9  ;;  %v8921_v35 = vld [vmem:[%s17360_s1 + $0x6b8] sm:$0xff] }
 0x9c1   : > { %12395 = vmatprep.subr.bf16.mxu0 %v14110_v37  ;;  %12477 = vmatprep.subr.bf16.mxu1 %v14112_v29  ;;  %v8929_v9 = vld [vmem:[%s17360_s1 + $0x6f8] sm:$0xff]  ;;  %v14205_v37 = vcombine.low %v8904_v27, %v8912_v28  ;;  %v14207_v29 = vcombine.low %v8905_v23, %v8913_v30  ;;  %v14302_v27 = vcombine.high %v9000_v16, %v9008_v50  ;;  %v9016_v23 = vld [vmem:[%s17360_s1 + $0x9b0] sm:$0xff] }
 0x9c2   : > { %v14224_v56 = vcombine.high %v8921_v35, %v8929_v9  ;;  %v9024_v30 = vld [vmem:[%s17360_s1 + $0x9f0] sm:$0xff] }
 0x9c4   : > { %12396 = vmatpush1.bf16.msra.mxu0 %v14109_v48  ;;  %12478 = vmatpush1.bf16.msra.mxu1 %v14111_v51  ;;  %v8937_v48 = vld [vmem:[%s17360_s1 + $0x738] sm:$0xff] }
 0x9c5   : > { %12397 = vmatprep.subr.bf16.mxu0 %v14126_v52  ;;  %12479 = vmatprep.subr.bf16.mxu1 %v14128_v53  ;;  %v8945_v51 = vld [vmem:[%s17360_s1 + $0x778] sm:$0xff]  ;;  %v14221_v52 = vcombine.low %v8920_v26, %v8928_v34  ;;  %v14223_v53 = vcombine.low %v8921_v35, %v8929_v9  ;;  %v9032_v34 = vld [vmem:[%s17360_s1 + $0xa30] sm:$0xff] }
 0x9c6   : > { %v14240_v55 = vcombine.high %v8937_v48, %v8945_v51  ;;  %v9040_v35 = vld [vmem:[%s17360_s1 + $0xa70] sm:$0xff]  ;;  %v9033_v9 = vld [vmem:[%s17360_s1 + $0xa38] sm:$0xff] }
 0x9c8   : > { %12398 = vmatpush1.bf16.msra.mxu0 %v14125_v58  ;;  %12480 = vmatpush1.bf16.msra.mxu1 %v14127_v41  ;;  %v8953_v58 = vld [vmem:[%s17360_s1 + $0x7b8] sm:$0xff] }
 0x9c9   : > { %12399 = vmatprep.subr.bf16.mxu0 %v14142_v60  ;;  %12481 = vmatprep.subr.bf16.mxu1 %v14144_v44  ;;  %v8961_v41 = vld [vmem:[%s17360_s1 + $0x7f8] sm:$0xff]  ;;  %v14237_v60 = vcombine.low %v8936_v47, %v8944_v43  ;;  %v14239_v44 = vcombine.low %v8937_v48, %v8945_v51  ;;  %v9048_v47 = vld [vmem:[%s17360_s1 + $0xab0] sm:$0xff]  ;;  %v9240_v48 = vsub.s32 4, %v17785_v10 }
 0x9ca   : > { %v14256_v61 = vcombine.high %v8953_v58, %v8961_v41  ;;  %v9056_v43 = vld [vmem:[%s17360_s1 + $0xaf0] sm:$0xff]  ;;  %v9049_v51 = vld [vmem:[%s17360_s1 + $0xab8] sm:$0xff] }
 0x9cc   : > { %12400 = vmatpush1.bf16.msra.mxu0 %v14141_v0  ;;  %12482 = vmatpush1.bf16.msra.mxu1 %v14143_v1  ;;  %v8969_v0 = vld [vmem:[%s17360_s1 + $0x838] sm:$0xff] }
 0x9cd   : > { %12401 = vmatprep.subr.bf16.mxu0 %v14158_v3  ;;  %12483 = vmatprep.subr.bf16.mxu1 %v14160_v21  ;;  %v8977_v1 = vld [vmem:[%s17360_s1 + $0x878] sm:$0xff]  ;;  %v14253_v3 = vcombine.low %v8952_v32, %v8960_v57  ;;  %v14255_v21 = vcombine.low %v8953_v58, %v8961_v41  ;;  %v9252_v57 = vsub.s32 7, %v17785_v10  ;;  %v14350_v58 = vcombine.high %v9048_v47, %v9056_v43 }
 0x9ce   : > { %v14272_v5 = vcombine.high %v8969_v0, %v8977_v1 }
 0x9d0   : > { %12402 = vmatpush1.bf16.msra.mxu0 %v14157_v8  ;;  %12484 = vmatpush1.bf16.msra.mxu1 %v14159_v11  ;;  %v8985_v8 = vld [vmem:[%s17360_s1 + $0x8b8] sm:$0xff] }
 0x9d1   : > { %12403 = vmatprep.subr.bf16.mxu0 %v14174_v45  ;;  %12485 = vmatprep.subr.bf16.mxu1 %v14176_v49  ;;  %v8993_v11 = vld [vmem:[%s17360_s1 + $0x8f8] sm:$0xff]  ;;  %v14269_v45 = vcombine.low %v8968_v62, %v8976_v63  ;;  %v14271_v49 = vcombine.low %v8969_v0, %v8977_v1  ;;  %v14349_v1 = vcombine.low %v9048_v47, %v9056_v43  ;;  %v9120_v47 = vld [vmem:[%s17360_s1 + $0xcf0] sm:$0xff] }
 0x9d2   : > { %v14288_v15 = vcombine.high %v8985_v8, %v8993_v11  ;;  %v9073_v62 = vld [vmem:[%s17360_s1 + $0xb78] sm:$0xff] }
 0x9d3   : > { %v9113_v43 = vld [vmem:[%s17360_s1 + $0xcb8] sm:$0xff] }
 0x9d4   : > { %12404 = vmatpush1.bf16.msra.mxu0 %v14173_v19  ;;  %12486 = vmatpush1.bf16.msra.mxu1 %v14175_v40  ;;  %v9001_v19 = vld [vmem:[%s17360_s1 + $0x938] sm:$0xff] }
 0x9d5   : > { %12405 = vmatprep.subr.bf16.mxu0 %v14190_v22  ;;  %12487 = vmatprep.subr.bf16.mxu1 %v14192_v24  ;;  %v9009_v40 = vld [vmem:[%s17360_s1 + $0x978] sm:$0xff]  ;;  %v14285_v22 = vcombine.low %v8984_v25, %v8992_v7  ;;  %v14287_v24 = vcombine.low %v8985_v8, %v8993_v11  ;;  %v9080_v7 = vld [vmem:[%s17360_s1 + $0xbb0] sm:$0xff] }
 0x9d6   : > { %v14304_v28 = vcombine.high %v9001_v19, %v9009_v40  ;;  %v9088_v8 = vld [vmem:[%s17360_s1 + $0xbf0] sm:$0xff] }
 0x9d8   : > { %12406 = vmatpush1.bf16.msra.mxu0 %v14189_v31  ;;  %12488 = vmatpush1.bf16.msra.mxu1 %v14191_v33  ;;  %v9017_v31 = vld [vmem:[%s17360_s1 + $0x9b8] sm:$0xff] }
 0x9d9   : > { %12407 = vmatprep.subr.bf16.mxu0 %v14206_v36  ;;  %12489 = vmatprep.subr.bf16.mxu1 %v14208_v39  ;;  %v9025_v33 = vld [vmem:[%s17360_s1 + $0x9f8] sm:$0xff]  ;;  %v14303_v36 = vcombine.low %v9001_v19, %v9009_v40  ;;  %v14318_v39 = vcombine.high %v9016_v23, %v9024_v30 }
 0x9da   : > { %v14320_v26 = vcombine.high %v9017_v31, %v9025_v33 }
 0x9dc   : > { %12408 = vmatpush1.bf16.msra.mxu0 %v14205_v37  ;;  %12490 = vmatpush1.bf16.msra.mxu1 %v14207_v29  ;;  %v9041_v37 = vld [vmem:[%s17360_s1 + $0xa78] sm:$0xff]  ;;  %v14317_v29 = vcombine.low %v9016_v23, %v9024_v30  ;;  %v14382_v30 = vcombine.high %v9080_v7, %v9088_v8 }
 0x9dd   : > { %12409 = vmatprep.subr.bf16.mxu0 %v14222_v46  ;;  %12491 = vmatprep.subr.bf16.mxu1 %v14224_v56  ;;  %v14334_v46 = vcombine.high %v9032_v34, %v9040_v35  ;;  %v14336_v56 = vcombine.high %v9033_v9, %v9041_v37  ;;  %v14335_v32 = vcombine.low %v9033_v9, %v9041_v37  ;;  %v9105_v9 = vld [vmem:[%s17360_s1 + $0xc78] sm:$0xff] }
 0x9de   : > { %v14381_v37 = vcombine.low %v9080_v7, %v9088_v8  ;;  %v9145_v8 = vld [vmem:[%s17360_s1 + $0xdb8] sm:$0xff] }
 0x9e0   : > { %12410 = vmatpush1.bf16.msra.mxu0 %v14221_v52  ;;  %12492 = vmatpush1.bf16.msra.mxu1 %v14223_v53  ;;  %v9057_v52 = vld [vmem:[%s17360_s1 + $0xaf8] sm:$0xff]  ;;  %v14333_v53 = vcombine.low %v9032_v34, %v9040_v35 }
 0x9e1   : > { %12411 = vmatprep.subr.bf16.mxu0 %v14238_v6  ;;  %12493 = vmatprep.subr.bf16.mxu1 %v14240_v55  ;;  %v9248_v6 = vsub.s32 6, %v17785_v10  ;;  %v9244_v55 = vsub.s32 5, %v17785_v10  ;;  %v14352_v41 = vcombine.high %v9049_v51, %v9057_v52  ;;  %v9097_v35 = vld [vmem:[%s17360_s1 + $0xc38] sm:$0xff] }
 0x9e3   : > { %v9249_v63 = vrot.slane %v18153_v17, %v9248_v6  ;;  %v9245_v0 = vrot.slane %v18153_v17, %v9244_v55 }
 0x9e4   : > { %12412 = vmatpush1.bf16.msra.mxu0 %v14237_v60  ;;  %12494 = vmatpush1.bf16.msra.mxu1 %v14239_v44  ;;  %v9064_v60 = vld [vmem:[%s17360_s1 + $0xb30] sm:$0xff] }
 0x9e5   : > { %12413 = vmatprep.subr.bf16.mxu0 %v14254_v38  ;;  %12495 = vmatprep.subr.bf16.mxu1 %v14256_v61  ;;  %v9072_v44 = vld [vmem:[%s17360_s1 + $0xb70] sm:$0xff]  ;;  %v9241_v38 = vrot.slane %v18153_v17, %v9240_v48  ;;  %v9065_v61 = vld [vmem:[%s17360_s1 + $0xb38] sm:$0xff] }
 0x9e6   : > { %v14368_v25 = vcombine.high %v9065_v61, %v9073_v62  ;;  %v14367_v23 = vcombine.low %v9065_v61, %v9073_v62 }
 0x9e8   : > { %12414 = vmatpush1.bf16.msra.mxu0 %v14253_v3  ;;  %12496 = vmatpush1.bf16.msra.mxu1 %v14255_v21  ;;  %v9253_v3 = vrot.slane %v18153_v17, %v9252_v57  ;;  %v14351_v21 = vcombine.low %v9049_v51, %v9057_v52  ;;  %v14365_v17 = vcombine.low %v9064_v60, %v9072_v44  ;;  %v9121_v51 = vld [vmem:[%s17360_s1 + $0xcf8] sm:$0xff] }
 0x9e9   : > { %12424 = vmatprep.subr.bf16.mxu0 %v14270_v4  ;;  %12506 = vmatprep.subr.bf16.mxu1 %v14272_v5  ;;  %v14366_v4 = vcombine.high %v9064_v60, %v9072_v44  ;;  %v9136_v60 = vld [vmem:[%s17360_s1 + $0xd70] sm:$0xff]  ;;  %v9129_v44 = vld [vmem:[%s17360_s1 + $0xd38] sm:$0xff] }
 0x9eb   : > { %12416 = vmatmul.mubr.bf16.vlgmr.msra.gmra.mrb[12].mxu0 %v17847_v2  ;;  %12498 = vmatmul.mubr.bf16.vlgmr.msra.gmra.mrb[12].mxu1 %v17847_v2  ;;  %v14301_v2 = vcombine.low %v9000_v16, %v9008_v50 }
 0x9ec   : > { %12425 = vmatpush1.bf16.msra.mxu0 %v14269_v45  ;;  %12507 = vmatpush1.bf16.msra.mxu1 %v14271_v49 }
 0x9ed   : > { %12426 = vmatprep.subr.bf16.mxu0 %v14286_v14  ;;  %12508 = vmatprep.subr.bf16.mxu1 %v14288_v15  ;;  %v9081_v14 = vld [vmem:[%s17360_s1 + $0xbb8] sm:$0xff] }
 0x9ee   : > { %12456 = vmatprep.mubr.bf16.mxu0 %v17855_v59  ;;  %12538 = vmatprep.mubr.bf16.mxu1 %v17855_v59  ;;  %v14319_v59 = vcombine.low %v9017_v31, %v9025_v33  ;;  %v9089_v15 = vld [vmem:[%s17360_s1 + $0xbf8] sm:$0xff]  ;;  %v9096_v31 = vld [vmem:[%s17360_s1 + $0xc30] sm:$0xff] }
 0x9f0   : > { %12427 = vmatpush1.bf16.msra.mxu0 %v14285_v22  ;;  %12509 = vmatpush1.bf16.msra.mxu1 %v14287_v24 }
 0x9f1   : > { %12428 = vmatprep.subr.bf16.mxu0 %v14302_v27  ;;  %12510 = vmatprep.subr.bf16.mxu1 %v14304_v28 }
 0x9f4   : > { %12429 = vmatpush1.bf16.msra.mxu0 %v14301_v2  ;;  %12511 = vmatpush1.bf16.msra.mxu1 %v14303_v36 }
 0x9f5   : > { %12430 = vmatprep.subr.bf16.mxu0 %v14318_v39  ;;  %12512 = vmatprep.subr.bf16.mxu1 %v14320_v26  ;;  %v14384_v39 = vcombine.high %v9081_v14, %v9089_v15  ;;  %v9104_v26 = vld [vmem:[%s17360_s1 + $0xc70] sm:$0xff] }
 0x9f6   : > { %v14397_v52 = vcombine.low %v9096_v31, %v9104_v26 }
 0x9f8   : > { %12431 = vmatpush1.bf16.msra.mxu0 %v14317_v29  ;;  %12513 = vmatpush1.bf16.msra.mxu1 %v14319_v59  ;;  %v14383_v29 = vcombine.low %v9081_v14, %v9089_v15  ;;  %v14398_v59 = vcombine.high %v9096_v31, %v9104_v26  ;;  %v9176_v31 = vld [vmem:[%s17360_s1 + $0xeb0] sm:$0xff] }
 0x9f9   : > { %12432 = vmatprep.subr.bf16.mxu0 %v14334_v46  ;;  %12514 = vmatprep.subr.bf16.mxu1 %v14336_v56  ;;  %v14400_v46 = vcombine.high %v9097_v35, %v9105_v9  ;;  %v9112_v56 = vld [vmem:[%s17360_s1 + $0xcb0] sm:$0xff] }
 0x9fa   : > { %v14413_v61 = vcombine.low %v9112_v56, %v9120_v47 }
 0x9fc   : > { %12433 = vmatpush1.bf16.msra.mxu0 %v14333_v53  ;;  %12515 = vmatpush1.bf16.msra.mxu1 %v14335_v32  ;;  %v14399_v53 = vcombine.low %v9097_v35, %v9105_v9  ;;  %v14414_v32 = vcombine.high %v9112_v56, %v9120_v47  ;;  %v9201_v56 = vld [vmem:[%s17360_s1 + $0xf78] sm:$0xff] }
 0x9fd   : > { %12434 = vmatprep.subr.bf16.mxu0 %v14350_v58  ;;  %12516 = vmatprep.subr.bf16.mxu1 %v14352_v41  ;;  %v14416_v58 = vcombine.high %v9113_v43, %v9121_v51  ;;  %v9128_v41 = vld [vmem:[%s17360_s1 + $0xd30] sm:$0xff] }
 0x9fe   : > { %v12130_v5 = vpop.f32.mrb[4].mxu0  ;;  %v12212_v45 = vpop.f32.mrb[4].mxu1  ;;  %v14429_v14 = vcombine.low %v9128_v41, %v9136_v60 }
 0x9ff   : > { %v14803_v11 = vadd.f32 %v12130_v5, %v9241_v38  ;;  %v12132_v49 = vpop.f32.mrb[5].mxu0  ;;  %v14805_v16 = vadd.f32 %v12212_v45, %v9249_v63  ;;  %v12214_v19 = vpop.f32.mrb[5].mxu1  ;;  %v9137_v38 = vld [vmem:[%s17360_s1 + $0xd78] sm:$0xff]  ;;  %v14415_v63 = vcombine.low %v9113_v43, %v9121_v51  ;;  %v9152_v5 = vld [vmem:[%s17360_s1 + $0xdf0] sm:$0xff] }
 0xa00   : > { %v14804_v50 = vadd.f32 %v12132_v49, %v9245_v0  ;;  %v12134_v40 = vpop.f32.mrb[6].mxu0  ;;  %12435 = vmatpush1.bf16.msra.mxu0 %v14349_v1  ;;  %v14806_v24 = vadd.f32 %v12214_v19, %v9253_v3  ;;  %v12216_v27 = vpop.f32.mrb[6].mxu1  ;;  %12517 = vmatpush1.bf16.msra.mxu1 %v14351_v21  ;;  %v14430_v0 = vcombine.high %v9128_v41, %v9136_v60  ;;  %v9208_v60 = vld [vmem:[%s17360_s1 + $0xfb0] sm:$0xff] }
 0xa01   : > { %v14517_v22 = vmul.f32 -1.442695, %v14803_v11  ;;  %v12135_v28 = vpop.f32.mrb[7].mxu0  ;;  %12436 = vmatprep.subr.bf16.mxu0 %v14366_v4  ;;  %v14519_v33 = vmul.f32 -1.442695, %v14805_v16  ;;  %v12217_v36 = vpop.f32.mrb[7].mxu1  ;;  %12518 = vmatprep.subr.bf16.mxu1 %v14368_v25  ;;  %v14432_v21 = vcombine.high %v9129_v44, %v9137_v38  ;;  %v14431_v16 = vcombine.low %v9129_v44, %v9137_v38 }
 0xa02   : > { %v14518_v2 = vmul.f32 -1.442695, %v14804_v50  ;;  %v14520_v34 = vmul.f32 -1.442695, %v14806_v24  ;;  %v9144_v4 = vld [vmem:[%s17360_s1 + $0xdb0] sm:$0xff]  ;;  %v9153_v11 = vld [vmem:[%s17360_s1 + $0xdf8] sm:$0xff] }
 0xa03   : > { %16547 = vpow2.f32 %v14517_v22  ;;  %v14446_v50 = vcombine.high %v9144_v4, %v9152_v5  ;;  %v14448_v19 = vcombine.high %v9145_v8, %v9153_v11  ;;  %v9160_v40 = vld [vmem:[%s17360_s1 + $0xe30] sm:$0xff]  ;;  %v9161_v22 = vld [vmem:[%s17360_s1 + $0xe38] sm:$0xff]  ;;  %v14445_v27 = vcombine.low %v9144_v4, %v9152_v5 }
 0xa04   : > { %16549 = vpow2.f32 %v14519_v33  ;;  %12437 = vmatpush1.bf16.msra.mxu0 %v14365_v17  ;;  %12519 = vmatpush1.bf16.msra.mxu1 %v14367_v23  ;;  %v9168_v17 = vld [vmem:[%s17360_s1 + $0xe70] sm:$0xff]  ;;  %v9169_v24 = vld [vmem:[%s17360_s1 + $0xe78] sm:$0xff]  ;;  %v14447_v28 = vcombine.low %v9145_v8, %v9153_v11 }
 0xa05   : > { %16551 = vpow2.f32 %v14518_v2  ;;  %12438 = vmatprep.subr.bf16.mxu0 %v14382_v30  ;;  %12520 = vmatprep.subr.bf16.mxu1 %v14384_v39  ;;  %v14462_v23 = vcombine.high %v9160_v40, %v9168_v17  ;;  %v14464_v30 = vcombine.high %v9161_v22, %v9169_v24  ;;  %v9184_v33 = vld [vmem:[%s17360_s1 + $0xef0] sm:$0xff]  ;;  %v9177_v2 = vld [vmem:[%s17360_s1 + $0xeb8] sm:$0xff]  ;;  %v14461_v39 = vcombine.low %v9160_v40, %v9168_v17 }
 0xa06   : > { %16553 = vpow2.f32 %v14520_v34  ;;  %v9185_v36 = vld [vmem:[%s17360_s1 + $0xef8] sm:$0xff]  ;;  %v14463_v26 = vcombine.low %v9161_v22, %v9169_v24  ;;  %v14478_v34 = vcombine.high %v9176_v31, %v9184_v33  ;;  %v14477_v43 = vcombine.low %v9176_v31, %v9184_v33  ;;  %v9216_v44 = vld [vmem:[%s17360_s1 + $0xff0] sm:$0xff] }
 0xa07   : > { %v14480_v9 = vcombine.high %v9177_v2, %v9185_v36  ;;  %v9209_v38 = vld [vmem:[%s17360_s1 + $0xfb8] sm:$0xff]  ;;  %v14509_v5 = vcombine.low %v9208_v60, %v9216_v44 }
 0xa08   : > { %12439 = vmatpush1.bf16.msra.mxu0 %v14381_v37  ;;  %12521 = vmatpush1.bf16.msra.mxu1 %v14383_v29  ;;  %v9192_v37 = vld [vmem:[%s17360_s1 + $0xf30] sm:$0xff] }
 0xa09   : > { %12440 = vmatprep.subr.bf16.mxu0 %v14398_v59  ;;  %12522 = vmatprep.subr.bf16.mxu1 %v14400_v46  ;;  %v9200_v29 = vld [vmem:[%s17360_s1 + $0xf70] sm:$0xff]  ;;  %v9193_v46 = vld [vmem:[%s17360_s1 + $0xf38] sm:$0xff] }
 0xa0a   : > { %v14496_v41 = vcombine.high %v9193_v46, %v9201_v56 }
 0xa0c   : > { %12441 = vmatpush1.bf16.msra.mxu0 %v14397_v52  ;;  %12523 = vmatpush1.bf16.msra.mxu1 %v14399_v53  ;;  %v14479_v53 = vcombine.low %v9177_v2, %v9185_v36 }
 0xa0d   : > { %v16548_v62 = vpop.eup %16547  ;;  %12442 = vmatprep.subr.bf16.mxu0 %v14414_v32  ;;  %12524 = vmatprep.subr.bf16.mxu1 %v14416_v58  ;;  %v14494_v32 = vcombine.high %v9192_v37, %v9200_v29 }
 0xa0e   : > { %v16550_v1 = vpop.eup %16549  ;;  %v12599_v3 = vadd.f32 1.0, %v16548_v62 }
 0xa0f   : > { %v16552_v25 = vpop.eup %16551  ;;  %v12601_v7 = vadd.f32 1.0, %v16550_v1  ;;  %v14495_v1 = vcombine.low %v9193_v46, %v9201_v56 }
 0xa10   : > { %v16554_v45 = vpop.eup %16553  ;;  %16555 = vrcp.f32 %v12599_v3  ;;  %v12600_v49 = vadd.f32 1.0, %v16552_v25  ;;  %12443 = vmatpush1.bf16.msra.mxu0 %v14413_v61  ;;  %12525 = vmatpush1.bf16.msra.mxu1 %v14415_v63  ;;  %v9217_v61 = vld [vmem:[%s17360_s1 + $0xff8] sm:$0xff]  ;;  %v14493_v63 = vcombine.low %v9192_v37, %v9200_v29  ;;  %v14510_v3 = vcombine.high %v9208_v60, %v9216_v44  ;;  %s16982_s1 = smov [#allocation17]  }
 0xa11   : > { %16557 = vrcp.f32 %v12601_v7  ;;  %v12602_v15 = vadd.f32 1.0, %v16554_v45  ;;  %12444 = vmatprep.subr.bf16.mxu0 %v14430_v0  ;;  %12526 = vmatprep.subr.bf16.mxu1 %v14432_v21  ;;  %v14512_v21 = vcombine.high %v9209_v38, %v9217_v61  ;;  %v14511_v25 = vcombine.low %v9209_v38, %v9217_v61  ;;  %v18374_v7 = vld [vmem:[%s17368_s12 + $0x8] sm:$0xff]  ;;  %s12761_s12 = sshll.u32 %s16982_s1, 4  ;;  %s12762_s12 = int_to_ptr.vmem [resolvable:$true] %s12761_s12 }
 0xa12   : > { %16559 = vrcp.f32 %v12600_v49  ;;  %v9257_v8 = vrot.slane %v18374_v7, %v9224_v13  ;;  %v9265_v11 = vrot.slane %v18374_v7, %v9232_v54  ;;  %v9261_v45 = vrot.slane %v18374_v7, %v9228_v18  ;;  %s16823_s15 = scalar_lea.vmem %s12762_s12, 32  ;;  %p16830_p11 = scmp.lt.s32.totalorder %s12762_s12, %s12762_s12 }
 0xa13   : > { %16561 = vrcp.f32 %v12602_v15  ;;  %v9269_v49 = vrot.slane %v18374_v7, %v9236_v20  ;;  %p16824_p3 = scmp.ne.s32.totalorder %s12762_s12, %s16823_s15  ;;  %p16831_p0 = scmp.lt.s32.totalorder %s16823_s15, %s16823_s15 }
 0xa14   : > { %12445 = vmatpush1.bf16.msra.mxu0 %v14429_v14  ;;  %12527 = vmatpush1.bf16.msra.mxu1 %v14431_v16 }
 0xa15   : > { %12446 = vmatprep.subr.bf16.mxu0 %v14446_v50  ;;  %12528 = vmatprep.subr.bf16.mxu1 %v14448_v19  ;;  %p16825_p5 = pnand %p16824_p3, %p18567_p4  ;;  %p16832_p6 = por %p16831_p0, %p16830_p11 }
 0xa17   : > { %p16826_p2 = pneg %p16825_p5 }
 0xa18   : > { %12447 = vmatpush1.bf16.msra.mxu0 %v14445_v27  ;;  %12529 = vmatpush1.bf16.msra.mxu1 %v14447_v28 }
 0xa19   : > { %12448 = vmatprep.subr.bf16.mxu0 %v14462_v23  ;;  %12530 = vmatprep.subr.bf16.mxu1 %v14464_v30  ;;  %p16833_p10 = pnand %p16832_p6, %p16826_p2 }
 0xa1a   : > { %v16556_v35 = vpop.eup %16555 }
 0xa1b   : > { %v16558_v59 = vpop.eup %16557 }
 0xa1c   : > { %v16560_v47 = vpop.eup %16559  ;;  %12449 = vmatpush1.bf16.msra.mxu0 %v14461_v39  ;;  %12531 = vmatpush1.bf16.msra.mxu1 %v14463_v26 }
 0xa1d   : > { %v16562_v51 = vpop.eup %16561  ;;  %v12676_v52 = vcombine.low %v16556_v35, %v16560_v47  ;;  %12450 = vmatprep.subr.bf16.mxu0 %v14478_v34  ;;  %12532 = vmatprep.subr.bf16.mxu1 %v14480_v9 }
 0xa1e   : > { %v12677_v58 = vcombine.low %v16558_v59, %v16562_v51 }
 0xa1f   : > { %v12684_v62 = vrot.slane %v12676_v52, %v18207_v12 }
 0xa20   : > { %12451 = vmatpush1.bf16.msra.mxu0 %v14477_v43  ;;  %v12691_v0 = vrot.slane %v12677_v58, %v18207_v12  ;;  %12533 = vmatpush1.bf16.msra.mxu1 %v14479_v53 }
 0xa21   : > { %12452 = vmatprep.subr.bf16.mxu0 %v14494_v32  ;;  %12534 = vmatprep.subr.bf16.mxu1 %v14496_v41 }
 0xa22   : > { %v12692_v4 = vcombine.low %v12684_v62, %v12691_v0 }
 0xa24   : > { %12453 = vmatpush1.bf16.msra.mxu0 %v14493_v63  ;;  %12732 = vst [vmem:[%s17370_s25 + $0x8] sm:$0xff] %v12692_v4  ;;  %12535 = vmatpush1.bf16.msra.mxu1 %v14495_v1 }
 0xa25   : > { %12454 = vmatprep.subr.bf16.mxu0 %v14510_v3  ;;  %12536 = vmatprep.subr.bf16.mxu1 %v14512_v21 }
 0xa28   : > { %12455 = vmatpush1.bf16.msra.mxu0 %v14509_v5  ;;  %12537 = vmatpush1.bf16.msra.mxu1 %v14511_v25 }
 0xa2b   : > { %12457 = vmatmul.mubr.bf16.vlgmr.msra.gmra.mrb[12].mxu0 %v17923_v42  ;;  %12539 = vmatmul.mubr.bf16.vlgmr.msra.gmra.mrb[12].mxu1 %v17923_v42 }
 0xa7e   : > { %v12294_v14 = vpop.f32.mrb[8].mxu0  ;;  %v12376_v15 = vpop.f32.mrb[8].mxu1 }
 0xa7f   : > { %v14807_v42 = vadd.f32 %v12294_v14, %v9257_v8  ;;  %v12296_v16 = vpop.f32.mrb[9].mxu0  ;;  %v14809_v50 = vadd.f32 %v12376_v15, %v9265_v11  ;;  %v12378_v40 = vpop.f32.mrb[9].mxu1 }
 0xa80   : > { %v14808_v19 = vadd.f32 %v12296_v16, %v9261_v45  ;;  %v12298_v13 = vpop.f32.mrb[10].mxu0  ;;  %v14810_v22 = vadd.f32 %v12378_v40, %v9269_v49  ;;  %v12380_v24 = vpop.f32.mrb[10].mxu1 }
 0xa81   : > { %v14521_v17 = vmul.f32 -1.442695, %v14807_v42  ;;  %v12299_v54 = vpop.f32.mrb[11].mxu0  ;;  %v14523_v27 = vmul.f32 -1.442695, %v14809_v50  ;;  %v12381_v23 = vpop.f32.mrb[11].mxu1 }
 0xa82   : > { %v14522_v28 = vmul.f32 -1.442695, %v14808_v19  ;;  %v14524_v18 = vmul.f32 -1.442695, %v14810_v22 }
 0xa83   : > { %16563 = vpow2.f32 %v14521_v17 }
 0xa84   : > { %16565 = vpow2.f32 %v14523_v27 }
 0xa85   : > { %16567 = vpow2.f32 %v14522_v28 }
 0xa86   : > { %16569 = vpow2.f32 %v14524_v18 }
 0xa8d   : > { %v16564_v20 = vpop.eup %16563 }
 0xa8e   : > { %v16566_v30 = vpop.eup %16565  ;;  %v12603_v31 = vadd.f32 1.0, %v16564_v20 }
 0xa8f   : > { %v16568_v33 = vpop.eup %16567  ;;  %v12605_v2 = vadd.f32 1.0, %v16566_v30 }
 0xa90   : > { %v16570_v36 = vpop.eup %16569  ;;  %16571 = vrcp.f32 %v12603_v31  ;;  %v12604_v39 = vadd.f32 1.0, %v16568_v33 }
 0xa91   : > { %16573 = vrcp.f32 %v12605_v2  ;;  %v12606_v26 = vadd.f32 1.0, %v16570_v36 }
 0xa92   : > { %16575 = vrcp.f32 %v12604_v39 }
 0xa93   : > { %16577 = vrcp.f32 %v12606_v26 }
 0xa9a   : > { %v16572_v34 = vpop.eup %16571 }
 0xa9b   : > { %v16574_v35 = vpop.eup %16573 }
 0xa9c   : > { %v16576_v9 = vpop.eup %16575 }
 0xa9d   : > { %v16578_v37 = vpop.eup %16577  ;;  %v12693_v29 = vcombine.low %v16572_v34, %v16576_v9 }
 0xa9e   : > { %v12694_v59 = vcombine.low %v16574_v35, %v16578_v37 }
 0xa9f   : > { %v12701_v46 = vrot.slane %v12693_v29, %v18207_v12 }
 0xaa0   : > { %v12708_v56 = vrot.slane %v12694_v59, %v18207_v12 }
 0xaa1   : > { %16836 = shalt.err (!%p16833_p10)
}
 0xaa2   : > { %s18568_s19 = sld [smem:[#allocation37_spill]]  ;;  %p18569_p13 = pmov %p18567_p4 }
 0xaa8   : > { %s16837_s30 = scalar_lea.hbm %s18568_s19, 32 }
 0xaa9   : > { %p16838_p12 = scmp.ne.s32.totalorder %s18568_s19, %s16837_s30  ;;  %p16843_p9 = scmp.lt.u32.totalorder %s16837_s30, %s18568_s19 }
 0xaab   : > { %p16839_p1 = pnand %p16838_p12, %p18569_p13 }
 0xaad   : > { %p16840_p7 = pneg %p16839_p1 }
 0xaaf   : > { %p16845_p8 = pnand %p16843_p9, %p16840_p7 }
 0xab1   : > { %16848 = shalt.err (!%p16845_p8)
}
 0xab2   : > { %p18570_p3 = pmov %p18567_p4  ;;  %v12709_v47 = vcombine.low %v12701_v46, %v12708_v56  ;;  %s16983_s28 = smov [#allocation19]  }
 0xab3   : > { %s12772_s26 = sshll.u32 %s16983_s28, 4  ;;  %s12773_s26 = int_to_ptr.vmem [resolvable:$true] %s12772_s26 }
 0xab4   : > { %14877 = dma.vmem_to_hbm [thread:$0]  (%p18570_p3), %s12762_s12, 32, %s18568_s19, [#allocation18]   ;;  %12733 = vst [vmem:[%s17370_s25 + $0x10] sm:$0xff] %v12709_v47 }
 0xab5   : > { %s16849_s5 = scalar_lea.vmem %s12773_s26, 32  ;;  %p18571_p5 = pmov %p18570_p3 }
 0xab6   : > { %p16850_p4 = scmp.ne.s32.totalorder %s12773_s26, %s16849_s5  ;;  %p16856_p0 = scmp.lt.s32.totalorder %s12773_s26, %s12773_s26 }
 0xab7   : > { %p16857_p6 = scmp.lt.s32.totalorder %s16849_s5, %s16849_s5 }
 0xab8   : > { %p16851_p2 = pnand %p16850_p4, %p18571_p5 }
 0xab9   : > { %p16858_p10 = por %p16857_p6, %p16856_p0 }
 0xaba   : > { %p16852_p11 = pneg %p16851_p2 }
 0xabc   : > { %p16859_p12 = pnand %p16858_p10, %p16852_p11 }
 0xabe   : > { %16862 = shalt.err (!%p16859_p12)
}
 0xabf   : > { %s18572_s1 = sld [smem:[#allocation38_spill]]  ;;  %p18573_p1 = pmov %p18570_p3 }
 0xac5   : > { %s16863_s12 = scalar_lea.hbm %s18572_s1, 32 }
 0xac6   : > { %p16864_p13 = scmp.ne.s32.totalorder %s18572_s1, %s16863_s12  ;;  %p16869_p8 = scmp.lt.u32.totalorder %s16863_s12, %s18572_s1 }
 0xac8   : > { %p16865_p7 = pnand %p16864_p13, %p18573_p1 }
 0xaca   : > { %p16866_p9 = pneg %p16865_p7 }
 0xacc   : > { %p16871_p3 = pnand %p16869_p8, %p16866_p9 }
 0xace   : > { %16874 = shalt.err (!%p16871_p3)
}
 0xacf   : > { %p18574_p4 = pmov %p18573_p1  ;;  %v9273_v43 = vrot.slane %v18374_v7, %v9240_v48  ;;  %v9281_v51 = vrot.slane %v18374_v7, %v9248_v6  ;;  %v9277_v52 = vrot.slane %v18374_v7, %v9244_v55  ;;  %v9285_v53 = vrot.slane %v18374_v7, %v9252_v57  ;;  %s14540_s2 = sshll.u32 %s17071_s27, 9 }
 0xad0   : > { %s12750_s11 = sshll.u32 %s17370_s25, 4  ;;  %s18575_s28 = sld [smem:[#allocation36_spill]]  ;;  %s18448_s11 = int_to_ptr.vmem [resolvable:$true] %s12750_s11 }
 0xad1   : > { %14879 = dma.vmem_to_hbm [thread:$0]  (%p18574_p4), %s12773_s26, 32, %s18572_s1, [#allocation18]  }
 0xad2   : > { %s12736_s5 = scalar_lea.sflag [#allocation5], %s17357_s20  ;;  %s16875_s10 = scalar_lea.vmem %s18448_s11, 512 }
 0xad3   : > { %p16876_p5 = scmp.ne.s32.totalorder %s18448_s11, %s16875_s10  ;;  %p18576_p2 = scmp.ne.s32.totalorder %s18545_s17, 0 }
 0xad4   : > { %s16984_s3 = smov [#allocation16]  }
 0xad5   : > { %p16877_p11 = pnand %p16876_p5, %p18576_p2  ;;  %s16879_s12 = sshll.u32 %s16984_s3, 4  ;;  %s16880_s12 = int_to_ptr.vmem [resolvable:$false] %s16879_s12 }
 0xad6   : > { %s18446_s26 = scalar_lea.hbm %s18575_s28, %s14540_s2  ;;  %s16881_s15 = scalar_lea.vmem %s16880_s12, 1024 }
 0xad7   : > { %p16878_p0 = pneg %p16877_p11  ;;  %p16882_p6 = scmp.lt.s32.totalorder %s18448_s11, %s16880_s12 }
 0xad8   : > { %p16883_p10 = scmp.lt.s32.totalorder %s16881_s15, %s16875_s10 }
 0xada   : > { %p16884_p12 = por %p16883_p10, %p16882_p6 }
 0xadc   : > { %p16885_p13 = pnand %p16884_p12, %p16878_p0 }
 0xafe   : > { %v12458_v32 = vpop.f32.mrb[12].mxu0  ;;  %v12540_v41 = vpop.f32.mrb[12].mxu1 }
 0xaff   : > { %v14811_v58 = vadd.f32 %v12458_v32, %v9273_v43  ;;  %v12460_v60 = vpop.f32.mrb[13].mxu0  ;;  %v14813_v44 = vadd.f32 %v12540_v41, %v9281_v51  ;;  %v12542_v61 = vpop.f32.mrb[13].mxu1 }
 0xb00   : > { %v14812_v38 = vadd.f32 %v12460_v60, %v9277_v52  ;;  %v12462_v48 = vpop.f32.mrb[14].mxu0  ;;  %v14814_v63 = vadd.f32 %v12542_v61, %v9285_v53  ;;  %v12544_v0 = vpop.f32.mrb[14].mxu1 }
 0xb01   : > { %v14525_v62 = vmul.f32 -1.442695, %v14811_v58  ;;  %v12463_v6 = vpop.f32.mrb[15].mxu0  ;;  %v14527_v1 = vmul.f32 -1.442695, %v14813_v44  ;;  %v12545_v21 = vpop.f32.mrb[15].mxu1 }
 0xb02   : > { %v14526_v3 = vmul.f32 -1.442695, %v14812_v38  ;;  %v14528_v55 = vmul.f32 -1.442695, %v14814_v63 }
 0xb03   : > { %16579 = vpow2.f32 %v14525_v62 }
 0xb04   : > { %16581 = vpow2.f32 %v14527_v1 }
 0xb05   : > { %16583 = vpow2.f32 %v14526_v3 }
 0xb06   : > { %16585 = vpow2.f32 %v14528_v55 }
 0xb0d   : > { %v16580_v10 = vpop.eup %16579 }
 0xb0e   : > { %v16582_v57 = vpop.eup %16581  ;;  %v12607_v4 = vadd.f32 1.0, %v16580_v10 }
 0xb0f   : > { %v16584_v5 = vpop.eup %16583  ;;  %v12609_v25 = vadd.f32 1.0, %v16582_v57 }
 0xb10   : > { %v16586_v7 = vpop.eup %16585  ;;  %16587 = vrcp.f32 %v12607_v4  ;;  %v12608_v8 = vadd.f32 1.0, %v16584_v5 }
 0xb11   : > { %16589 = vrcp.f32 %v12609_v25  ;;  %v12610_v11 = vadd.f32 1.0, %v16586_v7 }
 0xb12   : > { %16591 = vrcp.f32 %v12608_v8 }
 0xb13   : > { %16593 = vrcp.f32 %v12610_v11 }
 0xb1a   : > { %v16588_v45 = vpop.eup %16587 }
 0xb1b   : > { %v16590_v49 = vpop.eup %16589 }
 0xb1c   : > { %v16592_v14 = vpop.eup %16591 }
 0xb1d   : > { %v16594_v42 = vpop.eup %16593  ;;  %v12710_v15 = vcombine.low %v16588_v45, %v16592_v14 }
 0xb1e   : > { %v12711_v16 = vcombine.low %v16590_v49, %v16594_v42 }
 0xb1f   : > { %v12718_v50 = vrot.slane %v12710_v15, %v18207_v12 }
 0xb20   : > { %v12725_v19 = vrot.slane %v12711_v16, %v18207_v12 }
 0xb22   : > { %v12726_v40 = vcombine.low %v12718_v50, %v12725_v19 }
 0xb24   : > { %12734 = vst [vmem:[%s17370_s25 + $0x18] sm:$0xff] %v12726_v40 }
 0xb25   : > { %16888 = shalt.err (!%p16885_p13)
}
 0xb26   : > { %s16889_s20 = scalar_lea.hbm %s18446_s26, 512  ;;  %s16893_s13 = scalar_lea.hbm %s18575_s28, 1024 }
 0xb27   : > { %p16890_p1 = scmp.ne.s32.totalorder %s18446_s26, %s16889_s20  ;;  %p16894_p8 = scmp.lt.u32.totalorder %s18446_s26, %s18575_s28 }
 0xb28   : > { %p16895_p3 = scmp.lt.u32.totalorder %s16893_s13, %s16889_s20  ;;  %p16897_p5 = scmp.lt.u32.totalorder %s16889_s20, %s18446_s26 }
 0xb29   : > { %p16891_p7 = pnand %p16890_p1, %p18576_p2 }
 0xb2a   : > { %p16896_p4 = por %p16895_p3, %p16894_p8 }
 0xb2b   : > { %p16892_p9 = pneg %p16891_p7 }
 0xb2c   : > { %p16898_p11 = por %p16897_p5, %p16896_p4 }
 0xb2e   : > { %p16899_p0 = pnand %p16898_p11, %p16892_p9 }
 0xb30   : > { %16902 = shalt.err (!%p16899_p0)
}
 0xb31   : > { %14875 = dma.vmem_to_hbm [thread:$0]  (%p18576_p2), %s18448_s11, 512, %s18446_s26, %s12736_s5  }
 0xb32   : > { %p18577_p6 = scmp.eq.s32.totalorder %s17071_s27, 1 }
 0xb34   : > { %16940 = dma.done.wait (%p18577_p6), [#allocation18], 64   ;;  %p18578_p10 = pmov %p18577_p6 }
 0xb36   : > { %16942 = vsyncadd (%p18578_p10), [#allocation18], 4294967232 }
 0xb37 PF: > { %s18579_s21 = sld [smem:[#allocation27_spill]]  ;;  %s18580_s2 = sld [smem:[#allocation30_spill]] }
 0xb38   : > { %p18582_p13 = scmp.ge.s32.totalorder %s16961_s24, 2 }
 0xb3d   : > { %s12792_s16 = sand.u32 1, %s18579_s21   ;;  %p18581_p12 = scmp.ne.s32.totalorder %s18580_s2, 0 }
 0xb3e   : > { %s12793_s8 = scalar_lea.sflag [#allocation5], %s12792_s16 }
 0xb3f   : > { %p14912_p1 = pnand %p18582_p13, %p18581_p12 }
 0xb41   : > { %16944 = dma.done.wait (!%p14912_p1), %s12793_s8, 512  }
 0xb42   : > { %16946 = vsyncadd (!%p14912_p1), %s12793_s8, 4294966784  ;;  %s18583_s24 = sld [smem:[#allocation28_spill]]  ;;  %s18584_s17 = sld [smem:[#allocation29_spill]] }
 0xb43   : > { %s18585_s21 = smov %s16953_s22  ;;  %s18586_s22 = smov %s16957_s23 }
 0xb48   : > { %p28_p2 = scmp.ge.s32.totalorder %s18583_s24, 4   ;;  %s18587_s23 = smov %s18584_s17 }
 0xb4a   :  { %30 = sbr.rel (!%p28_p2) target bundleno = 17 (0x11), region = 159 }
 0xb51   :  { %12798 = vsyncpa [#allocation4], 1 }
 0xb52   :  { %12800 = vsyncpa [#allocation4 + $0x1], 1 }
 0xb53   :  { %12801 = vsyncpa [#allocation7], 1 }
 0xb54   :  { %12802 = vsyncpa [#allocation10], 1 }
 0xb55   :  { %12803 = vsyncpa [#allocation13], 1 }
 0xb56   :  { %12804 = vsyncpa [#allocation5], 1 }
 0xb57   :  { %12806 = vsyncpa [#allocation5 + $0x1], 1 }
 0xb58   :  { %12807 = vsyncpa [#allocation18], 1 }

</bundles_post_ra>
